<compile_context>
chip_gen: v7x
topology: tpu7x:2x2x1
jax: 0.10.0
libtpu: 0.0.40
codegen_flags: <defaults>
</compile_context>

<pallas_src>
import jax
import jax.numpy as jnp
from jax.experimental import pallas as pl
from jax.experimental.pallas import tpu as pltpu  # noqa: F401  (TPU backend)


def _conv3x3_s2_elu(a, w_taps, bias):
    """3x3 / stride-2 / pad-1 conv + bias + ELU on a VMEM-resident value.

    a:      (H, W, N, Cin)  activation (H, W even)
    w_taps: (9, Cin, Cout)  tap-major weights, tap index = kh*3 + kw
    bias:   (1, Cout)
    returns (OH, OW, N, Cout) with OH = H//2, OW = W//2
    """
    h, w, n, c = a.shape
    oh, ow = h // 2, w // 2
    cout = w_taps.shape[-1]
    m = oh * ow * n

    # Zero-pad the two spatial (leading) dims by 1: pure slab concatenation.
    zrow = jnp.zeros((1, w, n, c), jnp.float32)
    ap = jnp.concatenate([zrow, a, zrow], axis=0)            # (H+2, W, N, C)
    zcol = jnp.zeros((h + 2, 1, n, c), jnp.float32)
    ap = jnp.concatenate([zcol, ap, zcol], axis=1)           # (H+2, W+2, N, C)

    # Parity-split the (leading) H axis so each stride-2 row set becomes a
    # contiguous slice: ap[kh::2][:OH] == aph[kh//2 : kh//2 + OH, kh % 2].
    aph = ap.reshape(oh + 1, 2, w + 2, n, c)

    acc = jnp.zeros((m, cout), jnp.float32)
    for kh in range(3):
        rows = aph[kh // 2: kh // 2 + oh, kh % 2]            # (OH, W+2, N, C)
        roww = rows.reshape(oh, ow + 1, 2, n, c)             # parity-split W
        for kw in range(3):
            tap = roww[:, kw // 2: kw // 2 + ow, kw % 2]     # (OH, OW, N, C)
            acc = acc + jnp.dot(tap.reshape(m, c), w_taps[kh * 3 + kw],
                                preferred_element_type=jnp.float32)

    acc = acc + bias
    # ELU(alpha=1); exp only evaluated on the non-positive side.
    out = jnp.where(acc > 0.0, acc, jnp.exp(jnp.minimum(acc, 0.0)) - 1.0)
    return out.reshape(oh, ow, n, cout)


def _phi_fused_kernel(x_ref, w1_ref, w2_ref, w3_ref, w4_ref, b_ref, o_ref):
    # x_ref: (H, W, N, 3); b_ref: (4, 1, 32); o_ref: (N, 32)
    x = x_ref[...]
    # F.normalize(x): per-(n, h, w) L2 normalization over channels, eps=1e-12.
    ssq = jnp.sum(x * x, axis=-1, keepdims=True)
    x = x / jnp.maximum(jnp.sqrt(ssq), 1e-12)

    y = _conv3x3_s2_elu(x, w1_ref[...], b_ref[0])            # (8, 8, N, 32)
    y = _conv3x3_s2_elu(y, w2_ref[...], b_ref[1])            # (4, 4, N, 32)
    y = _conv3x3_s2_elu(y, w3_ref[...], b_ref[2])            # (2, 2, N, 32)
    y = _conv3x3_s2_elu(y, w4_ref[...], b_ref[3])            # (1, 1, N, 32)

    # PyTorch y.flatten(start_dim=1) on the (N, 32, 1, 1) result -> (N, 32).
    o_ref[...] = y.reshape(y.shape[2], y.shape[3])


def init_phi_params(key):
    """Deterministic init matching nn.Conv2d shapes: 4 layers of (32, cin, 3, 3)."""
    cins = [3, 32, 32, 32]
    cout = 32
    w_taps, biases = [], []
    for i, cin in enumerate(cins):
        kw_key, kb_key = jax.random.split(jax.random.fold_in(key, i))
        bound = 1.0 / float((cin * 9) ** 0.5)
        w = jax.random.uniform(kw_key, (cout, cin, 3, 3), jnp.float32,
                               minval=-bound, maxval=bound)
        b = jax.random.uniform(kb_key, (cout,), jnp.float32,
                               minval=-bound, maxval=bound)
        # (Cout, Cin, kh, kw) -> (kh, kw, Cin, Cout) -> (9, Cin, Cout);
        # tap index kh*3 + kw matches the in-kernel tap loop order.
        w_taps.append(jnp.transpose(w, (2, 3, 1, 0)).reshape(9, cin, cout))
        biases.append(b)
    b_all = jnp.stack(biases)[:, None, :]                    # (4, 1, 32)
    return (*w_taps, b_all)


@jax.jit
def phi_forward(params, x_nchw):
    w1, w2, w3, w4, b_all = params
    n = x_nchw.shape[0]
    cout = b_all.shape[-1]
    # (N, C, H, W) -> (H, W, N, C): spatial dims become leading (untiled) dims
    # inside the kernel.  This transpose is the only out-of-kernel glue op.
    x_hwnc = jnp.transpose(x_nchw, (2, 3, 0, 1))
    return pl.pallas_call(
        _phi_fused_kernel,
        out_shape=jax.ShapeDtypeStruct((n, cout), jnp.float32),
    )(x_hwnc, w1, w2, w3, w4, b_all)


if __name__ == "__main__":
    key = jax.random.PRNGKey(0)
    kx, kp = jax.random.split(key)
    # 16 -> 8 -> 4 -> 2 -> 1 spatially, 32 channels => (2, 32) features.
    x = jax.random.normal(kx, (2, 3, 16, 16), jnp.float32)
    params = init_phi_params(kp)
    out = phi_forward(params, x)
    jax.block_until_ready(out)
    assert out.shape == (2, 32), out.shape
    assert bool(jnp.all(jnp.isfinite(out)))
    print("KERNEL_OK")
</pallas_src>

<mosaic_0001>
module attributes {stable_mosaic.version = 11 : i64} {
  func.func @_phi_fused_kernel(%arg0: memref<16x16x2x3xf32, #tpu.memory_space<vmem>>, %arg1: memref<9x3x32xf32, #tpu.memory_space<vmem>>, %arg2: memref<9x32x32xf32, #tpu.memory_space<vmem>>, %arg3: memref<9x32x32xf32, #tpu.memory_space<vmem>>, %arg4: memref<9x32x32xf32, #tpu.memory_space<vmem>>, %arg5: memref<4x1x32xf32, #tpu.memory_space<vmem>>, %arg6: memref<2x32xf32, #tpu.memory_space<vmem>>) attributes {dimension_semantics = [], scalar_prefetch = 0 : i64, scratch_operands = 0 : i64, tpu.core_type = #tpu.core_type<tc>} {
    %c0 = arith.constant 0 : index
    %c0_0 = arith.constant 0 : index
    %c0_1 = arith.constant 0 : index
    %c0_2 = arith.constant 0 : index
    %0 = vector.load %arg0[%c0, %c0_0, %c0_1, %c0_2] : memref<16x16x2x3xf32, #tpu.memory_space<vmem>>, vector<16x16x2x3xf32>
    %1 = arith.mulf %0, %0 : vector<16x16x2x3xf32>
    %cst = arith.constant dense<0.000000e+00> : vector<16x16x2xf32>
    %2 = vector.multi_reduction <add>, %1, %cst [3] : vector<16x16x2x3xf32> to vector<16x16x2xf32>
    %3 = vector.shape_cast %2 : vector<16x16x2xf32> to vector<16x16x2x1xf32>
    %4 = math.sqrt %3 : vector<16x16x2x1xf32>
    %cst_3 = arith.constant 9.99999996E-13 : f32
    %5 = vector.broadcast %cst_3 : f32 to vector<16x16x2x1xf32>
    %6 = arith.maximumf %4, %5 : vector<16x16x2x1xf32>
    %7 = vector.broadcast %6 : vector<16x16x2x1xf32> to vector<16x16x2x3xf32>
    %8 = arith.divf %0, %7 : vector<16x16x2x3xf32>
    %c0_4 = arith.constant 0 : index
    %c0_5 = arith.constant 0 : index
    %c0_6 = arith.constant 0 : index
    %9 = vector.load %arg1[%c0_4, %c0_5, %c0_6] : memref<9x3x32xf32, #tpu.memory_space<vmem>>, vector<9x3x32xf32>
    %c0_7 = arith.constant 0 : index
    %c0_8 = arith.constant 0 : index
    %c0_9 = arith.constant 0 : index
    %10 = vector.load %arg5[%c0_7, %c0_8, %c0_9] : memref<4x1x32xf32, #tpu.memory_space<vmem>>, vector<1x1x32xf32>
    %11 = vector.shape_cast %10 : vector<1x1x32xf32> to vector<1x32xf32>
    %cst_10 = arith.constant 0.000000e+00 : f32
    %12 = vector.broadcast %cst_10 : f32 to vector<1x16x2x3xf32>
    %13 = tpu.concatenate %12, %8, %12 in 0 : vector<1x16x2x3xf32>, vector<16x16x2x3xf32>, vector<1x16x2x3xf32> -> vector<18x16x2x3xf32>
    %cst_11 = arith.constant 0.000000e+00 : f32
    %14 = vector.broadcast %cst_11 : f32 to vector<18x1x2x3xf32>
    %15 = tpu.concatenate %14, %13, %14 in 1 : vector<18x1x2x3xf32>, vector<18x16x2x3xf32>, vector<18x1x2x3xf32> -> vector<18x18x2x3xf32>
    %16 = vector.shape_cast %15 : vector<18x18x2x3xf32> to vector<9x2x18x2x3xf32>
    %cst_12 = arith.constant 0.000000e+00 : f32
    %17 = vector.broadcast %cst_12 : f32 to vector<128x32xf32>
    %18 = vector.extract_strided_slice %16 {offsets = [0, 0, 0, 0, 0], sizes = [8, 1, 18, 2, 3], strides = [1, 1, 1, 1, 1]} : vector<9x2x18x2x3xf32> to vector<8x1x18x2x3xf32>
    %19 = vector.shape_cast %18 : vector<8x1x18x2x3xf32> to vector<8x18x2x3xf32>
    %20 = vector.shape_cast %19 : vector<8x18x2x3xf32> to vector<8x9x2x2x3xf32>
    %21 = vector.extract_strided_slice %20 {offsets = [0, 0, 0, 0, 0], sizes = [8, 8, 1, 2, 3], strides = [1, 1, 1, 1, 1]} : vector<8x9x2x2x3xf32> to vector<8x8x1x2x3xf32>
    %22 = vector.shape_cast %21 : vector<8x8x1x2x3xf32> to vector<8x8x2x3xf32>
    %23 = vector.shape_cast %22 : vector<8x8x2x3xf32> to vector<128x3xf32>
    %24 = vector.extract_strided_slice %9 {offsets = [0, 0, 0], sizes = [1, 3, 32], strides = [1, 1, 1]} : vector<9x3x32xf32> to vector<1x3x32xf32>
    %25 = vector.shape_cast %24 : vector<1x3x32xf32> to vector<3x32xf32>
    %cst_13 = arith.constant dense<0.000000e+00> : vector<128x32xf32>
    %26 = tpu.matmul %23, %25, %cst_13 {dimension_numbers = #tpu.dot_dimension_numbers<[1], [0], [0], [1], [0, 0, 1, 1], [], []>} : vector<128x3xf32>, vector<3x32xf32>, vector<128x32xf32> -> vector<128x32xf32>
    %27 = arith.addf %17, %26 : vector<128x32xf32>
    %28 = vector.extract_strided_slice %20 {offsets = [0, 0, 1, 0, 0], sizes = [8, 8, 1, 2, 3], strides = [1, 1, 1, 1, 1]} : vector<8x9x2x2x3xf32> to vector<8x8x1x2x3xf32>
    %29 = vector.shape_cast %28 : vector<8x8x1x2x3xf32> to vector<8x8x2x3xf32>
    %30 = vector.shape_cast %29 : vector<8x8x2x3xf32> to vector<128x3xf32>
    %31 = vector.extract_strided_slice %9 {offsets = [1, 0, 0], sizes = [1, 3, 32], strides = [1, 1, 1]} : vector<9x3x32xf32> to vector<1x3x32xf32>
    %32 = vector.shape_cast %31 : vector<1x3x32xf32> to vector<3x32xf32>
    %cst_14 = arith.constant dense<0.000000e+00> : vector<128x32xf32>
    %33 = tpu.matmul %30, %32, %cst_14 {dimension_numbers = #tpu.dot_dimension_numbers<[1], [0], [0], [1], [0, 0, 1, 1], [], []>} : vector<128x3xf32>, vector<3x32xf32>, vector<128x32xf32> -> vector<128x32xf32>
    %34 = arith.addf %27, %33 : vector<128x32xf32>
    %35 = vector.extract_strided_slice %20 {offsets = [0, 1, 0, 0, 0], sizes = [8, 8, 1, 2, 3], strides = [1, 1, 1, 1, 1]} : vector<8x9x2x2x3xf32> to vector<8x8x1x2x3xf32>
    %36 = vector.shape_cast %35 : vector<8x8x1x2x3xf32> to vector<8x8x2x3xf32>
    %37 = vector.shape_cast %36 : vector<8x8x2x3xf32> to vector<128x3xf32>
    %38 = vector.extract_strided_slice %9 {offsets = [2, 0, 0], sizes = [1, 3, 32], strides = [1, 1, 1]} : vector<9x3x32xf32> to vector<1x3x32xf32>
    %39 = vector.shape_cast %38 : vector<1x3x32xf32> to vector<3x32xf32>
    %cst_15 = arith.constant dense<0.000000e+00> : vector<128x32xf32>
    %40 = tpu.matmul %37, %39, %cst_15 {dimension_numbers = #tpu.dot_dimension_numbers<[1], [0], [0], [1], [0, 0, 1, 1], [], []>} : vector<128x3xf32>, vector<3x32xf32>, vector<128x32xf32> -> vector<128x32xf32>
    %41 = arith.addf %34, %40 : vector<128x32xf32>
    %42 = vector.extract_strided_slice %16 {offsets = [0, 1, 0, 0, 0], sizes = [8, 1, 18, 2, 3], strides = [1, 1, 1, 1, 1]} : vector<9x2x18x2x3xf32> to vector<8x1x18x2x3xf32>
    %43 = vector.shape_cast %42 : vector<8x1x18x2x3xf32> to vector<8x18x2x3xf32>
    %44 = vector.shape_cast %43 : vector<8x18x2x3xf32> to vector<8x9x2x2x3xf32>
    %45 = vector.extract_strided_slice %44 {offsets = [0, 0, 0, 0, 0], sizes = [8, 8, 1, 2, 3], strides = [1, 1, 1, 1, 1]} : vector<8x9x2x2x3xf32> to vector<8x8x1x2x3xf32>
    %46 = vector.shape_cast %45 : vector<8x8x1x2x3xf32> to vector<8x8x2x3xf32>
    %47 = vector.shape_cast %46 : vector<8x8x2x3xf32> to vector<128x3xf32>
    %48 = vector.extract_strided_slice %9 {offsets = [3, 0, 0], sizes = [1, 3, 32], strides = [1, 1, 1]} : vector<9x3x32xf32> to vector<1x3x32xf32>
    %49 = vector.shape_cast %48 : vector<1x3x32xf32> to vector<3x32xf32>
    %cst_16 = arith.constant dense<0.000000e+00> : vector<128x32xf32>
    %50 = tpu.matmul %47, %49, %cst_16 {dimension_numbers = #tpu.dot_dimension_numbers<[1], [0], [0], [1], [0, 0, 1, 1], [], []>} : vector<128x3xf32>, vector<3x32xf32>, vector<128x32xf32> -> vector<128x32xf32>
    %51 = arith.addf %41, %50 : vector<128x32xf32>
    %52 = vector.extract_strided_slice %44 {offsets = [0, 0, 1, 0, 0], sizes = [8, 8, 1, 2, 3], strides = [1, 1, 1, 1, 1]} : vector<8x9x2x2x3xf32> to vector<8x8x1x2x3xf32>
    %53 = vector.shape_cast %52 : vector<8x8x1x2x3xf32> to vector<8x8x2x3xf32>
    %54 = vector.shape_cast %53 : vector<8x8x2x3xf32> to vector<128x3xf32>
    %55 = vector.extract_strided_slice %9 {offsets = [4, 0, 0], sizes = [1, 3, 32], strides = [1, 1, 1]} : vector<9x3x32xf32> to vector<1x3x32xf32>
    %56 = vector.shape_cast %55 : vector<1x3x32xf32> to vector<3x32xf32>
    %cst_17 = arith.constant dense<0.000000e+00> : vector<128x32xf32>
    %57 = tpu.matmul %54, %56, %cst_17 {dimension_numbers = #tpu.dot_dimension_numbers<[1], [0], [0], [1], [0, 0, 1, 1], [], []>} : vector<128x3xf32>, vector<3x32xf32>, vector<128x32xf32> -> vector<128x32xf32>
    %58 = arith.addf %51, %57 : vector<128x32xf32>
    %59 = vector.extract_strided_slice %44 {offsets = [0, 1, 0, 0, 0], sizes = [8, 8, 1, 2, 3], strides = [1, 1, 1, 1, 1]} : vector<8x9x2x2x3xf32> to vector<8x8x1x2x3xf32>
    %60 = vector.shape_cast %59 : vector<8x8x1x2x3xf32> to vector<8x8x2x3xf32>
    %61 = vector.shape_cast %60 : vector<8x8x2x3xf32> to vector<128x3xf32>
    %62 = vector.extract_strided_slice %9 {offsets = [5, 0, 0], sizes = [1, 3, 32], strides = [1, 1, 1]} : vector<9x3x32xf32> to vector<1x3x32xf32>
    %63 = vector.shape_cast %62 : vector<1x3x32xf32> to vector<3x32xf32>
    %cst_18 = arith.constant dense<0.000000e+00> : vector<128x32xf32>
    %64 = tpu.matmul %61, %63, %cst_18 {dimension_numbers = #tpu.dot_dimension_numbers<[1], [0], [0], [1], [0, 0, 1, 1], [], []>} : vector<128x3xf32>, vector<3x32xf32>, vector<128x32xf32> -> vector<128x32xf32>
    %65 = arith.addf %58, %64 : vector<128x32xf32>
    %66 = vector.extract_strided_slice %16 {offsets = [1, 0, 0, 0, 0], sizes = [8, 1, 18, 2, 3], strides = [1, 1, 1, 1, 1]} : vector<9x2x18x2x3xf32> to vector<8x1x18x2x3xf32>
    %67 = vector.shape_cast %66 : vector<8x1x18x2x3xf32> to vector<8x18x2x3xf32>
    %68 = vector.shape_cast %67 : vector<8x18x2x3xf32> to vector<8x9x2x2x3xf32>
    %69 = vector.extract_strided_slice %68 {offsets = [0, 0, 0, 0, 0], sizes = [8, 8, 1, 2, 3], strides = [1, 1, 1, 1, 1]} : vector<8x9x2x2x3xf32> to vector<8x8x1x2x3xf32>
    %70 = vector.shape_cast %69 : vector<8x8x1x2x3xf32> to vector<8x8x2x3xf32>
    %71 = vector.shape_cast %70 : vector<8x8x2x3xf32> to vector<128x3xf32>
    %72 = vector.extract_strided_slice %9 {offsets = [6, 0, 0], sizes = [1, 3, 32], strides = [1, 1, 1]} : vector<9x3x32xf32> to vector<1x3x32xf32>
    %73 = vector.shape_cast %72 : vector<1x3x32xf32> to vector<3x32xf32>
    %cst_19 = arith.constant dense<0.000000e+00> : vector<128x32xf32>
    %74 = tpu.matmul %71, %73, %cst_19 {dimension_numbers = #tpu.dot_dimension_numbers<[1], [0], [0], [1], [0, 0, 1, 1], [], []>} : vector<128x3xf32>, vector<3x32xf32>, vector<128x32xf32> -> vector<128x32xf32>
    %75 = arith.addf %65, %74 : vector<128x32xf32>
    %76 = vector.extract_strided_slice %68 {offsets = [0, 0, 1, 0, 0], sizes = [8, 8, 1, 2, 3], strides = [1, 1, 1, 1, 1]} : vector<8x9x2x2x3xf32> to vector<8x8x1x2x3xf32>
    %77 = vector.shape_cast %76 : vector<8x8x1x2x3xf32> to vector<8x8x2x3xf32>
    %78 = vector.shape_cast %77 : vector<8x8x2x3xf32> to vector<128x3xf32>
    %79 = vector.extract_strided_slice %9 {offsets = [7, 0, 0], sizes = [1, 3, 32], strides = [1, 1, 1]} : vector<9x3x32xf32> to vector<1x3x32xf32>
    %80 = vector.shape_cast %79 : vector<1x3x32xf32> to vector<3x32xf32>
    %cst_20 = arith.constant dense<0.000000e+00> : vector<128x32xf32>
    %81 = tpu.matmul %78, %80, %cst_20 {dimension_numbers = #tpu.dot_dimension_numbers<[1], [0], [0], [1], [0, 0, 1, 1], [], []>} : vector<128x3xf32>, vector<3x32xf32>, vector<128x32xf32> -> vector<128x32xf32>
    %82 = arith.addf %75, %81 : vector<128x32xf32>
    %83 = vector.extract_strided_slice %68 {offsets = [0, 1, 0, 0, 0], sizes = [8, 8, 1, 2, 3], strides = [1, 1, 1, 1, 1]} : vector<8x9x2x2x3xf32> to vector<8x8x1x2x3xf32>
    %84 = vector.shape_cast %83 : vector<8x8x1x2x3xf32> to vector<8x8x2x3xf32>
    %85 = vector.shape_cast %84 : vector<8x8x2x3xf32> to vector<128x3xf32>
    %86 = vector.extract_strided_slice %9 {offsets = [8, 0, 0], sizes = [1, 3, 32], strides = [1, 1, 1]} : vector<9x3x32xf32> to vector<1x3x32xf32>
    %87 = vector.shape_cast %86 : vector<1x3x32xf32> to vector<3x32xf32>
    %cst_21 = arith.constant dense<0.000000e+00> : vector<128x32xf32>
    %88 = tpu.matmul %85, %87, %cst_21 {dimension_numbers = #tpu.dot_dimension_numbers<[1], [0], [0], [1], [0, 0, 1, 1], [], []>} : vector<128x3xf32>, vector<3x32xf32>, vector<128x32xf32> -> vector<128x32xf32>
    %89 = arith.addf %82, %88 : vector<128x32xf32>
    %90 = vector.broadcast %11 : vector<1x32xf32> to vector<128x32xf32>
    %91 = arith.addf %89, %90 : vector<128x32xf32>
    %cst_22 = arith.constant 0.000000e+00 : f32
    %92 = vector.broadcast %cst_22 : f32 to vector<128x32xf32>
    %93 = arith.cmpf ogt, %91, %92 : vector<128x32xf32>
    %cst_23 = arith.constant 0.000000e+00 : f32
    %94 = vector.broadcast %cst_23 : f32 to vector<128x32xf32>
    %95 = arith.minimumf %91, %94 : vector<128x32xf32>
    %96 = math.exp %95 : vector<128x32xf32>
    %cst_24 = arith.constant 1.000000e+00 : f32
    %97 = vector.broadcast %cst_24 : f32 to vector<128x32xf32>
    %98 = arith.subf %96, %97 : vector<128x32xf32>
    %99 = arith.select %93, %91, %98 : vector<128x32xi1>, vector<128x32xf32>
    %100 = vector.shape_cast %99 : vector<128x32xf32> to vector<8x8x2x32xf32>
    %c0_25 = arith.constant 0 : index
    %c0_26 = arith.constant 0 : index
    %c0_27 = arith.constant 0 : index
    %101 = vector.load %arg2[%c0_25, %c0_26, %c0_27] : memref<9x32x32xf32, #tpu.memory_space<vmem>>, vector<9x32x32xf32>
    %c1 = arith.constant 1 : index
    %c0_28 = arith.constant 0 : index
    %c0_29 = arith.constant 0 : index
    %102 = vector.load %arg5[%c1, %c0_28, %c0_29] : memref<4x1x32xf32, #tpu.memory_space<vmem>>, vector<1x1x32xf32>
    %103 = vector.shape_cast %102 : vector<1x1x32xf32> to vector<1x32xf32>
    %cst_30 = arith.constant 0.000000e+00 : f32
    %104 = vector.broadcast %cst_30 : f32 to vector<1x8x2x32xf32>
    %105 = tpu.concatenate %104, %100, %104 in 0 : vector<1x8x2x32xf32>, vector<8x8x2x32xf32>, vector<1x8x2x32xf32> -> vector<10x8x2x32xf32>
    %cst_31 = arith.constant 0.000000e+00 : f32
    %106 = vector.broadcast %cst_31 : f32 to vector<10x1x2x32xf32>
    %107 = tpu.concatenate %106, %105, %106 in 1 : vector<10x1x2x32xf32>, vector<10x8x2x32xf32>, vector<10x1x2x32xf32> -> vector<10x10x2x32xf32>
    %108 = vector.shape_cast %107 : vector<10x10x2x32xf32> to vector<5x2x10x2x32xf32>
    %cst_32 = arith.constant 0.000000e+00 : f32
    %109 = vector.broadcast %cst_32 : f32 to vector<32x32xf32>
    %110 = vector.extract_strided_slice %108 {offsets = [0, 0, 0, 0, 0], sizes = [4, 1, 10, 2, 32], strides = [1, 1, 1, 1, 1]} : vector<5x2x10x2x32xf32> to vector<4x1x10x2x32xf32>
    %111 = vector.shape_cast %110 : vector<4x1x10x2x32xf32> to vector<4x10x2x32xf32>
    %112 = vector.shape_cast %111 : vector<4x10x2x32xf32> to vector<4x5x2x2x32xf32>
    %113 = vector.extract_strided_slice %112 {offsets = [0, 0, 0, 0, 0], sizes = [4, 4, 1, 2, 32], strides = [1, 1, 1, 1, 1]} : vector<4x5x2x2x32xf32> to vector<4x4x1x2x32xf32>
    %114 = vector.shape_cast %113 : vector<4x4x1x2x32xf32> to vector<4x4x2x32xf32>
    %115 = vector.shape_cast %114 : vector<4x4x2x32xf32> to vector<32x32xf32>
    %116 = vector.extract_strided_slice %101 {offsets = [0, 0, 0], sizes = [1, 32, 32], strides = [1, 1, 1]} : vector<9x32x32xf32> to vector<1x32x32xf32>
    %117 = vector.shape_cast %116 : vector<1x32x32xf32> to vector<32x32xf32>
    %cst_33 = arith.constant dense<0.000000e+00> : vector<32x32xf32>
    %118 = tpu.matmul %115, %117, %cst_33 {dimension_numbers = #tpu.dot_dimension_numbers<[1], [0], [0], [1], [0, 0, 1, 1], [], []>} : vector<32x32xf32>, vector<32x32xf32>, vector<32x32xf32> -> vector<32x32xf32>
    %119 = arith.addf %109, %118 : vector<32x32xf32>
    %120 = vector.extract_strided_slice %112 {offsets = [0, 0, 1, 0, 0], sizes = [4, 4, 1, 2, 32], strides = [1, 1, 1, 1, 1]} : vector<4x5x2x2x32xf32> to vector<4x4x1x2x32xf32>
    %121 = vector.shape_cast %120 : vector<4x4x1x2x32xf32> to vector<4x4x2x32xf32>
    %122 = vector.shape_cast %121 : vector<4x4x2x32xf32> to vector<32x32xf32>
    %123 = vector.extract_strided_slice %101 {offsets = [1, 0, 0], sizes = [1, 32, 32], strides = [1, 1, 1]} : vector<9x32x32xf32> to vector<1x32x32xf32>
    %124 = vector.shape_cast %123 : vector<1x32x32xf32> to vector<32x32xf32>
    %cst_34 = arith.constant dense<0.000000e+00> : vector<32x32xf32>
    %125 = tpu.matmul %122, %124, %cst_34 {dimension_numbers = #tpu.dot_dimension_numbers<[1], [0], [0], [1], [0, 0, 1, 1], [], []>} : vector<32x32xf32>, vector<32x32xf32>, vector<32x32xf32> -> vector<32x32xf32>
    %126 = arith.addf %119, %125 : vector<32x32xf32>
    %127 = vector.extract_strided_slice %112 {offsets = [0, 1, 0, 0, 0], sizes = [4, 4, 1, 2, 32], strides = [1, 1, 1, 1, 1]} : vector<4x5x2x2x32xf32> to vector<4x4x1x2x32xf32>
    %128 = vector.shape_cast %127 : vector<4x4x1x2x32xf32> to vector<4x4x2x32xf32>
    %129 = vector.shape_cast %128 : vector<4x4x2x32xf32> to vector<32x32xf32>
    %130 = vector.extract_strided_slice %101 {offsets = [2, 0, 0], sizes = [1, 32, 32], strides = [1, 1, 1]} : vector<9x32x32xf32> to vector<1x32x32xf32>
    %131 = vector.shape_cast %130 : vector<1x32x32xf32> to vector<32x32xf32>
    %cst_35 = arith.constant dense<0.000000e+00> : vector<32x32xf32>
    %132 = tpu.matmul %129, %131, %cst_35 {dimension_numbers = #tpu.dot_dimension_numbers<[1], [0], [0], [1], [0, 0, 1, 1], [], []>} : vector<32x32xf32>, vector<32x32xf32>, vector<32x32xf32> -> vector<32x32xf32>
    %133 = arith.addf %126, %132 : vector<32x32xf32>
    %134 = vector.extract_strided_slice %108 {offsets = [0, 1, 0, 0, 0], sizes = [4, 1, 10, 2, 32], strides = [1, 1, 1, 1, 1]} : vector<5x2x10x2x32xf32> to vector<4x1x10x2x32xf32>
    %135 = vector.shape_cast %134 : vector<4x1x10x2x32xf32> to vector<4x10x2x32xf32>
    %136 = vector.shape_cast %135 : vector<4x10x2x32xf32> to vector<4x5x2x2x32xf32>
    %137 = vector.extract_strided_slice %136 {offsets = [0, 0, 0, 0, 0], sizes = [4, 4, 1, 2, 32], strides = [1, 1, 1, 1, 1]} : vector<4x5x2x2x32xf32> to vector<4x4x1x2x32xf32>
    %138 = vector.shape_cast %137 : vector<4x4x1x2x32xf32> to vector<4x4x2x32xf32>
    %139 = vector.shape_cast %138 : vector<4x4x2x32xf32> to vector<32x32xf32>
    %140 = vector.extract_strided_slice %101 {offsets = [3, 0, 0], sizes = [1, 32, 32], strides = [1, 1, 1]} : vector<9x32x32xf32> to vector<1x32x32xf32>
    %141 = vector.shape_cast %140 : vector<1x32x32xf32> to vector<32x32xf32>
    %cst_36 = arith.constant dense<0.000000e+00> : vector<32x32xf32>
    %142 = tpu.matmul %139, %141, %cst_36 {dimension_numbers = #tpu.dot_dimension_numbers<[1], [0], [0], [1], [0, 0, 1, 1], [], []>} : vector<32x32xf32>, vector<32x32xf32>, vector<32x32xf32> -> vector<32x32xf32>
    %143 = arith.addf %133, %142 : vector<32x32xf32>
    %144 = vector.extract_strided_slice %136 {offsets = [0, 0, 1, 0, 0], sizes = [4, 4, 1, 2, 32], strides = [1, 1, 1, 1, 1]} : vector<4x5x2x2x32xf32> to vector<4x4x1x2x32xf32>
    %145 = vector.shape_cast %144 : vector<4x4x1x2x32xf32> to vector<4x4x2x32xf32>
    %146 = vector.shape_cast %145 : vector<4x4x2x32xf32> to vector<32x32xf32>
    %147 = vector.extract_strided_slice %101 {offsets = [4, 0, 0], sizes = [1, 32, 32], strides = [1, 1, 1]} : vector<9x32x32xf32> to vector<1x32x32xf32>
    %148 = vector.shape_cast %147 : vector<1x32x32xf32> to vector<32x32xf32>
    %cst_37 = arith.constant dense<0.000000e+00> : vector<32x32xf32>
    %149 = tpu.matmul %146, %148, %cst_37 {dimension_numbers = #tpu.dot_dimension_numbers<[1], [0], [0], [1], [0, 0, 1, 1], [], []>} : vector<32x32xf32>, vector<32x32xf32>, vector<32x32xf32> -> vector<32x32xf32>
    %150 = arith.addf %143, %149 : vector<32x32xf32>
    %151 = vector.extract_strided_slice %136 {offsets = [0, 1, 0, 0, 0], sizes = [4, 4, 1, 2, 32], strides = [1, 1, 1, 1, 1]} : vector<4x5x2x2x32xf32> to vector<4x4x1x2x32xf32>
    %152 = vector.shape_cast %151 : vector<4x4x1x2x32xf32> to vector<4x4x2x32xf32>
    %153 = vector.shape_cast %152 : vector<4x4x2x32xf32> to vector<32x32xf32>
    %154 = vector.extract_strided_slice %101 {offsets = [5, 0, 0], sizes = [1, 32, 32], strides = [1, 1, 1]} : vector<9x32x32xf32> to vector<1x32x32xf32>
    %155 = vector.shape_cast %154 : vector<1x32x32xf32> to vector<32x32xf32>
    %cst_38 = arith.constant dense<0.000000e+00> : vector<32x32xf32>
    %156 = tpu.matmul %153, %155, %cst_38 {dimension_numbers = #tpu.dot_dimension_numbers<[1], [0], [0], [1], [0, 0, 1, 1], [], []>} : vector<32x32xf32>, vector<32x32xf32>, vector<32x32xf32> -> vector<32x32xf32>
    %157 = arith.addf %150, %156 : vector<32x32xf32>
    %158 = vector.extract_strided_slice %108 {offsets = [1, 0, 0, 0, 0], sizes = [4, 1, 10, 2, 32], strides = [1, 1, 1, 1, 1]} : vector<5x2x10x2x32xf32> to vector<4x1x10x2x32xf32>
    %159 = vector.shape_cast %158 : vector<4x1x10x2x32xf32> to vector<4x10x2x32xf32>
    %160 = vector.shape_cast %159 : vector<4x10x2x32xf32> to vector<4x5x2x2x32xf32>
    %161 = vector.extract_strided_slice %160 {offsets = [0, 0, 0, 0, 0], sizes = [4, 4, 1, 2, 32], strides = [1, 1, 1, 1, 1]} : vector<4x5x2x2x32xf32> to vector<4x4x1x2x32xf32>
    %162 = vector.shape_cast %161 : vector<4x4x1x2x32xf32> to vector<4x4x2x32xf32>
    %163 = vector.shape_cast %162 : vector<4x4x2x32xf32> to vector<32x32xf32>
    %164 = vector.extract_strided_slice %101 {offsets = [6, 0, 0], sizes = [1, 32, 32], strides = [1, 1, 1]} : vector<9x32x32xf32> to vector<1x32x32xf32>
    %165 = vector.shape_cast %164 : vector<1x32x32xf32> to vector<32x32xf32>
    %cst_39 = arith.constant dense<0.000000e+00> : vector<32x32xf32>
    %166 = tpu.matmul %163, %165, %cst_39 {dimension_numbers = #tpu.dot_dimension_numbers<[1], [0], [0], [1], [0, 0, 1, 1], [], []>} : vector<32x32xf32>, vector<32x32xf32>, vector<32x32xf32> -> vector<32x32xf32>
    %167 = arith.addf %157, %166 : vector<32x32xf32>
    %168 = vector.extract_strided_slice %160 {offsets = [0, 0, 1, 0, 0], sizes = [4, 4, 1, 2, 32], strides = [1, 1, 1, 1, 1]} : vector<4x5x2x2x32xf32> to vector<4x4x1x2x32xf32>
    %169 = vector.shape_cast %168 : vector<4x4x1x2x32xf32> to vector<4x4x2x32xf32>
    %170 = vector.shape_cast %169 : vector<4x4x2x32xf32> to vector<32x32xf32>
    %171 = vector.extract_strided_slice %101 {offsets = [7, 0, 0], sizes = [1, 32, 32], strides = [1, 1, 1]} : vector<9x32x32xf32> to vector<1x32x32xf32>
    %172 = vector.shape_cast %171 : vector<1x32x32xf32> to vector<32x32xf32>
    %cst_40 = arith.constant dense<0.000000e+00> : vector<32x32xf32>
    %173 = tpu.matmul %170, %172, %cst_40 {dimension_numbers = #tpu.dot_dimension_numbers<[1], [0], [0], [1], [0, 0, 1, 1], [], []>} : vector<32x32xf32>, vector<32x32xf32>, vector<32x32xf32> -> vector<32x32xf32>
    %174 = arith.addf %167, %173 : vector<32x32xf32>
    %175 = vector.extract_strided_slice %160 {offsets = [0, 1, 0, 0, 0], sizes = [4, 4, 1, 2, 32], strides = [1, 1, 1, 1, 1]} : vector<4x5x2x2x32xf32> to vector<4x4x1x2x32xf32>
    %176 = vector.shape_cast %175 : vector<4x4x1x2x32xf32> to vector<4x4x2x32xf32>
    %177 = vector.shape_cast %176 : vector<4x4x2x32xf32> to vector<32x32xf32>
    %178 = vector.extract_strided_slice %101 {offsets = [8, 0, 0], sizes = [1, 32, 32], strides = [1, 1, 1]} : vector<9x32x32xf32> to vector<1x32x32xf32>
    %179 = vector.shape_cast %178 : vector<1x32x32xf32> to vector<32x32xf32>
    %cst_41 = arith.constant dense<0.000000e+00> : vector<32x32xf32>
    %180 = tpu.matmul %177, %179, %cst_41 {dimension_numbers = #tpu.dot_dimension_numbers<[1], [0], [0], [1], [0, 0, 1, 1], [], []>} : vector<32x32xf32>, vector<32x32xf32>, vector<32x32xf32> -> vector<32x32xf32>
    %181 = arith.addf %174, %180 : vector<32x32xf32>
    %182 = vector.broadcast %103 : vector<1x32xf32> to vector<32x32xf32>
    %183 = arith.addf %181, %182 : vector<32x32xf32>
    %cst_42 = arith.constant 0.000000e+00 : f32
    %184 = vector.broadcast %cst_42 : f32 to vector<32x32xf32>
    %185 = arith.cmpf ogt, %183, %184 : vector<32x32xf32>
    %cst_43 = arith.constant 0.000000e+00 : f32
    %186 = vector.broadcast %cst_43 : f32 to vector<32x32xf32>
    %187 = arith.minimumf %183, %186 : vector<32x32xf32>
    %188 = math.exp %187 : vector<32x32xf32>
    %cst_44 = arith.constant 1.000000e+00 : f32
    %189 = vector.broadcast %cst_44 : f32 to vector<32x32xf32>
    %190 = arith.subf %188, %189 : vector<32x32xf32>
    %191 = arith.select %185, %183, %190 : vector<32x32xi1>, vector<32x32xf32>
    %192 = vector.shape_cast %191 : vector<32x32xf32> to vector<4x4x2x32xf32>
    %c0_45 = arith.constant 0 : index
    %c0_46 = arith.constant 0 : index
    %c0_47 = arith.constant 0 : index
    %193 = vector.load %arg3[%c0_45, %c0_46, %c0_47] : memref<9x32x32xf32, #tpu.memory_space<vmem>>, vector<9x32x32xf32>
    %c2 = arith.constant 2 : index
    %c0_48 = arith.constant 0 : index
    %c0_49 = arith.constant 0 : index
    %194 = vector.load %arg5[%c2, %c0_48, %c0_49] : memref<4x1x32xf32, #tpu.memory_space<vmem>>, vector<1x1x32xf32>
    %195 = vector.shape_cast %194 : vector<1x1x32xf32> to vector<1x32xf32>
    %cst_50 = arith.constant 0.000000e+00 : f32
    %196 = vector.broadcast %cst_50 : f32 to vector<1x4x2x32xf32>
    %197 = tpu.concatenate %196, %192, %196 in 0 : vector<1x4x2x32xf32>, vector<4x4x2x32xf32>, vector<1x4x2x32xf32> -> vector<6x4x2x32xf32>
    %cst_51 = arith.constant 0.000000e+00 : f32
    %198 = vector.broadcast %cst_51 : f32 to vector<6x1x2x32xf32>
    %199 = tpu.concatenate %198, %197, %198 in 1 : vector<6x1x2x32xf32>, vector<6x4x2x32xf32>, vector<6x1x2x32xf32> -> vector<6x6x2x32xf32>
    %200 = vector.shape_cast %199 : vector<6x6x2x32xf32> to vector<3x2x6x2x32xf32>
    %cst_52 = arith.constant 0.000000e+00 : f32
    %201 = vector.broadcast %cst_52 : f32 to vector<8x32xf32>
    %202 = vector.extract_strided_slice %200 {offsets = [0, 0, 0, 0, 0], sizes = [2, 1, 6, 2, 32], strides = [1, 1, 1, 1, 1]} : vector<3x2x6x2x32xf32> to vector<2x1x6x2x32xf32>
    %203 = vector.shape_cast %202 : vector<2x1x6x2x32xf32> to vector<2x6x2x32xf32>
    %204 = vector.shape_cast %203 : vector<2x6x2x32xf32> to vector<2x3x2x2x32xf32>
    %205 = vector.extract_strided_slice %204 {offsets = [0, 0, 0, 0, 0], sizes = [2, 2, 1, 2, 32], strides = [1, 1, 1, 1, 1]} : vector<2x3x2x2x32xf32> to vector<2x2x1x2x32xf32>
    %206 = vector.shape_cast %205 : vector<2x2x1x2x32xf32> to vector<2x2x2x32xf32>
    %207 = vector.shape_cast %206 : vector<2x2x2x32xf32> to vector<8x32xf32>
    %208 = vector.extract_strided_slice %193 {offsets = [0, 0, 0], sizes = [1, 32, 32], strides = [1, 1, 1]} : vector<9x32x32xf32> to vector<1x32x32xf32>
    %209 = vector.shape_cast %208 : vector<1x32x32xf32> to vector<32x32xf32>
    %cst_53 = arith.constant dense<0.000000e+00> : vector<8x32xf32>
    %210 = tpu.matmul %207, %209, %cst_53 {dimension_numbers = #tpu.dot_dimension_numbers<[1], [0], [0], [1], [0, 0, 1, 1], [], []>} : vector<8x32xf32>, vector<32x32xf32>, vector<8x32xf32> -> vector<8x32xf32>
    %211 = arith.addf %201, %210 : vector<8x32xf32>
    %212 = vector.extract_strided_slice %204 {offsets = [0, 0, 1, 0, 0], sizes = [2, 2, 1, 2, 32], strides = [1, 1, 1, 1, 1]} : vector<2x3x2x2x32xf32> to vector<2x2x1x2x32xf32>
    %213 = vector.shape_cast %212 : vector<2x2x1x2x32xf32> to vector<2x2x2x32xf32>
    %214 = vector.shape_cast %213 : vector<2x2x2x32xf32> to vector<8x32xf32>
    %215 = vector.extract_strided_slice %193 {offsets = [1, 0, 0], sizes = [1, 32, 32], strides = [1, 1, 1]} : vector<9x32x32xf32> to vector<1x32x32xf32>
    %216 = vector.shape_cast %215 : vector<1x32x32xf32> to vector<32x32xf32>
    %cst_54 = arith.constant dense<0.000000e+00> : vector<8x32xf32>
    %217 = tpu.matmul %214, %216, %cst_54 {dimension_numbers = #tpu.dot_dimension_numbers<[1], [0], [0], [1], [0, 0, 1, 1], [], []>} : vector<8x32xf32>, vector<32x32xf32>, vector<8x32xf32> -> vector<8x32xf32>
    %218 = arith.addf %211, %217 : vector<8x32xf32>
    %219 = vector.extract_strided_slice %204 {offsets = [0, 1, 0, 0, 0], sizes = [2, 2, 1, 2, 32], strides = [1, 1, 1, 1, 1]} : vector<2x3x2x2x32xf32> to vector<2x2x1x2x32xf32>
    %220 = vector.shape_cast %219 : vector<2x2x1x2x32xf32> to vector<2x2x2x32xf32>
    %221 = vector.shape_cast %220 : vector<2x2x2x32xf32> to vector<8x32xf32>
    %222 = vector.extract_strided_slice %193 {offsets = [2, 0, 0], sizes = [1, 32, 32], strides = [1, 1, 1]} : vector<9x32x32xf32> to vector<1x32x32xf32>
    %223 = vector.shape_cast %222 : vector<1x32x32xf32> to vector<32x32xf32>
    %cst_55 = arith.constant dense<0.000000e+00> : vector<8x32xf32>
    %224 = tpu.matmul %221, %223, %cst_55 {dimension_numbers = #tpu.dot_dimension_numbers<[1], [0], [0], [1], [0, 0, 1, 1], [], []>} : vector<8x32xf32>, vector<32x32xf32>, vector<8x32xf32> -> vector<8x32xf32>
    %225 = arith.addf %218, %224 : vector<8x32xf32>
    %226 = vector.extract_strided_slice %200 {offsets = [0, 1, 0, 0, 0], sizes = [2, 1, 6, 2, 32], strides = [1, 1, 1, 1, 1]} : vector<3x2x6x2x32xf32> to vector<2x1x6x2x32xf32>
    %227 = vector.shape_cast %226 : vector<2x1x6x2x32xf32> to vector<2x6x2x32xf32>
    %228 = vector.shape_cast %227 : vector<2x6x2x32xf32> to vector<2x3x2x2x32xf32>
    %229 = vector.extract_strided_slice %228 {offsets = [0, 0, 0, 0, 0], sizes = [2, 2, 1, 2, 32], strides = [1, 1, 1, 1, 1]} : vector<2x3x2x2x32xf32> to vector<2x2x1x2x32xf32>
    %230 = vector.shape_cast %229 : vector<2x2x1x2x32xf32> to vector<2x2x2x32xf32>
    %231 = vector.shape_cast %230 : vector<2x2x2x32xf32> to vector<8x32xf32>
    %232 = vector.extract_strided_slice %193 {offsets = [3, 0, 0], sizes = [1, 32, 32], strides = [1, 1, 1]} : vector<9x32x32xf32> to vector<1x32x32xf32>
    %233 = vector.shape_cast %232 : vector<1x32x32xf32> to vector<32x32xf32>
    %cst_56 = arith.constant dense<0.000000e+00> : vector<8x32xf32>
    %234 = tpu.matmul %231, %233, %cst_56 {dimension_numbers = #tpu.dot_dimension_numbers<[1], [0], [0], [1], [0, 0, 1, 1], [], []>} : vector<8x32xf32>, vector<32x32xf32>, vector<8x32xf32> -> vector<8x32xf32>
    %235 = arith.addf %225, %234 : vector<8x32xf32>
    %236 = vector.extract_strided_slice %228 {offsets = [0, 0, 1, 0, 0], sizes = [2, 2, 1, 2, 32], strides = [1, 1, 1, 1, 1]} : vector<2x3x2x2x32xf32> to vector<2x2x1x2x32xf32>
    %237 = vector.shape_cast %236 : vector<2x2x1x2x32xf32> to vector<2x2x2x32xf32>
    %238 = vector.shape_cast %237 : vector<2x2x2x32xf32> to vector<8x32xf32>
    %239 = vector.extract_strided_slice %193 {offsets = [4, 0, 0], sizes = [1, 32, 32], strides = [1, 1, 1]} : vector<9x32x32xf32> to vector<1x32x32xf32>
    %240 = vector.shape_cast %239 : vector<1x32x32xf32> to vector<32x32xf32>
    %cst_57 = arith.constant dense<0.000000e+00> : vector<8x32xf32>
    %241 = tpu.matmul %238, %240, %cst_57 {dimension_numbers = #tpu.dot_dimension_numbers<[1], [0], [0], [1], [0, 0, 1, 1], [], []>} : vector<8x32xf32>, vector<32x32xf32>, vector<8x32xf32> -> vector<8x32xf32>
    %242 = arith.addf %235, %241 : vector<8x32xf32>
    %243 = vector.extract_strided_slice %228 {offsets = [0, 1, 0, 0, 0], sizes = [2, 2, 1, 2, 32], strides = [1, 1, 1, 1, 1]} : vector<2x3x2x2x32xf32> to vector<2x2x1x2x32xf32>
    %244 = vector.shape_cast %243 : vector<2x2x1x2x32xf32> to vector<2x2x2x32xf32>
    %245 = vector.shape_cast %244 : vector<2x2x2x32xf32> to vector<8x32xf32>
    %246 = vector.extract_strided_slice %193 {offsets = [5, 0, 0], sizes = [1, 32, 32], strides = [1, 1, 1]} : vector<9x32x32xf32> to vector<1x32x32xf32>
    %247 = vector.shape_cast %246 : vector<1x32x32xf32> to vector<32x32xf32>
    %cst_58 = arith.constant dense<0.000000e+00> : vector<8x32xf32>
    %248 = tpu.matmul %245, %247, %cst_58 {dimension_numbers = #tpu.dot_dimension_numbers<[1], [0], [0], [1], [0, 0, 1, 1], [], []>} : vector<8x32xf32>, vector<32x32xf32>, vector<8x32xf32> -> vector<8x32xf32>
    %249 = arith.addf %242, %248 : vector<8x32xf32>
    %250 = vector.extract_strided_slice %200 {offsets = [1, 0, 0, 0, 0], sizes = [2, 1, 6, 2, 32], strides = [1, 1, 1, 1, 1]} : vector<3x2x6x2x32xf32> to vector<2x1x6x2x32xf32>
    %251 = vector.shape_cast %250 : vector<2x1x6x2x32xf32> to vector<2x6x2x32xf32>
    %252 = vector.shape_cast %251 : vector<2x6x2x32xf32> to vector<2x3x2x2x32xf32>
    %253 = vector.extract_strided_slice %252 {offsets = [0, 0, 0, 0, 0], sizes = [2, 2, 1, 2, 32], strides = [1, 1, 1, 1, 1]} : vector<2x3x2x2x32xf32> to vector<2x2x1x2x32xf32>
    %254 = vector.shape_cast %253 : vector<2x2x1x2x32xf32> to vector<2x2x2x32xf32>
    %255 = vector.shape_cast %254 : vector<2x2x2x32xf32> to vector<8x32xf32>
    %256 = vector.extract_strided_slice %193 {offsets = [6, 0, 0], sizes = [1, 32, 32], strides = [1, 1, 1]} : vector<9x32x32xf32> to vector<1x32x32xf32>
    %257 = vector.shape_cast %256 : vector<1x32x32xf32> to vector<32x32xf32>
    %cst_59 = arith.constant dense<0.000000e+00> : vector<8x32xf32>
    %258 = tpu.matmul %255, %257, %cst_59 {dimension_numbers = #tpu.dot_dimension_numbers<[1], [0], [0], [1], [0, 0, 1, 1], [], []>} : vector<8x32xf32>, vector<32x32xf32>, vector<8x32xf32> -> vector<8x32xf32>
    %259 = arith.addf %249, %258 : vector<8x32xf32>
    %260 = vector.extract_strided_slice %252 {offsets = [0, 0, 1, 0, 0], sizes = [2, 2, 1, 2, 32], strides = [1, 1, 1, 1, 1]} : vector<2x3x2x2x32xf32> to vector<2x2x1x2x32xf32>
    %261 = vector.shape_cast %260 : vector<2x2x1x2x32xf32> to vector<2x2x2x32xf32>
    %262 = vector.shape_cast %261 : vector<2x2x2x32xf32> to vector<8x32xf32>
    %263 = vector.extract_strided_slice %193 {offsets = [7, 0, 0], sizes = [1, 32, 32], strides = [1, 1, 1]} : vector<9x32x32xf32> to vector<1x32x32xf32>
    %264 = vector.shape_cast %263 : vector<1x32x32xf32> to vector<32x32xf32>
    %cst_60 = arith.constant dense<0.000000e+00> : vector<8x32xf32>
    %265 = tpu.matmul %262, %264, %cst_60 {dimension_numbers = #tpu.dot_dimension_numbers<[1], [0], [0], [1], [0, 0, 1, 1], [], []>} : vector<8x32xf32>, vector<32x32xf32>, vector<8x32xf32> -> vector<8x32xf32>
    %266 = arith.addf %259, %265 : vector<8x32xf32>
    %267 = vector.extract_strided_slice %252 {offsets = [0, 1, 0, 0, 0], sizes = [2, 2, 1, 2, 32], strides = [1, 1, 1, 1, 1]} : vector<2x3x2x2x32xf32> to vector<2x2x1x2x32xf32>
    %268 = vector.shape_cast %267 : vector<2x2x1x2x32xf32> to vector<2x2x2x32xf32>
    %269 = vector.shape_cast %268 : vector<2x2x2x32xf32> to vector<8x32xf32>
    %270 = vector.extract_strided_slice %193 {offsets = [8, 0, 0], sizes = [1, 32, 32], strides = [1, 1, 1]} : vector<9x32x32xf32> to vector<1x32x32xf32>
    %271 = vector.shape_cast %270 : vector<1x32x32xf32> to vector<32x32xf32>
    %cst_61 = arith.constant dense<0.000000e+00> : vector<8x32xf32>
    %272 = tpu.matmul %269, %271, %cst_61 {dimension_numbers = #tpu.dot_dimension_numbers<[1], [0], [0], [1], [0, 0, 1, 1], [], []>} : vector<8x32xf32>, vector<32x32xf32>, vector<8x32xf32> -> vector<8x32xf32>
    %273 = arith.addf %266, %272 : vector<8x32xf32>
    %274 = vector.broadcast %195 : vector<1x32xf32> to vector<8x32xf32>
    %275 = arith.addf %273, %274 : vector<8x32xf32>
    %cst_62 = arith.constant 0.000000e+00 : f32
    %276 = vector.broadcast %cst_62 : f32 to vector<8x32xf32>
    %277 = arith.cmpf ogt, %275, %276 : vector<8x32xf32>
    %cst_63 = arith.constant 0.000000e+00 : f32
    %278 = vector.broadcast %cst_63 : f32 to vector<8x32xf32>
    %279 = arith.minimumf %275, %278 : vector<8x32xf32>
    %280 = math.exp %279 : vector<8x32xf32>
    %cst_64 = arith.constant 1.000000e+00 : f32
    %281 = vector.broadcast %cst_64 : f32 to vector<8x32xf32>
    %282 = arith.subf %280, %281 : vector<8x32xf32>
    %283 = arith.select %277, %275, %282 : vector<8x32xi1>, vector<8x32xf32>
    %284 = vector.shape_cast %283 : vector<8x32xf32> to vector<2x2x2x32xf32>
    %c0_65 = arith.constant 0 : index
    %c0_66 = arith.constant 0 : index
    %c0_67 = arith.constant 0 : index
    %285 = vector.load %arg4[%c0_65, %c0_66, %c0_67] : memref<9x32x32xf32, #tpu.memory_space<vmem>>, vector<9x32x32xf32>
    %c3 = arith.constant 3 : index
    %c0_68 = arith.constant 0 : index
    %c0_69 = arith.constant 0 : index
    %286 = vector.load %arg5[%c3, %c0_68, %c0_69] : memref<4x1x32xf32, #tpu.memory_space<vmem>>, vector<1x1x32xf32>
    %287 = vector.shape_cast %286 : vector<1x1x32xf32> to vector<1x32xf32>
    %cst_70 = arith.constant 0.000000e+00 : f32
    %288 = vector.broadcast %cst_70 : f32 to vector<1x2x2x32xf32>
    %289 = tpu.concatenate %288, %284, %288 in 0 : vector<1x2x2x32xf32>, vector<2x2x2x32xf32>, vector<1x2x2x32xf32> -> vector<4x2x2x32xf32>
    %cst_71 = arith.constant 0.000000e+00 : f32
    %290 = vector.broadcast %cst_71 : f32 to vector<4x1x2x32xf32>
    %291 = tpu.concatenate %290, %289, %290 in 1 : vector<4x1x2x32xf32>, vector<4x2x2x32xf32>, vector<4x1x2x32xf32> -> vector<4x4x2x32xf32>
    %292 = vector.shape_cast %291 : vector<4x4x2x32xf32> to vector<2x2x4x2x32xf32>
    %cst_72 = arith.constant 0.000000e+00 : f32
    %293 = vector.broadcast %cst_72 : f32 to vector<2x32xf32>
    %294 = vector.extract_strided_slice %292 {offsets = [0, 0, 0, 0, 0], sizes = [1, 1, 4, 2, 32], strides = [1, 1, 1, 1, 1]} : vector<2x2x4x2x32xf32> to vector<1x1x4x2x32xf32>
    %295 = vector.shape_cast %294 : vector<1x1x4x2x32xf32> to vector<1x4x2x32xf32>
    %296 = vector.shape_cast %295 : vector<1x4x2x32xf32> to vector<1x2x2x2x32xf32>
    %297 = vector.extract_strided_slice %296 {offsets = [0, 0, 0, 0, 0], sizes = [1, 1, 1, 2, 32], strides = [1, 1, 1, 1, 1]} : vector<1x2x2x2x32xf32> to vector<1x1x1x2x32xf32>
    %298 = vector.shape_cast %297 : vector<1x1x1x2x32xf32> to vector<1x1x2x32xf32>
    %299 = vector.shape_cast %298 : vector<1x1x2x32xf32> to vector<2x32xf32>
    %300 = vector.extract_strided_slice %285 {offsets = [0, 0, 0], sizes = [1, 32, 32], strides = [1, 1, 1]} : vector<9x32x32xf32> to vector<1x32x32xf32>
    %301 = vector.shape_cast %300 : vector<1x32x32xf32> to vector<32x32xf32>
    %cst_73 = arith.constant dense<0.000000e+00> : vector<2x32xf32>
    %302 = tpu.matmul %299, %301, %cst_73 {dimension_numbers = #tpu.dot_dimension_numbers<[1], [0], [0], [1], [0, 0, 1, 1], [], []>} : vector<2x32xf32>, vector<32x32xf32>, vector<2x32xf32> -> vector<2x32xf32>
    %303 = arith.addf %293, %302 : vector<2x32xf32>
    %304 = vector.extract_strided_slice %296 {offsets = [0, 0, 1, 0, 0], sizes = [1, 1, 1, 2, 32], strides = [1, 1, 1, 1, 1]} : vector<1x2x2x2x32xf32> to vector<1x1x1x2x32xf32>
    %305 = vector.shape_cast %304 : vector<1x1x1x2x32xf32> to vector<1x1x2x32xf32>
    %306 = vector.shape_cast %305 : vector<1x1x2x32xf32> to vector<2x32xf32>
    %307 = vector.extract_strided_slice %285 {offsets = [1, 0, 0], sizes = [1, 32, 32], strides = [1, 1, 1]} : vector<9x32x32xf32> to vector<1x32x32xf32>
    %308 = vector.shape_cast %307 : vector<1x32x32xf32> to vector<32x32xf32>
    %cst_74 = arith.constant dense<0.000000e+00> : vector<2x32xf32>
    %309 = tpu.matmul %306, %308, %cst_74 {dimension_numbers = #tpu.dot_dimension_numbers<[1], [0], [0], [1], [0, 0, 1, 1], [], []>} : vector<2x32xf32>, vector<32x32xf32>, vector<2x32xf32> -> vector<2x32xf32>
    %310 = arith.addf %303, %309 : vector<2x32xf32>
    %311 = vector.extract_strided_slice %296 {offsets = [0, 1, 0, 0, 0], sizes = [1, 1, 1, 2, 32], strides = [1, 1, 1, 1, 1]} : vector<1x2x2x2x32xf32> to vector<1x1x1x2x32xf32>
    %312 = vector.shape_cast %311 : vector<1x1x1x2x32xf32> to vector<1x1x2x32xf32>
    %313 = vector.shape_cast %312 : vector<1x1x2x32xf32> to vector<2x32xf32>
    %314 = vector.extract_strided_slice %285 {offsets = [2, 0, 0], sizes = [1, 32, 32], strides = [1, 1, 1]} : vector<9x32x32xf32> to vector<1x32x32xf32>
    %315 = vector.shape_cast %314 : vector<1x32x32xf32> to vector<32x32xf32>
    %cst_75 = arith.constant dense<0.000000e+00> : vector<2x32xf32>
    %316 = tpu.matmul %313, %315, %cst_75 {dimension_numbers = #tpu.dot_dimension_numbers<[1], [0], [0], [1], [0, 0, 1, 1], [], []>} : vector<2x32xf32>, vector<32x32xf32>, vector<2x32xf32> -> vector<2x32xf32>
    %317 = arith.addf %310, %316 : vector<2x32xf32>
    %318 = vector.extract_strided_slice %292 {offsets = [0, 1, 0, 0, 0], sizes = [1, 1, 4, 2, 32], strides = [1, 1, 1, 1, 1]} : vector<2x2x4x2x32xf32> to vector<1x1x4x2x32xf32>
    %319 = vector.shape_cast %318 : vector<1x1x4x2x32xf32> to vector<1x4x2x32xf32>
    %320 = vector.shape_cast %319 : vector<1x4x2x32xf32> to vector<1x2x2x2x32xf32>
    %321 = vector.extract_strided_slice %320 {offsets = [0, 0, 0, 0, 0], sizes = [1, 1, 1, 2, 32], strides = [1, 1, 1, 1, 1]} : vector<1x2x2x2x32xf32> to vector<1x1x1x2x32xf32>
    %322 = vector.shape_cast %321 : vector<1x1x1x2x32xf32> to vector<1x1x2x32xf32>
    %323 = vector.shape_cast %322 : vector<1x1x2x32xf32> to vector<2x32xf32>
    %324 = vector.extract_strided_slice %285 {offsets = [3, 0, 0], sizes = [1, 32, 32], strides = [1, 1, 1]} : vector<9x32x32xf32> to vector<1x32x32xf32>
    %325 = vector.shape_cast %324 : vector<1x32x32xf32> to vector<32x32xf32>
    %cst_76 = arith.constant dense<0.000000e+00> : vector<2x32xf32>
    %326 = tpu.matmul %323, %325, %cst_76 {dimension_numbers = #tpu.dot_dimension_numbers<[1], [0], [0], [1], [0, 0, 1, 1], [], []>} : vector<2x32xf32>, vector<32x32xf32>, vector<2x32xf32> -> vector<2x32xf32>
    %327 = arith.addf %317, %326 : vector<2x32xf32>
    %328 = vector.extract_strided_slice %320 {offsets = [0, 0, 1, 0, 0], sizes = [1, 1, 1, 2, 32], strides = [1, 1, 1, 1, 1]} : vector<1x2x2x2x32xf32> to vector<1x1x1x2x32xf32>
    %329 = vector.shape_cast %328 : vector<1x1x1x2x32xf32> to vector<1x1x2x32xf32>
    %330 = vector.shape_cast %329 : vector<1x1x2x32xf32> to vector<2x32xf32>
    %331 = vector.extract_strided_slice %285 {offsets = [4, 0, 0], sizes = [1, 32, 32], strides = [1, 1, 1]} : vector<9x32x32xf32> to vector<1x32x32xf32>
    %332 = vector.shape_cast %331 : vector<1x32x32xf32> to vector<32x32xf32>
    %cst_77 = arith.constant dense<0.000000e+00> : vector<2x32xf32>
    %333 = tpu.matmul %330, %332, %cst_77 {dimension_numbers = #tpu.dot_dimension_numbers<[1], [0], [0], [1], [0, 0, 1, 1], [], []>} : vector<2x32xf32>, vector<32x32xf32>, vector<2x32xf32> -> vector<2x32xf32>
    %334 = arith.addf %327, %333 : vector<2x32xf32>
    %335 = vector.extract_strided_slice %320 {offsets = [0, 1, 0, 0, 0], sizes = [1, 1, 1, 2, 32], strides = [1, 1, 1, 1, 1]} : vector<1x2x2x2x32xf32> to vector<1x1x1x2x32xf32>
    %336 = vector.shape_cast %335 : vector<1x1x1x2x32xf32> to vector<1x1x2x32xf32>
    %337 = vector.shape_cast %336 : vector<1x1x2x32xf32> to vector<2x32xf32>
    %338 = vector.extract_strided_slice %285 {offsets = [5, 0, 0], sizes = [1, 32, 32], strides = [1, 1, 1]} : vector<9x32x32xf32> to vector<1x32x32xf32>
    %339 = vector.shape_cast %338 : vector<1x32x32xf32> to vector<32x32xf32>
    %cst_78 = arith.constant dense<0.000000e+00> : vector<2x32xf32>
    %340 = tpu.matmul %337, %339, %cst_78 {dimension_numbers = #tpu.dot_dimension_numbers<[1], [0], [0], [1], [0, 0, 1, 1], [], []>} : vector<2x32xf32>, vector<32x32xf32>, vector<2x32xf32> -> vector<2x32xf32>
    %341 = arith.addf %334, %340 : vector<2x32xf32>
    %342 = vector.extract_strided_slice %292 {offsets = [1, 0, 0, 0, 0], sizes = [1, 1, 4, 2, 32], strides = [1, 1, 1, 1, 1]} : vector<2x2x4x2x32xf32> to vector<1x1x4x2x32xf32>
    %343 = vector.shape_cast %342 : vector<1x1x4x2x32xf32> to vector<1x4x2x32xf32>
    %344 = vector.shape_cast %343 : vector<1x4x2x32xf32> to vector<1x2x2x2x32xf32>
    %345 = vector.extract_strided_slice %344 {offsets = [0, 0, 0, 0, 0], sizes = [1, 1, 1, 2, 32], strides = [1, 1, 1, 1, 1]} : vector<1x2x2x2x32xf32> to vector<1x1x1x2x32xf32>
    %346 = vector.shape_cast %345 : vector<1x1x1x2x32xf32> to vector<1x1x2x32xf32>
    %347 = vector.shape_cast %346 : vector<1x1x2x32xf32> to vector<2x32xf32>
    %348 = vector.extract_strided_slice %285 {offsets = [6, 0, 0], sizes = [1, 32, 32], strides = [1, 1, 1]} : vector<9x32x32xf32> to vector<1x32x32xf32>
    %349 = vector.shape_cast %348 : vector<1x32x32xf32> to vector<32x32xf32>
    %cst_79 = arith.constant dense<0.000000e+00> : vector<2x32xf32>
    %350 = tpu.matmul %347, %349, %cst_79 {dimension_numbers = #tpu.dot_dimension_numbers<[1], [0], [0], [1], [0, 0, 1, 1], [], []>} : vector<2x32xf32>, vector<32x32xf32>, vector<2x32xf32> -> vector<2x32xf32>
    %351 = arith.addf %341, %350 : vector<2x32xf32>
    %352 = vector.extract_strided_slice %344 {offsets = [0, 0, 1, 0, 0], sizes = [1, 1, 1, 2, 32], strides = [1, 1, 1, 1, 1]} : vector<1x2x2x2x32xf32> to vector<1x1x1x2x32xf32>
    %353 = vector.shape_cast %352 : vector<1x1x1x2x32xf32> to vector<1x1x2x32xf32>
    %354 = vector.shape_cast %353 : vector<1x1x2x32xf32> to vector<2x32xf32>
    %355 = vector.extract_strided_slice %285 {offsets = [7, 0, 0], sizes = [1, 32, 32], strides = [1, 1, 1]} : vector<9x32x32xf32> to vector<1x32x32xf32>
    %356 = vector.shape_cast %355 : vector<1x32x32xf32> to vector<32x32xf32>
    %cst_80 = arith.constant dense<0.000000e+00> : vector<2x32xf32>
    %357 = tpu.matmul %354, %356, %cst_80 {dimension_numbers = #tpu.dot_dimension_numbers<[1], [0], [0], [1], [0, 0, 1, 1], [], []>} : vector<2x32xf32>, vector<32x32xf32>, vector<2x32xf32> -> vector<2x32xf32>
    %358 = arith.addf %351, %357 : vector<2x32xf32>
    %359 = vector.extract_strided_slice %344 {offsets = [0, 1, 0, 0, 0], sizes = [1, 1, 1, 2, 32], strides = [1, 1, 1, 1, 1]} : vector<1x2x2x2x32xf32> to vector<1x1x1x2x32xf32>
    %360 = vector.shape_cast %359 : vector<1x1x1x2x32xf32> to vector<1x1x2x32xf32>
    %361 = vector.shape_cast %360 : vector<1x1x2x32xf32> to vector<2x32xf32>
    %362 = vector.extract_strided_slice %285 {offsets = [8, 0, 0], sizes = [1, 32, 32], strides = [1, 1, 1]} : vector<9x32x32xf32> to vector<1x32x32xf32>
    %363 = vector.shape_cast %362 : vector<1x32x32xf32> to vector<32x32xf32>
    %cst_81 = arith.constant dense<0.000000e+00> : vector<2x32xf32>
    %364 = tpu.matmul %361, %363, %cst_81 {dimension_numbers = #tpu.dot_dimension_numbers<[1], [0], [0], [1], [0, 0, 1, 1], [], []>} : vector<2x32xf32>, vector<32x32xf32>, vector<2x32xf32> -> vector<2x32xf32>
    %365 = arith.addf %358, %364 : vector<2x32xf32>
    %366 = vector.broadcast %287 : vector<1x32xf32> to vector<2x32xf32>
    %367 = arith.addf %365, %366 : vector<2x32xf32>
    %cst_82 = arith.constant 0.000000e+00 : f32
    %368 = vector.broadcast %cst_82 : f32 to vector<2x32xf32>
    %369 = arith.cmpf ogt, %367, %368 : vector<2x32xf32>
    %cst_83 = arith.constant 0.000000e+00 : f32
    %370 = vector.broadcast %cst_83 : f32 to vector<2x32xf32>
    %371 = arith.minimumf %367, %370 : vector<2x32xf32>
    %372 = math.exp %371 : vector<2x32xf32>
    %cst_84 = arith.constant 1.000000e+00 : f32
    %373 = vector.broadcast %cst_84 : f32 to vector<2x32xf32>
    %374 = arith.subf %372, %373 : vector<2x32xf32>
    %375 = arith.select %369, %367, %374 : vector<2x32xi1>, vector<2x32xf32>
    %376 = vector.shape_cast %375 : vector<2x32xf32> to vector<1x1x2x32xf32>
    %377 = vector.shape_cast %376 : vector<1x1x2x32xf32> to vector<2x32xf32>
    %c0_85 = arith.constant 0 : index
    %c0_86 = arith.constant 0 : index
    %378 = vector.load %arg6[%c0_85, %c0_86] : memref<2x32xf32, #tpu.memory_space<vmem>>, vector<2x32xf32>
    tpu.vector_store %arg6[%c0_85, %c0_86], %377 {strides = array<i32>} : memref<2x32xf32, #tpu.memory_space<vmem>>, vector<2x32xf32>,
    return
  }
}

</mosaic_0001>

<bundles_post_ra>
// kernel: phi_forward.1
= control target key start
LH: loop header
LB: loop body
LE: loop exit
PB: predicated region body
PF: predicated region fallthrough
CT: control target
= control target key end

     0   :  { %11 = vsyncpa [#allocation3], 0  ;;  %s21259_s0 = inlined_call_operand.vmem [shape: f32[16,16,2,3], index: 0, kind: input, shape index: {}]   ;;  %s21260_s1 = inlined_call_operand.hbm [shape: f32[9,3,32], index: 1, kind: input, shape index: {}]   ;;  %s21261_s2 = inlined_call_operand.vmem [shape: f32[9,32,32], index: 2, kind: input, shape index: {}]   ;;  %s21262_s3 = inlined_call_operand.vmem [shape: f32[9,32,32], index: 3, kind: input, shape index: {}]   ;;  %s21263_s4 = inlined_call_operand.hbm [shape: f32[9,32,32], index: 4, kind: input, shape index: {}]   ;;  %s21264_s5 = inlined_call_operand.vmem [shape: f32[4,1,32], index: 5, kind: input, shape index: {}]   ;;  %s21265_s6 = inlined_call_operand.hbm [shape: f32[2,32], index: 6, kind: output, shape index: {}]  }
   0x1   :  { %12 = vsyncpa [#allocation6], 0 }
   0x2   :  { %13 = vsyncpa [#allocation4], 0  ;;  %s13667_s21 = smov [#allocation2]   ;;  %s13595_s25 = scalar_lea.hbm %s21260_s1, 576 }
   0x3   :  { %s21_s22 = sshll.u32 %s13667_s21, 4  ;;  %p13596_p0 = scmp.ne.s32.totalorder %s21260_s1, %s13595_s25  ;;  %s22_s22 = int_to_ptr.vmem [resolvable:$true] %s21_s22 }
   0x4   :  { %p13599_p1 = scmp.lt.u32.totalorder %s13595_s25, %s21260_s1 }
   0x6   :  { %p13601_p2 = pnand %p13599_p1, %p13596_p0 }
   0x8   :  { %13604 = shalt.err (!%p13601_p2)
}
   0x9   :  { %s13605_s30 = scalar_lea.vmem %s22_s22, 576  ;;  %p13610_p4 = scmp.lt.s32.totalorder %s22_s22, %s22_s22 }
   0xa   :  { %p13606_p3 = scmp.ne.s32.totalorder %s22_s22, %s13605_s30  ;;  %p13611_p5 = scmp.lt.s32.totalorder %s13605_s30, %s13605_s30 }
   0xc   :  { %p13612_p6 = por %p13611_p5, %p13610_p4 }
   0xe   :  { %p13613_p7 = pnand %p13612_p6, %p13606_p3 }
  0x10   :  { %13616 = shalt.err (!%p13613_p7)
}
  0x11   :  { %s13668_s7 = smov 64   ;;  %s13669_s8 = smov 4  }
  0x12   :  { %27 = dma.hbm_to_vmem [thread:$0]  %s21260_s1, 576, %s22_s22, [#allocation3], %s13668_s7, %s13668_s7, %s13669_s8  }
  0x13   :  { %s13670_s11 = smov [#allocation5]   ;;  %s13617_s15 = scalar_lea.hbm %s21263_s4, 4608 }
  0x14   :  { %s37_s12 = sshll.u32 %s13670_s11, 4  ;;  %p13618_p8 = scmp.ne.s32.totalorder %s21263_s4, %s13617_s15  ;;  %s38_s12 = int_to_ptr.vmem [resolvable:$true] %s37_s12 }
  0x15   :  { %p13621_p9 = scmp.lt.u32.totalorder %s13617_s15, %s21263_s4 }
  0x17   :  { %p13623_p10 = pnand %p13621_p9, %p13618_p8 }
  0x19   :  { %13626 = shalt.err (!%p13623_p10)
}
  0x1a   :  { %s13627_s20 = scalar_lea.vmem %s38_s12, 4608  ;;  %p13632_p12 = scmp.lt.s32.totalorder %s38_s12, %s38_s12 }
  0x1b   :  { %p13628_p11 = scmp.ne.s32.totalorder %s38_s12, %s13627_s20  ;;  %p13633_p13 = scmp.lt.s32.totalorder %s13627_s20, %s13627_s20 }
  0x1d   :  { %p13634_p0 = por %p13633_p13, %p13632_p12 }
  0x1f   :  { %p13635_p1 = pnand %p13634_p0, %p13628_p11 }
  0x21   :  { %13638 = shalt.err (!%p13635_p1)
}
  0x22   :  { %s13671_s1 = smov 128   ;;  %s13672_s21 = smov 8  }
  0x23   :  { %43 = dma.hbm_to_vmem [thread:$0]  %s21263_s4, 4608, %s38_s12, [#allocation6], %s13671_s1, %s13671_s1, %s13672_s21  }
  0x24   :  { %13661 = dma.done.wait [#allocation3], 576  }
  0x25   :  { %13662 = vsyncadd [#allocation3], 4294966720 }
  0x26   :  { %13663 = dma.done.wait [#allocation6], 4608  }
  0x27   :  { %13664 = vsyncadd [#allocation6], 4294962688  ;;  %vm564_vm0 = vcmask 17408   ;;  %v73_v0 = vld [vmem:[%s21259_s0 + $0x2a] sm:$0x3]  ;;  %vm4238_vm1 = vcmask 1042432  }
  0x28   :  { %v69_v1 = vld [vmem:[%s21259_s0 + $0x22] sm:$0x3]  ;;  %v75_v2 = vld [vmem:[%s21259_s0 + $0x2e] sm:$0x3]  ;;  %v329_v3 = vmul.f32 %v73_v0, %v73_v0  ;;  %v71_v6 = vld [vmem:[%s21259_s0 + $0x26] sm:$0x3] }
  0x29   :  { %v325_v4 = vmul.f32 %v69_v1, %v69_v1  ;;  %v331_v5 = vmul.f32 %v75_v2, %v75_v2  ;;  %v327_v7 = vmul.f32 %v71_v6, %v71_v6  ;;  %v79_v8 = vld [vmem:[%s21259_s0 + $0x36] sm:$0x3]  ;;  %v77_v9 = vld [vmem:[%s21259_s0 + $0x32] sm:$0x3]  ;;  %v101_v16 = vld [vmem:[%s21259_s0 + $0x62] sm:$0x3] }
  0x2a   :  { %v628_v10 = vsel %vm564_vm0, %v329_v3, 0.0  ;;  %v335_v14 = vmul.f32 %v79_v8, %v79_v8  ;;  %v333_v15 = vmul.f32 %v77_v9, %v77_v9  ;;  %v81_v17 = vld [vmem:[%s21259_s0 + $0x3a] sm:$0x3]  ;;  %v357_v20 = vmul.f32 %v101_v16, %v101_v16  ;;  %v105_v22 = vld [vmem:[%s21259_s0 + $0x6a] sm:$0x3]  ;;  %s13677_s1 = smov [#allocation7]  }
  0x2b   :  { %v616_v11 = vsel %vm564_vm0, %v325_v4, 0.0  ;;  %629 = vadd.xlane.f32.xlu1 %v628_v10  ;;  %v634_v12 = vsel %vm564_vm0, %v331_v5, 0.0  ;;  %v622_v13 = vsel %vm564_vm0, %v327_v7, 0.0  ;;  %v337_v21 = vmul.f32 %v81_v17, %v81_v17  ;;  %v103_v23 = vld [vmem:[%s21259_s0 + $0x66] sm:$0x3]  ;;  %s10778_s21 = sshll.u32 %s13677_s1, 4  ;;  %s10779_s21 = int_to_ptr.vmem [resolvable:$true] %s10778_s21 }
  0x2c   :  { %617 = vadd.xlane.f32.xlu0 %v616_v11  ;;  %v646_v18 = vsel %vm564_vm0, %v335_v14, 0.0  ;;  %v640_v19 = vsel %vm564_vm0, %v333_v15, 0.0  ;;  %v712_v24 = vsel %vm564_vm0, %v357_v20, 0.0  ;;  %v361_v26 = vmul.f32 %v105_v22, %v105_v22  ;;  %v109_v28 = vld [vmem:[%s21259_s0 + $0x72] sm:$0x3]  ;;  %s13639_s22 = scalar_lea.vmem %s10779_s21, 32  ;;  %p13644_p3 = scmp.lt.s32.totalorder %s10779_s21, %s10779_s21 }
  0x2d   :  { %v652_v25 = vsel %vm564_vm0, %v337_v21, 0.0  ;;  %v359_v27 = vmul.f32 %v103_v23, %v103_v23  ;;  %v107_v29 = vld [vmem:[%s21259_s0 + $0x6e] sm:$0x3]  ;;  %v365_v32 = vmul.f32 %v109_v28, %v109_v28  ;;  %v113_v34 = vld [vmem:[%s21259_s0 + $0x7a] sm:$0x3]  ;;  %v3964_v22 = vlaneseq  ;;  %p13640_p2 = scmp.ne.s32.totalorder %s10779_s21, %s13639_s22  ;;  %p13645_p4 = scmp.lt.s32.totalorder %s13639_s22, %s13639_s22 }
  0x2e   :  { %v724_v30 = vsel %vm564_vm0, %v361_v26, 0.0  ;;  %v363_v33 = vmul.f32 %v107_v29, %v107_v29  ;;  %v111_v35 = vld [vmem:[%s21259_s0 + $0x76] sm:$0x3]  ;;  %v369_v38 = vmul.f32 %v113_v34, %v113_v34  ;;  %v135_v40 = vld [vmem:[%s21259_s0 + $0xa6] sm:$0x3]  ;;  %vm4207_vm2 = vcmask 23552  }
  0x2f   :  { %635 = vadd.xlane.f32.xlu1 %v634_v12  ;;  %v718_v31 = vsel %vm564_vm0, %v359_v27, 0.0  ;;  %v736_v36 = vsel %vm564_vm0, %v365_v32, 0.0  ;;  %v367_v39 = vmul.f32 %v111_v35, %v111_v35  ;;  %v133_v41 = vld [vmem:[%s21259_s0 + $0xa2] sm:$0x3]  ;;  %v391_v44 = vmul.f32 %v135_v40, %v135_v40  ;;  %v139_v46 = vld [vmem:[%s21259_s0 + $0xae] sm:$0x3]  ;;  %p13646_p5 = por %p13645_p4, %p13644_p3 }
  0x30   :  { %623 = vadd.xlane.f32.xlu0 %v622_v13  ;;  %v730_v37 = vsel %vm564_vm0, %v363_v33, 0.0  ;;  %v748_v42 = vsel %vm564_vm0, %v369_v38, 0.0  ;;  %v389_v45 = vmul.f32 %v133_v41, %v133_v41  ;;  %v137_v47 = vld [vmem:[%s21259_s0 + $0xaa] sm:$0x3]  ;;  %v395_v50 = vmul.f32 %v139_v46, %v139_v46  ;;  %v143_v52 = vld [vmem:[%s21259_s0 + $0xb6] sm:$0x3] }
  0x31   :  { %v742_v43 = vsel %vm564_vm0, %v367_v39, 0.0  ;;  %v814_v48 = vsel %vm564_vm0, %v391_v44, 0.0  ;;  %v393_v51 = vmul.f32 %v137_v47, %v137_v47  ;;  %v141_v53 = vld [vmem:[%s21259_s0 + $0xb2] sm:$0x3]  ;;  %v399_v56 = vmul.f32 %v143_v52, %v143_v52  ;;  %v165_v58 = vld [vmem:[%s21259_s0 + $0xe2] sm:$0x3]  ;;  %p13647_p6 = pnand %p13646_p5, %p13640_p2 }
  0x32   :  { %v808_v49 = vsel %vm564_vm0, %v389_v45, 0.0  ;;  %v826_v54 = vsel %vm564_vm0, %v395_v50, 0.0  ;;  %v397_v57 = vmul.f32 %v141_v53, %v141_v53  ;;  %v145_v59 = vld [vmem:[%s21259_s0 + $0xba] sm:$0x3]  ;;  %v421_v62 = vmul.f32 %v165_v58, %v165_v58  ;;  %v169_v0 = vld [vmem:[%s21259_s0 + $0xea] sm:$0x3] }
  0x33   :  { %647 = vadd.xlane.f32.xlu1 %v646_v18  ;;  %v820_v55 = vsel %vm564_vm0, %v393_v51, 0.0  ;;  %v838_v60 = vsel %vm564_vm0, %v399_v56, 0.0  ;;  %v401_v63 = vmul.f32 %v145_v59, %v145_v59  ;;  %v167_v1 = vld [vmem:[%s21259_s0 + $0xe6] sm:$0x3]  ;;  %v425_v4 = vmul.f32 %v169_v0, %v169_v0  ;;  %v173_v6 = vld [vmem:[%s21259_s0 + $0xf2] sm:$0x3] }
  0x34   :  { %641 = vadd.xlane.f32.xlu0 %v640_v19  ;;  %v832_v61 = vsel %vm564_vm0, %v397_v57, 0.0  ;;  %v904_v2 = vsel %vm564_vm0, %v421_v62, 0.0  ;;  %v423_v5 = vmul.f32 %v167_v1, %v167_v1  ;;  %v171_v7 = vld [vmem:[%s21259_s0 + $0xee] sm:$0x3]  ;;  %v429_v10 = vmul.f32 %v173_v6, %v173_v6  ;;  %v177_v12 = vld [vmem:[%s21259_s0 + $0xfa] sm:$0x3] }
  0x35   :  { %v844_v3 = vsel %vm564_vm0, %v401_v63, 0.0  ;;  %v916_v8 = vsel %vm564_vm0, %v425_v4, 0.0  ;;  %v427_v11 = vmul.f32 %v171_v7, %v171_v7  ;;  %v175_v13 = vld [vmem:[%s21259_s0 + $0xf6] sm:$0x3]  ;;  %v433_v14 = vmul.f32 %v177_v12, %v177_v12  ;;  %v199_v18 = vld [vmem:[%s21259_s0 + $0x126] sm:$0x3] }
  0x36   :  { %v910_v9 = vsel %vm564_vm0, %v423_v5, 0.0  ;;  %v928_v15 = vsel %vm564_vm0, %v429_v10, 0.0  ;;  %v431_v17 = vmul.f32 %v175_v13, %v175_v13  ;;  %v197_v19 = vld [vmem:[%s21259_s0 + $0x122] sm:$0x3]  ;;  %v13673_v20 = vmov 1983009808  }
  0x37   :  { %713 = vadd.xlane.f32.xlu1 %v712_v24  ;;  %v922_v16 = vsel %vm564_vm0, %v427_v11, 0.0  ;;  %v3962_v21 = vunpack.c.l.s4 %v13673_v20  ;;  %v3965_v24 = vshrl.u32 %v3964_v22, 7  ;;  %v455_v27 = vmul.f32 %v199_v18, %v199_v18  ;;  %v203_v29 = vld [vmem:[%s21259_s0 + $0x12e] sm:$0x3]  ;;  %v207_v38 = vld [vmem:[%s21259_s0 + $0x136] sm:$0x3] }
  0x38   :  { %653 = vadd.xlane.f32.xlu0 %v652_v25  ;;  %v940_v25 = vsel %vm564_vm0, %v433_v14, 0.0  ;;  %v934_v26 = vsel %vm564_vm0, %v431_v17, 0.0  ;;  %v453_v28 = vmul.f32 %v197_v19, %v197_v19  ;;  %v205_v39 = vld [vmem:[%s21259_s0 + $0x132] sm:$0x3]  ;;  %v463_v41 = vmul.f32 %v207_v38, %v207_v38  ;;  %v229_v47 = vld [vmem:[%s21259_s0 + $0x162] sm:$0x3] }
  0x39   :  { %v3963_v23 = vunpack.c.0.s8 %v3962_v21  ;;  %v1006_v34 = vsel %vm564_vm0, %v455_v27, 0.0  ;;  %v461_v46 = vmul.f32 %v205_v39, %v205_v39  ;;  %v485_v51 = vmul.f32 %v229_v47, %v229_v47  ;;  %v233_v53 = vld [vmem:[%s21259_s0 + $0x16a] sm:$0x3]  ;;  %v237_v59 = vld [vmem:[%s21259_s0 + $0x172] sm:$0x3] }
  0x3a   :  { %v1000_v35 = vsel %vm564_vm0, %v453_v28, 0.0  ;;  %v489_v57 = vmul.f32 %v233_v53, %v233_v53  ;;  %v493_v63 = vmul.f32 %v237_v59, %v237_v59  ;;  %v241_v1 = vld [vmem:[%s21259_s0 + $0x17a] sm:$0x3]  ;;  %v263_v7 = vld [vmem:[%s21259_s0 + $0x1a6] sm:$0x3] }
  0x3b   :  { %725 = vadd.xlane.f32.xlu1 %v724_v30  ;;  %v201_v30 = vld [vmem:[%s21259_s0 + $0x12a] sm:$0x3]  ;;  %v13863_v33 = vsub.s32 %v3963_v23, %v3965_v24  ;;  %v1024_v50 = vsel %vm564_vm0, %v461_v46, 0.0  ;;  %v497_v5 = vmul.f32 %v241_v1, %v241_v1  ;;  %v519_v11 = vmul.f32 %v263_v7, %v263_v7  ;;  %v267_v13 = vld [vmem:[%s21259_s0 + $0x1ae] sm:$0x3] }
  0x3c   :  { %719 = vadd.xlane.f32.xlu0 %v718_v31  ;;  %v21266_v31 = vmov 0.0   ;;  %v265_v14 = vld [vmem:[%s21259_s0 + $0x1aa] sm:$0x3]  ;;  %v523_v17 = vmul.f32 %v267_v13, %v267_v13  ;;  %v271_v19 = vld [vmem:[%s21259_s0 + $0x1b6] sm:$0x3] }
  0x3d   :  { %v3960_v32 = vcombine.low %v21266_v31, %v21266_v31  ;;  %v521_v18 = vmul.f32 %v265_v14, %v265_v14  ;;  %v269_v20 = vld [vmem:[%s21259_s0 + $0x1b2] sm:$0x3]  ;;  %v527_v23 = vmul.f32 %v271_v19, %v271_v19  ;;  %v211_v39 = vld [vmem:[%s21259_s0 + $0x13e] sm:$0x3]  ;;  %v55_v53 = vld [vmem:[%s21259_s0 + $0x6] sm:$0x3] }
  0x3e   :  { %v1210_v21 = vsel %vm564_vm0, %v523_v17, 0.0  ;;  %v525_v24 = vmul.f32 %v269_v20, %v269_v20  ;;  %v275_v47 = vld [vmem:[%s21259_s0 + $0x1be] sm:$0x3]  ;;  %v59_v59 = vld [vmem:[%s21259_s0 + $0xe] sm:$0x3] }
  0x3f   :  { %737 = vadd.xlane.f32.xlu1 %v736_v36  ;;  %v459_v36 = vmul.f32 %v203_v29, %v203_v29  ;;  %v13874_v40 = vrot.slane %v3960_v32, %v13863_v33  ;;  %v1204_v22 = vsel %vm564_vm0, %v521_v18, 0.0  ;;  %v1222_v27 = vsel %vm564_vm0, %v527_v23, 0.0  ;;  %v147_v32 = vld [vmem:[%s21259_s0 + $0xbe] sm:$0x3]  ;;  %v63_v1 = vld [vmem:[%s21259_s0 + $0x16] sm:$0x3] }
  0x40   :  { %731 = vadd.xlane.f32.xlu0 %v730_v37  ;;  %v457_v37 = vmul.f32 %v201_v30, %v201_v30  ;;  %v1216_v28 = vsel %vm564_vm0, %v525_v24, 0.0  ;;  %v85_v7 = vld [vmem:[%s21259_s0 + $0x42] sm:$0x3]  ;;  %v89_v13 = vld [vmem:[%s21259_s0 + $0x4a] sm:$0x3] }
  0x41   :  { %21359 = vst [vmem:[#allocation11_spill] sm:$0xff] %v13874_v40  ;;  %v1018_v44 = vsel %vm564_vm0, %v459_v36, 0.0  ;;  %v87_v14 = vld [vmem:[%s21259_s0 + $0x46] sm:$0x3]  ;;  %v93_v19 = vld [vmem:[%s21259_s0 + $0x52] sm:$0x3] }
  0x42   :  { %v1012_v45 = vsel %vm564_vm0, %v457_v37, 0.0  ;;  %v403_v37 = vmul.f32 %v147_v32, %v147_v32  ;;  %v91_v20 = vld [vmem:[%s21259_s0 + $0x4e] sm:$0x3]  ;;  %v95_v24 = vld [vmem:[%s21259_s0 + $0x56] sm:$0x3] }
  0x43   :  { %749 = vadd.xlane.f32.xlu1 %v748_v42  ;;  %v3893_v42 = vld [vmem:[#allocation2] sm:$0x7]  ;;  %v127_v32 = vld [vmem:[%s21259_s0 + $0x96] sm:$0x3] }
  0x44   :  { %743 = vadd.xlane.f32.xlu0 %v742_v43  ;;  %v13878_v43 = vcombine.low %v13874_v40, %v13874_v40  ;;  %11388 = vmatprep.subr.msk.mxu0 %vm4238_vm1, %v3893_v42 }
  0x45   :  { %11389 = vmatpush3.msk.msra.mxu0 %vm4238_vm1, %v3893_v42  ;;  %v850_v42 = vsel %vm564_vm0, %v403_v37, 0.0 }
  0x46   :  { %21360 = vst [vmem:[#allocation12_spill] sm:$0xff] %v13878_v43  ;;  %11390 = vmatprep.mubr.msk.f32.mxu0 %vm4207_vm2, %v13878_v43  ;;  %11364 = vmatprep.mubr.msk.f32.mxu1 %vm4207_vm2, %v13878_v43 }
  0x47   :  { %815 = vadd.xlane.f32.xlu1 %v814_v48  ;;  %v209_v48 = vld [vmem:[%s21259_s0 + $0x13a] sm:$0x3]  ;;  %11391 = vmatmul.mubr.msk.f32.vlgmr.msra.gmra.mrb[0].mxu0 %vm4207_vm2, %v13878_v43 }
  0x48   :  { %809 = vadd.xlane.f32.xlu0 %v808_v49  ;;  %v1030_v49 = vsel %vm564_vm0, %v463_v41, 0.0  ;;  %v465_v52 = vmul.f32 %v209_v48, %v209_v48  ;;  %v179_v41 = vld [vmem:[%s21259_s0 + $0xfe] sm:$0x3] }
  0x49   :  { %v435_v46 = vmul.f32 %v179_v41, %v179_v41  ;;  %v243_v48 = vld [vmem:[%s21259_s0 + $0x17e] sm:$0x3] }
  0x4a   :  { %v1036_v56 = vsel %vm564_vm0, %v465_v52, 0.0  ;;  %v499_v52 = vmul.f32 %v243_v48, %v243_v48 }
  0x4b   :  { %827 = vadd.xlane.f32.xlu1 %v826_v54  ;;  %v231_v54 = vld [vmem:[%s21259_s0 + $0x166] sm:$0x3] }
  0x4c   :  { %821 = vadd.xlane.f32.xlu0 %v820_v55  ;;  %v1096_v55 = vsel %vm564_vm0, %v485_v51, 0.0  ;;  %v487_v58 = vmul.f32 %v231_v54, %v231_v54  ;;  %v531_v51 = vmul.f32 %v275_v47, %v275_v47  ;;  %v53_v54 = vld [vmem:[%s21259_s0 + $0x2] sm:$0x3] }
  0x4e   :  { %v1102_v62 = vsel %vm564_vm0, %v487_v58, 0.0  ;;  %v309_v58 = vmul.f32 %v53_v54, %v53_v54  ;;  %v155_v54 = vld [vmem:[%s21259_s0 + $0xce] sm:$0x3] }
  0x4f   :  { %839 = vadd.xlane.f32.xlu1 %v838_v60  ;;  %v235_v60 = vld [vmem:[%s21259_s0 + $0x16e] sm:$0x3] }
  0x50   :  { %833 = vadd.xlane.f32.xlu0 %v832_v61  ;;  %v1108_v61 = vsel %vm564_vm0, %v489_v57, 0.0  ;;  %v491_v0 = vmul.f32 %v235_v60, %v235_v60  ;;  %v311_v57 = vmul.f32 %v55_v53, %v55_v53  ;;  %v57_v60 = vld [vmem:[%s21259_s0 + $0xa] sm:$0x3]  ;;  %v157_v53 = vld [vmem:[%s21259_s0 + $0xd2] sm:$0x3] }
  0x52   :  { %v1114_v4 = vsel %vm564_vm0, %v491_v0, 0.0  ;;  %v313_v0 = vmul.f32 %v57_v60, %v57_v60  ;;  %v159_v60 = vld [vmem:[%s21259_s0 + $0xd6] sm:$0x3] }
  0x53   :  { %905 = vadd.xlane.f32.xlu1 %v904_v2  ;;  %v239_v2 = vld [vmem:[%s21259_s0 + $0x176] sm:$0x3] }
  0x54   :  { %845 = vadd.xlane.f32.xlu0 %v844_v3  ;;  %v1120_v3 = vsel %vm564_vm0, %v493_v63, 0.0  ;;  %v495_v6 = vmul.f32 %v239_v2, %v239_v2  ;;  %v315_v63 = vmul.f32 %v59_v59, %v59_v59  ;;  %v61_v2 = vld [vmem:[%s21259_s0 + $0x12] sm:$0x3]  ;;  %v161_v59 = vld [vmem:[%s21259_s0 + $0xda] sm:$0x3] }
  0x56   :  { %v1126_v10 = vsel %vm564_vm0, %v495_v6, 0.0  ;;  %v317_v6 = vmul.f32 %v61_v2, %v61_v2 }
  0x57   :  { %917 = vadd.xlane.f32.xlu1 %v916_v8  ;;  %v261_v8 = vld [vmem:[%s21259_s0 + $0x1a2] sm:$0x3] }
  0x58   :  { %911 = vadd.xlane.f32.xlu0 %v910_v9  ;;  %v1132_v9 = vsel %vm564_vm0, %v497_v5, 0.0  ;;  %v517_v12 = vmul.f32 %v261_v8, %v261_v8  ;;  %v319_v5 = vmul.f32 %v63_v1, %v63_v1  ;;  %v65_v8 = vld [vmem:[%s21259_s0 + $0x1a] sm:$0x3]  ;;  %v183_v1 = vld [vmem:[%s21259_s0 + $0x106] sm:$0x3] }
  0x5b   :  { %929 = vadd.xlane.f32.xlu1 %v928_v15  ;;  %v1198_v15 = vsel %vm564_vm0, %v519_v11, 0.0  ;;  %v341_v11 = vmul.f32 %v85_v7, %v85_v7  ;;  %v187_v7 = vld [vmem:[%s21259_s0 + $0x10e] sm:$0x3] }
  0x5c   :  { %923 = vadd.xlane.f32.xlu0 %v922_v16  ;;  %v1192_v16 = vsel %vm564_vm0, %v517_v12, 0.0  ;;  %v321_v12 = vmul.f32 %v65_v8, %v65_v8 }
  0x5d   :  { %v664_v17 = vsel %vm564_vm0, %v341_v11, 0.0  ;;  %v415_v11 = vmul.f32 %v159_v60, %v159_v60  ;;  %v249_v60 = vld [vmem:[%s21259_s0 + $0x18a] sm:$0x3] }
  0x5e   :  { %v604_v18 = vsel %vm564_vm0, %v321_v12, 0.0  ;;  %v185_v12 = vld [vmem:[%s21259_s0 + $0x10a] sm:$0x3] }
  0x5f   :  { %941 = vadd.xlane.f32.xlu1 %v940_v25  ;;  %v83_v25 = vld [vmem:[%s21259_s0 + $0x3e] sm:$0x3] }
  0x60   :  { %935 = vadd.xlane.f32.xlu0 %v934_v26  ;;  %v273_v26 = vld [vmem:[%s21259_s0 + $0x1ba] sm:$0x3]  ;;  %v339_v29 = vmul.f32 %v83_v25, %v83_v25  ;;  %v119_v25 = vld [vmem:[%s21259_s0 + $0x86] sm:$0x3] }
  0x61   :  { %v529_v30 = vmul.f32 %v273_v26, %v273_v26  ;;  %v349_v26 = vmul.f32 %v93_v19, %v93_v19  ;;  %v375_v37 = vmul.f32 %v119_v25, %v119_v25 }
  0x63   :  { %1007 = vadd.xlane.f32.xlu1 %v1006_v34  ;;  %v115_v34 = vld [vmem:[%s21259_s0 + $0x7e] sm:$0x3]  ;;  %v1228_v36 = vsel %vm564_vm0, %v529_v30, 0.0  ;;  %v121_v30 = vld [vmem:[%s21259_s0 + $0x8a] sm:$0x3]  ;;  %v688_v47 = vsel %vm564_vm0, %v349_v26, 0.0  ;;  %v441_v26 = vmul.f32 %v185_v12, %v185_v12 }
  0x64   :  { %1001 = vadd.xlane.f32.xlu0 %v1000_v35  ;;  %v658_v35 = vsel %vm564_vm0, %v339_v29, 0.0  ;;  %v371_v38 = vmul.f32 %v115_v34, %v115_v34  ;;  %v123_v29 = vld [vmem:[%s21259_s0 + $0x8e] sm:$0x3]  ;;  %v125_v34 = vld [vmem:[%s21259_s0 + $0x92] sm:$0x3] }
  0x67   :  { %1019 = vadd.xlane.f32.xlu1 %v1018_v44  ;;  %v754_v44 = vsel %vm564_vm0, %v371_v38, 0.0  ;;  %v149_v38 = vld [vmem:[%s21259_s0 + $0xc2] sm:$0x3] }
  0x68   :  { %1013 = vadd.xlane.f32.xlu0 %v1012_v45  ;;  %v467_v45 = vmul.f32 %v211_v39, %v211_v39  ;;  %v129_v39 = vld [vmem:[%s21259_s0 + $0x9a] sm:$0x3] }
  0x6b   :  { %1031 = vadd.xlane.f32.xlu1 %v1030_v49  ;;  %v1042_v49 = vsel %vm564_vm0, %v467_v45, 0.0  ;;  %v153_v45 = vld [vmem:[%s21259_s0 + $0xca] sm:$0x3] }
  0x6c   :  { %1025 = vadd.xlane.f32.xlu0 %v1024_v50  ;;  %v946_v50 = vsel %vm564_vm0, %v435_v46, 0.0  ;;  %v151_v46 = vld [vmem:[%s21259_s0 + $0xc6] sm:$0x3] }
  0x6f   :  { %1097 = vadd.xlane.f32.xlu1 %v1096_v55  ;;  %v1234_v55 = vsel %vm564_vm0, %v531_v51, 0.0  ;;  %v405_v51 = vmul.f32 %v149_v38, %v149_v38 }
  0x70   :  { %1037 = vadd.xlane.f32.xlu0 %v1036_v56  ;;  %v1138_v56 = vsel %vm564_vm0, %v499_v52, 0.0  ;;  %v385_v52 = vmul.f32 %v129_v39, %v129_v39 }
  0x71   :  { %v14102_v8 = vsel %vm564_vm0, %v405_v51, 0.0  ;;  %v14175_v51 = vsel %vm564_vm0, %v441_v26, 0.0  ;;  %v285_v26 = vld [vmem:[%s21259_s0 + $0x1d2] sm:$0x3] }
  0x73   :  { %1109 = vadd.xlane.f32.xlu1 %v1108_v61  ;;  %v574_v61 = vsel %vm564_vm0, %v311_v57, 0.0  ;;  %v409_v57 = vmul.f32 %v153_v45, %v153_v45 }
  0x74   :  { %1103 = vadd.xlane.f32.xlu0 %v1102_v62  ;;  %v568_v62 = vsel %vm564_vm0, %v309_v58, 0.0  ;;  %v407_v58 = vmul.f32 %v151_v46, %v151_v46 }
  0x77   :  { %1121 = vadd.xlane.f32.xlu1 %v1120_v3  ;;  %v586_v3 = vsel %vm564_vm0, %v315_v63, 0.0 }
  0x78   :  { %1115 = vadd.xlane.f32.xlu0 %v1114_v4  ;;  %v580_v4 = vsel %vm564_vm0, %v313_v0, 0.0 }
  0x7b   :  { %1133 = vadd.xlane.f32.xlu1 %v1132_v9  ;;  %v598_v9 = vsel %vm564_vm0, %v319_v5, 0.0  ;;  %v411_v5 = vmul.f32 %v155_v54, %v155_v54  ;;  %v245_v54 = vld [vmem:[%s21259_s0 + $0x182] sm:$0x3] }
  0x7c   :  { %1127 = vadd.xlane.f32.xlu0 %v1126_v10  ;;  %v592_v10 = vsel %vm564_vm0, %v317_v6, 0.0  ;;  %v181_v6 = vld [vmem:[%s21259_s0 + $0x102] sm:$0x3] }
  0x7d   :  { %v437_v19 = vmul.f32 %v181_v6, %v181_v6  ;;  %v14138_v25 = vsel %vm564_vm0, %v411_v5, 0.0 }
  0x7f   :  { %1199 = vadd.xlane.f32.xlu1 %v1198_v15  ;;  %v345_v15 = vmul.f32 %v89_v13, %v89_v13  ;;  %v191_v13 = vld [vmem:[%s21259_s0 + $0x116] sm:$0x3]  ;;  %v14165_v45 = vsel %vm564_vm0, %v437_v19, 0.0 }
  0x80   :  { %1193 = vadd.xlane.f32.xlu0 %v1192_v16  ;;  %v343_v16 = vmul.f32 %v87_v14, %v87_v14  ;;  %v14114_v14 = vsel %vm564_vm0, %v409_v57, 0.0 }
  0x82   :  { %v670_v23 = vsel %vm564_vm0, %v343_v16, 0.0  ;;  %v439_v16 = vmul.f32 %v183_v1, %v183_v1 }
  0x83   :  { %1211 = vadd.xlane.f32.xlu1 %v1210_v21  ;;  %v97_v21 = vld [vmem:[%s21259_s0 + $0x5a] sm:$0x3] }
  0x84   :  { %1205 = vadd.xlane.f32.xlu0 %v1204_v22  ;;  %v676_v22 = vsel %vm564_vm0, %v345_v15, 0.0  ;;  %v14117_v15 = vsel %vm564_vm0, %v407_v58, 0.0 }
  0x87   :  { %1223 = vadd.xlane.f32.xlu1 %v1222_v27  ;;  %v347_v27 = vmul.f32 %v91_v20, %v91_v20  ;;  %v443_v20 = vmul.f32 %v187_v7, %v187_v7  ;;  %v501_v7 = vmul.f32 %v245_v54, %v245_v54 }
  0x88   :  { %1217 = vadd.xlane.f32.xlu0 %v1216_v28  ;;  %v117_v28 = vld [vmem:[%s21259_s0 + $0x82] sm:$0x3] }
  0x89   :  { %v373_v41 = vmul.f32 %v117_v28, %v117_v28  ;;  %v682_v48 = vsel %vm564_vm0, %v347_v27, 0.0  ;;  %v447_v27 = vmul.f32 %v191_v13, %v191_v13  ;;  %v221_v28 = vld [vmem:[%s21259_s0 + $0x152] sm:$0x3]  ;;  %v14168_v46 = vsel %vm564_vm0, %v443_v20, 0.0  ;;  %v257_v20 = vld [vmem:[%s21259_s0 + $0x19a] sm:$0x3] }
  0x8b   :  { %659 = vadd.xlane.f32.xlu1 %v658_v35  ;;  %v353_v35 = vmul.f32 %v97_v21, %v97_v21  ;;  %v193_v21 = vld [vmem:[%s21259_s0 + $0x11a] sm:$0x3] }
  0x8c   :  { %1229 = vadd.xlane.f32.xlu0 %v1228_v36  ;;  %v351_v36 = vmul.f32 %v95_v24, %v95_v24  ;;  %v449_v38 = vmul.f32 %v193_v21, %v193_v21  ;;  %v281_v21 = vld [vmem:[%s21259_s0 + $0x1ca] sm:$0x3] }
  0x8f   :  { %851 = vadd.xlane.f32.xlu1 %v850_v42  ;;  %v379_v42 = vmul.f32 %v123_v29, %v123_v29  ;;  %v219_v29 = vld [vmem:[%s21259_s0 + $0x14e] sm:$0x3] }
  0x90   :  { %755 = vadd.xlane.f32.xlu0 %v754_v44  ;;  %v377_v44 = vmul.f32 %v121_v30, %v121_v30 }
  0x91   :  { %v14081_v63 = vsel %vm564_vm0, %v379_v42, 0.0  ;;  %v223_v42 = vld [vmem:[%s21259_s0 + $0x156] sm:$0x3] }
  0x92   :  { %v14084_v0 = vsel %vm564_vm0, %v377_v44, 0.0  ;;  %v247_v44 = vld [vmem:[%s21259_s0 + $0x186] sm:$0x3]  ;;  %v479_v58 = vmul.f32 %v223_v42, %v223_v42  ;;  %v54_v42 = vld [vmem:[%s21259_s0 + $0x4] sm:$0x3] }
  0x93   :  { %1043 = vadd.xlane.f32.xlu1 %v1042_v49  ;;  %v383_v49 = vmul.f32 %v127_v32, %v127_v32  ;;  %v14150_v32 = vsel %vm564_vm0, %v415_v11, 0.0  ;;  %v253_v11 = vld [vmem:[%s21259_s0 + $0x192] sm:$0x3] }
  0x94   :  { %947 = vadd.xlane.f32.xlu0 %v946_v50  ;;  %v381_v50 = vmul.f32 %v125_v34, %v125_v34 }
  0x95   :  { %v14090_v2 = vsel %vm564_vm0, %v383_v49, 0.0 }
  0x97   :  { %1235 = vadd.xlane.f32.xlu1 %v1234_v55  ;;  %v700_v55 = vsel %vm564_vm0, %v353_v35, 0.0 }
  0x98   :  { %1139 = vadd.xlane.f32.xlu0 %v1138_v56  ;;  %v694_v56 = vsel %vm564_vm0, %v351_v36, 0.0  ;;  %v225_v36 = vld [vmem:[%s21259_s0 + $0x15a] sm:$0x3] }
  0x9b   :  { %575 = vadd.xlane.f32.xlu1 %v574_v61  ;;  %v766_v61 = vsel %vm564_vm0, %v375_v37, 0.0  ;;  %v14156_v37 = vsel %vm564_vm0, %v439_v16, 0.0 }
  0x9c   :  { %569 = vadd.xlane.f32.xlu0 %v568_v62  ;;  %v760_v62 = vsel %vm564_vm0, %v373_v41, 0.0 }
  0x9f   :  { %587 = vadd.xlane.f32.xlu1 %v586_v3  ;;  %v14093_v3 = vsel %vm564_vm0, %v381_v50, 0.0 }
  0xa0   :  { %581 = vadd.xlane.f32.xlu0 %v580_v4  ;;  %v413_v4 = vmul.f32 %v157_v53, %v157_v53  ;;  %v481_v53 = vmul.f32 %v225_v36, %v225_v36  ;;  %v287_v36 = vld [vmem:[%s21259_s0 + $0x1d6] sm:$0x3] }
  0xa2   :  { %v14135_v24 = vsel %vm564_vm0, %v413_v4, 0.0 }
  0xa3   :  { %599 = vadd.xlane.f32.xlu1 %v598_v9  ;;  %v14105_v9 = vsel %vm564_vm0, %v385_v52, 0.0  ;;  %v14178_v52 = vsel %vm564_vm0, %v447_v27, 0.0  ;;  %v283_v27 = vld [vmem:[%s21259_s0 + $0x1ce] sm:$0x3] }
  0xa4   :  { %593 = vadd.xlane.f32.xlu0 %v592_v10  ;;  %v417_v10 = vmul.f32 %v161_v59, %v161_v59  ;;  %v503_v59 = vmul.f32 %v247_v44, %v247_v44  ;;  %v52_v44 = vld [vmem:[%s21259_s0] sm:$0x3]  ;;  %v539_v54 = vmul.f32 %v283_v27, %v283_v27 }
  0xa6   :  { %v14147_v30 = vsel %vm564_vm0, %v417_v10, 0.0  ;;  %v14234_v19 = vsel %vm564_vm0, %v503_v59, 0.0 }
  0xa7   :  { %665 = vadd.xlane.f32.xlu1 %v664_v17  ;;  %v189_v17 = vld [vmem:[%s21259_s0 + $0x112] sm:$0x3] }
  0xa8   :  { %605 = vadd.xlane.f32.xlu0 %v604_v18  ;;  %v213_v18 = vld [vmem:[%s21259_s0 + $0x142] sm:$0x3]  ;;  %v445_v34 = vmul.f32 %v189_v17, %v189_v17 }
  0xa9   :  { %v469_v35 = vmul.f32 %v213_v18, %v213_v18  ;;  %v277_v17 = vld [vmem:[%s21259_s0 + $0x1c2] sm:$0x3]  ;;  %v14231_v18 = vsel %vm564_vm0, %v479_v58, 0.0  ;;  %v56_v58 = vld [vmem:[%s21259_s0 + $0x8] sm:$0x3] }
  0xab   :  { %677 = vadd.xlane.f32.xlu1 %v676_v22  ;;  %v217_v22 = vld [vmem:[%s21259_s0 + $0x14a] sm:$0x3]  ;;  %v14190_v57 = vsel %vm564_vm0, %v469_v35, 0.0  ;;  %v289_v35 = vld [vmem:[%s21259_s0 + $0x1da] sm:$0x3] }
  0xac   :  { %671 = vadd.xlane.f32.xlu0 %v670_v23  ;;  %v215_v23 = vld [vmem:[%s21259_s0 + $0x146] sm:$0x3]  ;;  %v473_v39 = vmul.f32 %v217_v22, %v217_v22  ;;  %v509_v22 = vmul.f32 %v253_v11, %v253_v11  ;;  %v308_v11 = vmul.f32 %v52_v44, %v52_v44 }
  0xad   :  { %v471_v41 = vmul.f32 %v215_v23, %v215_v23  ;;  %v279_v23 = vld [vmem:[%s21259_s0 + $0x1c6] sm:$0x3] }
  0xae   :  { %v14203_v1 = vsel %vm564_vm0, %v473_v39, 0.0  ;;  %v14290_v59 = vsel %vm564_vm0, %v509_v22, 0.0  ;;  %v312_v22 = vmul.f32 %v56_v58, %v56_v58 }
  0xaf   :  { %689 = vadd.xlane.f32.xlu1 %v688_v47  ;;  %v477_v47 = vmul.f32 %v221_v28, %v221_v28  ;;  %v14206_v4 = vsel %vm564_vm0, %v471_v41, 0.0  ;;  %v14255_v28 = vsel %vm564_vm0, %v501_v7, 0.0  ;;  %v513_v41 = vmul.f32 %v257_v20, %v257_v20 }
  0xb0   :  { %683 = vadd.xlane.f32.xlu0 %v682_v48  ;;  %v475_v48 = vmul.f32 %v219_v29, %v219_v29 }
  0xb1   :  { %v14211_v5 = vsel %vm564_vm0, %v477_v47, 0.0  ;;  %v537_v47 = vmul.f32 %v281_v21, %v281_v21  ;;  %v14304_v20 = vsel %vm564_vm0, %v513_v41, 0.0  ;;  %v60_v41 = vld [vmem:[%s21259_s0 + $0x10] sm:$0x3] }
  0xb2   :  { %v14214_v6 = vsel %vm564_vm0, %v475_v48, 0.0  ;;  %v535_v48 = vmul.f32 %v279_v23, %v279_v23 }
  0xb3   :  { %701 = vadd.xlane.f32.xlu1 %v700_v55  ;;  %v251_v55 = vld [vmem:[%s21259_s0 + $0x18e] sm:$0x3] }
  0xb4   :  { %695 = vadd.xlane.f32.xlu0 %v694_v56  ;;  %v14187_v56 = vsel %vm564_vm0, %v445_v34, 0.0  ;;  %v507_v10 = vmul.f32 %v251_v55, %v251_v55  ;;  %v533_v34 = vmul.f32 %v277_v17, %v277_v17  ;;  %v58_v55 = vld [vmem:[%s21259_s0 + $0xc] sm:$0x3] }
  0xb5   :  { %v314_v21 = vmul.f32 %v58_v55, %v58_v55 }
  0xb6   :  { %v14258_v29 = vsel %vm564_vm0, %v507_v10, 0.0  ;;  %v14296_v7 = vsel %vm564_vm0, %v533_v34, 0.0  ;;  %v310_v10 = vmul.f32 %v54_v42, %v54_v42 }
  0xb7   :  { %767 = vadd.xlane.f32.xlu1 %v766_v61  ;;  %v255_v61 = vld [vmem:[%s21259_s0 + $0x196] sm:$0x3]  ;;  %v14347_v55 = vsel %vm564_vm0, %v314_v21, 0.0 }
  0xb8   :  { %761 = vadd.xlane.f32.xlu0 %v760_v62  ;;  %v14170_v49 = vpop.xlane.xlu1 %629  ;;  %v14200_v62 = vsel %vm564_vm0, %v449_v38, 0.0  ;;  %v511_v16 = vmul.f32 %v255_v61, %v255_v61  ;;  %v543_v61 = vmul.f32 %v287_v36, %v287_v36  ;;  %v62_v36 = vld [vmem:[%s21259_s0 + $0x14] sm:$0x3]  ;;  %v14335_v44 = vsel %vm564_vm0, %v310_v10, 0.0  ;;  %21362 = vst [vmem:[#allocation14_spill] sm:$0xff] %v14347_v55 }
  0xb9   :  { %v14172_v50 = vpop.xlane.xlu0 %617  ;;  %12271 = vrsqrt.f32 %v14170_v49  ;;  %vm1482_vm3 = vcmp.eq.f32.partialorder %v14170_v49, inf  ;;  %vm1484_vm4 = vcmp.eq.f32.partialorder %v14170_v49, 0.0  ;;  %v318_v58 = vmul.f32 %v62_v36, %v62_v36 }
  0xba   :  { %12273 = vrsqrt.f32 %v14172_v50  ;;  %v14274_v39 = vsel %vm564_vm0, %v511_v16, 0.0  ;;  %vm1454_vm5 = vcmp.eq.f32.partialorder %v14172_v50, inf  ;;  %vm1456_vm6 = vcmp.eq.f32.partialorder %v14172_v50, 0.0 }
  0xbb   :  { %779 = vadd.xlane.f32.xlu1 %v14081_v63  ;;  %v14225_v63 = vsel %vm564_vm0, %v481_v53, 0.0  ;;  %v541_v53 = vmul.f32 %v285_v26, %v285_v26  ;;  %v14316_v26 = vsel %vm564_vm0, %v539_v54, 0.0  ;;  %v1457_v10 = vand.u32 2147483648, %v14172_v50 }
  0xbc   :  { %773 = vadd.xlane.f32.xlu0 %v14084_v0  ;;  %v14220_v12 = vpop.xlane.xlu1 %635  ;;  %v505_v0 = vmul.f32 %v249_v60, %v249_v60  ;;  %v545_v60 = vmul.f32 %v289_v35, %v289_v35  ;;  %v14322_v35 = vsel %vm564_vm0, %v543_v61, 0.0  ;;  %v1485_v61 = vand.u32 2147483648, %v14170_v49 }
  0xbd   :  { %v14222_v13 = vpop.xlane.xlu0 %623  ;;  %12275 = vrsqrt.f32 %v14220_v12  ;;  %v14313_v23 = vsel %vm564_vm0, %v541_v53, 0.0  ;;  %vm1496_vm7 = vcmp.eq.f32.partialorder %v14220_v12, inf  ;;  %vm1498_vm8 = vcmp.eq.f32.partialorder %v14220_v12, 0.0 }
  0xbe   :  { %12277 = vrsqrt.f32 %v14222_v13  ;;  %v14319_v34 = vsel %vm564_vm0, %v545_v60, 0.0  ;;  %v316_v60 = vmul.f32 %v60_v41, %v60_v41  ;;  %v1499_v36 = vand.u32 2147483648, %v14220_v12 }
  0xbf   :  { %791 = vadd.xlane.f32.xlu1 %v14090_v2  ;;  %vm1468_vm9 = vcmp.eq.f32.partialorder %v14222_v13, inf  ;;  %v1471_v41 = vand.u32 2147483648, %v14222_v13  ;;  %vm1470_vm10 = vcmp.eq.f32.partialorder %v14222_v13, 0.0  ;;  %v14383_v31 = vsel %vm564_vm0, %v318_v58, 0.0 }
  0xc0   :  { %785 = vadd.xlane.f32.xlu0 %v14093_v3  ;;  %v14266_v38 = vpop.xlane.xlu1 %647  ;;  %v14271_v3 = vsel %vm564_vm0, %v505_v0, 0.0  ;;  %21364 = vst [vmem:[#allocation16_spill] sm:$0xff] %v14383_v31  ;;  %v14386_v40 = vsel %vm564_vm0, %v316_v60, 0.0 }
  0xc1   :  { %v14268_v2 = vpop.xlane.xlu0 %641  ;;  %12279 = vrsqrt.f32 %v14266_v38  ;;  %vm1524_vm11 = vcmp.eq.f32.partialorder %v14266_v38, inf  ;;  %vm1526_vm12 = vcmp.eq.f32.partialorder %v14266_v38, 0.0  ;;  %v1527_v31 = vand.u32 2147483648, %v14266_v38 }
  0xc2   :  { %12281 = vrsqrt.f32 %v14268_v2  ;;  %vm1510_vm13 = vcmp.eq.f32.partialorder %v14268_v2, inf  ;;  %vm1512_vm14 = vcmp.eq.f32.partialorder %v14268_v2, 0.0 }
  0xc3   :  { %857 = vadd.xlane.f32.xlu1 %v14102_v8  ;;  %v12272_v0 = vpop.eup %12271  ;;  %v14307_v8 = vsel %vm564_vm0, %v537_v47, 0.0  ;;  %v14338_v47 = vsel %vm564_vm0, %v308_v11, 0.0  ;;  %v66_v11 = vld [vmem:[%s21259_s0 + $0x1c] sm:$0x3] }
  0xc4   :  { %797 = vadd.xlane.f32.xlu0 %v14105_v9  ;;  %v14299_v16 = vpop.xlane.xlu1 %713  ;;  %v14310_v9 = vsel %vm564_vm0, %v535_v48, 0.0  ;;  %v12274_v27 = vpop.eup %12273  ;;  %v1481_v42 = vmul.f32 %v12272_v0, %v14170_v49  ;;  %21361 = vst [vmem:[#allocation13_spill] sm:$0xff] %v14338_v47  ;;  %v322_v43 = vmul.f32 %v66_v11, %v66_v11 }
  0xc5   :  { %v14301_v17 = vpop.xlane.xlu0 %653  ;;  %12283 = vrsqrt.f32 %v14299_v16  ;;  %vm1678_vm15 = vcmp.eq.f32.partialorder %v14299_v16, inf }
  0xc6   :  { %12285 = vrsqrt.f32 %v14301_v17  ;;  %v1483_v0 = vsel %vm1482_vm3, %v14170_v49, %v1481_v42  ;;  %vm1680_vm3 = vcmp.eq.f32.partialorder %v14299_v16, 0.0 }
  0xc7   :  { %869 = vadd.xlane.f32.xlu1 %v14114_v14  ;;  %v12276_v48 = vpop.eup %12275  ;;  %v14350_v14 = vsel %vm564_vm0, %v312_v22, 0.0  ;;  %v64_v22 = vld [vmem:[%s21259_s0 + $0x18] sm:$0x3]  ;;  %v1486_v55 = vsel %vm1484_vm4, %v1485_v61, %v1483_v0  ;;  %vm1538_vm4 = vcmp.eq.f32.partialorder %v14301_v17, inf }
  0xc8   :  { %863 = vadd.xlane.f32.xlu0 %v14117_v15  ;;  %v14342_v53 = vpop.xlane.xlu1 %725  ;;  %21363 = vst [vmem:[#allocation15_spill] sm:$0xff] %v14350_v14  ;;  %v1453_v15 = vmul.f32 %v12274_v27, %v14172_v50  ;;  %v1495_v21 = vmul.f32 %v12276_v48, %v14220_v12  ;;  %v12278_v27 = vpop.eup %12277  ;;  %v320_v47 = vmul.f32 %v64_v22, %v64_v22 }
  0xc9   :  { %v14344_v54 = vpop.xlane.xlu0 %719  ;;  %12287 = vrsqrt.f32 %v14342_v53  ;;  %v1467_v58 = vmul.f32 %v12278_v27, %v14222_v13 }
  0xca   :  { %12289 = vrsqrt.f32 %v14344_v54  ;;  %v14419_v27 = vsel %vm564_vm0, %v320_v47, 0.0  ;;  %v1681_v47 = vand.u32 2147483648, %v14299_v16 }
  0xcb   :  { %881 = vadd.xlane.f32.xlu1 %v14135_v24  ;;  %v12280_v24 = vpop.eup %12279 }
  0xcc   :  { %875 = vadd.xlane.f32.xlu0 %v14138_v25  ;;  %v14374_v42 = vpop.xlane.xlu1 %737  ;;  %v1455_v25 = vsel %vm1454_vm5, %v14172_v50, %v1453_v15  ;;  %v12282_v14 = vpop.eup %12281  ;;  %v1497_v15 = vsel %vm1496_vm7, %v14220_v12, %v1495_v21  ;;  %v1523_v60 = vmul.f32 %v12280_v24, %v14266_v38  ;;  %v3146_v21 = vmax.f32 %v1486_v55, 1e-12 }
  0xcd   :  { %v14376_v48 = vpop.xlane.xlu0 %731  ;;  %v1458_v49 = vsel %vm1456_vm6, %v1457_v10, %v1455_v25  ;;  %v1509_v22 = vmul.f32 %v12282_v14, %v14268_v2  ;;  %12291 = vrsqrt.f32 %v14374_v42  ;;  %v1500_v50 = vsel %vm1498_vm8, %v1499_v36, %v1497_v15 }
  0xce   :  { %v14416_v10 = vsel %vm564_vm0, %v322_v43, 0.0  ;;  %v3142_v24 = vmax.f32 %v1458_v49, 1e-12  ;;  %v1469_v55 = vsel %vm1468_vm9, %v14222_v13, %v1467_v58  ;;  %12293 = vrsqrt.f32 %v14376_v48 }
  0xcf   :  { %893 = vadd.xlane.f32.xlu1 %v14147_v30  ;;  %v12284_v0 = vpop.eup %12283  ;;  %v1513_v30 = vand.u32 2147483648, %v14268_v2  ;;  %v1525_v43 = vsel %vm1524_vm11, %v14266_v38, %v1523_v60  ;;  %12295 = vrcp.f32 %v3146_v21  ;;  %v1511_v15 = vsel %vm1510_vm13, %v14268_v2, %v1509_v22 }
  0xd0   :  { %887 = vadd.xlane.f32.xlu0 %v14150_v32  ;;  %v14405_v61 = vpop.xlane.xlu1 %749  ;;  %v12286_v32 = vpop.eup %12285  ;;  %v1677_v12 = vmul.f32 %v12284_v0, %v14299_v16  ;;  %v1472_v49 = vsel %vm1470_vm10, %v1471_v41, %v1469_v55  ;;  %vm1540_vm5 = vcmp.eq.f32.partialorder %v14301_v17, 0.0  ;;  %v1541_v60 = vand.u32 2147483648, %v14301_v17 }
  0xd1   :  { %v14407_v11 = vpop.xlane.xlu0 %743  ;;  %v1537_v58 = vmul.f32 %v12286_v32, %v14301_v17  ;;  %12297 = vrsqrt.f32 %v14405_v61  ;;  %v1528_v0 = vsel %vm1526_vm12, %v1527_v31, %v1525_v43  ;;  %vm1706_vm6 = vcmp.eq.f32.partialorder %v14342_v53, inf }
  0xd2   :  { %12299 = vrcp.f32 %v3142_v24  ;;  %v1514_v13 = vsel %vm1512_vm14, %v1513_v30, %v1511_v15  ;;  %v1679_v41 = vsel %vm1678_vm15, %v14299_v16, %v1677_v12  ;;  %vm1708_vm7 = vcmp.eq.f32.partialorder %v14342_v53, 0.0 }
  0xd3   :  { %959 = vadd.xlane.f32.xlu1 %v14156_v37  ;;  %v86_v37 = vld [vmem:[%s21259_s0 + $0x44] sm:$0x3]  ;;  %v12288_v25 = vpop.eup %12287  ;;  %12301 = vrsqrt.f32 %v14407_v11  ;;  %v1539_v2 = vsel %vm1538_vm4, %v14301_v17, %v1537_v58  ;;  %v1709_v30 = vand.u32 2147483648, %v14342_v53  ;;  %vm1692_vm8 = vcmp.eq.f32.partialorder %v14344_v54, inf }
  0xd4   :  { %953 = vadd.xlane.f32.xlu0 %v14165_v45  ;;  %v14434_v14 = vpop.xlane.xlu1 %815  ;;  %v3148_v45 = vmax.f32 %v1500_v50, 1e-12  ;;  %v14455_v21 = vmul.f32 %v86_v37, %v86_v37  ;;  %v1705_v22 = vmul.f32 %v12288_v25, %v14342_v53  ;;  %vm1694_vm9 = vcmp.eq.f32.partialorder %v14344_v54, 0.0 }
  0xd5   :  { %v14436_v36 = vpop.xlane.xlu0 %809  ;;  %v3152_v50 = vmax.f32 %v1528_v0, 1e-12  ;;  %v3150_v24 = vmax.f32 %v1514_v13, 1e-12  ;;  %v1682_v55 = vsel %vm1680_vm3, %v1681_v47, %v1679_v41  ;;  %v1542_v43 = vsel %vm1540_vm5, %v1541_v60, %v1539_v2 }
  0xd6   :  { %12303 = vrcp.f32 %v3148_v45  ;;  %v1707_v12 = vsel %vm1706_vm6, %v14342_v53, %v1705_v22  ;;  %v1695_v47 = vand.u32 2147483648, %v14344_v54  ;;  %vm1734_vm10 = vcmp.eq.f32.partialorder %v14374_v42, inf }
  0xd7   :  { %971 = vadd.xlane.f32.xlu1 %v14168_v46  ;;  %v12290_v46 = vpop.eup %12289  ;;  %12305 = vrsqrt.f32 %v14434_v14  ;;  %vm1736_vm11 = vcmp.eq.f32.partialorder %v14374_v42, 0.0  ;;  %v1737_v17 = vand.u32 2147483648, %v14374_v42  ;;  %vm1720_vm12 = vcmp.eq.f32.partialorder %v14376_v48, inf }
  0xd8   :  { %965 = vadd.xlane.f32.xlu0 %v14175_v51  ;;  %v14464_v31 = vpop.xlane.xlu1 %827  ;;  %v3144_v51 = vmax.f32 %v1472_v49, 1e-12  ;;  %v12292_v32 = vpop.eup %12291  ;;  %12307 = vrsqrt.f32 %v14436_v36  ;;  %v1691_v37 = vmul.f32 %v12290_v46, %v14344_v54  ;;  %v3154_v58 = vmax.f32 %v1542_v43, 1e-12 }
  0xd9   :  { %v14466_v38 = vpop.xlane.xlu0 %821  ;;  %12309 = vrsqrt.f32 %v14464_v31  ;;  %v12294_v16 = vpop.eup %12293  ;;  %v1710_v49 = vsel %vm1708_vm7, %v1709_v30, %v1707_v12  ;;  %vm1722_vm13 = vcmp.eq.f32.partialorder %v14376_v48, 0.0  ;;  %v1723_v41 = vand.u32 2147483648, %v14376_v48 }
  0xda   :  { %12311 = vrcp.f32 %v3144_v51  ;;  %v14498_v15 = vpop.eup %12295  ;;  %v1693_v0 = vsel %vm1692_vm8, %v14344_v54, %v1691_v37  ;;  %v1719_v13 = vmul.f32 %v12294_v16, %v14376_v48  ;;  %vm1762_vm14 = vcmp.eq.f32.partialorder %v14405_v61, inf }
  0xdb   :  { %983 = vadd.xlane.f32.xlu1 %v14178_v52  ;;  %v3174_v52 = vmax.f32 %v1682_v55, 1e-12  ;;  %12313 = vrcp.f32 %v3152_v50  ;;  %v12298_v60 = vpop.eup %12297  ;;  %vm1764_vm15 = vcmp.eq.f32.partialorder %v14405_v61, 0.0  ;;  %v3178_v46 = vmax.f32 %v1710_v49, 1e-12 }
  0xdc   :  { %977 = vadd.xlane.f32.xlu0 %v14187_v56  ;;  %v14488_v25 = vpop.xlane.xlu1 %839  ;;  %v1733_v56 = vmul.f32 %v12292_v32, %v14374_v42  ;;  %12315 = vrcp.f32 %v3150_v24  ;;  %v12300_v53 = vpop.eup %12299  ;;  %vm1748_vm3 = vcmp.eq.f32.partialorder %v14407_v11, inf  ;;  %v1696_v30 = vsel %vm1694_vm9, %v1695_v47, %v1693_v0 }
  0xdd   :  { %v14496_v45 = vpop.xlane.xlu0 %833  ;;  %12317 = vrsqrt.f32 %v14466_v38  ;;  %v1761_v32 = vmul.f32 %v12298_v60, %v14405_v61  ;;  %vm1750_vm4 = vcmp.eq.f32.partialorder %v14407_v11, 0.0  ;;  %v1721_v24 = vsel %vm1720_vm12, %v14376_v48, %v1719_v13 }
  0xde   :  { %12319 = vrcp.f32 %v3174_v52  ;;  %v1735_v51 = vsel %vm1734_vm10, %v14374_v42, %v1733_v56  ;;  %v1751_v55 = vand.u32 2147483648, %v14407_v11  ;;  %vm1916_vm5 = vcmp.eq.f32.partialorder %v14434_v14, inf }
  0xdf   :  { %1049 = vadd.xlane.f32.xlu1 %v14190_v57  ;;  %v1765_v57 = vand.u32 2147483648, %v14405_v61  ;;  %12321 = vrcp.f32 %v3154_v58  ;;  %v1919_v54 = vand.u32 2147483648, %v14434_v14  ;;  %v1738_v37 = vsel %vm1736_vm11, %v1737_v17, %v1735_v51 }
  0xe0   :  { %989 = vadd.xlane.f32.xlu0 %v14200_v62  ;;  %v14510_v22 = vpop.xlane.xlu1 %905  ;;  %v12302_v62 = vpop.eup %12301  ;;  %vm1918_vm6 = vcmp.eq.f32.partialorder %v14434_v14, 0.0  ;;  %vm1902_vm7 = vcmp.eq.f32.partialorder %v14436_v36, inf  ;;  %12323 = vrsqrt.f32 %v14488_v25  ;;  %v3176_v16 = vmax.f32 %v1696_v30, 1e-12 }
  0xe1   :  { %v14520_v2 = vpop.eup %12303  ;;  %v14534_v43 = vpop.xlane.xlu0 %845  ;;  %12325 = vrcp.f32 %v3178_v46  ;;  %vm1904_vm8 = vcmp.eq.f32.partialorder %v14436_v36, 0.0  ;;  %v1905_v47 = vand.u32 2147483648, %v14436_v36  ;;  %v1724_v42 = vsel %vm1722_vm13, %v1723_v41, %v1721_v24 }
  0xe2   :  { %v12306_v50 = vpop.eup %12305  ;;  %v1763_v17 = vsel %vm1762_vm14, %v14405_v61, %v1761_v32  ;;  %12327 = vrsqrt.f32 %v14496_v45  ;;  %v3182_v49 = vmax.f32 %v1738_v37, 1e-12  ;;  %vm1944_vm9 = vcmp.eq.f32.partialorder %v14464_v31, inf  ;;  %v13340_v61 = vld [vmem:[%s21259_s0 + $0x26] sm:$0x3] }
  0xe3   :  { %1061 = vadd.xlane.f32.xlu1 %v14203_v1  ;;  %v12308_v12 = vpop.eup %12307  ;;  %v1747_v1 = vmul.f32 %v12302_v62, %v14407_v11  ;;  %v1915_v58 = vmul.f32 %v12306_v50, %v14434_v14  ;;  %12329 = vrsqrt.f32 %v14510_v22  ;;  %vm1946_vm10 = vcmp.eq.f32.partialorder %v14464_v31, 0.0  ;;  %v13339_v50 = vld [vmem:[%s21259_s0 + $0x22] sm:$0x3] }
  0xe4   :  { %1055 = vadd.xlane.f32.xlu0 %v14206_v4  ;;  %v12310_v4 = vpop.eup %12309  ;;  %v14544_v52 = vpop.xlane.xlu1 %917  ;;  %v1901_v60 = vmul.f32 %v12308_v12, %v14436_v36  ;;  %12331 = vrcp.f32 %v3176_v16  ;;  %v3180_v41 = vmax.f32 %v1724_v42, 1e-12  ;;  %v1766_v62 = vsel %vm1764_vm15, %v1765_v57, %v1763_v17 }
  0xe5   :  { %v12312_v56 = vpop.eup %12311  ;;  %v1749_v0 = vsel %vm1748_vm3, %v14407_v11, %v1747_v1  ;;  %v1943_v13 = vmul.f32 %v12310_v4, %v14464_v31  ;;  %vm1930_vm11 = vcmp.eq.f32.partialorder %v14466_v38, inf  ;;  %v14571_v46 = vpop.xlane.xlu0 %911  ;;  %v1917_v30 = vsel %vm1916_vm5, %v14434_v14, %v1915_v58  ;;  %v13341_v1 = vld [vmem:[%s21259_s0 + $0x2a] sm:$0x3] }
  0xe6   :  { %v14558_v48 = vpop.eup %12313  ;;  %v1933_v32 = vand.u32 2147483648, %v14466_v38  ;;  %v14580_v24 = vmul.f32 %v13339_v50, %v12300_v53  ;;  %v14585_v57 = vmul.f32 %v13340_v61, %v12312_v56  ;;  %12333 = vrcp.f32 %v3182_v49 }
  0xe7   :  { %1073 = vadd.xlane.f32.xlu1 %v14211_v5  ;;  %v1947_v5 = vand.u32 2147483648, %v14464_v31  ;;  %v1752_v37 = vsel %vm1750_vm4, %v1751_v55, %v1749_v0  ;;  %v1903_v53 = vsel %vm1902_vm7, %v14436_v36, %v1901_v60  ;;  %vm1932_vm12 = vcmp.eq.f32.partialorder %v14466_v38, 0.0 }
  0xe8   :  { %1067 = vadd.xlane.f32.xlu0 %v14214_v6  ;;  %v14566_v6 = vpop.eup %12315  ;;  %v3186_v16 = vmax.f32 %v1766_v62, 1e-12  ;;  %v1945_v11 = vsel %vm1944_vm9, %v14464_v31, %v1943_v13  ;;  %12335 = vrsqrt.f32 %v14534_v43  ;;  %v21365_v55 = vmov 0.0  }
  0xe9   :  { %v12318_v51 = vpop.eup %12317  ;;  %v4436_v56 = vcombine.low %v21365_v55, %v14580_v24  ;;  %12337 = vrcp.f32 %v3180_v41  ;;  %v1920_v42 = vsel %vm1918_vm6, %v1919_v54, %v1917_v30  ;;  %v3184_v49 = vmax.f32 %v1752_v37, 1e-12  ;;  %v14631_v36 = vpop.xlane.xlu0 %923 }
  0xea   :  { %v14589_v12 = vpop.eup %12319  ;;  %v1906_v60 = vsel %vm1904_vm8, %v1905_v47, %v1903_v53  ;;  %vm1972_vm13 = vcmp.eq.f32.partialorder %v14488_v25, inf  ;;  %12339 = vrsqrt.f32 %v14544_v52  ;;  %v1948_v54 = vsel %vm1946_vm10, %v1947_v5, %v1945_v11 }
  0xeb   :  { %1085 = vadd.xlane.f32.xlu1 %v14225_v63  ;;  %v14601_v63 = vmul.f32 %v13341_v1, %v14498_v15  ;;  %v14605_v4 = vpop.eup %12321  ;;  %v1929_v15 = vmul.f32 %v12318_v51, %v14466_v38  ;;  %v4444_v0 = vrot.slane %v4436_v56, %v13863_v33  ;;  %12341 = vrsqrt.f32 %v14571_v46  ;;  %v13342_v56 = vld [vmem:[%s21259_s0 + $0x2e] sm:$0x3] }
  0xec   :  { %1079 = vadd.xlane.f32.xlu0 %v14231_v18  ;;  %v14603_v18 = vpop.xlane.xlu1 %929  ;;  %v12324_v58 = vpop.eup %12323  ;;  %12343 = vrcp.f32 %v3186_v16  ;;  %v3208_v41 = vmax.f32 %v1920_v42, 1e-12  ;;  %vm1974_vm14 = vcmp.eq.f32.partialorder %v14488_v25, 0.0  ;;  %v3206_v62 = vmax.f32 %v1906_v60, 1e-12 }
  0xed   :  { %v4437_v17 = vcombine.low %v14585_v57, %v14601_v63  ;;  %v14624_v14 = vpop.eup %12325  ;;  %v1931_v31 = vsel %vm1930_vm11, %v14466_v38, %v1929_v15  ;;  %v1971_v5 = vmul.f32 %v12324_v58, %v14488_v25  ;;  %v3212_v50 = vmax.f32 %v1948_v54, 1e-12  ;;  %v14675_v15 = vpop.xlane.xlu0 %935  ;;  %v13344_v58 = vld [vmem:[%s21259_s0 + $0x36] sm:$0x3] }
  0xee   :  { %v12328_v47 = vpop.eup %12327  ;;  %vm1958_vm15 = vcmp.eq.f32.partialorder %v14496_v45, inf  ;;  %vm1960_vm3 = vcmp.eq.f32.partialorder %v14496_v45, 0.0  ;;  %12345 = vrsqrt.f32 %v14603_v18  ;;  %v1961_v37 = vand.u32 2147483648, %v14496_v45 }
  0xef   :  { %1151 = vadd.xlane.f32.xlu1 %v14234_v19  ;;  %v4451_v13 = vrot.slane %v4437_v17, %v13863_v33  ;;  %v1975_v19 = vand.u32 2147483648, %v14488_v25  ;;  %12347 = vrcp.f32 %v3184_v49  ;;  %vm2126_vm4 = vcmp.eq.f32.partialorder %v14510_v22, inf  ;;  %v13345_v49 = vld [vmem:[%s21259_s0 + $0x3a] sm:$0x3] }
  0xf0   :  { %1145 = vadd.xlane.f32.xlu0 %v14255_v28  ;;  %v12330_v28 = vpop.eup %12329  ;;  %v14641_v30 = vpop.xlane.xlu1 %941  ;;  %v2129_v53 = vand.u32 2147483648, %v14510_v22  ;;  %12349 = vrcp.f32 %v3208_v41  ;;  %v1934_v1 = vsel %vm1932_vm12, %v1933_v32, %v1931_v31  ;;  %v1957_v16 = vmul.f32 %v12328_v47, %v14496_v45  ;;  %v13343_v32 = vld [vmem:[%s21259_s0 + $0x32] sm:$0x3]  ;;  %v13347_v31 = vld [vmem:[%s21259_s0 + $0x66] sm:$0x3] }
  0xf1   :  { %v14639_v51 = vcombine.low %v4444_v0, %v4451_v13  ;;  %v12332_v61 = vpop.eup %12331  ;;  %vm2128_vm5 = vcmp.eq.f32.partialorder %v14510_v22, 0.0  ;;  %12351 = vrcp.f32 %v3206_v62  ;;  %v1973_v11 = vsel %vm1972_vm13, %v14488_v25, %v1971_v5  ;;  %v13346_v25 = vld [vmem:[%s21259_s0 + $0x62] sm:$0x3] }
  0xf2   :  { %v14667_v38 = vmul.f32 %v13342_v56, %v14520_v2  ;;  %v14673_v42 = vmul.f32 %v13343_v32, %v14566_v6  ;;  %12353 = vrcp.f32 %v3212_v50  ;;  %vm1986_vm6 = vcmp.eq.f32.partialorder %v14534_v43, inf  ;;  %v14742_v32 = vpop.xlane.xlu0 %1001 }
  0xf3   :  { %21366 = vst [vmem:[#allocation17_spill] sm:$0xff] %v14639_v51  ;;  %1163 = vadd.xlane.f32.xlu1 %v14258_v29  ;;  %11393 = vmatprep.mubr.msk.f32.mxu0 %vm4207_vm2, %v14639_v51  ;;  %v2125_v29 = vmul.f32 %v12330_v28, %v14510_v22  ;;  %v14682_v2 = vmul.f32 %v13344_v58, %v14558_v48  ;;  %v3210_v54 = vmax.f32 %v1934_v1, 1e-12  ;;  %v1989_v0 = vand.u32 2147483648, %v14534_v43 }
  0xf4   :  { %1157 = vadd.xlane.f32.xlu0 %v14271_v3  ;;  %v14658_v3 = vpop.eup %12333  ;;  %v14688_v6 = vmul.f32 %v13345_v49, %v14605_v4  ;;  %12355 = vrsqrt.f32 %v14631_v36  ;;  %v4453_v48 = vcombine.low %v14667_v38, %v14673_v42  ;;  %v14698_v13 = vpop.xlane.xlu1 %1007  ;;  %v1976_v4 = vsel %vm1974_vm14, %v1975_v19, %v1973_v11 }
  0xf5   :  { %v12336_v17 = vpop.eup %12335  ;;  %vm1988_vm7 = vcmp.eq.f32.partialorder %v14534_v43, 0.0  ;;  %12357 = vrsqrt.f32 %v14641_v30  ;;  %v14717_v19 = vmul.f32 %v13346_v25, %v14589_v12  ;;  %v14722_v5 = vmul.f32 %v13347_v31, %v12332_v61 }
  0xf6   :  { %v14692_v60 = vpop.eup %12337  ;;  %v4454_v41 = vcombine.low %v14682_v2, %v14688_v6  ;;  %v1985_v62 = vmul.f32 %v12336_v17, %v14534_v43  ;;  %v4461_v1 = vrot.slane %v4453_v48, %v13863_v33  ;;  %12359 = vrsqrt.f32 %v14675_v15 }
  0xf7   :  { %1175 = vadd.xlane.f32.xlu1 %v14274_v39  ;;  %v12340_v47 = vpop.eup %12339  ;;  %v1959_v39 = vsel %vm1958_vm15, %v14496_v45, %v1957_v16  ;;  %vm2154_vm8 = vcmp.eq.f32.partialorder %v14544_v52, inf  ;;  %v4470_v56 = vcombine.low %v21365_v55, %v14717_v19  ;;  %v3216_v58 = vmax.f32 %v1976_v4, 1e-12 }
  0xf8   :  { %1169 = vadd.xlane.f32.xlu0 %v14290_v59  ;;  %v2127_v59 = vsel %vm2126_vm4, %v14510_v22, %v2125_v29  ;;  %v12342_v28 = vpop.eup %12341  ;;  %v4468_v16 = vrot.slane %v4454_v41, %v13863_v33  ;;  %v13348_v29 = vld [vmem:[%s21259_s0 + $0x6a] sm:$0x3]  ;;  %v1962_v61 = vsel %vm1960_vm3, %v1961_v37, %v1959_v39  ;;  %v2153_v11 = vmul.f32 %v12340_v47, %v14544_v52  ;;  %v14758_v48 = vpop.xlane.xlu1 %1019 }
  0xf9   :  { %v14724_v50 = vpop.eup %12343  ;;  %v14733_v12 = vmul.f32 %v13348_v29, %v14624_v14  ;;  %v2139_v14 = vmul.f32 %v12342_v28, %v14571_v46  ;;  %12361 = vrcp.f32 %v3210_v54  ;;  %v2130_v37 = vsel %vm2128_vm5, %v2129_v53, %v2127_v59  ;;  %v14789_v29 = vpop.xlane.xlu0 %1013 }
  0xfa   :  { %v12346_v17 = vpop.eup %12345  ;;  %v14746_v49 = vcombine.low %v4461_v1, %v4468_v16  ;;  %vm2156_vm9 = vcmp.eq.f32.partialorder %v14544_v52, 0.0  ;;  %v3214_v4 = vmax.f32 %v1962_v61, 1e-12  ;;  %v1987_v39 = vsel %vm1986_vm6, %v14534_v43, %v1985_v62 }
  0xfb   :  { %1241 = vadd.xlane.f32.xlu1 %v14296_v7  ;;  %v4471_v7 = vcombine.low %v14722_v5, %v14733_v12  ;;  %v14750_v45 = vpop.eup %12347  ;;  %v4478_v54 = vrot.slane %v4470_v56, %v13863_v33  ;;  %v2155_v59 = vsel %vm2154_vm8, %v14544_v52, %v2153_v11  ;;  %vm2140_vm10 = vcmp.eq.f32.partialorder %v14571_v46, inf }
  0xfc   :  { %1181 = vadd.xlane.f32.xlu0 %v14304_v20  ;;  %21367 = vst [vmem:[#allocation18_spill] sm:$0xff] %v14746_v49  ;;  %v2157_v20 = vand.u32 2147483648, %v14544_v52  ;;  %v14760_v47 = vpop.eup %12349  ;;  %11394 = vmatmul.mubr.msk.f32.gmra.mrb[2].mxu0 %vm4207_vm2, %v14746_v49  ;;  %v2181_v41 = vmul.f32 %v12346_v17, %v14603_v18  ;;  %12363 = vrsqrt.f32 %v14698_v13  ;;  %v2141_v62 = vsel %vm2140_vm10, %v14571_v46, %v2139_v14  ;;  %v14801_v11 = vpop.xlane.xlu1 %1031 }
  0xfd   :  { %v4485_v22 = vrot.slane %v4471_v7, %v13863_v33  ;;  %v14770_v53 = vpop.eup %12351  ;;  %12365 = vrcp.f32 %v3216_v58  ;;  %vm2142_vm11 = vcmp.eq.f32.partialorder %v14571_v46, 0.0  ;;  %v3238_v31 = vmax.f32 %v2130_v37, 1e-12  ;;  %v13349_v37 = vld [vmem:[%s21259_s0 + $0x6e] sm:$0x3] }
  0xfe   :  { %v14779_v28 = vpop.eup %12353  ;;  %v1990_v1 = vsel %vm1988_vm7, %v1989_v0, %v1987_v39  ;;  %v2143_v16 = vand.u32 2147483648, %v14571_v46  ;;  %vm2182_vm12 = vcmp.eq.f32.partialorder %v14603_v18, inf  ;;  %12367 = vrcp.f32 %v3214_v4  ;;  %v3895_v4 = vld [vmem:[#allocation2 + $0x8] sm:$0x7] }
  0xff   :  { %1253 = vadd.xlane.f32.xlu1 %v14307_v8  ;;  %v14783_v8 = vcombine.low %v4478_v54, %v4485_v22  ;;  %v12356_v25 = vpop.eup %12355  ;;  %vm2184_vm13 = vcmp.eq.f32.partialorder %v14603_v18, 0.0  ;;  %v2185_v61 = vand.u32 2147483648, %v14603_v18  ;;  %v2183_v46 = vsel %vm2182_vm12, %v14603_v18, %v2181_v41  ;;  %v13350_v18 = vld [vmem:[%s21259_s0 + $0x72] sm:$0x3]  ;;  %11414 = vmatprep.subr.msk.mxu0 %vm4238_vm1, %v3895_v4 }
 0x100   :  { %1247 = vadd.xlane.f32.xlu0 %v14310_v9  ;;  %v2158_v9 = vsel %vm2156_vm9, %v2157_v20, %v2155_v59  ;;  %v12358_v43 = vpop.eup %12357  ;;  %v2144_v0 = vsel %vm2142_vm11, %v2143_v16, %v2141_v62  ;;  %vm2168_vm14 = vcmp.eq.f32.partialorder %v14631_v36, inf  ;;  %12369 = vrsqrt.f32 %v14742_v32  ;;  %v14835_v59 = vpop.xlane.xlu0 %1025  ;;  %11415 = vmatpush3.msk.msra.mxu0 %vm4238_vm1, %v3895_v4  ;;  %v21371_v4 = vld [vmem:[#allocation14_spill] sm:$0xff] }
 0x101   :  { %21368 = vst [vmem:[#allocation19_spill] sm:$0xff] %v14783_v8  ;;  %11396 = vmatprep.mubr.msk.f32.mxu0 %vm4207_vm2, %v14783_v8  ;;  %v12360_v52 = vpop.eup %12359  ;;  %v3218_v56 = vmax.f32 %v1990_v1, 1e-12  ;;  %v2167_v17 = vmul.f32 %v12356_v25, %v14631_v36  ;;  %vm2170_vm15 = vcmp.eq.f32.partialorder %v14631_v36, 0.0  ;;  %12371 = vrsqrt.f32 %v14758_v48  ;;  %v14854_v1 = vpop.xlane.xlu1 %1097 }
 0x102   :  { %12373 = vrcp.f32 %v3238_v31  ;;  %v2171_v58 = vand.u32 2147483648, %v14631_v36  ;;  %vm2210_vm3 = vcmp.eq.f32.partialorder %v14641_v30, inf  ;;  %v3240_v14 = vmax.f32 %v2144_v0, 1e-12 }
 0x103   :  { %1265 = vadd.xlane.f32.xlu1 %v14313_v23  ;;  %v3242_v23 = vmax.f32 %v2158_v9, 1e-12  ;;  %v2186_v7 = vsel %vm2184_vm13, %v2185_v61, %v2183_v46  ;;  %v14816_v20 = vmul.f32 %v13349_v37, %v14692_v60  ;;  %v14819_v39 = vpop.eup %12361  ;;  %v2195_v54 = vmul.f32 %v12360_v52, %v14675_v15  ;;  %v13351_v60 = vld [vmem:[%s21259_s0 + $0x76] sm:$0x3] }
 0x104   :  { %1259 = vadd.xlane.f32.xlu0 %v14316_v26  ;;  %v2209_v26 = vmul.f32 %v12358_v43, %v14641_v30  ;;  %12375 = vrsqrt.f32 %v14789_v29  ;;  %v14827_v22 = vmul.f32 %v13350_v18, %v14658_v3  ;;  %v2169_v41 = vsel %vm2168_vm14, %v14631_v36, %v2167_v17  ;;  %v13352_v3 = vld [vmem:[%s21259_s0 + $0x7a] sm:$0x3] }
 0x105   :  { %12377 = vrcp.f32 %v3218_v56  ;;  %vm2212_vm4 = vcmp.eq.f32.partialorder %v14641_v30, 0.0  ;;  %v2213_v25 = vand.u32 2147483648, %v14641_v30  ;;  %vm2196_vm5 = vcmp.eq.f32.partialorder %v14675_v15, inf  ;;  %v21369_v46 = vld [vmem:[#allocation13_spill] sm:$0xff] }
 0x106   :  { %v12364_v62 = vpop.eup %12363  ;;  %v4487_v31 = vcombine.low %v14816_v20, %v14827_v22  ;;  %12379 = vrcp.f32 %v3242_v23  ;;  %vm2198_vm6 = vcmp.eq.f32.partialorder %v14675_v15, 0.0  ;;  %v2172_v61 = vsel %vm2170_vm15, %v2171_v58, %v2169_v41  ;;  %v14879_v58 = vpop.xlane.xlu0 %1037 }
 0x107   :  { %1277 = vadd.xlane.f32.xlu1 %v14319_v34  ;;  %v14833_v34 = vmul.f32 %v13351_v60, %v14750_v45  ;;  %v14847_v45 = vmul.f32 %v13352_v3, %v14724_v50  ;;  %v14856_v16 = vpop.eup %12365  ;;  %v2199_v50 = vand.u32 2147483648, %v14675_v15  ;;  %12381 = vrcp.f32 %v3240_v14  ;;  %v14894_v60 = vpop.xlane.xlu1 %1109 }
 0x108   :  { %1271 = vadd.xlane.f32.xlu0 %v14322_v35  ;;  %v3246_v35 = vmax.f32 %v2186_v7, 1e-12  ;;  %v2211_v43 = vsel %vm2210_vm3, %v14641_v30, %v2209_v26  ;;  %v2197_v0 = vsel %vm2196_vm5, %v14675_v15, %v2195_v54  ;;  %v14870_v52 = vpop.eup %12367  ;;  %v2363_v56 = vmul.f32 %v12364_v62, %v14698_v13  ;;  %v21372_v30 = vld [vmem:[#allocation15_spill] sm:$0xff] }
 0x109   :  { %v4488_v9 = vcombine.low %v14833_v34, %v14847_v45  ;;  %v4495_v17 = vrot.slane %v4487_v31, %v13863_v33  ;;  %12383 = vrsqrt.f32 %v14801_v11  ;;  %vm2364_vm7 = vcmp.eq.f32.partialorder %v14698_v13, inf  ;;  %v13353_v31 = vld [vmem:[%s21259_s0 + $0xa2] sm:$0x3] }
 0x10a   :  { %v12370_v36 = vpop.eup %12369  ;;  %12385 = vrcp.f32 %v3246_v35  ;;  %vm2366_vm8 = vcmp.eq.f32.partialorder %v14698_v13, 0.0  ;;  %v2367_v23 = vand.u32 2147483648, %v14698_v13  ;;  %v3244_v7 = vmax.f32 %v2172_v61, 1e-12 }
 0x10b   :  { %572 = vadd.xlane.f32.xlu1 %v14335_v44  ;;  %v4502_v44 = vrot.slane %v4488_v9, %v13863_v33  ;;  %v12372_v14 = vpop.eup %12371  ;;  %v2214_v26 = vsel %vm2212_vm4, %v2213_v25, %v2211_v43  ;;  %12387 = vrsqrt.f32 %v14835_v59  ;;  %v2200_v18 = vsel %vm2198_vm6, %v2199_v50, %v2197_v0  ;;  %v13354_v43 = vld [vmem:[%s21259_s0 + $0xa6] sm:$0x3] }
 0x10c   :  { %566 = vadd.xlane.f32.xlu0 %v21369_v46  ;;  %v14887_v54 = vpop.eup %12373  ;;  %vm2350_vm9 = vcmp.eq.f32.partialorder %v14742_v32, inf  ;;  %vm2352_vm10 = vcmp.eq.f32.partialorder %v14742_v32, 0.0  ;;  %12389 = vrsqrt.f32 %v14854_v1  ;;  %v2365_v41 = vsel %vm2364_vm7, %v14698_v13, %v2363_v56  ;;  %v13355_v46 = vld [vmem:[%s21259_s0 + $0xaa] sm:$0x3] }
 0x10d   :  { %v14883_v37 = vcombine.low %v4495_v17, %v4502_v44  ;;  %v2349_v3 = vmul.f32 %v12370_v36, %v14742_v32  ;;  %v2353_v62 = vand.u32 2147483648, %v14742_v32  ;;  %vm2392_vm11 = vcmp.eq.f32.partialorder %v14758_v48, inf  ;;  %v14934_v36 = vpop.xlane.xlu0 %1103 }
 0x10e   :  { %v12376_v15 = vpop.eup %12375  ;;  %v3250_v35 = vmax.f32 %v2214_v26, 1e-12  ;;  %v2391_v25 = vmul.f32 %v12372_v14, %v14758_v48  ;;  %vm2394_vm12 = vcmp.eq.f32.partialorder %v14758_v48, 0.0  ;;  %v14911_v50 = vmul.f32 %v13353_v31, %v14770_v53  ;;  %v21373_v53 = vld [vmem:[#allocation16_spill] sm:$0xff]  ;;  %v14953_v26 = vpop.xlane.xlu1 %1121 }
 0x10f   :  { %21370 = vst [vmem:[#allocation13_spill] sm:$0xff] %v14883_v37  ;;  %584 = vadd.xlane.f32.xlu1 %v21371_v4  ;;  %11397 = vmatmul.mubr.msk.f32.gmra.mrb[4].mxu0 %vm4207_vm2, %v14883_v37  ;;  %v14913_v9 = vpop.eup %12377  ;;  %12391 = vrcp.f32 %v3244_v7  ;;  %v3248_v61 = vmax.f32 %v2200_v18, 1e-12  ;;  %v14919_v0 = vmul.f32 %v13354_v43, %v14760_v47  ;;  %v14925_v56 = vmul.f32 %v13355_v46, %v14819_v39 }
 0x110   :  { %578 = vadd.xlane.f32.xlu0 %v21372_v30  ;;  %v2368_v17 = vsel %vm2366_vm8, %v2367_v23, %v2365_v41  ;;  %v2395_v44 = vand.u32 2147483648, %v14758_v48  ;;  %12393 = vrsqrt.f32 %v14879_v58  ;;  %v4504_v47 = vcombine.low %v21365_v55, %v14911_v50  ;;  %v14937_v14 = vpop.eup %12379 }
 0x111   :  { %v2351_v39 = vsel %vm2350_vm9, %v14742_v32, %v2349_v3  ;;  %v2377_v13 = vmul.f32 %v12376_v15, %v14789_v29  ;;  %v4505_v23 = vcombine.low %v14919_v0, %v14925_v56  ;;  %12395 = vrsqrt.f32 %v14894_v60  ;;  %v14946_v7 = vpop.eup %12381 }
 0x112   :  { %12397 = vrcp.f32 %v3250_v35  ;;  %vm2378_vm13 = vcmp.eq.f32.partialorder %v14789_v29, inf  ;;  %vm2380_vm14 = vcmp.eq.f32.partialorder %v14789_v29, 0.0  ;;  %v3272_v18 = vmax.f32 %v2368_v17, 1e-12 }
 0x113   :  { %596 = vadd.xlane.f32.xlu1 %v21373_v53  ;;  %v12384_v4 = vpop.eup %12383  ;;  %12399 = vrcp.f32 %v3248_v61  ;;  %v4512_v30 = vrot.slane %v4504_v47, %v13863_v33  ;;  %v4519_v41 = vrot.slane %v4505_v23, %v13863_v33  ;;  %v2354_v15 = vsel %vm2352_vm10, %v2353_v62, %v2351_v39  ;;  %v14989_v47 = vpop.xlane.xlu1 %1133  ;;  %v13356_v23 = vld [vmem:[%s21259_s0 + $0xae] sm:$0x3] }
 0x114   :  { %590 = vadd.xlane.f32.xlu0 %v14386_v40  ;;  %v2393_v40 = vsel %vm2392_vm11, %v14758_v48, %v2391_v25  ;;  %v14958_v3 = vpop.eup %12385  ;;  %v2381_v35 = vand.u32 2147483648, %v14789_v29  ;;  %vm2420_vm15 = vcmp.eq.f32.partialorder %v14801_v11, inf  ;;  %12401 = vrsqrt.f32 %v14934_v36 }
 0x115   :  { %v12388_v25 = vpop.eup %12387  ;;  %v2396_v31 = vsel %vm2394_vm12, %v2395_v44, %v2393_v40  ;;  %vm2422_vm3 = vcmp.eq.f32.partialorder %v14801_v11, 0.0  ;;  %v14972_v32 = vcombine.low %v4512_v30, %v4519_v41  ;;  %v2419_v61 = vmul.f32 %v12384_v4, %v14801_v11 }
 0x116   :  { %v12390_v62 = vpop.eup %12389  ;;  %v2423_v43 = vand.u32 2147483648, %v14801_v11  ;;  %vm2406_vm4 = vcmp.eq.f32.partialorder %v14835_v59, inf  ;;  %12403 = vrsqrt.f32 %v14953_v26  ;;  %v3270_v48 = vmax.f32 %v2354_v15, 1e-12  ;;  %v13358_v15 = vld [vmem:[%s21259_s0 + $0xb6] sm:$0x3] }
 0x117   :  { %608 = vadd.xlane.f32.xlu1 %v14416_v10  ;;  %v2379_v10 = vsel %vm2378_vm13, %v14789_v29, %v2377_v13  ;;  %21374 = vst [vmem:[#allocation14_spill] sm:$0xff] %v14972_v32  ;;  %12405 = vrcp.f32 %v3272_v18  ;;  %vm2408_vm5 = vcmp.eq.f32.partialorder %v14835_v59, 0.0  ;;  %v2409_v46 = vand.u32 2147483648, %v14835_v59  ;;  %11399 = vmatprep.mubr.msk.f32.mxu0 %vm4207_vm2, %v14972_v32  ;;  %v13357_v29 = vld [vmem:[%s21259_s0 + $0xb2] sm:$0x3] }
 0x118   :  { %602 = vadd.xlane.f32.xlu0 %v14419_v27  ;;  %v14978_v27 = vpop.xlane.xlu0 %1115  ;;  %vm2574_vm6 = vcmp.eq.f32.partialorder %v14854_v1, inf  ;;  %v3276_v53 = vmax.f32 %v2396_v31, 1e-12  ;;  %v2382_v17 = vsel %vm2380_vm14, %v2381_v35, %v2379_v10  ;;  %v2405_v44 = vmul.f32 %v12388_v25, %v14835_v59  ;;  %v13359_v35 = vld [vmem:[%s21259_s0 + $0xba] sm:$0x3] }
 0x119   :  { %vm2576_vm7 = vcmp.eq.f32.partialorder %v14854_v1, 0.0  ;;  %v14991_v39 = vpop.eup %12391  ;;  %v2573_v13 = vmul.f32 %v12390_v62, %v14854_v1  ;;  %12407 = vrsqrt.f32 %v14978_v27  ;;  %v14999_v40 = vmul.f32 %v13356_v23, %v14779_v28 }
 0x11a   :  { %v15005_v4 = vmul.f32 %v13357_v29, %v14870_v52  ;;  %v12394_v18 = vpop.eup %12393  ;;  %v2421_v30 = vsel %vm2420_vm15, %v14801_v11, %v2419_v61  ;;  %v2577_v41 = vand.u32 2147483648, %v14854_v1  ;;  %v15015_v28 = vmul.f32 %v13358_v15, %v14856_v16 }
 0x11b   :  { %v15021_v52 = vmul.f32 %v13359_v35, %v14913_v9  ;;  %v12396_v25 = vpop.eup %12395  ;;  %12409 = vrcp.f32 %v3270_v48  ;;  %v3274_v31 = vmax.f32 %v2382_v17, 1e-12  ;;  %vm2434_vm8 = vcmp.eq.f32.partialorder %v14879_v58, inf }
 0x11c   :  { %v4521_v10 = vcombine.low %v14999_v40, %v15005_v4  ;;  %v15026_v62 = vpop.eup %12397  ;;  %12411 = vrcp.f32 %v3276_v53  ;;  %vm2436_vm9 = vcmp.eq.f32.partialorder %v14879_v58, 0.0  ;;  %v2437_v16 = vand.u32 2147483648, %v14879_v58  ;;  %v15033_v61 = vpop.xlane.xlu0 %1127 }
 0x11d   :  { %21375 = vst [vmem:[#allocation15_spill] sm:$0xff] %v15021_v52  ;;  %vm2602_vm10 = vcmp.eq.f32.partialorder %v14894_v60, inf  ;;  %v4522_v9 = vcombine.low %v15015_v28, %v15021_v52  ;;  %v15035_v48 = vpop.eup %12399  ;;  %v2424_v17 = vsel %vm2422_vm3, %v2423_v43, %v2421_v30  ;;  %v2407_v53 = vsel %vm2406_vm4, %v14835_v59, %v2405_v44  ;;  %v15050_v43 = vpop.xlane.xlu1 %1199 }
 0x11e   :  { %v2575_v23 = vsel %vm2574_vm6, %v14854_v1, %v2573_v13  ;;  %12413 = vrsqrt.f32 %v14989_v47  ;;  %v12402_v29 = vpop.eup %12401  ;;  %v2433_v15 = vmul.f32 %v12394_v18, %v14879_v58  ;;  %v2601_v35 = vmul.f32 %v12396_v25, %v14894_v60 }
 0x11f   :  { %v4529_v32 = vrot.slane %v4521_v10, %v13863_v33  ;;  %v4536_v11 = vrot.slane %v4522_v9, %v13863_v33  ;;  %12415 = vrcp.f32 %v3274_v31  ;;  %vm2604_vm11 = vcmp.eq.f32.partialorder %v14894_v60, 0.0 }
 0x120   :  { %v2605_v44 = vand.u32 2147483648, %v14894_v60  ;;  %vm2588_vm12 = vcmp.eq.f32.partialorder %v14934_v36, inf  ;;  %v12404_v13 = vpop.eup %12403  ;;  %v3280_v30 = vmax.f32 %v2424_v17, 1e-12  ;;  %v2410_v18 = vsel %vm2408_vm5, %v2409_v46, %v2407_v53  ;;  %v13360_v17 = vld [vmem:[%s21259_s0 + $0xe2] sm:$0x3]  ;;  %v15093_v53 = vpop.xlane.xlu0 %1193 }
 0x121   :  { %vm2590_vm13 = vcmp.eq.f32.partialorder %v14934_v36, 0.0  ;;  %v2591_v25 = vand.u32 2147483648, %v14934_v36  ;;  %v15059_v10 = vcombine.low %v4529_v32, %v4536_v11  ;;  %v15061_v9 = vpop.eup %12405  ;;  %v2578_v31 = vsel %vm2576_vm7, %v2577_v41, %v2575_v23  ;;  %v13361_v46 = vld [vmem:[%s21259_s0 + $0xe6] sm:$0x3]  ;;  %v15103_v11 = vpop.xlane.xlu1 %1211 }
 0x122   :  { %v2587_v37 = vmul.f32 %v12402_v29, %v14934_v36  ;;  %v15070_v59 = vmul.f32 %v13360_v17, %v14887_v54  ;;  %v15076_v32 = vmul.f32 %v13361_v46, %v14946_v7  ;;  %v2435_v1 = vsel %vm2434_vm8, %v14879_v58, %v2433_v15  ;;  %v13362_v54 = vld [vmem:[%s21259_s0 + $0xea] sm:$0x3] }
 0x123   :  { %21376 = vst [vmem:[#allocation16_spill] sm:$0xff] %v15059_v10  ;;  %v2603_v41 = vsel %vm2602_vm10, %v14894_v60, %v2601_v35  ;;  %11400 = vmatmul.mubr.msk.f32.gmra.mrb[6].mxu0 %vm4207_vm2, %v15059_v10  ;;  %12417 = vrsqrt.f32 %v15033_v61  ;;  %v15091_v7 = vmul.f32 %v13362_v54, %v14937_v14  ;;  %v12408_v23 = vpop.eup %12407  ;;  %v2629_v29 = vmul.f32 %v12404_v13, %v14953_v26 }
 0x124   :  { %21377 = vst [vmem:[#allocation20_spill] sm:$0xff] %v15070_v59  ;;  %21378 = vst [vmem:[#allocation21_spill] sm:$0xff] %v15076_v32  ;;  %vm2630_vm14 = vcmp.eq.f32.partialorder %v14953_v26, inf  ;;  %v4538_v15 = vcombine.low %v21365_v55, %v15070_v59  ;;  %12419 = vrsqrt.f32 %v15050_v43  ;;  %v3278_v35 = vmax.f32 %v2410_v18, 1e-12 }
 0x125   :  { %21379 = vst [vmem:[#allocation22_spill] sm:$0xff] %v15091_v7  ;;  %12421 = vrcp.f32 %v3280_v30  ;;  %vm2632_vm15 = vcmp.eq.f32.partialorder %v14953_v26, 0.0  ;;  %v4539_v14 = vcombine.low %v15076_v32, %v15091_v7  ;;  %v15105_v17 = vpop.eup %12409  ;;  %v3302_v46 = vmax.f32 %v2578_v31, 1e-12 }
 0x126   :  { %v2438_v13 = vsel %vm2436_vm9, %v2437_v16, %v2435_v1  ;;  %v2606_v54 = vsel %vm2604_vm11, %v2605_v44, %v2603_v41  ;;  %v2589_v30 = vsel %vm2588_vm12, %v14934_v36, %v2587_v37  ;;  %v15114_v18 = vpop.eup %12411  ;;  %v2615_v10 = vmul.f32 %v12408_v23, %v14978_v27  ;;  %v15129_v44 = vpop.xlane.xlu0 %1205  ;;  %v13364_v36 = vld [vmem:[%s21259_s0 + $0xf2] sm:$0x3] }
 0x127   :  { %v4546_v8 = vrot.slane %v4538_v15, %v13863_v33  ;;  %v4553_v49 = vrot.slane %v4539_v14, %v13863_v33  ;;  %12423 = vrsqrt.f32 %v15093_v53  ;;  %v2631_v58 = vsel %vm2630_vm14, %v14953_v26, %v2629_v29 }
 0x128   :  { %v12414_v31 = vpop.eup %12413  ;;  %v2633_v60 = vand.u32 2147483648, %v14953_v26  ;;  %vm2616_vm3 = vcmp.eq.f32.partialorder %v14978_v27, inf  ;;  %12425 = vrsqrt.f32 %v15103_v11  ;;  %v3282_v37 = vmax.f32 %v2438_v13, 1e-12 }
 0x129   :  { %12427 = vrcp.f32 %v3278_v35  ;;  %vm2618_vm4 = vcmp.eq.f32.partialorder %v14978_v27, 0.0  ;;  %v15127_v16 = vcombine.low %v4546_v8, %v4553_v49  ;;  %v15131_v1 = vpop.eup %12415  ;;  %v3306_v41 = vmax.f32 %v2606_v54, 1e-12  ;;  %v13363_v49 = vld [vmem:[%s21259_s0 + $0xee] sm:$0x3] }
 0x12a   :  { %12429 = vrcp.f32 %v3302_v46  ;;  %v2592_v23 = vsel %vm2590_vm13, %v2591_v25, %v2589_v30  ;;  %v2619_v29 = vand.u32 2147483648, %v14978_v27  ;;  %v2634_v15 = vsel %vm2632_vm15, %v2633_v60, %v2631_v58  ;;  %v13365_v25 = vld [vmem:[%s21259_s0 + $0xf6] sm:$0x3] }
 0x12b   :  { %21380 = vst [vmem:[#allocation23_spill] sm:$0xff] %v15127_v16  ;;  %v2617_v35 = vsel %vm2616_vm3, %v14978_v27, %v2615_v10  ;;  %v2657_v14 = vmul.f32 %v12414_v31, %v14989_v47  ;;  %11402 = vmatprep.mubr.msk.f32.mxu0 %vm4207_vm2, %v15127_v16  ;;  %v15146_v8 = vmul.f32 %v13363_v49, %v14991_v39  ;;  %12431 = vrsqrt.f32 %v15129_v44  ;;  %v13366_v39 = vld [vmem:[%s21259_s0 + $0xfa] sm:$0x3]  ;;  %v15182_v49 = vpop.xlane.xlu0 %1217  ;;  %v13369_v16 = vld [vmem:[%s21259_s0 + $0x12a] sm:$0x3] }
 0x12c   :  { %v15153_v26 = vmul.f32 %v13364_v36, %v14958_v3  ;;  %v15159_v10 = vmul.f32 %v13365_v25, %v15035_v48  ;;  %v15165_v46 = vmul.f32 %v13366_v39, %v15026_v62  ;;  %12433 = vrcp.f32 %v3282_v37  ;;  %v15169_v3 = vpop.xlane.xlu1 %1223 }
 0x12d   :  { %21381 = vst [vmem:[#allocation24_spill] sm:$0xff] %v15146_v8  ;;  %v12418_v13 = vpop.eup %12417  ;;  %v3304_v54 = vmax.f32 %v2592_v23, 1e-12  ;;  %vm2658_vm5 = vcmp.eq.f32.partialorder %v14989_v47, inf  ;;  %vm2660_vm6 = vcmp.eq.f32.partialorder %v14989_v47, 0.0  ;;  %v2661_v48 = vand.u32 2147483648, %v14989_v47 }
 0x12e   :  { %21382 = vst [vmem:[#allocation25_spill] sm:$0xff] %v15153_v26  ;;  %21383 = vst [vmem:[#allocation26_spill] sm:$0xff] %v15159_v10  ;;  %v12420_v30 = vpop.eup %12419  ;;  %v3310_v31 = vmax.f32 %v2634_v15, 1e-12  ;;  %v4555_v58 = vcombine.low %v15146_v8, %v15153_v26  ;;  %v4556_v62 = vcombine.low %v15159_v10, %v15165_v46  ;;  %12435 = vrcp.f32 %v3306_v41 }
 0x12f   :  { %21384 = vst [vmem:[#allocation27_spill] sm:$0xff] %v15165_v46  ;;  %v15176_v60 = vpop.eup %12421  ;;  %v2620_v37 = vsel %vm2618_vm4, %v2619_v29, %v2617_v35  ;;  %v2659_v23 = vsel %vm2658_vm5, %v14989_v47, %v2657_v14  ;;  %vm2644_vm7 = vcmp.eq.f32.partialorder %v15033_v61, inf  ;;  %v2643_v15 = vmul.f32 %v12418_v13, %v15033_v61 }
 0x130   :  { %v4563_v36 = vrot.slane %v4555_v58, %v13863_v33  ;;  %v4570_v25 = vrot.slane %v4556_v62, %v13863_v33  ;;  %12437 = vrsqrt.f32 %v15169_v3  ;;  %vm2646_vm8 = vcmp.eq.f32.partialorder %v15033_v61, 0.0  ;;  %v15201_v62 = vpop.xlane.xlu1 %659 }
 0x131   :  { %v12424_v39 = vpop.eup %12423  ;;  %12439 = vrcp.f32 %v3304_v54  ;;  %v2647_v27 = vand.u32 2147483648, %v15033_v61  ;;  %v2811_v41 = vmul.f32 %v12420_v30, %v15050_v43  ;;  %v3308_v35 = vmax.f32 %v2620_v37, 1e-12 }
 0x132   :  { %v12426_v29 = vpop.eup %12425  ;;  %12441 = vrcp.f32 %v3310_v31  ;;  %vm2812_vm9 = vcmp.eq.f32.partialorder %v15050_v43, inf  ;;  %v15192_v14 = vcombine.low %v4563_v36, %v4570_v25  ;;  %v2662_v58 = vsel %vm2660_vm6, %v2661_v48, %v2659_v23  ;;  %v15217_v36 = vpop.xlane.xlu0 %1229 }
 0x133   :  { %v15194_v13 = vpop.eup %12427  ;;  %vm2814_vm10 = vcmp.eq.f32.partialorder %v15050_v43, 0.0  ;;  %v2815_v54 = vand.u32 2147483648, %v15050_v43  ;;  %12443 = vrsqrt.f32 %v15182_v49  ;;  %v2645_v31 = vsel %vm2644_vm7, %v15033_v61, %v2643_v15  ;;  %v84_v61 = vld [vmem:[%s21259_s0 + $0x40] sm:$0x3] }
 0x134   :  { %21385 = vst [vmem:[#allocation28_spill] sm:$0xff] %v15192_v14  ;;  %v15203_v30 = vpop.eup %12429  ;;  %v2797_v37 = vmul.f32 %v12424_v39, %v15093_v53  ;;  %vm2798_vm11 = vcmp.eq.f32.partialorder %v15093_v53, inf  ;;  %vm2800_vm12 = vcmp.eq.f32.partialorder %v15093_v53, 0.0  ;;  %11403 = vmatmul.mubr.msk.f32.gmra.mrb[8].mxu0 %vm4207_vm2, %v15192_v14  ;;  %v2813_v47 = vsel %vm2812_vm9, %v15050_v43, %v2811_v41  ;;  %v13367_v39 = vld [vmem:[%s21259_s0 + $0x122] sm:$0x3] }
 0x135   :  { %v2801_v48 = vand.u32 2147483648, %v15093_v53  ;;  %v2839_v23 = vmul.f32 %v12426_v29, %v15103_v11  ;;  %vm2840_vm13 = vcmp.eq.f32.partialorder %v15103_v11, inf  ;;  %v12432_v15 = vpop.eup %12431  ;;  %12445 = vrcp.f32 %v3308_v35  ;;  %v13368_v35 = vld [vmem:[%s21259_s0 + $0x126] sm:$0x3] }
 0x136   :  { %v3314_v25 = vmax.f32 %v2662_v58, 1e-12  ;;  %vm2842_vm14 = vcmp.eq.f32.partialorder %v15103_v11, 0.0  ;;  %v15224_v14 = vmul.f32 %v13367_v39, %v15105_v17  ;;  %v15226_v41 = vpop.eup %12433  ;;  %v2648_v29 = vsel %vm2646_vm8, %v2647_v27, %v2645_v31 }
 0x137   :  { %12447 = vrsqrt.f32 %v15201_v62  ;;  %v15235_v58 = vmul.f32 %v13368_v35, %v15061_v9  ;;  %v15241_v17 = vmul.f32 %v13369_v16, %v15131_v1  ;;  %v2816_v27 = vsel %vm2814_vm10, %v2815_v54, %v2813_v47 }
 0x138   :  { %21386 = vst [vmem:[#allocation29_spill] sm:$0xff] %v15224_v14  ;;  %v2799_v31 = vsel %vm2798_vm11, %v15093_v53, %v2797_v37  ;;  %12449 = vrsqrt.f32 %v15217_v36  ;;  %v4572_v9 = vcombine.low %v21365_v55, %v15224_v14  ;;  %v15254_v39 = vpop.eup %12435  ;;  %v2841_v16 = vsel %vm2840_vm13, %v15103_v11, %v2839_v23  ;;  %v15264_v37 = vpop.xlane.xlu1 %851  ;;  %v90_v53 = vld [vmem:[%s21259_s0 + $0x4c] sm:$0x3] }
 0x139   :  { %21387 = vst [vmem:[#allocation30_spill] sm:$0xff] %v15235_v58  ;;  %21388 = vst [vmem:[#allocation31_spill] sm:$0xff] %v15241_v17  ;;  %v2825_v1 = vmul.f32 %v12432_v15, %v15129_v44  ;;  %v4573_v43 = vcombine.low %v15235_v58, %v15241_v17  ;;  %v667_v54 = vsel %vm564_vm0, %v14455_v21, 0.0  ;;  %v3312_v35 = vmax.f32 %v2648_v29, 1e-12 }
 0x13a   :  { %v12438_v47 = vpop.eup %12437  ;;  %v2843_v51 = vand.u32 2147483648, %v15103_v11  ;;  %vm2826_vm15 = vcmp.eq.f32.partialorder %v15129_v44, inf  ;;  %668 = vadd.xlane.f32.xlu1 %v667_v54  ;;  %v340_v46 = vmul.f32 %v84_v61, %v84_v61  ;;  %v3336_v23 = vmax.f32 %v2816_v27, 1e-12  ;;  %v88_v11 = vld [vmem:[%s21259_s0 + $0x48] sm:$0x3] }
 0x13b   :  { %v15268_v14 = vpop.eup %12439  ;;  %vm2828_vm3 = vcmp.eq.f32.partialorder %v15129_v44, 0.0  ;;  %v4580_v15 = vrot.slane %v4572_v9, %v13863_v33  ;;  %v4587_v17 = vrot.slane %v4573_v43, %v13863_v33  ;;  %12451 = vrcp.f32 %v3314_v25  ;;  %v15285_v9 = vpop.xlane.xlu0 %755 }
 0x13c   :  { %v15273_v21 = vpop.eup %12441  ;;  %v2802_v29 = vsel %vm2800_vm12, %v2801_v48, %v2799_v31  ;;  %v2844_v58 = vsel %vm2842_vm14, %v2843_v51, %v2841_v16  ;;  %v661_v61 = vsel %vm564_vm0, %v340_v46, 0.0  ;;  %v2827_v27 = vsel %vm2826_vm15, %v15129_v44, %v2825_v1  ;;  %v15300_v25 = vpop.xlane.xlu1 %1043 }
 0x13d   :  { %v12444_v54 = vpop.eup %12443  ;;  %v2867_v26 = vmul.f32 %v12438_v47, %v15169_v3  ;;  %v15282_v10 = vcombine.low %v4580_v15, %v4587_v17  ;;  %662 = vadd.xlane.f32.xlu0 %v661_v61  ;;  %12453 = vrsqrt.f32 %v15264_v37  ;;  %v2829_v51 = vand.u32 2147483648, %v15129_v44  ;;  %v94_v61 = vld [vmem:[%s21259_s0 + $0x54] sm:$0x3] }
 0x13e   :  { %12455 = vrcp.f32 %v3312_v35  ;;  %vm2868_vm4 = vcmp.eq.f32.partialorder %v15169_v3, inf  ;;  %vm2870_vm5 = vcmp.eq.f32.partialorder %v15169_v3, 0.0  ;;  %v3334_v46 = vmax.f32 %v2802_v29, 1e-12 }
 0x13f   :  { %21389 = vst [vmem:[#allocation32_spill] sm:$0xff] %v15282_v10  ;;  %12457 = vrcp.f32 %v3336_v23  ;;  %v2871_v48 = vand.u32 2147483648, %v15169_v3  ;;  %vm2854_vm6 = vcmp.eq.f32.partialorder %v15182_v49, inf  ;;  %11405 = vmatprep.mubr.msk.f32.mxu0 %vm4207_vm2, %v15282_v10  ;;  %v15302_v17 = vpop.eup %12445  ;;  %v3340_v31 = vmax.f32 %v2844_v58, 1e-12 }
 0x140   :  { %v2830_v16 = vsel %vm2828_vm3, %v2829_v51, %v2827_v27  ;;  %v2853_v1 = vmul.f32 %v12444_v54, %v15182_v49  ;;  %vm2856_vm7 = vcmp.eq.f32.partialorder %v15182_v49, 0.0  ;;  %v346_v43 = vmul.f32 %v90_v53, %v90_v53  ;;  %v15323_v27 = vpop.xlane.xlu0 %947  ;;  %v92_v53 = vld [vmem:[%s21259_s0 + $0x50] sm:$0x3] }
 0x141   :  { %v12448_v47 = vpop.eup %12447  ;;  %v2869_v35 = vsel %vm2868_vm4, %v15169_v3, %v2867_v26  ;;  %v2857_v23 = vand.u32 2147483648, %v15182_v49  ;;  %12459 = vrsqrt.f32 %v15285_v9  ;;  %v344_v15 = vmul.f32 %v88_v11, %v88_v11  ;;  %v13371_v3 = vld [vmem:[%s21259_s0 + $0x132] sm:$0x3] }
 0x142   :  { %v12450_v29 = vpop.eup %12449  ;;  %vm1552_vm8 = vcmp.eq.f32.partialorder %v15201_v62, inf  ;;  %v679_v58 = vsel %vm564_vm0, %v346_v43, 0.0  ;;  %12461 = vrsqrt.f32 %v15300_v25  ;;  %v3338_v26 = vmax.f32 %v2830_v16, 1e-12  ;;  %v13370_v43 = vld [vmem:[%s21259_s0 + $0x12e] sm:$0x3] }
 0x143   :  { %12463 = vrcp.f32 %v3334_v46  ;;  %vm1554_vm9 = vcmp.eq.f32.partialorder %v15201_v62, 0.0  ;;  %vm2882_vm10 = vcmp.eq.f32.partialorder %v15217_v36, inf  ;;  %680 = vadd.xlane.f32.xlu1 %v679_v58  ;;  %v673_v54 = vsel %vm564_vm0, %v344_v15, 0.0 }
 0x144   :  { %12465 = vrcp.f32 %v3340_v31  ;;  %v2872_v51 = vsel %vm2870_vm5, %v2871_v48, %v2869_v35  ;;  %v2855_v11 = vsel %vm2854_vm6, %v15182_v49, %v2853_v1  ;;  %vm2884_vm11 = vcmp.eq.f32.partialorder %v15217_v36, 0.0  ;;  %674 = vadd.xlane.f32.xlu0 %v673_v54  ;;  %v15348_v1 = vld [vmem:[#allocation2 + $0xc] sm:$0x7] }
 0x145   :  { %v1551_v46 = vmul.f32 %v12448_v47, %v15201_v62  ;;  %v2881_v16 = vmul.f32 %v12450_v29, %v15217_v36  ;;  %v15340_v31 = vmul.f32 %v13370_v43, %v15114_v18  ;;  %v15346_v48 = vmul.f32 %v13371_v3, %v15194_v13  ;;  %v15350_v35 = vpop.eup %12451  ;;  %v13372_v47 = vld [vmem:[%s21259_s0 + $0x136] sm:$0x3]  ;;  %v13373_v18 = vld [vmem:[%s21259_s0 + $0x13a] sm:$0x3]  ;;  %11440 = vmatprep.subr.msk.mxu0 %vm4238_vm1, %v15348_v1 }
 0x146   :  { %v15356_v15 = vmul.f32 %v13372_v47, %v15176_v60  ;;  %v15362_v29 = vmul.f32 %v13373_v18, %v15226_v41  ;;  %v350_v13 = vmul.f32 %v94_v61, %v94_v61  ;;  %v348_v58 = vmul.f32 %v92_v53, %v92_v53  ;;  %v15369_v47 = vpop.xlane.xlu1 %1235 }
 0x147   :  { %21390 = vst [vmem:[#allocation33_spill] sm:$0xff] %v15340_v31  ;;  %21391 = vst [vmem:[#allocation34_spill] sm:$0xff] %v15346_v48  ;;  %v12454_v54 = vpop.eup %12453  ;;  %12467 = vrcp.f32 %v3338_v26  ;;  %v3344_v43 = vmax.f32 %v2872_v51, 1e-12  ;;  %v2885_v3 = vand.u32 2147483648, %v15217_v36  ;;  %v4589_v60 = vcombine.low %v15340_v31, %v15346_v48 }
 0x148   :  { %21392 = vst [vmem:[#allocation35_spill] sm:$0xff] %v15356_v15  ;;  %21393 = vst [vmem:[#allocation36_spill] sm:$0xff] %v15362_v29  ;;  %v15371_v44 = vpop.eup %12455  ;;  %12469 = vrsqrt.f32 %v15323_v27  ;;  %v4590_v41 = vcombine.low %v15356_v15, %v15362_v29  ;;  %v691_v61 = vsel %vm564_vm0, %v350_v13, 0.0  ;;  %v685_v53 = vsel %vm564_vm0, %v348_v58, 0.0  ;;  %v15389_v13 = vpop.xlane.xlu0 %1139 }
 0x149   :  { %v15378_v26 = vpop.eup %12457  ;;  %v2858_v51 = vsel %vm2856_vm7, %v2857_v23, %v2855_v11  ;;  %v1553_v18 = vsel %vm1552_vm8, %v15201_v62, %v1551_v46  ;;  %v2883_v10 = vsel %vm2882_vm10, %v15217_v36, %v2881_v16  ;;  %vm2000_vm12 = vcmp.eq.f32.partialorder %v15264_v37, inf  ;;  %692 = vadd.xlane.f32.xlu1 %v691_v61  ;;  %686 = vadd.xlane.f32.xlu0 %v685_v53  ;;  %v98_v23 = vld [vmem:[%s21259_s0 + $0x5c] sm:$0x3]  ;;  %v13374_v46 = vld [vmem:[%s21259_s0 + $0x162] sm:$0x3] }
 0x14a   :  { %v1999_v58 = vmul.f32 %v12454_v54, %v15264_v37  ;;  %v4597_v29 = vrot.slane %v4589_v60, %v13863_v33  ;;  %v4604_v49 = vrot.slane %v4590_v41, %v13863_v33  ;;  %12471 = vrsqrt.f32 %v15369_v47  ;;  %v13375_v54 = vld [vmem:[%s21259_s0 + $0x166] sm:$0x3] }
 0x14b   :  { %v12460_v11 = vpop.eup %12459  ;;  %12473 = vrcp.f32 %v3344_v43  ;;  %vm2002_vm13 = vcmp.eq.f32.partialorder %v15264_v37, 0.0  ;;  %v15403_v16 = vmul.f32 %v13374_v46, %v15203_v30  ;;  %v15409_v60 = vmul.f32 %v13375_v54, %v15268_v14  ;;  %v96_v43 = vld [vmem:[%s21259_s0 + $0x58] sm:$0x3]  ;;  %v13376_v30 = vld [vmem:[%s21259_s0 + $0x16a] sm:$0x3] }
 0x14c   :  { %v12462_v41 = vpop.eup %12461  ;;  %v21396_v61 = vand.u32 2147483648, %v15201_v62  ;;  %v15418_v48 = vcombine.low %v4597_v29, %v4604_v49  ;;  %12475 = vrsqrt.f32 %v15389_v13  ;;  %v15425_v14 = vmul.f32 %v13376_v30, %v15254_v39 }
 0x14d   :  { %21394 = vst [vmem:[#allocation37_spill] sm:$0xff] %v15403_v16  ;;  %21395 = vst [vmem:[#allocation38_spill] sm:$0xff] %v15409_v60  ;;  %v15427_v46 = vpop.eup %12463  ;;  %v3342_v54 = vmax.f32 %v2858_v51, 1e-12  ;;  %v2886_v15 = vsel %vm2884_vm11, %v2885_v3, %v2883_v10  ;;  %v4606_v62 = vcombine.low %v21365_v55, %v15403_v16  ;;  %v354_v29 = vmul.f32 %v98_v23, %v98_v23 }
 0x14e   :  { %v1556_v53 = vsel %vm1554_vm9, %v21396_v61, %v1553_v18  ;;  %21397 = vst [vmem:[#allocation39_spill] sm:$0xff] %v15418_v48  ;;  %21398 = vst [vmem:[#allocation40_spill] sm:$0xff] %v15425_v14  ;;  %v15433_v18 = vpop.xlane.xlu1 %575  ;;  %v15435_v49 = vpop.eup %12465  ;;  %v2001_v61 = vsel %vm2000_vm12, %v15264_v37, %v1999_v58  ;;  %v1775_v39 = vmul.f32 %v12460_v11, %v15285_v9  ;;  %11406 = vmatmul.mubr.msk.f32.gmra.mrb[10].mxu0 %vm4207_vm2, %v15418_v48 }
 0x14f   :  { %v4607_v10 = vcombine.low %v15409_v60, %v15425_v14  ;;  %v352_v36 = vmul.f32 %v96_v43, %v96_v43  ;;  %v3156_v3 = vmax.f32 %v1556_v53, 1e-12  ;;  %v2003_v51 = vand.u32 2147483648, %v15264_v37  ;;  %v15451_v48 = vpop.xlane.xlu0 %569  ;;  %v13382_v14 = vld [vmem:[%s21259_s0 + $0x1a6] sm:$0x3] }
 0x150   :  { %v2447_v23 = vmul.f32 %v12462_v41, %v15300_v25  ;;  %v703_v30 = vsel %vm564_vm0, %v354_v29, 0.0  ;;  %v3346_v16 = vmax.f32 %v2886_v15, 1e-12  ;;  %v4614_v31 = vrot.slane %v4606_v62, %v13863_v33 }
 0x151   :  { %v4621_v58 = vrot.slane %v4607_v10, %v13863_v33  ;;  %704 = vadd.xlane.f32.xlu1 %v703_v30  ;;  %v697_v11 = vsel %vm564_vm0, %v352_v36, 0.0  ;;  %v15453_v52 = vpop.eup %12467  ;;  %12477 = vrcp.f32 %v3342_v54  ;;  %v2004_v43 = vsel %vm2002_vm13, %v2003_v51, %v2001_v61  ;;  %v118_v54 = vld [vmem:[%s21259_s0 + $0x84] sm:$0x3]  ;;  %v116_v61 = vld [vmem:[%s21259_s0 + $0x80] sm:$0x3] }
 0x152   :  { %vm1776_vm14 = vcmp.eq.f32.partialorder %v15285_v9, inf  ;;  %vm1778_vm15 = vcmp.eq.f32.partialorder %v15285_v9, 0.0  ;;  %698 = vadd.xlane.f32.xlu0 %v697_v11  ;;  %v12470_v15 = vpop.eup %12469  ;;  %v1779_v53 = vand.u32 2147483648, %v15285_v9  ;;  %vm2448_vm3 = vcmp.eq.f32.partialorder %v15300_v25, inf }
 0x153   :  { %v1777_v41 = vsel %vm1776_vm14, %v15285_v9, %v1775_v39  ;;  %v15462_v62 = vcombine.low %v4614_v31, %v4621_v58  ;;  %12479 = vrcp.f32 %v3156_v3  ;;  %v2449_v37 = vsel %vm2448_vm3, %v15300_v25, %v2447_v23  ;;  %v15473_v39 = vpop.xlane.xlu1 %587 }
 0x154   :  { %vm2450_vm4 = vcmp.eq.f32.partialorder %v15300_v25, 0.0  ;;  %v2451_v29 = vand.u32 2147483648, %v15300_v25  ;;  %v12472_v10 = vpop.eup %12471  ;;  %12481 = vrcp.f32 %v3346_v16  ;;  %v3220_v31 = vmax.f32 %v2004_v43, 1e-12  ;;  %v15489_v43 = vpop.xlane.xlu0 %581  ;;  %v122_v25 = vld [vmem:[%s21259_s0 + $0x8c] sm:$0x3] }
 0x155   :  { %21399 = vst [vmem:[#allocation41_spill] sm:$0xff] %v15462_v62  ;;  %vm2224_vm5 = vcmp.eq.f32.partialorder %v15323_v27, inf  ;;  %vm2226_vm6 = vcmp.eq.f32.partialorder %v15323_v27, 0.0  ;;  %11408 = vmatprep.mubr.msk.f32.mxu0 %vm4207_vm2, %v15462_v62  ;;  %v15479_v36 = vpop.eup %12473  ;;  %v1780_v3 = vsel %vm1778_vm15, %v1779_v53, %v1777_v41  ;;  %v2223_v51 = vmul.f32 %v12470_v15, %v15323_v27 }
 0x156   :  { %12483 = vrsqrt.f32 %v15433_v18  ;;  %v374_v23 = vmul.f32 %v118_v54, %v118_v54  ;;  %v12476_v30 = vpop.eup %12475  ;;  %v2452_v16 = vsel %vm2450_vm4, %v2451_v29, %v2449_v37  ;;  %v2227_v58 = vand.u32 2147483648, %v15323_v27  ;;  %v120_v54 = vld [vmem:[%s21259_s0 + $0x88] sm:$0x3] }
 0x157   :  { %12485 = vrsqrt.f32 %v15451_v48  ;;  %v372_v11 = vmul.f32 %v116_v61, %v116_v61  ;;  %v2895_v62 = vmul.f32 %v12472_v10, %v15369_v47  ;;  %vm2896_vm7 = vcmp.eq.f32.partialorder %v15369_v47, inf  ;;  %v13377_v10 = vld [vmem:[%s21259_s0 + $0x16e] sm:$0x3] }
 0x158   :  { %vm2898_vm8 = vcmp.eq.f32.partialorder %v15369_v47, 0.0  ;;  %v763_v9 = vsel %vm564_vm0, %v374_v23, 0.0  ;;  %12487 = vrcp.f32 %v3220_v31  ;;  %v3188_v15 = vmax.f32 %v1780_v3, 1e-12  ;;  %v15513_v3 = vpop.xlane.xlu1 %599  ;;  %v13378_v23 = vld [vmem:[%s21259_s0 + $0x172] sm:$0x3] }
 0x159   :  { %v2899_v41 = vand.u32 2147483648, %v15369_v47  ;;  %764 = vadd.xlane.f32.xlu1 %v763_v9  ;;  %v757_v53 = vsel %vm564_vm0, %v372_v11, 0.0  ;;  %v3284_v37 = vmax.f32 %v2452_v16, 1e-12  ;;  %v2225_v29 = vsel %vm2224_vm5, %v15323_v27, %v2223_v51 }
 0x15a   :  { %v2671_v61 = vmul.f32 %v12476_v30, %v15389_v13  ;;  %758 = vadd.xlane.f32.xlu0 %v757_v53  ;;  %v15511_v31 = vmul.f32 %v13377_v10, %v15302_v17  ;;  %12489 = vrsqrt.f32 %v15473_v39  ;;  %v15520_v51 = vmul.f32 %v13378_v23, %v15273_v21  ;;  %v13379_v30 = vld [vmem:[%s21259_s0 + $0x176] sm:$0x3]  ;;  %v13380_v17 = vld [vmem:[%s21259_s0 + $0x17a] sm:$0x3] }
 0x15b   :  { %v15526_v16 = vmul.f32 %v13379_v30, %v15371_v44  ;;  %v15532_v11 = vmul.f32 %v13380_v17, %v15350_v35  ;;  %v15534_v9 = vpop.eup %12477  ;;  %v2897_v21 = vsel %vm2896_vm7, %v15369_v47, %v2895_v62  ;;  %12491 = vrsqrt.f32 %v15489_v43  ;;  %v15547_v30 = vpop.xlane.xlu0 %593 }
 0x15c   :  { %21400 = vst [vmem:[#allocation42_spill] sm:$0xff] %v15511_v31  ;;  %21401 = vst [vmem:[#allocation43_spill] sm:$0xff] %v15520_v51  ;;  %v378_v53 = vmul.f32 %v122_v25, %v122_v25  ;;  %v376_v10 = vmul.f32 %v120_v54, %v120_v54  ;;  %v2228_v44 = vsel %vm2226_vm6, %v2227_v58, %v2225_v29  ;;  %12493 = vrsqrt.f32 %v15513_v3  ;;  %v126_v58 = vld [vmem:[%s21259_s0 + $0x94] sm:$0x3] }
 0x15d   :  { %21402 = vst [vmem:[#allocation44_spill] sm:$0xff] %v15526_v16  ;;  %21403 = vst [vmem:[#allocation45_spill] sm:$0xff] %v15532_v11  ;;  %v4623_v23 = vcombine.low %v15511_v31, %v15520_v51  ;;  %v4624_v35 = vcombine.low %v15526_v16, %v15532_v11  ;;  %v15549_v17 = vpop.eup %12479  ;;  %12495 = vrcp.f32 %v3188_v15  ;;  %vm2672_vm9 = vcmp.eq.f32.partialorder %v15389_v13, inf }
 0x15e   :  { %v775_v62 = vsel %vm564_vm0, %v378_v53, 0.0  ;;  %v769_v27 = vsel %vm564_vm0, %v376_v10, 0.0  ;;  %v15557_v25 = vpop.eup %12481  ;;  %v2900_v54 = vsel %vm2898_vm8, %v2899_v41, %v2897_v21  ;;  %v2673_v29 = vsel %vm2672_vm9, %v15389_v13, %v2671_v61  ;;  %v124_v53 = vld [vmem:[%s21259_s0 + $0x90] sm:$0x3] }
 0x15f   :  { %v4631_v11 = vrot.slane %v4623_v23, %v13863_v33  ;;  %v4638_v15 = vrot.slane %v4624_v35, %v13863_v33  ;;  %776 = vadd.xlane.f32.xlu1 %v775_v62  ;;  %v3252_v51 = vmax.f32 %v2228_v44, 1e-12  ;;  %vm2674_vm10 = vcmp.eq.f32.partialorder %v15389_v13, 0.0  ;;  %770 = vadd.xlane.f32.xlu0 %v769_v27  ;;  %v15574_v44 = vpop.xlane.xlu1 %665 }
 0x160   :  { %v12484_v10 = vpop.eup %12483  ;;  %v2675_v16 = vand.u32 2147483648, %v15389_v13  ;;  %12497 = vrsqrt.f32 %v15547_v30  ;;  %vm1356_vm11 = vcmp.eq.f32.partialorder %v15433_v18, inf  ;;  %v382_v61 = vmul.f32 %v126_v58, %v126_v58  ;;  %v15587_v58 = vpop.xlane.xlu0 %605 }
 0x161   :  { %v12486_v47 = vpop.eup %12485  ;;  %12499 = vrcp.f32 %v3284_v37  ;;  %v15571_v41 = vcombine.low %v4631_v11, %v4638_v15  ;;  %v3348_v21 = vmax.f32 %v2900_v54, 1e-12  ;;  %vm1358_vm12 = vcmp.eq.f32.partialorder %v15433_v18, 0.0 }
 0x162   :  { %v2676_v23 = vsel %vm2674_vm10, %v2675_v16, %v2673_v29  ;;  %v380_v35 = vmul.f32 %v124_v53, %v124_v53  ;;  %v15576_v62 = vpop.eup %12487  ;;  %v1355_v13 = vmul.f32 %v12484_v10, %v15433_v18  ;;  %v1359_v27 = vand.u32 2147483648, %v15433_v18  ;;  %v130_v10 = vld [vmem:[%s21259_s0 + $0x9c] sm:$0x3] }
 0x163   :  { %21404 = vst [vmem:[#allocation46_spill] sm:$0xff] %v15571_v41  ;;  %vm1342_vm13 = vcmp.eq.f32.partialorder %v15451_v48, inf  ;;  %11409 = vmatmul.mubr.msk.f32.gmra.mrb[12].mxu0 %vm4207_vm2, %v15571_v41  ;;  %v787_v37 = vsel %vm564_vm0, %v382_v61, 0.0  ;;  %12501 = vrcp.f32 %v3252_v51  ;;  %v1341_v16 = vmul.f32 %v12486_v47, %v15451_v48 }
 0x164   :  { %vm1344_vm14 = vcmp.eq.f32.partialorder %v15451_v48, 0.0  ;;  %788 = vadd.xlane.f32.xlu1 %v787_v37  ;;  %v781_v11 = vsel %vm564_vm0, %v380_v35, 0.0  ;;  %v12490_v54 = vpop.eup %12489  ;;  %v3316_v29 = vmax.f32 %v2676_v23, 1e-12  ;;  %v1345_v15 = vand.u32 2147483648, %v15451_v48 }
 0x165   :  { %vm1384_vm15 = vcmp.eq.f32.partialorder %v15473_v39, inf  ;;  %782 = vadd.xlane.f32.xlu0 %v781_v11  ;;  %12503 = vrsqrt.f32 %v15574_v44  ;;  %v12492_v53 = vpop.eup %12491  ;;  %vm1386_vm3 = vcmp.eq.f32.partialorder %v15473_v39, 0.0  ;;  %v1387_v51 = vand.u32 2147483648, %v15473_v39  ;;  %v128_v37 = vld [vmem:[%s21259_s0 + $0x98] sm:$0x3] }
 0x166   :  { %12505 = vrcp.f32 %v3348_v21  ;;  %vm1370_vm4 = vcmp.eq.f32.partialorder %v15489_v43, inf  ;;  %v12494_v47 = vpop.eup %12493  ;;  %v1357_v61 = vsel %vm1356_vm11, %v15433_v18, %v1355_v13  ;;  %vm1372_vm5 = vcmp.eq.f32.partialorder %v15489_v43, 0.0  ;;  %v13381_v21 = vld [vmem:[%s21259_s0 + $0x1a2] sm:$0x3] }
 0x167   :  { %v1373_v23 = vand.u32 2147483648, %v15489_v43  ;;  %12507 = vrsqrt.f32 %v15587_v58  ;;  %v15608_v35 = vmul.f32 %v13381_v21, %v15427_v46  ;;  %v15613_v11 = vpop.eup %12495  ;;  %v1343_v13 = vsel %vm1342_vm13, %v15451_v48, %v1341_v16  ;;  %v13383_v46 = vld [vmem:[%s21259_s0 + $0x1aa] sm:$0x3] }
 0x168   :  { %v1383_v41 = vmul.f32 %v12490_v54, %v15473_v39  ;;  %v15623_v31 = vmul.f32 %v13382_v14, %v15378_v26  ;;  %v15629_v21 = vmul.f32 %v13383_v46, %v15453_v52  ;;  %12509 = vrcp.f32 %v3316_v29 }
 0x169   :  { %v1369_v60 = vmul.f32 %v12492_v53, %v15489_v43  ;;  %v4640_v16 = vcombine.low %v21365_v55, %v15608_v35  ;;  %v386_v54 = vmul.f32 %v130_v10, %v130_v10  ;;  %v1360_v8 = vsel %vm1358_vm12, %v1359_v27, %v1357_v61  ;;  %v15646_v53 = vpop.xlane.xlu1 %677 }
 0x16a   :  { %v12498_v7 = vpop.eup %12497  ;;  %v1411_v26 = vmul.f32 %v12494_v47, %v15513_v3  ;;  %v4641_v14 = vcombine.low %v15623_v31, %v15629_v21  ;;  %v384_v59 = vmul.f32 %v128_v37, %v128_v37  ;;  %v1346_v52 = vsel %vm1344_vm14, %v1345_v15, %v1343_v13  ;;  %v150_v15 = vld [vmem:[%s21259_s0 + $0xc4] sm:$0x3]  ;;  %v15662_v13 = vpop.xlane.xlu0 %671 }
 0x16b   :  { %v15639_v32 = vpop.eup %12499  ;;  %vm1412_vm6 = vcmp.eq.f32.partialorder %v15513_v3, inf  ;;  %vm1414_vm7 = vcmp.eq.f32.partialorder %v15513_v3, 0.0  ;;  %v799_v29 = vsel %vm564_vm0, %v386_v54, 0.0  ;;  %v1385_v18 = vsel %vm1384_vm15, %v15473_v39, %v1383_v41 }
 0x16c   :  { %v4648_v27 = vrot.slane %v4640_v16, %v13863_v33  ;;  %v4655_v10 = vrot.slane %v4641_v14, %v13863_v33  ;;  %800 = vadd.xlane.f32.xlu1 %v799_v29  ;;  %v793_v48 = vsel %vm564_vm0, %v384_v59, 0.0  ;;  %v3128_v47 = vmax.f32 %v1360_v8, 1e-12  ;;  %v148_v59 = vld [vmem:[%s21259_s0 + $0xc0] sm:$0x3] }
 0x16d   :  { %v1371_v61 = vsel %vm1370_vm4, %v15489_v43, %v1369_v60  ;;  %v1415_v37 = vand.u32 2147483648, %v15513_v3  ;;  %v1397_v41 = vmul.f32 %v12498_v7, %v15547_v30  ;;  %794 = vadd.xlane.f32.xlu0 %v793_v48  ;;  %v15667_v46 = vpop.eup %12501  ;;  %v1413_v8 = vsel %vm1412_vm6, %v15513_v3, %v1411_v26  ;;  %v15693_v43 = vpop.xlane.xlu1 %689 }
 0x16e   :  { %vm1398_vm8 = vcmp.eq.f32.partialorder %v15547_v30, inf  ;;  %v15673_v60 = vcombine.low %v4648_v27, %v4655_v10  ;;  %12511 = vrsqrt.f32 %v15646_v53  ;;  %v3126_v16 = vmax.f32 %v1346_v52, 1e-12 }
 0x16f   :  { %v12504_v7 = vpop.eup %12503  ;;  %v1388_v54 = vsel %vm1386_vm3, %v1387_v51, %v1385_v18  ;;  %vm1400_vm9 = vcmp.eq.f32.partialorder %v15547_v30, 0.0  ;;  %v1401_v14 = vand.u32 2147483648, %v15547_v30  ;;  %v1374_v26 = vsel %vm1372_vm5, %v1373_v23, %v1371_v61  ;;  %v154_v23 = vld [vmem:[%s21259_s0 + $0xcc] sm:$0x3] }
 0x170   :  { %21405 = vst [vmem:[#allocation47_spill] sm:$0xff] %v15673_v60  ;;  %v15680_v29 = vpop.eup %12505  ;;  %11411 = vmatprep.mubr.msk.f32.mxu0 %vm4207_vm2, %v15673_v60  ;;  %12513 = vrsqrt.f32 %v15662_v13  ;;  %v406_v27 = vmul.f32 %v150_v15, %v150_v15  ;;  %v404_v10 = vmul.f32 %v148_v59, %v148_v59  ;;  %v1416_v39 = vsel %vm1414_vm7, %v1415_v37, %v1413_v8  ;;  %v152_v15 = vld [vmem:[%s21259_s0 + $0xc8] sm:$0x3]  ;;  %v15708_v59 = vpop.xlane.xlu0 %683 }
 0x171   :  { %v12508_v52 = vpop.eup %12507  ;;  %12515 = vrcp.f32 %v3128_v47  ;;  %v1399_v51 = vsel %vm1398_vm8, %v15547_v30, %v1397_v41  ;;  %vm1566_vm10 = vcmp.eq.f32.partialorder %v15574_v44, inf  ;;  %v1565_v18 = vmul.f32 %v12504_v7, %v15574_v44  ;;  %v13386_v30 = vld [vmem:[%s21259_s0 + $0x1b6] sm:$0x3] }
 0x172   :  { %vm1568_vm11 = vcmp.eq.f32.partialorder %v15574_v44, 0.0  ;;  %v859_v48 = vsel %vm564_vm0, %v406_v27, 0.0  ;;  %v853_v3 = vsel %vm564_vm0, %v404_v10, 0.0  ;;  %v15705_v47 = vpop.eup %12509  ;;  %12517 = vrcp.f32 %v3126_v16  ;;  %v13384_v16 = vld [vmem:[%s21259_s0 + $0x1ae] sm:$0x3] }
 0x173   :  { %v3132_v61 = vmax.f32 %v1388_v54, 1e-12  ;;  %v3130_v37 = vmax.f32 %v1374_v26, 1e-12  ;;  %v1569_v41 = vand.u32 2147483648, %v15574_v44  ;;  %860 = vadd.xlane.f32.xlu1 %v859_v48  ;;  %854 = vadd.xlane.f32.xlu0 %v853_v3  ;;  %v1402_v7 = vsel %vm1400_vm9, %v1401_v14, %v1399_v51 }
 0x174   :  { %v3136_v8 = vmax.f32 %v1416_v39, 1e-12  ;;  %v1425_v27 = vmul.f32 %v12508_v52, %v15587_v58  ;;  %12519 = vrsqrt.f32 %v15693_v43  ;;  %v15718_v54 = vmul.f32 %v13384_v16, %v15435_v49  ;;  %v13385_v26 = vld [vmem:[%s21259_s0 + $0x1b2] sm:$0x3]  ;;  %v13387_v52 = vld [vmem:[%s21259_s0 + $0x1ba] sm:$0x3] }
 0x175   :  { %v15724_v10 = vmul.f32 %v13385_v26, %v15534_v9  ;;  %v15730_v14 = vmul.f32 %v13386_v30, %v15479_v36  ;;  %v15736_v49 = vmul.f32 %v13387_v52, %v15557_v25  ;;  %v1567_v39 = vsel %vm1566_vm10, %v15574_v44, %v1565_v18  ;;  %v15754_v26 = vpop.xlane.xlu1 %701 }
 0x176   :  { %12521 = vrsqrt.f32 %v15708_v59  ;;  %v410_v9 = vmul.f32 %v154_v23, %v154_v23  ;;  %v408_v51 = vmul.f32 %v152_v15, %v152_v15  ;;  %v3134_v48 = vmax.f32 %v1402_v7, 1e-12 }
 0x177   :  { %12523 = vrcp.f32 %v3132_v61  ;;  %v4657_v36 = vcombine.low %v15718_v54, %v15724_v10  ;;  %v4658_v3 = vcombine.low %v15730_v14, %v15736_v49  ;;  %vm1426_vm12 = vcmp.eq.f32.partialorder %v15587_v58, inf }
 0x178   :  { %v12512_v16 = vpop.eup %12511  ;;  %12525 = vrcp.f32 %v3130_v37  ;;  %v871_v25 = vsel %vm564_vm0, %v410_v9, 0.0  ;;  %v865_v18 = vsel %vm564_vm0, %v408_v51, 0.0  ;;  %v1570_v23 = vsel %vm1568_vm11, %v1569_v41, %v1567_v39  ;;  %v158_v37 = vld [vmem:[%s21259_s0 + $0xd4] sm:$0x3]  ;;  %v156_v41 = vld [vmem:[%s21259_s0 + $0xd0] sm:$0x3] }
 0x179   :  { %v1427_v15 = vsel %vm1426_vm12, %v15587_v58, %v1425_v27  ;;  %v4665_v61 = vrot.slane %v4657_v36, %v13863_v33  ;;  %v4672_v7 = vrot.slane %v4658_v3, %v13863_v33  ;;  %872 = vadd.xlane.f32.xlu1 %v871_v25  ;;  %12527 = vrcp.f32 %v3136_v8  ;;  %866 = vadd.xlane.f32.xlu0 %v865_v18  ;;  %v15771_v8 = vpop.xlane.xlu0 %695 }
 0x17a   :  { %v12514_v30 = vpop.eup %12513  ;;  %vm1428_vm13 = vcmp.eq.f32.partialorder %v15587_v58, 0.0  ;;  %v1429_v44 = vand.u32 2147483648, %v15587_v58  ;;  %vm1594_vm14 = vcmp.eq.f32.partialorder %v15646_v53, inf  ;;  %12529 = vrcp.f32 %v3134_v48 }
 0x17b   :  { %v15765_v27 = vpop.eup %12515  ;;  %v1593_v52 = vmul.f32 %v12512_v16, %v15646_v53  ;;  %vm1596_vm15 = vcmp.eq.f32.partialorder %v15646_v53, 0.0  ;;  %v15769_v39 = vcombine.low %v4665_v61, %v4672_v7  ;;  %v3158_v9 = vmax.f32 %v1570_v23, 1e-12  ;;  %v15795_v61 = vpop.xlane.xlu1 %767 }
 0x17c   :  { %v1430_v58 = vsel %vm1428_vm13, %v1429_v44, %v1427_v15  ;;  %v4857_v51 = vcombine.low %v14580_v24, %v14585_v57  ;;  %v4858_v36 = vcombine.low %v14601_v63, %v14667_v38  ;;  %v15777_v3 = vpop.eup %12517  ;;  %v1579_v48 = vmul.f32 %v12514_v30, %v15662_v13  ;;  %v21407_v15 = vld [vmem:[#allocation12_spill] sm:$0xff] }
 0x17d   :  { %21406 = vst [vmem:[#allocation48_spill] sm:$0xff] %v15769_v39  ;;  %11412 = vmatmul.mubr.msk.f32.gmra.mrb[14].mxu0 %vm4207_vm2, %v15769_v39  ;;  %12531 = vrsqrt.f32 %v15754_v26  ;;  %v414_v16 = vmul.f32 %v158_v37, %v158_v37  ;;  %v412_v25 = vmul.f32 %v156_v41, %v156_v41  ;;  %v1597_v23 = vand.u32 2147483648, %v15646_v53 }
 0x17e   :  { %v12520_v18 = vpop.eup %12519  ;;  %11416 = vmatprep.mubr.msk.f32.mxu0 %vm4207_vm2, %v21407_v15  ;;  %12533 = vrsqrt.f32 %v15771_v8  ;;  %v4865_v24 = vrot.slane %v4857_v51, %v13863_v33  ;;  %v4872_v57 = vrot.slane %v4858_v36, %v13863_v33  ;;  %v1595_v63 = vsel %vm1594_vm14, %v15646_v53, %v1593_v52 }
 0x17f   :  { %vm1580_vm3 = vcmp.eq.f32.partialorder %v15662_v13, inf  ;;  %vm1582_vm4 = vcmp.eq.f32.partialorder %v15662_v13, 0.0  ;;  %v883_v38 = vsel %vm564_vm0, %v414_v16, 0.0  ;;  %v3138_v37 = vmax.f32 %v1430_v58, 1e-12 }
 0x180   :  { %v12522_v7 = vpop.eup %12521  ;;  %v1583_v30 = vand.u32 2147483648, %v15662_v13  ;;  %v15798_v44 = vcombine.low %v4865_v24, %v4872_v57  ;;  %884 = vadd.xlane.f32.xlu1 %v883_v38  ;;  %v877_v41 = vsel %vm564_vm0, %v412_v25, 0.0  ;;  %12535 = vrcp.f32 %v3158_v9  ;;  %v13388_v24 = vld [vmem:[%s21259_s0 + $0x3e] sm:$0x3]  ;;  %v160_v38 = vld [vmem:[%s21259_s0 + $0xd8] sm:$0x3] }
 0x181   :  { %v15801_v51 = vpop.eup %12523  ;;  %v1581_v52 = vsel %vm1580_vm3, %v15662_v13, %v1579_v48  ;;  %vm1622_vm5 = vcmp.eq.f32.partialorder %v15693_v43, inf  ;;  %vm1624_vm6 = vcmp.eq.f32.partialorder %v15693_v43, 0.0  ;;  %11417 = vmatmul.mubr.msk.f32.vlgmr.msra.gmra.mrb[0].mxu0 %vm4207_vm2, %v21407_v15  ;;  %878 = vadd.xlane.f32.xlu0 %v877_v41  ;;  %v1598_v36 = vsel %vm1596_vm15, %v1597_v23, %v1595_v63  ;;  %v15823_v48 = vpop.xlane.xlu0 %761 }
 0x182   :  { %21408 = vst [vmem:[#allocation12_spill] sm:$0xff] %v15798_v44  ;;  %v15808_v58 = vpop.eup %12525  ;;  %v1621_v16 = vmul.f32 %v12520_v18, %v15693_v43  ;;  %v1625_v25 = vand.u32 2147483648, %v15693_v43  ;;  %11419 = vmatprep.mubr.msk.f32.mxu0 %vm4207_vm2, %v15798_v44  ;;  %12537 = vrsqrt.f32 %v15795_v61  ;;  %11441 = vmatpush3.msk.msra.mxu0 %vm4238_vm1, %v15348_v1  ;;  %v1607_v9 = vmul.f32 %v12522_v7, %v15708_v59  ;;  %v162_v18 = vld [vmem:[%s21259_s0 + $0xdc] sm:$0x3]  ;;  %v15858_v13 = vpop.xlane.xlu1 %779 }
 0x183   :  { %vm1608_vm7 = vcmp.eq.f32.partialorder %v15708_v59, inf  ;;  %vm1610_vm8 = vcmp.eq.f32.partialorder %v15708_v59, 0.0  ;;  %v1611_v53 = vand.u32 2147483648, %v15708_v59  ;;  %v15828_v23 = vpop.eup %12527  ;;  %12539 = vrcp.f32 %v3138_v37 }
 0x184   :  { %v1584_v1 = vsel %vm1582_vm4, %v1583_v30, %v1581_v52  ;;  %v3444_v57 = vmul.f32 %v13388_v24, %v15549_v17  ;;  %v4874_v63 = vcombine.low %v14673_v42, %v14682_v2  ;;  %v15841_v7 = vpop.eup %12529  ;;  %v3162_v41 = vmax.f32 %v1598_v36, 1e-12 }
 0x185   :  { %vm1650_vm9 = vcmp.eq.f32.partialorder %v15754_v26, inf  ;;  %v4891_v37 = vcombine.low %v14717_v19, %v14722_v5  ;;  %v4892_v17 = vcombine.low %v14733_v12, %v14816_v20  ;;  %v1623_v42 = vsel %vm1622_vm5, %v15693_v43, %v1621_v16 }
 0x186   :  { %12541 = vrsqrt.f32 %v15823_v48  ;;  %v4875_v2 = vcombine.low %v14688_v6, %v3444_v57  ;;  %v418_v30 = vmul.f32 %v162_v18, %v162_v18  ;;  %v3160_v36 = vmax.f32 %v1584_v1, 1e-12 }
 0x187   :  { %v12532_v52 = vpop.eup %12531  ;;  %v1609_v24 = vsel %vm1608_vm7, %v15708_v59, %v1607_v9  ;;  %v4906_v19 = vrot.slane %v4892_v17, %v13863_v33  ;;  %v416_v5 = vmul.f32 %v160_v38, %v160_v38  ;;  %vm1652_vm10 = vcmp.eq.f32.partialorder %v15754_v26, 0.0  ;;  %v182_v59 = vld [vmem:[%s21259_s0 + $0x104] sm:$0x3] }
 0x188   :  { %v12534_v12 = vpop.eup %12533  ;;  %vm1636_vm11 = vcmp.eq.f32.partialorder %v15771_v8, inf  ;;  %v4882_v20 = vrot.slane %v4874_v63, %v13863_v33  ;;  %v4889_v6 = vrot.slane %v4875_v2, %v13863_v33  ;;  %v895_v16 = vsel %vm564_vm0, %v418_v30, 0.0  ;;  %v15892_v30 = vpop.xlane.xlu0 %773 }
 0x189   :  { %12543 = vrcp.f32 %v3162_v41  ;;  %v1626_v9 = vsel %vm1624_vm6, %v1625_v25, %v1623_v42  ;;  %vm1638_vm12 = vcmp.eq.f32.partialorder %v15771_v8, 0.0  ;;  %v4899_v18 = vrot.slane %v4891_v37, %v13863_v33  ;;  %896 = vadd.xlane.f32.xlu1 %v895_v16 }
 0x18a   :  { %v889_v1 = vsel %vm564_vm0, %v416_v5, 0.0  ;;  %v1612_v57 = vsel %vm1610_vm8, %v1611_v53, %v1609_v24  ;;  %v1649_v63 = vmul.f32 %v12532_v52, %v15754_v26  ;;  %v15873_v38 = vcombine.low %v4882_v20, %v4889_v6  ;;  %v15876_v41 = vpop.eup %12535  ;;  %v180_v53 = vld [vmem:[%s21259_s0 + $0x100] sm:$0x3]  ;;  %v13389_v52 = vld [vmem:[%s21259_s0 + $0x7e] sm:$0x3] }
 0x18b   :  { %890 = vadd.xlane.f32.xlu0 %v889_v1  ;;  %12545 = vrsqrt.f32 %v15858_v13  ;;  %v1635_v43 = vmul.f32 %v12534_v12, %v15771_v8  ;;  %v1639_v25 = vand.u32 2147483648, %v15771_v8  ;;  %v15880_v37 = vcombine.low %v4899_v18, %v4906_v19 }
 0x18c   :  { %21409 = vst [vmem:[#allocation49_spill] sm:$0xff] %v15873_v38  ;;  %12547 = vrcp.f32 %v3160_v36  ;;  %v12538_v17 = vpop.eup %12537  ;;  %v3166_v42 = vmax.f32 %v1626_v9, 1e-12  ;;  %vm1804_vm13 = vcmp.eq.f32.partialorder %v15795_v61, inf  ;;  %v1807_v2 = vand.u32 2147483648, %v15795_v61  ;;  %11420 = vmatmul.mubr.msk.f32.gmra.mrb[2].mxu0 %vm4207_vm2, %v15873_v38 }
 0x18d   :  { %21410 = vst [vmem:[#allocation50_spill] sm:$0xff] %v15880_v37  ;;  %v3508_v36 = vmul.f32 %v13389_v52, %v15613_v11  ;;  %v3164_v24 = vmax.f32 %v1612_v57, 1e-12  ;;  %vm1806_vm14 = vcmp.eq.f32.partialorder %v15795_v61, 0.0  ;;  %11422 = vmatprep.mubr.msk.f32.mxu0 %vm4207_vm2, %v15880_v37  ;;  %v4908_v19 = vcombine.low %v14827_v22, %v14833_v34  ;;  %v15907_v20 = vpop.eup %12539  ;;  %v13418_v37 = vld [vmem:[%s21259_s0 + $0xca] sm:$0x3] }
 0x18e   :  { %v4925_v5 = vcombine.low %v14911_v50, %v14919_v0  ;;  %v4926_v12 = vcombine.low %v14925_v56, %v14999_v40  ;;  %v1651_v11 = vsel %vm1650_vm9, %v15754_v26, %v1649_v63  ;;  %v438_v16 = vmul.f32 %v182_v59, %v182_v59  ;;  %v15919_v0 = vpop.xlane.xlu1 %791 }
 0x18f   :  { %v4909_v6 = vcombine.low %v14847_v45, %v3508_v36  ;;  %v436_v9 = vmul.f32 %v180_v53, %v180_v53  ;;  %v1637_v22 = vsel %vm1636_vm11, %v15771_v8, %v1635_v43  ;;  %v1803_v34 = vmul.f32 %v12538_v17, %v15795_v61 }
 0x190   :  { %12549 = vrsqrt.f32 %v15892_v30  ;;  %v4940_v50 = vrot.slane %v4926_v12, %v13863_v33  ;;  %v12542_v56 = vpop.eup %12541  ;;  %v4916_v40 = vrot.slane %v4908_v19, %v13863_v33  ;;  %v955_v45 = vsel %vm564_vm0, %v438_v16, 0.0  ;;  %v184_v19 = vld [vmem:[%s21259_s0 + $0x108] sm:$0x3] }
 0x191   :  { %v4923_v18 = vrot.slane %v4909_v6, %v13863_v33  ;;  %v949_v1 = vsel %vm564_vm0, %v436_v9, 0.0  ;;  %12551 = vrcp.f32 %v3166_v42  ;;  %v21411_v57 = vand.u32 2147483648, %v15754_v26  ;;  %956 = vadd.xlane.f32.xlu1 %v955_v45  ;;  %v15937_v42 = vpop.xlane.xlu0 %785  ;;  %v186_v26 = vld [vmem:[%s21259_s0 + $0x10c] sm:$0x3] }
 0x192   :  { %vm1790_vm15 = vcmp.eq.f32.partialorder %v15823_v48, inf  ;;  %v4933_v43 = vrot.slane %v4925_v5, %v13863_v33  ;;  %950 = vadd.xlane.f32.xlu0 %v949_v1  ;;  %v1640_v59 = vsel %vm1638_vm12, %v1639_v25, %v1637_v22  ;;  %vm1792_vm3 = vcmp.eq.f32.partialorder %v15823_v48, 0.0  ;;  %v21415_v22 = vld [vmem:[#allocation20_spill] sm:$0xff]  ;;  %v15971_v45 = vpop.xlane.xlu1 %857 }
 0x193   :  { %v1654_v63 = vsel %vm1652_vm10, %v21411_v57, %v1651_v11  ;;  %v1793_v53 = vand.u32 2147483648, %v15823_v48  ;;  %v15935_v17 = vcombine.low %v4916_v40, %v4923_v18  ;;  %v15942_v52 = vpop.eup %12543  ;;  %v1805_v36 = vsel %vm1804_vm13, %v15795_v61, %v1803_v34  ;;  %v13390_v11 = vld [vmem:[%s21259_s0 + $0xbe] sm:$0x3] }
 0x194   :  { %v1789_v8 = vmul.f32 %v12542_v56, %v15823_v48  ;;  %v15948_v25 = vcombine.low %v4933_v43, %v4940_v50  ;;  %12553 = vrsqrt.f32 %v15919_v0  ;;  %v3170_v12 = vmax.f32 %v1654_v63, 1e-12  ;;  %v21416_v50 = vld [vmem:[#allocation24_spill] sm:$0xff]  ;;  %v21417_v56 = vld [vmem:[#allocation22_spill] sm:$0xff] }
 0x195   :  { %21412 = vst [vmem:[#allocation51_spill] sm:$0xff] %v15935_v17  ;;  %v12546_v5 = vpop.eup %12545  ;;  %12555 = vrcp.f32 %v3164_v24  ;;  %11423 = vmatmul.mubr.msk.f32.gmra.mrb[4].mxu0 %vm4207_vm2, %v15935_v17  ;;  %v3572_v6 = vmul.f32 %v13390_v11, %v15576_v62  ;;  %v4942_v16 = vcombine.low %v15005_v4, %v15015_v28  ;;  %v21414_v24 = vld [vmem:[#allocation21_spill] sm:$0xff]  ;;  %v4960_v40 = vcombine.low %v21417_v56, %v21416_v50  ;;  %v21418_v28 = vld [vmem:[#allocation15_spill] sm:$0xff]  ;;  %v16007_v56 = vpop.xlane.xlu0 %797 }
 0x196   :  { %21413 = vst [vmem:[#allocation52_spill] sm:$0xff] %v15948_v25  ;;  %v15962_v9 = vpop.eup %12547  ;;  %11425 = vmatprep.mubr.msk.f32.mxu0 %vm4207_vm2, %v15948_v25  ;;  %12557 = vrsqrt.f32 %v15937_v42  ;;  %v4959_v34 = vcombine.low %v21415_v22, %v21414_v24  ;;  %v442_v18 = vmul.f32 %v186_v26, %v186_v26  ;;  %v3168_v62 = vmax.f32 %v1640_v59, 1e-12 }
 0x197   :  { %v1808_v4 = vsel %vm1806_vm14, %v1807_v2, %v1805_v36  ;;  %v4943_v1 = vcombine.low %v21418_v28, %v3572_v6  ;;  %v440_v57 = vmul.f32 %v184_v19, %v184_v19  ;;  %v1791_v63 = vsel %vm1790_vm15, %v15823_v48, %v1789_v8  ;;  %v190_v6 = vld [vmem:[%s21259_s0 + $0x114] sm:$0x3]  ;;  %v13391_v48 = vld [vmem:[%s21259_s0 + $0xfe] sm:$0x3] }
 0x198   :  { %v1831_v43 = vmul.f32 %v12546_v5, %v15858_v13  ;;  %v4950_v11 = vrot.slane %v4942_v16, %v13863_v33  ;;  %v4974_v24 = vrot.slane %v4960_v40, %v13863_v33  ;;  %v967_v59 = vsel %vm564_vm0, %v442_v18, 0.0  ;;  %v21421_v40 = vld [vmem:[#allocation26_spill] sm:$0xff]  ;;  %v21422_v18 = vld [vmem:[#allocation25_spill] sm:$0xff] }
 0x199   :  { %v4957_v26 = vrot.slane %v4943_v1, %v13863_v33  ;;  %v961_v61 = vsel %vm564_vm0, %v440_v57, 0.0  ;;  %12559 = vrsqrt.f32 %v15971_v45  ;;  %vm1832_vm4 = vcmp.eq.f32.partialorder %v15858_v13, inf  ;;  %968 = vadd.xlane.f32.xlu1 %v967_v59  ;;  %v21423_v1 = vld [vmem:[#allocation30_spill] sm:$0xff]  ;;  %v21424_v57 = vld [vmem:[#allocation29_spill] sm:$0xff] }
 0x19a   :  { %v12550_v2 = vpop.eup %12549  ;;  %12561 = vrcp.f32 %v3170_v12  ;;  %vm1834_vm5 = vcmp.eq.f32.partialorder %v15858_v13, 0.0  ;;  %v4967_v36 = vrot.slane %v4959_v34, %v13863_v33  ;;  %962 = vadd.xlane.f32.xlu0 %v961_v61  ;;  %v3192_v8 = vmax.f32 %v1808_v4, 1e-12 }
 0x19b   :  { %12563 = vrcp.f32 %v3168_v62  ;;  %v1835_v19 = vand.u32 2147483648, %v15858_v13  ;;  %v15990_v5 = vcombine.low %v4950_v11, %v4957_v26  ;;  %v15995_v16 = vpop.eup %12551  ;;  %v1794_v12 = vsel %vm1792_vm3, %v1793_v53, %v1791_v63  ;;  %v21426_v11 = vld [vmem:[#allocation31_spill] sm:$0xff] }
 0x19c   :  { %vm1818_vm6 = vcmp.eq.f32.partialorder %v15892_v30, inf  ;;  %vm1820_vm7 = vcmp.eq.f32.partialorder %v15892_v30, 0.0  ;;  %v16001_v22 = vcombine.low %v4967_v36, %v4974_v24  ;;  %v1833_v34 = vsel %vm1832_vm4, %v15858_v13, %v1831_v43  ;;  %v21425_v43 = vld [vmem:[#allocation33_spill] sm:$0xff] }
 0x19d   :  { %21419 = vst [vmem:[#allocation21_spill] sm:$0xff] %v15990_v5  ;;  %v1821_v50 = vand.u32 2147483648, %v15892_v30  ;;  %11426 = vmatmul.mubr.msk.f32.gmra.mrb[6].mxu0 %vm4207_vm2, %v15990_v5  ;;  %v3636_v53 = vmul.f32 %v13391_v48, %v15667_v46  ;;  %v4976_v62 = vcombine.low %v21422_v18, %v21421_v40  ;;  %v1817_v28 = vmul.f32 %v12550_v2, %v15892_v30  ;;  %v188_v46 = vld [vmem:[%s21259_s0 + $0x110] sm:$0x3]  ;;  %v21427_v2 = vld [vmem:[#allocation27_spill] sm:$0xff]  ;;  %v16029_v48 = vpop.xlane.xlu1 %869 }
 0x19e   :  { %21420 = vst [vmem:[#allocation20_spill] sm:$0xff] %v16001_v22  ;;  %v12554_v4 = vpop.eup %12553  ;;  %11428 = vmatprep.mubr.msk.f32.mxu0 %vm4207_vm2, %v16001_v22  ;;  %v4993_v63 = vcombine.low %v21424_v57, %v21423_v1  ;;  %v4994_v24 = vcombine.low %v21426_v11, %v21425_v43  ;;  %v446_v26 = vmul.f32 %v190_v6, %v190_v6  ;;  %12565 = vrcp.f32 %v3192_v8 }
 0x19f   :  { %v16025_v59 = vpop.eup %12555  ;;  %v3190_v61 = vmax.f32 %v1794_v12, 1e-12  ;;  %vm1860_vm8 = vcmp.eq.f32.partialorder %v15919_v0, inf  ;;  %v4977_v36 = vcombine.low %v21427_v2, %v3636_v53  ;;  %v1836_v18 = vsel %vm1834_vm5, %v1835_v19, %v1833_v34 }
 0x1a0   :  { %v12558_v40 = vpop.eup %12557  ;;  %12567 = vrsqrt.f32 %v16007_v56  ;;  %v5008_v6 = vrot.slane %v4994_v24, %v13863_v33  ;;  %v979_v1 = vsel %vm564_vm0, %v446_v26, 0.0  ;;  %v1859_v57 = vmul.f32 %v12554_v4, %v15919_v0  ;;  %v16050_v24 = vpop.xlane.xlu0 %863 }
 0x1a1   :  { %v4984_v8 = vrot.slane %v4976_v62, %v13863_v33  ;;  %v4991_v12 = vrot.slane %v4977_v36, %v13863_v33  ;;  %980 = vadd.xlane.f32.xlu1 %v979_v1  ;;  %v444_v53 = vmul.f32 %v188_v46, %v188_v46  ;;  %v1819_v43 = vsel %vm1818_vm6, %v15892_v30, %v1817_v28  ;;  %v194_v46 = vld [vmem:[%s21259_s0 + $0x11c] sm:$0x3]  ;;  %v13392_v30 = vld [vmem:[%s21259_s0 + $0x13e] sm:$0x3] }
 0x1a2   :  { %vm1862_vm9 = vcmp.eq.f32.partialorder %v15919_v0, 0.0  ;;  %v5001_v13 = vrot.slane %v4993_v63, %v13863_v33  ;;  %12569 = vrsqrt.f32 %v16029_v48  ;;  %v1863_v34 = vand.u32 2147483648, %v15919_v0  ;;  %v21431_v1 = vld [vmem:[#allocation34_spill] sm:$0xff] }
 0x1a3   :  { %v12560_v19 = vpop.eup %12559  ;;  %v1845_v4 = vmul.f32 %v12558_v40, %v15937_v42  ;;  %v16047_v62 = vcombine.low %v4984_v8, %v4991_v12  ;;  %v973_v11 = vsel %vm564_vm0, %v444_v53, 0.0  ;;  %v3196_v28 = vmax.f32 %v1836_v18, 1e-12  ;;  %v192_v8 = vld [vmem:[%s21259_s0 + $0x118] sm:$0x3]  ;;  %v21432_v53 = vld [vmem:[#allocation38_spill] sm:$0xff] }
 0x1a4   :  { %v16052_v26 = vpop.eup %12561  ;;  %vm1846_vm10 = vcmp.eq.f32.partialorder %v15937_v42, inf  ;;  %vm1848_vm11 = vcmp.eq.f32.partialorder %v15937_v42, 0.0  ;;  %v16056_v63 = vcombine.low %v5001_v13, %v5008_v6  ;;  %974 = vadd.xlane.f32.xlu0 %v973_v11  ;;  %12571 = vrcp.f32 %v3190_v61  ;;  %v21430_v61 = vld [vmem:[#allocation35_spill] sm:$0xff]  ;;  %v21435_v11 = vld [vmem:[#allocation40_spill] sm:$0xff] }
 0x1a5   :  { %21428 = vst [vmem:[#allocation24_spill] sm:$0xff] %v16047_v62  ;;  %v16061_v2 = vpop.eup %12563  ;;  %v1822_v36 = vsel %vm1820_vm7, %v1821_v50, %v1819_v43  ;;  %v1861_v40 = vsel %vm1860_vm8, %v15919_v0, %v1859_v57  ;;  %v1849_v18 = vand.u32 2147483648, %v15937_v42  ;;  %11429 = vmatmul.mubr.msk.f32.gmra.mrb[8].mxu0 %vm4207_vm2, %v16047_v62  ;;  %v2013_v6 = vmul.f32 %v12560_v19, %v15971_v45  ;;  %v21433_v43 = vld [vmem:[#allocation37_spill] sm:$0xff]  ;;  %v21434_v19 = vld [vmem:[#allocation42_spill] sm:$0xff] }
 0x1a6   :  { %21429 = vst [vmem:[#allocation22_spill] sm:$0xff] %v16056_v63  ;;  %11431 = vmatprep.mubr.msk.f32.mxu0 %vm4207_vm2, %v16056_v63  ;;  %12573 = vrsqrt.f32 %v16050_v24  ;;  %v3700_v50 = vmul.f32 %v13392_v30, %v15639_v32  ;;  %v5010_v57 = vcombine.low %v21431_v1, %v21430_v61  ;;  %v1847_v12 = vsel %vm1846_vm10, %v15937_v42, %v1845_v4  ;;  %v21436_v30 = vld [vmem:[#allocation36_spill] sm:$0xff] }
 0x1a7   :  { %v5027_v13 = vcombine.low %v21433_v43, %v21432_v53  ;;  %v5028_v63 = vcombine.low %v21435_v11, %v21434_v19  ;;  %v450_v62 = vmul.f32 %v194_v46, %v194_v46  ;;  %12575 = vrcp.f32 %v3196_v28  ;;  %v21439_v19 = vld [vmem:[#allocation44_spill] sm:$0xff]  ;;  %v21440_v11 = vld [vmem:[#allocation43_spill] sm:$0xff] }
 0x1a8   :  { %v3194_v32 = vmax.f32 %v1822_v36, 1e-12  ;;  %vm2014_vm12 = vcmp.eq.f32.partialorder %v15971_v45, inf  ;;  %v5011_v61 = vcombine.low %v21436_v30, %v3700_v50  ;;  %v16093_v1 = vpop.eup %12565  ;;  %v1864_v22 = vsel %vm1862_vm9, %v1863_v34, %v1861_v40 }
 0x1a9   :  { %v5042_v4 = vrot.slane %v5028_v63, %v13863_v33  ;;  %v991_v5 = vsel %vm564_vm0, %v450_v62, 0.0  ;;  %v448_v53 = vmul.f32 %v192_v8, %v192_v8  ;;  %v1850_v46 = vsel %vm1848_vm11, %v1849_v18, %v1847_v12  ;;  %v16108_v63 = vpop.xlane.xlu1 %881  ;;  %v13393_v12 = vld [vmem:[%s21259_s0 + $0x17e] sm:$0x3] }
 0x1aa   :  { %v12568_v43 = vpop.eup %12567  ;;  %v2015_v28 = vsel %vm2014_vm12, %v15971_v45, %v2013_v6  ;;  %v5018_v36 = vrot.slane %v5010_v57, %v13863_v33  ;;  %v5025_v50 = vrot.slane %v5011_v61, %v13863_v33  ;;  %992 = vadd.xlane.f32.xlu1 %v991_v5  ;;  %vm2016_vm13 = vcmp.eq.f32.partialorder %v15971_v45, 0.0  ;;  %v214_v5 = vld [vmem:[%s21259_s0 + $0x144] sm:$0x3] }
 0x1ab   :  { %v2017_v0 = vand.u32 2147483648, %v15971_v45  ;;  %v5035_v34 = vrot.slane %v5027_v13, %v13863_v33  ;;  %v985_v62 = vsel %vm564_vm0, %v448_v53, 0.0  ;;  %v3200_v42 = vmax.f32 %v1864_v22, 1e-12 }
 0x1ac   :  { %v12570_v40 = vpop.eup %12569  ;;  %vm1874_vm14 = vcmp.eq.f32.partialorder %v16007_v56, inf  ;;  %v1877_v18 = vand.u32 2147483648, %v16007_v56  ;;  %v16112_v6 = vcombine.low %v5018_v36, %v5025_v50  ;;  %986 = vadd.xlane.f32.xlu0 %v985_v62  ;;  %12577 = vrcp.f32 %v3194_v32  ;;  %v21441_v36 = vld [vmem:[#allocation45_spill] sm:$0xff] }
 0x1ad   :  { %v3198_v45 = vmax.f32 %v1850_v46, 1e-12  ;;  %v2018_v57 = vsel %vm2016_vm13, %v2017_v0, %v2015_v28  ;;  %vm1876_vm15 = vcmp.eq.f32.partialorder %v16007_v56, 0.0  ;;  %v16118_v8 = vcombine.low %v5035_v34, %v5042_v4  ;;  %v16135_v4 = vpop.xlane.xlu0 %875 }
 0x1ae   :  { %21437 = vst [vmem:[#allocation15_spill] sm:$0xff] %v16112_v6  ;;  %v1873_v22 = vmul.f32 %v12568_v43, %v16007_v56  ;;  %11432 = vmatmul.mubr.msk.f32.gmra.mrb[10].mxu0 %vm4207_vm2, %v16112_v6  ;;  %12579 = vrsqrt.f32 %v16108_v63  ;;  %v3764_v13 = vmul.f32 %v13393_v12, %v15705_v47  ;;  %v5044_v32 = vcombine.low %v21440_v11, %v21439_v19  ;;  %v16130_v30 = vpop.eup %12571  ;;  %v212_v47 = vld [vmem:[%s21259_s0 + $0x140] sm:$0x3] }
 0x1af   :  { %21438 = vst [vmem:[#allocation26_spill] sm:$0xff] %v16118_v8  ;;  %v2041_v61 = vmul.f32 %v12570_v40, %v16029_v48  ;;  %11434 = vmatprep.mubr.msk.f32.mxu0 %vm4207_vm2, %v16118_v8  ;;  %v5061_v53 = vcombine.low %v15608_v35, %v15623_v31  ;;  %v5062_v43 = vcombine.low %v15629_v21, %v15718_v54  ;;  %12581 = vrcp.f32 %v3200_v42  ;;  %v16149_v21 = vpop.xlane.xlu1 %893 }
 0x1b0   :  { %v470_v46 = vmul.f32 %v214_v5, %v214_v5  ;;  %v12574_v28 = vpop.eup %12573  ;;  %vm2042_vm3 = vcmp.eq.f32.partialorder %v16029_v48, inf  ;;  %vm2044_vm4 = vcmp.eq.f32.partialorder %v16029_v48, 0.0  ;;  %v5045_v50 = vcombine.low %v21441_v36, %v3764_v13 }
 0x1b1   :  { %12583 = vrcp.f32 %v3198_v45  ;;  %v3222_v0 = vmax.f32 %v2018_v57, 1e-12  ;;  %v5076_v31 = vrot.slane %v5062_v43, %v13863_v33  ;;  %v16151_v54 = vpop.eup %12575  ;;  %v5052_v34 = vrot.slane %v5044_v32, %v13863_v33  ;;  %v16171_v11 = vpop.xlane.xlu0 %887  ;;  %v218_v32 = vld [vmem:[%s21259_s0 + $0x14c] sm:$0x3]  ;;  %v13394_v43 = vld [vmem:[%s21259_s0 + $0x1be] sm:$0x3] }
 0x1b2   :  { %v1051_v35 = vsel %vm564_vm0, %v470_v46, 0.0  ;;  %12585 = vrsqrt.f32 %v16135_v4  ;;  %v5059_v62 = vrot.slane %v5045_v50, %v13863_v33  ;;  %v468_v40 = vmul.f32 %v212_v47, %v212_v47 }
 0x1b3   :  { %1052 = vadd.xlane.f32.xlu1 %v1051_v35  ;;  %v1875_v42 = vsel %vm1874_vm14, %v16007_v56, %v1873_v22  ;;  %v2043_v5 = vsel %vm2042_vm3, %v16029_v48, %v2041_v61  ;;  %v2027_v45 = vmul.f32 %v12574_v28, %v16050_v24  ;;  %v5069_v57 = vrot.slane %v5061_v53, %v13863_v33 }
 0x1b4   :  { %v2045_v12 = vand.u32 2147483648, %v16029_v48  ;;  %v16163_v13 = vcombine.low %v5052_v34, %v5059_v62  ;;  %v1045_v19 = vsel %vm564_vm0, %v468_v40, 0.0  ;;  %12587 = vrsqrt.f32 %v16149_v21  ;;  %v13395_v48 = vld [vmem:[%s21259_s0 + $0x2] sm:$0x3] }
 0x1b5   :  { %12589 = vrcp.f32 %v3222_v0  ;;  %vm2028_vm5 = vcmp.eq.f32.partialorder %v16050_v24, inf  ;;  %vm2030_vm6 = vcmp.eq.f32.partialorder %v16050_v24, 0.0  ;;  %v16169_v22 = vcombine.low %v5069_v57, %v5076_v31  ;;  %1046 = vadd.xlane.f32.xlu0 %v1045_v19 }
 0x1b6   :  { %21442 = vst [vmem:[#allocation25_spill] sm:$0xff] %v16163_v13  ;;  %v1878_v61 = vsel %vm1876_vm15, %v1877_v18, %v1875_v42  ;;  %v2046_v53 = vsel %vm2044_vm4, %v2045_v12, %v2043_v5  ;;  %11435 = vmatmul.mubr.msk.f32.gmra.mrb[12].mxu0 %vm4207_vm2, %v16163_v13  ;;  %v3828_v46 = vmul.f32 %v13394_v43, %v15680_v29  ;;  %v16188_v28 = vpop.eup %12577  ;;  %v13396_v29 = vld [vmem:[%s21259_s0 + $0x6] sm:$0x3]  ;;  %v2031_v0 = vand.u32 2147483648, %v16050_v24 }
 0x1b7   :  { %21443 = vst [vmem:[#allocation30_spill] sm:$0xff] %v16169_v22  ;;  %v5078_v47 = vcombine.low %v15724_v10, %v15730_v14  ;;  %v2029_v56 = vsel %vm2028_vm5, %v16050_v24, %v2027_v45  ;;  %11437 = vmatprep.mubr.msk.f32.mxu0 %vm4207_vm2, %v16169_v22  ;;  %v16197_v18 = vmul.f32 %v13395_v48, %v15777_v3  ;;  %v13397_v14 = vld [vmem:[%s21259_s0 + $0xa] sm:$0x3]  ;;  %12591 = vrsqrt.f32 %v16171_v11 }
 0x1b8   :  { %v16203_v10 = vmul.f32 %v13396_v29, %v15765_v27  ;;  %v16209_v36 = vmul.f32 %v13397_v14, %v15808_v58  ;;  %v12580_v50 = vpop.eup %12579  ;;  %v5079_v3 = vcombine.low %v15736_v49, %v3828_v46  ;;  %v474_v31 = vmul.f32 %v218_v32, %v218_v32  ;;  %v216_v27 = vld [vmem:[%s21259_s0 + $0x148] sm:$0x3]  ;;  %v16240_v46 = vpop.xlane.xlu1 %959 }
 0x1b9   :  { %v3202_v35 = vmax.f32 %v1878_v61, 1e-12  ;;  %v3226_v34 = vmax.f32 %v2046_v53, 1e-12  ;;  %v5343_v62 = vcombine.low %v21365_v55, %v16197_v18  ;;  %v16221_v40 = vpop.eup %12581  ;;  %v16225_v42 = vsel %vm2030_vm6, %v2031_v0, %v2029_v56 }
 0x1ba   :  { %v5344_v58 = vcombine.low %v16203_v10, %v16209_v36  ;;  %v5086_v49 = vrot.slane %v5078_v47, %v13863_v33  ;;  %v5093_v5 = vrot.slane %v5079_v3, %v13863_v33  ;;  %v1063_v45 = vsel %vm564_vm0, %v474_v31, 0.0  ;;  %v16259_v31 = vpop.xlane.xlu0 %953 }
 0x1bb   :  { %v16230_v57 = vpop.eup %12583  ;;  %v2069_v12 = vmul.f32 %v12580_v50, %v16108_v63  ;;  %v5351_v19 = vrot.slane %v5343_v62, %v13863_v33  ;;  %1064 = vadd.xlane.f32.xlu1 %v1063_v45  ;;  %v472_v61 = vmul.f32 %v216_v27, %v216_v27  ;;  %vm2070_vm7 = vcmp.eq.f32.partialorder %v16108_v63, inf  ;;  %v222_v27 = vld [vmem:[%s21259_s0 + $0x154] sm:$0x3]  ;;  %v13399_v62 = vld [vmem:[%s21259_s0 + $0x12] sm:$0x3] }
 0x1bc   :  { %v5358_v32 = vrot.slane %v5344_v58, %v13863_v33  ;;  %v12586_v53 = vpop.eup %12585  ;;  %vm2072_vm8 = vcmp.eq.f32.partialorder %v16108_v63, 0.0  ;;  %v2073_v24 = vand.u32 2147483648, %v16108_v63  ;;  %v16238_v43 = vcombine.low %v5086_v49, %v5093_v5  ;;  %v13401_v5 = vld [vmem:[%s21259_s0 + $0x1a] sm:$0x3]  ;;  %v220_v45 = vld [vmem:[%s21259_s0 + $0x150] sm:$0x3] }
 0x1bd   :  { %12593 = vrcp.f32 %v3202_v35  ;;  %vm2056_vm9 = vcmp.eq.f32.partialorder %v16135_v4, inf  ;;  %v1057_v56 = vsel %vm564_vm0, %v472_v61, 0.0  ;;  %v3224_v29 = vmax.f32 %v16225_v42, 1e-12  ;;  %v13398_v35 = vld [vmem:[%s21259_s0 + $0xe] sm:$0x3] }
 0x1be   :  { %21444 = vst [vmem:[#allocation29_spill] sm:$0xff] %v16238_v43  ;;  %v5359_v47 = vcombine.low %v5351_v19, %v5358_v32  ;;  %v12588_v48 = vpop.eup %12587  ;;  %12595 = vrcp.f32 %v3226_v34  ;;  %vm2058_vm10 = vcmp.eq.f32.partialorder %v16135_v4, 0.0  ;;  %v2059_v14 = vand.u32 2147483648, %v16135_v4  ;;  %11438 = vmatmul.mubr.msk.f32.gmra.mrb[14].mxu0 %vm4207_vm2, %v16238_v43  ;;  %1058 = vadd.xlane.f32.xlu0 %v1057_v56  ;;  %v13400_v42 = vld [vmem:[%s21259_s0 + $0x16] sm:$0x3] }
 0x1bf   :  { %vm2098_vm11 = vcmp.eq.f32.partialorder %v16149_v21, inf  ;;  %v16250_v50 = vpop.eup %12589  ;;  %v2071_v0 = vsel %vm2070_vm7, %v16108_v63, %v2069_v12  ;;  %v2055_v3 = vmul.f32 %v12586_v53, %v16135_v4  ;;  %vm2100_vm12 = vcmp.eq.f32.partialorder %v16149_v21, 0.0  ;;  %v13404_v56 = vld [vmem:[%s21259_s0 + $0x4a] sm:$0x3] }
 0x1c0   :  { %11442 = vmatprep.mubr.msk.f32.mxu0 %vm4207_vm2, %v5359_v47  ;;  %12597 = vrsqrt.f32 %v16240_v46  ;;  %v16268_v34 = vmul.f32 %v13398_v35, %v15801_v51  ;;  %v16274_v58 = vmul.f32 %v13399_v62, %v15841_v7  ;;  %v16280_v49 = vmul.f32 %v13400_v42, %v15828_v23  ;;  %v13402_v23 = vld [vmem:[%s21259_s0 + $0x42] sm:$0x3]  ;;  %v16315_v35 = vpop.xlane.xlu1 %971 }
 0x1c1   :  { %v16286_v51 = vmul.f32 %v13401_v5, %v15907_v20  ;;  %v2097_v7 = vmul.f32 %v12588_v48, %v16149_v21  ;;  %v2101_v12 = vand.u32 2147483648, %v16149_v21  ;;  %v16297_v19 = vmul.f32 %v13402_v23, %v15876_v41  ;;  %v13403_v20 = vld [vmem:[%s21259_s0 + $0x46] sm:$0x3]  ;;  %v12592_v61 = vpop.eup %12591 }
 0x1c2   :  { %v16303_v32 = vmul.f32 %v13403_v20, %v15962_v9  ;;  %v5360_v53 = vcombine.low %v16268_v34, %v16274_v58  ;;  %v16313_v41 = vmul.f32 %v13404_v56, %v15942_v52  ;;  %v478_v48 = vmul.f32 %v222_v27, %v222_v27 }
 0x1c3   :  { %v5361_v47 = vcombine.low %v16280_v49, %v16286_v51  ;;  %v2074_v9 = vsel %vm2072_vm8, %v2073_v24, %v2071_v0  ;;  %v2057_v62 = vsel %vm2056_vm9, %v16135_v4, %v2055_v3  ;;  %v5377_v42 = vcombine.low %v21365_v55, %v16297_v19 }
 0x1c4   :  { %v476_v5 = vmul.f32 %v220_v45, %v220_v45  ;;  %12599 = vrsqrt.f32 %v16259_v31  ;;  %v5368_v23 = vrot.slane %v5360_v53, %v13863_v33  ;;  %v5378_v27 = vcombine.low %v16303_v32, %v16313_v41  ;;  %v16335_v45 = vpop.xlane.xlu0 %965 }
 0x1c5   :  { %v5375_v52 = vrot.slane %v5361_v47, %v13863_v33  ;;  %v2099_v63 = vsel %vm2098_vm11, %v16149_v21, %v2097_v7  ;;  %v2083_v24 = vmul.f32 %v12592_v61, %v16171_v11  ;;  %v1075_v0 = vsel %vm564_vm0, %v478_v48, 0.0  ;;  %v226_v48 = vld [vmem:[%s21259_s0 + $0x15c] sm:$0x3]  ;;  %v13406_v21 = vld [vmem:[%s21259_s0 + $0x52] sm:$0x3] }
 0x1c6   :  { %v1069_v3 = vsel %vm564_vm0, %v476_v5, 0.0  ;;  %v5385_v53 = vrot.slane %v5377_v42, %v13863_v33  ;;  %v5392_v47 = vrot.slane %v5378_v27, %v13863_v33  ;;  %1076 = vadd.xlane.f32.xlu1 %v1075_v0  ;;  %12601 = vrsqrt.f32 %v16315_v35  ;;  %v224_v42 = vld [vmem:[%s21259_s0 + $0x158] sm:$0x3]  ;;  %v13405_v27 = vld [vmem:[%s21259_s0 + $0x4e] sm:$0x3] }
 0x1c7   :  { %v5376_v20 = vcombine.low %v5368_v23, %v5375_v52  ;;  %1070 = vadd.xlane.f32.xlu0 %v1069_v3  ;;  %v16340_v56 = vpop.eup %12593  ;;  %12603 = vrcp.f32 %v3224_v29  ;;  %v2060_v7 = vsel %vm2058_vm10, %v2059_v14, %v2057_v62  ;;  %vm2084_vm13 = vcmp.eq.f32.partialorder %v16171_v11, inf  ;;  %v16358_v14 = vpop.xlane.xlu1 %983 }
 0x1c8   :  { %v2087_v61 = vand.u32 2147483648, %v16171_v11  ;;  %v16352_v5 = vpop.eup %12595  ;;  %v3230_v23 = vmax.f32 %v2074_v9, 1e-12  ;;  %v2102_v29 = vsel %vm2100_vm12, %v2101_v12, %v2099_v63  ;;  %v5393_v4 = vcombine.low %v5385_v53, %v5392_v47  ;;  %v13407_v9 = vld [vmem:[%s21259_s0 + $0x56] sm:$0x3] }
 0x1c9   :  { %11443 = vmatmul.mubr.msk.f32.vlgmr.msra.gmra.mrb[0].mxu0 %vm4207_vm2, %v5376_v20  ;;  %12605 = vrsqrt.f32 %v16335_v45  ;;  %v2085_v52 = vsel %vm2084_vm13, %v16171_v11, %v2083_v24  ;;  %v16365_v0 = vmul.f32 %v13405_v27, %v16025_v59  ;;  %v16371_v12 = vmul.f32 %v13406_v21, %v15995_v16  ;;  %v13408_v59 = vld [vmem:[%s21259_s0 + $0x5a] sm:$0x3] }
 0x1ca   :  { %v12598_v62 = vpop.eup %12597  ;;  %v16377_v63 = vmul.f32 %v13407_v9, %v16061_v2  ;;  %v3228_v24 = vmax.f32 %v2060_v7, 1e-12  ;;  %11445 = vmatprep.mubr.msk.f32.mxu0 %vm4207_vm2, %v5393_v4  ;;  %v16384_v3 = vmul.f32 %v13408_v59, %v16052_v26  ;;  %v482_v20 = vmul.f32 %v226_v48, %v226_v48  ;;  %v16396_v48 = vpop.xlane.xlu0 %977 }
 0x1cb   :  { %v480_v16 = vmul.f32 %v224_v42, %v224_v42  ;;  %vm2086_vm14 = vcmp.eq.f32.partialorder %v16171_v11, 0.0  ;;  %v5394_v53 = vcombine.low %v16365_v0, %v16371_v12  ;;  %12607 = vrsqrt.f32 %v16358_v14  ;;  %v246_v42 = vld [vmem:[%s21259_s0 + $0x184] sm:$0x3]  ;;  %v16410_v21 = vpop.xlane.xlu1 %1049 }
 0x1cc   :  { %v3234_v2 = vmax.f32 %v2102_v29, 1e-12  ;;  %v2088_v47 = vsel %vm2086_vm14, %v2087_v61, %v2085_v52  ;;  %v5395_v7 = vcombine.low %v16377_v63, %v16384_v3  ;;  %v1087_v4 = vsel %vm564_vm0, %v482_v20, 0.0  ;;  %v244_v61 = vld [vmem:[%s21259_s0 + $0x180] sm:$0x3] }
 0x1cd   :  { %12609 = vrcp.f32 %v3230_v23  ;;  %v2251_v26 = vmul.f32 %v12598_v62, %v16240_v46  ;;  %vm2252_vm15 = vcmp.eq.f32.partialorder %v16240_v46, inf  ;;  %1088 = vadd.xlane.f32.xlu1 %v1087_v4  ;;  %v1081_v11 = vsel %vm564_vm0, %v480_v16, 0.0 }
 0x1ce   :  { %v12600_v29 = vpop.eup %12599  ;;  %12611 = vrcp.f32 %v3228_v24  ;;  %vm2254_vm3 = vcmp.eq.f32.partialorder %v16240_v46, 0.0  ;;  %v5402_v23 = vrot.slane %v5394_v53, %v13863_v33  ;;  %v5409_v62 = vrot.slane %v5395_v7, %v13863_v33  ;;  %1082 = vadd.xlane.f32.xlu0 %v1081_v11 }
 0x1cf   :  { %v3232_v52 = vmax.f32 %v2088_v47, 1e-12  ;;  %v2255_v27 = vand.u32 2147483648, %v16240_v46  ;;  %vm2238_vm4 = vcmp.eq.f32.partialorder %v16259_v31, inf  ;;  %vm2240_vm5 = vcmp.eq.f32.partialorder %v16259_v31, 0.0 }
 0x1d0   :  { %v12602_v9 = vpop.eup %12601  ;;  %12613 = vrcp.f32 %v3234_v2  ;;  %v5410_v59 = vcombine.low %v5402_v23, %v5409_v62  ;;  %v502_v24 = vmul.f32 %v246_v42, %v246_v42  ;;  %v500_v20 = vmul.f32 %v244_v61, %v244_v61  ;;  %v16428_v61 = vpop.xlane.xlu0 %989  ;;  %v13409_v62 = vld [vmem:[%s21259_s0 + $0x82] sm:$0x3] }
 0x1d1   :  { %v16412_v16 = vpop.eup %12603  ;;  %v2253_v53 = vsel %vm2252_vm15, %v16240_v46, %v2251_v26  ;;  %v2237_v47 = vmul.f32 %v12600_v29, %v16259_v31  ;;  %v2241_v7 = vand.u32 2147483648, %v16259_v31  ;;  %12615 = vrsqrt.f32 %v16396_v48  ;;  %v250_v29 = vld [vmem:[%s21259_s0 + $0x18c] sm:$0x3]  ;;  %v16462_v46 = vpop.xlane.xlu1 %1061 }
 0x1d2   :  { %v2279_v11 = vmul.f32 %v12602_v9, %v16315_v35  ;;  %11446 = vmatmul.mubr.msk.f32.gmra.mrb[2].mxu0 %vm4207_vm2, %v5410_v59  ;;  %v1147_v2 = vsel %vm564_vm0, %v502_v24, 0.0  ;;  %v1141_v42 = vsel %vm564_vm0, %v500_v20, 0.0  ;;  %12617 = vrsqrt.f32 %v16410_v21  ;;  %v248_v9 = vld [vmem:[%s21259_s0 + $0x188] sm:$0x3] }
 0x1d3   :  { %v12606_v4 = vpop.eup %12605  ;;  %12619 = vrcp.f32 %v3232_v52  ;;  %vm2280_vm6 = vcmp.eq.f32.partialorder %v16315_v35, inf  ;;  %vm2282_vm7 = vcmp.eq.f32.partialorder %v16315_v35, 0.0  ;;  %1148 = vadd.xlane.f32.xlu1 %v1147_v2  ;;  %1142 = vadd.xlane.f32.xlu0 %v1141_v42  ;;  %v2283_v23 = vand.u32 2147483648, %v16315_v35 }
 0x1d4   :  { %v2265_v26 = vmul.f32 %v12606_v4, %v16335_v45  ;;  %vm2266_vm8 = vcmp.eq.f32.partialorder %v16335_v45, inf  ;;  %vm2268_vm9 = vcmp.eq.f32.partialorder %v16335_v45, 0.0  ;;  %v16440_v52 = vmul.f32 %v13409_v62, %v16130_v30  ;;  %v13410_v4 = vld [vmem:[%s21259_s0 + $0x86] sm:$0x3]  ;;  %v13411_v30 = vld [vmem:[%s21259_s0 + $0x8a] sm:$0x3]  ;;  %v16489_v25 = vpop.xlane.xlu0 %1055 }
 0x1d5   :  { %v12608_v59 = vpop.eup %12607  ;;  %v2256_v24 = vsel %vm2254_vm3, %v2255_v27, %v2253_v53  ;;  %v2239_v20 = vsel %vm2238_vm4, %v16259_v31, %v2237_v47  ;;  %v16454_v2 = vmul.f32 %v13410_v4, %v16093_v1  ;;  %v16460_v42 = vmul.f32 %v13411_v30, %v16188_v28  ;;  %v254_v31 = vld [vmem:[%s21259_s0 + $0x194] sm:$0x3] }
 0x1d6   :  { %v2281_v27 = vsel %vm2280_vm6, %v16315_v35, %v2279_v11  ;;  %12621 = vrsqrt.f32 %v16428_v61  ;;  %v5411_v53 = vcombine.low %v21365_v55, %v16440_v52  ;;  %v506_v1 = vmul.f32 %v250_v29, %v250_v29 }
 0x1d7   :  { %v16470_v47 = vpop.eup %12609  ;;  %v2267_v62 = vsel %vm2266_vm8, %v16335_v45, %v2265_v26  ;;  %v2269_v28 = vand.u32 2147483648, %v16335_v45  ;;  %v5412_v4 = vcombine.low %v16454_v2, %v16460_v42  ;;  %v504_v30 = vmul.f32 %v248_v9, %v248_v9 }
 0x1d8   :  { %v16478_v43 = vpop.eup %12611  ;;  %v3256_v11 = vmax.f32 %v2256_v24, 1e-12  ;;  %v2242_v22 = vsel %vm2240_vm5, %v2241_v7, %v2239_v20  ;;  %v2307_v29 = vmul.f32 %v12608_v59, %v16358_v14  ;;  %v1159_v13 = vsel %vm564_vm0, %v506_v1, 0.0 }
 0x1d9   :  { %v2284_v8 = vsel %vm2282_vm7, %v2283_v23, %v2281_v27  ;;  %v5419_v26 = vrot.slane %v5411_v53, %v13863_v33  ;;  %v5426_v6 = vrot.slane %v5412_v4, %v13863_v33  ;;  %1160 = vadd.xlane.f32.xlu1 %v1159_v13  ;;  %v1153_v9 = vsel %vm564_vm0, %v504_v30, 0.0  ;;  %v252_v13 = vld [vmem:[%s21259_s0 + $0x190] sm:$0x3]  ;;  %v16505_v27 = vpop.xlane.xlu1 %1073 }
 0x1da   :  { %v16494_v7 = vpop.eup %12613  ;;  %v2270_v59 = vsel %vm2268_vm9, %v2269_v28, %v2267_v62  ;;  %vm2308_vm10 = vcmp.eq.f32.partialorder %v16358_v14, inf  ;;  %1154 = vadd.xlane.f32.xlu0 %v1153_v9  ;;  %12623 = vrsqrt.f32 %v16462_v46  ;;  %v3254_v23 = vmax.f32 %v2242_v22, 1e-12 }
 0x1db   :  { %v12616_v35 = vpop.eup %12615  ;;  %vm2310_vm11 = vcmp.eq.f32.partialorder %v16358_v14, 0.0  ;;  %v2311_v24 = vand.u32 2147483648, %v16358_v14  ;;  %v5427_v20 = vcombine.low %v5419_v26, %v5426_v6  ;;  %12625 = vrcp.f32 %v3256_v11  ;;  %v16521_v26 = vpop.xlane.xlu0 %1067 }
 0x1dc   :  { %v12618_v45 = vpop.eup %12617  ;;  %v3260_v53 = vmax.f32 %v2284_v8, 1e-12  ;;  %v2309_v1 = vsel %vm2308_vm10, %v16358_v14, %v2307_v29  ;;  %v510_v62 = vmul.f32 %v254_v31, %v254_v31  ;;  %v3258_v4 = vmax.f32 %v2270_v59, 1e-12  ;;  %v258_v14 = vld [vmem:[%s21259_s0 + $0x19c] sm:$0x3] }
 0x1dd   :  { %v16508_v28 = vpop.eup %12619  ;;  %vm2294_vm12 = vcmp.eq.f32.partialorder %v16396_v48, inf  ;;  %11448 = vmatprep.mubr.msk.f32.mxu0 %vm4207_vm2, %v5427_v20  ;;  %12627 = vrsqrt.f32 %v16489_v25  ;;  %v508_v22 = vmul.f32 %v252_v13, %v252_v13  ;;  %v2293_v6 = vmul.f32 %v12616_v35, %v16396_v48  ;;  %v256_v13 = vld [vmem:[%s21259_s0 + $0x198] sm:$0x3] }
 0x1de   :  { %vm2296_vm13 = vcmp.eq.f32.partialorder %v16396_v48, 0.0  ;;  %v1171_v30 = vsel %vm564_vm0, %v510_v62, 0.0  ;;  %12629 = vrsqrt.f32 %v16505_v27  ;;  %v2312_v8 = vsel %vm2310_vm11, %v2311_v24, %v2309_v1  ;;  %v13413_v62 = vld [vmem:[%s21259_s0 + $0x92] sm:$0x3] }
 0x1df   :  { %12631 = vrcp.f32 %v3254_v23  ;;  %v2461_v11 = vmul.f32 %v12618_v45, %v16410_v21  ;;  %1172 = vadd.xlane.f32.xlu1 %v1171_v30  ;;  %v1165_v29 = vsel %vm564_vm0, %v508_v22, 0.0  ;;  %v2297_v31 = vand.u32 2147483648, %v16396_v48 }
 0x1e0   :  { %v12622_v9 = vpop.eup %12621  ;;  %12633 = vrcp.f32 %v3260_v53  ;;  %vm2462_vm14 = vcmp.eq.f32.partialorder %v16410_v21, inf  ;;  %vm2464_vm15 = vcmp.eq.f32.partialorder %v16410_v21, 0.0  ;;  %1166 = vadd.xlane.f32.xlu0 %v1165_v29  ;;  %v2465_v59 = vand.u32 2147483648, %v16410_v21  ;;  %v13412_v53 = vld [vmem:[%s21259_s0 + $0x8e] sm:$0x3] }
 0x1e1   :  { %12635 = vrcp.f32 %v3258_v4  ;;  %vm2322_vm3 = vcmp.eq.f32.partialorder %v16428_v61, inf  ;;  %vm2324_vm4 = vcmp.eq.f32.partialorder %v16428_v61, 0.0  ;;  %v3264_v35 = vmax.f32 %v2312_v8, 1e-12 }
 0x1e2   :  { %v2295_v23 = vsel %vm2294_vm12, %v16396_v48, %v2293_v6  ;;  %v2325_v24 = vand.u32 2147483648, %v16428_v61  ;;  %12637 = vrsqrt.f32 %v16521_v26  ;;  %v2463_v20 = vsel %vm2462_vm14, %v16410_v21, %v2461_v11  ;;  %v13414_v6 = vld [vmem:[%s21259_s0 + $0x96] sm:$0x3]  ;;  %v16588_v21 = vpop.xlane.xlu0 %1079 }
 0x1e3   :  { %v2321_v45 = vmul.f32 %v12622_v9, %v16428_v61  ;;  %v16546_v1 = vmul.f32 %v13412_v53, %v16151_v54  ;;  %v16552_v4 = vmul.f32 %v13413_v62, %v16230_v57  ;;  %v16558_v30 = vmul.f32 %v13414_v6, %v16221_v40  ;;  %v13415_v54 = vld [vmem:[%s21259_s0 + $0x9a] sm:$0x3]  ;;  %v16566_v9 = vpop.xlane.xlu1 %1085 }
 0x1e4   :  { %v12624_v22 = vpop.eup %12623  ;;  %v16564_v8 = vmul.f32 %v13415_v54, %v16340_v56  ;;  %v514_v11 = vmul.f32 %v258_v14, %v258_v14  ;;  %v512_v29 = vmul.f32 %v256_v13, %v256_v13  ;;  %v2298_v57 = vsel %vm2296_vm13, %v2297_v31, %v2295_v23 }
 0x1e5   :  { %vm2490_vm5 = vcmp.eq.f32.partialorder %v16462_v46, inf  ;;  %vm2492_vm6 = vcmp.eq.f32.partialorder %v16462_v46, 0.0  ;;  %v5428_v40 = vcombine.low %v16546_v1, %v16552_v4  ;;  %v16574_v53 = vpop.eup %12625  ;;  %v2466_v56 = vsel %vm2464_vm15, %v2465_v59, %v2463_v20 }
 0x1e6   :  { %21445 = vst [vmem:[#allocation33_spill] sm:$0xff] %v16564_v8  ;;  %v2493_v14 = vand.u32 2147483648, %v16462_v46  ;;  %v5429_v13 = vcombine.low %v16558_v30, %v16564_v8  ;;  %v1183_v48 = vsel %vm564_vm0, %v514_v11, 0.0  ;;  %v2323_v23 = vsel %vm2322_vm3, %v16428_v61, %v2321_v45  ;;  %v16641_v44 = vpop.xlane.xlu0 %1145 }
 0x1e7   :  { %v12628_v31 = vpop.eup %12627  ;;  %v2489_v62 = vmul.f32 %v12624_v22, %v16462_v46  ;;  %1184 = vadd.xlane.f32.xlu1 %v1183_v48  ;;  %v1177_v6 = vsel %vm564_vm0, %v512_v29, 0.0  ;;  %12639 = vrsqrt.f32 %v16566_v9  ;;  %v3262_v20 = vmax.f32 %v2298_v57, 1e-12 }
 0x1e8   :  { %v12630_v59 = vpop.eup %12629  ;;  %vm2476_vm7 = vcmp.eq.f32.partialorder %v16489_v25, inf  ;;  %v5436_v54 = vrot.slane %v5428_v40, %v13863_v33  ;;  %v5443_v11 = vrot.slane %v5429_v13, %v13863_v33  ;;  %1178 = vadd.xlane.f32.xlu0 %v1177_v6  ;;  %12641 = vrcp.f32 %v3264_v35  ;;  %v278_v35 = vld [vmem:[%s21259_s0 + $0x1c4] sm:$0x3]  ;;  %v16610_v13 = vpop.xlane.xlu1 %1151 }
 0x1e9   :  { %v16593_v17 = vpop.eup %12631  ;;  %v3286_v45 = vmax.f32 %v2466_v56, 1e-12  ;;  %vm2478_vm8 = vcmp.eq.f32.partialorder %v16489_v25, 0.0  ;;  %v2479_v22 = vand.u32 2147483648, %v16489_v25  ;;  %vm2518_vm9 = vcmp.eq.f32.partialorder %v16505_v27, inf }
 0x1ea   :  { %v16598_v29 = vpop.eup %12633  ;;  %v2326_v57 = vsel %vm2324_vm4, %v2325_v24, %v2323_v23  ;;  %v2475_v40 = vmul.f32 %v12628_v31, %v16489_v25  ;;  %v5444_v48 = vcombine.low %v5436_v54, %v5443_v11  ;;  %12643 = vrsqrt.f32 %v16588_v21  ;;  %v276_v56 = vld [vmem:[%s21259_s0 + $0x1c0] sm:$0x3]  ;;  %v13416_v31 = vld [vmem:[%s21259_s0 + $0xc2] sm:$0x3]  ;;  %v16681_v39 = vpop.xlane.xlu0 %1157 }
 0x1eb   :  { %v16612_v6 = vpop.eup %12635  ;;  %v2491_v61 = vsel %vm2490_vm5, %v16462_v46, %v2489_v62  ;;  %v2517_v24 = vmul.f32 %v12630_v59, %v16505_v27  ;;  %vm2520_vm10 = vcmp.eq.f32.partialorder %v16505_v27, 0.0  ;;  %v16623_v23 = vmul.f32 %v13416_v31, %v16250_v50  ;;  %v13417_v62 = vld [vmem:[%s21259_s0 + $0xc6] sm:$0x3] }
 0x1ec   :  { %v12638_v54 = vpop.eup %12637  ;;  %12645 = vrcp.f32 %v3262_v20  ;;  %v2521_v11 = vand.u32 2147483648, %v16505_v27  ;;  %11449 = vmatmul.mubr.msk.f32.gmra.mrb[4].mxu0 %vm4207_vm2, %v5444_v48  ;;  %v16631_v59 = vmul.f32 %v13417_v62, %v16412_v16  ;;  %v16637_v50 = vmul.f32 %v13418_v37, %v16352_v5 }
 0x1ed   :  { %21446 = vst [vmem:[#allocation31_spill] sm:$0xff] %v16623_v23  ;;  %v3266_v31 = vmax.f32 %v2326_v57, 1e-12  ;;  %v5445_v20 = vcombine.low %v21365_v55, %v16623_v23  ;;  %v534_v38 = vmul.f32 %v278_v35, %v278_v35  ;;  %v532_v48 = vmul.f32 %v276_v56, %v276_v56  ;;  %v16666_v56 = vpop.xlane.xlu1 %1163 }
 0x1ee   :  { %21447 = vst [vmem:[#allocation27_spill] sm:$0xff] %v16631_v59  ;;  %21448 = vst [vmem:[#allocation35_spill] sm:$0xff] %v16637_v50  ;;  %12647 = vrcp.f32 %v3286_v45  ;;  %v2494_v16 = vsel %vm2492_vm6, %v2493_v14, %v2491_v61  ;;  %v2477_v62 = vsel %vm2476_vm7, %v16489_v25, %v2475_v40  ;;  %v5446_v37 = vcombine.low %v16631_v59, %v16637_v50  ;;  %v282_v40 = vld [vmem:[%s21259_s0 + $0x1cc] sm:$0x3]  ;;  %v286_v25 = vld [vmem:[%s21259_s0 + $0x1d4] sm:$0x3] }
 0x1ef   :  { %v2519_v5 = vsel %vm2518_vm9, %v16505_v27, %v2517_v24  ;;  %v2503_v57 = vmul.f32 %v12638_v54, %v16521_v26  ;;  %v1243_v35 = vsel %vm564_vm0, %v534_v38, 0.0  ;;  %v1237_v45 = vsel %vm564_vm0, %v532_v48, 0.0  ;;  %v280_v38 = vld [vmem:[%s21259_s0 + $0x1c8] sm:$0x3] }
 0x1f0   :  { %vm2504_vm11 = vcmp.eq.f32.partialorder %v16521_v26, inf  ;;  %v5453_v46 = vrot.slane %v5445_v20, %v13863_v33  ;;  %v5460_v14 = vrot.slane %v5446_v37, %v13863_v33  ;;  %1244 = vadd.xlane.f32.xlu1 %v1243_v35  ;;  %1238 = vadd.xlane.f32.xlu0 %v1237_v45  ;;  %12649 = vrsqrt.f32 %v16610_v13 }
 0x1f1   :  { %v12640_v61 = vpop.eup %12639  ;;  %12651 = vrcp.f32 %v3266_v31  ;;  %v3290_v24 = vmax.f32 %v2494_v16, 1e-12  ;;  %vm2506_vm12 = vcmp.eq.f32.partialorder %v16521_v26, 0.0  ;;  %v2507_v54 = vand.u32 2147483648, %v16521_v26 }
 0x1f2   :  { %v2480_v20 = vsel %vm2478_vm8, %v2479_v22, %v2477_v62  ;;  %v2522_v48 = vsel %vm2520_vm10, %v2521_v11, %v2519_v5  ;;  %v5461_v37 = vcombine.low %v5453_v46, %v5460_v14  ;;  %12653 = vrsqrt.f32 %v16641_v44  ;;  %v16675_v35 = vpop.eup %12641  ;;  %v284_v62 = vld [vmem:[%s21259_s0 + $0x1d0] sm:$0x3] }
 0x1f3   :  { %v2505_v31 = vsel %vm2504_vm11, %v16521_v26, %v2503_v57  ;;  %v538_v16 = vmul.f32 %v282_v40, %v282_v40  ;;  %v536_v45 = vmul.f32 %v280_v38, %v280_v38  ;;  %12655 = vrsqrt.f32 %v16666_v56  ;;  %v3897_v46 = vld [vmem:[#allocation2 + $0x10] sm:$0x7] }
 0x1f4   :  { %v12644_v27 = vpop.eup %12643  ;;  %v2545_v22 = vmul.f32 %v12640_v61, %v16566_v9  ;;  %vm2546_vm13 = vcmp.eq.f32.partialorder %v16566_v9, inf  ;;  %vm2548_vm14 = vcmp.eq.f32.partialorder %v16566_v9, 0.0  ;;  %v2549_v11 = vand.u32 2147483648, %v16566_v9  ;;  %11451 = vmatprep.mubr.msk.f32.mxu0 %vm4207_vm2, %v5461_v37  ;;  %v13420_v26 = vld [vmem:[%s21259_s0 + $0xd2] sm:$0x3]  ;;  %11466 = vmatprep.subr.msk.mxu0 %vm4238_vm1, %v3897_v46 }
 0x1f5   :  { %12657 = vrcp.f32 %v3290_v24  ;;  %vm2532_vm15 = vcmp.eq.f32.partialorder %v16588_v21, inf  ;;  %v1255_v5 = vsel %vm564_vm0, %v538_v16, 0.0  ;;  %v1249_v57 = vsel %vm564_vm0, %v536_v45, 0.0  ;;  %v16703_v24 = vpop.xlane.xlu1 %1175  ;;  %v13419_v16 = vld [vmem:[%s21259_s0 + $0xce] sm:$0x3]  ;;  %11467 = vmatpush3.msk.msra.mxu0 %vm4238_vm1, %v3897_v46 }
 0x1f6   :  { %v16697_v14 = vpop.eup %12645  ;;  %v3288_v40 = vmax.f32 %v2480_v20, 1e-12  ;;  %v3294_v38 = vmax.f32 %v2522_v48, 1e-12  ;;  %v2508_v61 = vsel %vm2506_vm12, %v2507_v54, %v2505_v31  ;;  %v2531_v37 = vmul.f32 %v12644_v27, %v16588_v21  ;;  %1256 = vadd.xlane.f32.xlu1 %v1255_v5  ;;  %1250 = vadd.xlane.f32.xlu0 %v1249_v57  ;;  %v13421_v48 = vld [vmem:[%s21259_s0 + $0xd6] sm:$0x3] }
 0x1f7   :  { %vm2534_vm3 = vcmp.eq.f32.partialorder %v16588_v21, 0.0  ;;  %12659 = vrsqrt.f32 %v16681_v39  ;;  %v16710_v20 = vmul.f32 %v13419_v16, %v16478_v43  ;;  %v16716_v54 = vmul.f32 %v13420_v26, %v16470_v47  ;;  %v13422_v47 = vld [vmem:[%s21259_s0 + $0xda] sm:$0x3]  ;;  %v290_v46 = vld [vmem:[%s21259_s0 + $0x1dc] sm:$0x3] }
 0x1f8   :  { %v16722_v31 = vmul.f32 %v13421_v48, %v16508_v28  ;;  %v16725_v45 = vpop.eup %12647  ;;  %v2547_v43 = vsel %vm2546_vm13, %v16566_v9, %v2545_v22  ;;  %v16734_v27 = vmul.f32 %v13422_v47, %v16494_v7  ;;  %v542_v5 = vmul.f32 %v286_v25, %v286_v25  ;;  %v16741_v22 = vpop.xlane.xlu0 %1169 }
 0x1f9   :  { %21449 = vst [vmem:[#allocation34_spill] sm:$0xff] %v16710_v20  ;;  %21450 = vst [vmem:[#allocation38_spill] sm:$0xff] %v16716_v54  ;;  %v540_v57 = vmul.f32 %v284_v62, %v284_v62  ;;  %v3292_v28 = vmax.f32 %v2508_v61, 1e-12  ;;  %v2535_v16 = vand.u32 2147483648, %v16588_v21  ;;  %v5462_v26 = vcombine.low %v16710_v20, %v16716_v54 }
 0x1fa   :  { %21451 = vst [vmem:[#allocation37_spill] sm:$0xff] %v16722_v31  ;;  %21452 = vst [vmem:[#allocation42_spill] sm:$0xff] %v16734_v27  ;;  %12661 = vrsqrt.f32 %v16703_v24  ;;  %v12650_v48 = vpop.eup %12649  ;;  %v5463_v7 = vcombine.low %v16722_v31, %v16734_v27  ;;  %v1267_v25 = vsel %vm564_vm0, %v542_v5, 0.0  ;;  %v2550_v47 = vsel %vm2548_vm14, %v2549_v11, %v2547_v43  ;;  %v288_v5 = vld [vmem:[%s21259_s0 + $0x1d8] sm:$0x3] }
 0x1fb   :  { %12663 = vrcp.f32 %v3288_v40  ;;  %v1261_v62 = vsel %vm564_vm0, %v540_v57, 0.0  ;;  %v16750_v61 = vpop.eup %12651  ;;  %v2533_v40 = vsel %vm2532_vm15, %v16588_v21, %v2531_v37  ;;  %vm2700_vm4 = vcmp.eq.f32.partialorder %v16610_v13, inf  ;;  %1268 = vadd.xlane.f32.xlu1 %v1267_v25  ;;  %v16767_v25 = vpop.xlane.xlu1 %1241 }
 0x1fc   :  { %12665 = vrcp.f32 %v3294_v38  ;;  %1262 = vadd.xlane.f32.xlu0 %v1261_v62  ;;  %v12654_v57 = vpop.eup %12653  ;;  %v2699_v60 = vmul.f32 %v12650_v48, %v16610_v13  ;;  %v5470_v38 = vrot.slane %v5462_v26, %v13863_v33  ;;  %v5477_v9 = vrot.slane %v5463_v7, %v13863_v33  ;;  %v16784_v21 = vpop.xlane.xlu0 %1181 }
 0x1fd   :  { %12667 = vrsqrt.f32 %v16741_v22  ;;  %v12656_v11 = vpop.eup %12655  ;;  %vm2702_vm5 = vcmp.eq.f32.partialorder %v16610_v13, 0.0  ;;  %v2685_v37 = vmul.f32 %v12654_v57, %v16641_v44  ;;  %v546_v43 = vmul.f32 %v290_v46, %v290_v46  ;;  %v99_v57 = vld [vmem:[%s21259_s0 + $0x5e] sm:$0x3] }
 0x1fe   :  { %12669 = vrcp.f32 %v3292_v28  ;;  %v3298_v62 = vmax.f32 %v2550_v47, 1e-12  ;;  %v2703_v27 = vand.u32 2147483648, %v16610_v13  ;;  %v5478_v54 = vcombine.low %v5470_v38, %v5477_v9 }
 0x1ff   :  { %v544_v48 = vmul.f32 %v288_v5, %v288_v5  ;;  %v16770_v31 = vpop.eup %12657  ;;  %v2536_v26 = vsel %vm2534_vm3, %v2535_v16, %v2533_v40  ;;  %vm2686_vm6 = vcmp.eq.f32.partialorder %v16641_v44, inf  ;;  %vm2688_vm7 = vcmp.eq.f32.partialorder %v16641_v44, 0.0 }
 0x200   :  { %v1279_v28 = vsel %vm564_vm0, %v546_v43, 0.0  ;;  %v2701_v7 = vsel %vm2700_vm4, %v16610_v13, %v2699_v60  ;;  %v2727_v46 = vmul.f32 %v12656_v11, %v16666_v56  ;;  %11452 = vmatmul.mubr.msk.f32.gmra.mrb[6].mxu0 %vm4207_vm2, %v5478_v54  ;;  %12671 = vrsqrt.f32 %v16767_v25  ;;  %v16836_v8 = vpop.xlane.xlu0 %1247 }
 0x201   :  { %1280 = vadd.xlane.f32.xlu1 %v1279_v28  ;;  %v1273_v47 = vsel %vm564_vm0, %v544_v48, 0.0  ;;  %v12660_v16 = vpop.eup %12659  ;;  %v2687_v40 = vsel %vm2686_vm6, %v16641_v44, %v2685_v37  ;;  %v2689_v5 = vand.u32 2147483648, %v16641_v44  ;;  %vm2728_vm8 = vcmp.eq.f32.partialorder %v16666_v56, inf  ;;  %v67_v37 = vld [vmem:[%s21259_s0 + $0x1e] sm:$0x3] }
 0x202   :  { %vm2730_vm9 = vcmp.eq.f32.partialorder %v16666_v56, 0.0  ;;  %1274 = vadd.xlane.f32.xlu0 %v1273_v47  ;;  %12673 = vrcp.f32 %v3298_v62  ;;  %v3296_v60 = vmax.f32 %v2536_v26, 1e-12  ;;  %v2731_v54 = vand.u32 2147483648, %v16666_v56  ;;  %v13423_v28 = vld [vmem:[%s21259_s0 + $0x102] sm:$0x3] }
 0x203   :  { %vm2714_vm10 = vcmp.eq.f32.partialorder %v16681_v39, inf  ;;  %v2704_v9 = vsel %vm2702_vm5, %v2703_v27, %v2701_v7  ;;  %vm2716_vm11 = vcmp.eq.f32.partialorder %v16681_v39, 0.0  ;;  %v2717_v11 = vand.u32 2147483648, %v16681_v39  ;;  %v13424_v44 = vld [vmem:[%s21259_s0 + $0x106] sm:$0x3] }
 0x204   :  { %v12662_v38 = vpop.eup %12661  ;;  %vm2756_vm12 = vcmp.eq.f32.partialorder %v16703_v24, inf  ;;  %vm2758_vm13 = vcmp.eq.f32.partialorder %v16703_v24, 0.0  ;;  %v2690_v62 = vsel %vm2688_vm7, %v2689_v5, %v2687_v40  ;;  %v2729_v13 = vsel %vm2728_vm8, %v16666_v56, %v2727_v46  ;;  %v13425_v47 = vld [vmem:[%s21259_s0 + $0x10a] sm:$0x3]  ;;  %v16834_v40 = vpop.xlane.xlu1 %1253 }
 0x205   :  { %v16804_v43 = vpop.eup %12663  ;;  %v2713_v27 = vmul.f32 %v12660_v16, %v16681_v39  ;;  %v2755_v48 = vmul.f32 %v12662_v38, %v16703_v24  ;;  %12675 = vrsqrt.f32 %v16784_v21  ;;  %v16820_v7 = vmul.f32 %v13423_v28, %v16593_v17 }
 0x206   :  { %v16813_v26 = vpop.eup %12665  ;;  %v16826_v46 = vmul.f32 %v13424_v44, %v16574_v53  ;;  %v16832_v16 = vmul.f32 %v13425_v47, %v16612_v6  ;;  %12677 = vrcp.f32 %v3296_v60  ;;  %v3320_v17 = vmax.f32 %v2704_v9, 1e-12 }
 0x207   :  { %21453 = vst [vmem:[#allocation40_spill] sm:$0xff] %v16820_v7  ;;  %v12668_v5 = vpop.eup %12667  ;;  %v355_v38 = vmul.f32 %v99_v57, %v99_v57  ;;  %v323_v28 = vmul.f32 %v67_v37, %v67_v37  ;;  %v3318_v53 = vmax.f32 %v2690_v62, 1e-12  ;;  %v2732_v44 = vsel %vm2730_vm9, %v2731_v54, %v2729_v13  ;;  %v163_v13 = vld [vmem:[%s21259_s0 + $0xde] sm:$0x3] }
 0x208   :  { %21454 = vst [vmem:[#allocation36_spill] sm:$0xff] %v16826_v46  ;;  %21455 = vst [vmem:[#allocation44_spill] sm:$0xff] %v16832_v16  ;;  %v16838_v50 = vpop.eup %12669  ;;  %v5479_v20 = vcombine.low %v21365_v55, %v16820_v7  ;;  %v5480_v6 = vcombine.low %v16826_v46, %v16832_v16  ;;  %v2715_v60 = vsel %vm2714_vm10, %v16681_v39, %v2713_v27  ;;  %12679 = vrsqrt.f32 %v16834_v40  ;;  %v227_v39 = vld [vmem:[%s21259_s0 + $0x15e] sm:$0x3] }
 0x209   :  { %v2757_v57 = vsel %vm2756_vm12, %v16703_v24, %v2755_v48  ;;  %v706_v9 = vsel %vm564_vm0, %v355_v38, 0.0  ;;  %v610_v37 = vsel %vm564_vm0, %v323_v28, 0.0  ;;  %v2741_v56 = vmul.f32 %v12668_v5, %v16741_v22  ;;  %v16870_v38 = vpop.xlane.xlu1 %1265 }
 0x20a   :  { %v5487_v54 = vrot.slane %v5479_v20, %v13863_v33  ;;  %v5494_v62 = vrot.slane %v5480_v6, %v13863_v33  ;;  %707 = vadd.xlane.f32.xlu1 %v706_v9  ;;  %611 = vadd.xlane.f32.xlu0 %v610_v37  ;;  %v12672_v27 = vpop.eup %12671  ;;  %12681 = vrcp.f32 %v3320_v17  ;;  %v2759_v48 = vand.u32 2147483648, %v16703_v24  ;;  %v131_v20 = vld [vmem:[%s21259_s0 + $0x9e] sm:$0x3]  ;;  %v16878_v37 = vpop.xlane.xlu0 %1259 }
 0x20b   :  { %vm2742_vm14 = vcmp.eq.f32.partialorder %v16741_v22, inf  ;;  %vm2744_vm15 = vcmp.eq.f32.partialorder %v16741_v22, 0.0  ;;  %v2745_v47 = vand.u32 2147483648, %v16741_v22  ;;  %vm2910_vm3 = vcmp.eq.f32.partialorder %v16767_v25, inf }
 0x20c   :  { %v5495_v5 = vcombine.low %v5487_v54, %v5494_v62  ;;  %12683 = vrsqrt.f32 %v16836_v8  ;;  %v16872_v17 = vpop.eup %12673  ;;  %v3324_v28 = vmax.f32 %v2732_v44, 1e-12  ;;  %v2718_v6 = vsel %vm2716_vm11, %v2717_v11, %v2715_v60 }
 0x20d   :  { %12685 = vrcp.f32 %v3318_v53  ;;  %v2760_v9 = vsel %vm2758_vm13, %v2759_v48, %v2757_v57  ;;  %v2743_v16 = vsel %vm2742_vm14, %v16741_v22, %v2741_v56  ;;  %v2909_v54 = vmul.f32 %v12672_v27, %v16767_v25  ;;  %v195_v57 = vld [vmem:[%s21259_s0 + $0x11e] sm:$0x3]  ;;  %v13427_v22 = vld [vmem:[%s21259_s0 + $0x112] sm:$0x3] }
 0x20e   :  { %11454 = vmatprep.mubr.msk.f32.mxu0 %vm4207_vm2, %v5495_v5  ;;  %v419_v62 = vmul.f32 %v163_v13, %v163_v13  ;;  %v387_v7 = vmul.f32 %v131_v20, %v131_v20  ;;  %vm2912_vm4 = vcmp.eq.f32.partialorder %v16767_v25, 0.0  ;;  %v2913_v53 = vand.u32 2147483648, %v16767_v25  ;;  %v13426_v5 = vld [vmem:[%s21259_s0 + $0x10e] sm:$0x3] }
 0x20f   :  { %vm2770_vm5 = vcmp.eq.f32.partialorder %v16784_v21, inf  ;;  %12687 = vrsqrt.f32 %v16870_v38  ;;  %v12676_v24 = vpop.eup %12675  ;;  %v3322_v11 = vmax.f32 %v2718_v6, 1e-12  ;;  %v3328_v13 = vmax.f32 %v2760_v9, 1e-12 }
 0x210   :  { %v898_v44 = vsel %vm564_vm0, %v419_v62, 0.0  ;;  %v802_v60 = vsel %vm564_vm0, %v387_v7, 0.0  ;;  %12689 = vrsqrt.f32 %v16878_v37  ;;  %v16896_v56 = vpop.eup %12677  ;;  %v2746_v27 = vsel %vm2744_vm15, %v2745_v47, %v2743_v16  ;;  %v16918_v47 = vpop.xlane.xlu1 %1277  ;;  %v13428_v6 = vld [vmem:[%s21259_s0 + $0x116] sm:$0x3] }
 0x211   :  { %12691 = vrcp.f32 %v3324_v28  ;;  %vm2772_vm6 = vcmp.eq.f32.partialorder %v16784_v21, 0.0  ;;  %v2773_v48 = vand.u32 2147483648, %v16784_v21  ;;  %899 = vadd.xlane.f32.xlu1 %v898_v44  ;;  %803 = vadd.xlane.f32.xlu0 %v802_v60  ;;  %v2911_v7 = vsel %vm2910_vm3, %v16767_v25, %v2909_v54 }
 0x212   :  { %v2769_v20 = vmul.f32 %v12676_v24, %v16784_v21  ;;  %v16910_v28 = vmul.f32 %v13426_v5, %v16598_v29  ;;  %v16916_v16 = vmul.f32 %v13427_v22, %v16697_v14  ;;  %v16924_v9 = vmul.f32 %v13428_v6, %v16675_v35  ;;  %v13429_v29 = vld [vmem:[%s21259_s0 + $0x11a] sm:$0x3]  ;;  %v12680_v14 = vpop.eup %12679 }
 0x213   :  { %v16930_v54 = vmul.f32 %v13429_v29, %v16750_v61  ;;  %v483_v62 = vmul.f32 %v227_v39, %v227_v39  ;;  %v451_v24 = vmul.f32 %v195_v57, %v195_v57  ;;  %12693 = vrcp.f32 %v3322_v11  ;;  %v16942_v39 = vpop.xlane.xlu0 %1271 }
 0x214   :  { %21456 = vst [vmem:[#allocation43_spill] sm:$0xff] %v16910_v28  ;;  %21457 = vst [vmem:[#allocation45_spill] sm:$0xff] %v16916_v16  ;;  %v3326_v44 = vmax.f32 %v2746_v27, 1e-12  ;;  %vm2938_vm7 = vcmp.eq.f32.partialorder %v16834_v40, inf  ;;  %v5496_v60 = vcombine.low %v16910_v28, %v16916_v16  ;;  %v16935_v5 = vpop.eup %12681  ;;  %12695 = vrsqrt.f32 %v16918_v47 }
 0x215   :  { %21458 = vst [vmem:[#allocation53_spill] sm:$0xff] %v16924_v9  ;;  %21459 = vst [vmem:[#allocation54_spill] sm:$0xff] %v16930_v54  ;;  %v5497_v35 = vcombine.low %v16924_v9, %v16930_v54  ;;  %v1090_v22 = vsel %vm564_vm0, %v483_v62, 0.0  ;;  %v994_v61 = vsel %vm564_vm0, %v451_v24, 0.0  ;;  %12697 = vrcp.f32 %v3328_v13 }
 0x216   :  { %v12684_v11 = vpop.eup %12683  ;;  %v2914_v57 = vsel %vm2912_vm4, %v2913_v53, %v2911_v7  ;;  %vm2940_vm8 = vcmp.eq.f32.partialorder %v16834_v40, 0.0  ;;  %v2941_v27 = vand.u32 2147483648, %v16834_v40  ;;  %1091 = vadd.xlane.f32.xlu1 %v1090_v22  ;;  %995 = vadd.xlane.f32.xlu0 %v994_v61  ;;  %v2771_v29 = vsel %vm2770_vm5, %v16784_v21, %v2769_v20 }
 0x217   :  { %v16948_v6 = vpop.eup %12685  ;;  %v2937_v62 = vmul.f32 %v12680_v14, %v16834_v40  ;;  %v5504_v24 = vrot.slane %v5496_v60, %v13863_v33  ;;  %v5511_v13 = vrot.slane %v5497_v35, %v13863_v33  ;;  %vm2924_vm9 = vcmp.eq.f32.partialorder %v16836_v8, inf  ;;  %v291_v14 = vld [vmem:[%s21259_s0 + $0x1de] sm:$0x3]  ;;  %v16967_v35 = vpop.xlane.xlu1 %572 }
 0x218   :  { %vm2926_vm10 = vcmp.eq.f32.partialorder %v16836_v8, 0.0  ;;  %v2927_v25 = vand.u32 2147483648, %v16836_v8  ;;  %12699 = vrsqrt.f32 %v16942_v39  ;;  %v3350_v7 = vmax.f32 %v2914_v57, 1e-12  ;;  %v259_v60 = vld [vmem:[%s21259_s0 + $0x19e] sm:$0x3]  ;;  %v17001_v16 = vpop.xlane.xlu0 %566 }
 0x219   :  { %v12688_v53 = vpop.eup %12687  ;;  %12701 = vrcp.f32 %v3326_v44  ;;  %v2923_v22 = vmul.f32 %v12684_v11, %v16836_v8  ;;  %v5512_v20 = vcombine.low %v5504_v24, %v5511_v13  ;;  %v2774_v54 = vsel %vm2772_vm6, %v2773_v48, %v2771_v29  ;;  %v13430_v44 = vld [vmem:[%s21259_s0 + $0x142] sm:$0x3]  ;;  %v13431_v48 = vld [vmem:[%s21259_s0 + $0x146] sm:$0x3] }
 0x21a   :  { %v12690_v61 = vpop.eup %12689  ;;  %vm2966_vm11 = vcmp.eq.f32.partialorder %v16870_v38, inf  ;;  %vm2968_vm12 = vcmp.eq.f32.partialorder %v16870_v38, 0.0  ;;  %v16977_v11 = vmul.f32 %v13430_v44, %v16725_v45  ;;  %v2939_v24 = vsel %vm2938_vm7, %v16834_v40, %v2937_v62  ;;  %v13432_v45 = vld [vmem:[%s21259_s0 + $0x14a] sm:$0x3] }
 0x21b   :  { %v16979_v57 = vpop.eup %12691  ;;  %v2965_v21 = vmul.f32 %v12688_v53, %v16870_v38  ;;  %11455 = vmatmul.mubr.msk.f32.gmra.mrb[8].mxu0 %vm4207_vm2, %v5512_v20  ;;  %v16990_v29 = vmul.f32 %v13431_v48, %v16804_v43  ;;  %v16996_v13 = vmul.f32 %v13432_v45, %v16770_v31  ;;  %v2969_v62 = vand.u32 2147483648, %v16870_v38 }
 0x21c   :  { %21460 = vst [vmem:[#allocation55_spill] sm:$0xff] %v16977_v11  ;;  %v5513_v53 = vcombine.low %v21365_v55, %v16977_v11  ;;  %v547_v20 = vmul.f32 %v291_v14, %v291_v14  ;;  %v515_v44 = vmul.f32 %v259_v60, %v259_v60  ;;  %v3330_v9 = vmax.f32 %v2774_v54, 1e-12 }
 0x21d   :  { %21461 = vst [vmem:[#allocation56_spill] sm:$0xff] %v16990_v29  ;;  %21462 = vst [vmem:[#allocation57_spill] sm:$0xff] %v16996_v13  ;;  %v2925_v43 = vsel %vm2924_vm9, %v16836_v8, %v2923_v22  ;;  %v2951_v48 = vmul.f32 %v12690_v61, %v16878_v37  ;;  %v5514_v31 = vcombine.low %v16990_v29, %v16996_v13  ;;  %v17009_v45 = vpop.eup %12693  ;;  %12703 = vrcp.f32 %v3350_v7  ;;  %v17021_v7 = vpop.xlane.xlu1 %584  ;;  %v293_v8 = vld [vmem:[%s21259_s0 + $0x1e2] sm:$0x3] }
 0x21e   :  { %v2942_v11 = vsel %vm2940_vm8, %v2941_v27, %v2939_v24  ;;  %vm2952_vm13 = vcmp.eq.f32.partialorder %v16878_v37, inf  ;;  %v1282_v14 = vsel %vm564_vm0, %v547_v20, 0.0  ;;  %v12696_v54 = vpop.eup %12695  ;;  %v2967_v22 = vsel %vm2966_vm11, %v16870_v38, %v2965_v21  ;;  %v295_v21 = vld [vmem:[%s21259_s0 + $0x1e6] sm:$0x3] }
 0x21f   :  { %v5521_v60 = vrot.slane %v5513_v53, %v13863_v33  ;;  %v5528_v61 = vrot.slane %v5514_v31, %v13863_v33  ;;  %1283 = vadd.xlane.f32.xlu1 %v1282_v14  ;;  %v1186_v13 = vsel %vm564_vm0, %v515_v44, 0.0  ;;  %v17023_v40 = vpop.eup %12697  ;;  %v2928_v27 = vsel %vm2926_vm10, %v2927_v25, %v2925_v43 }
 0x220   :  { %vm2954_vm14 = vcmp.eq.f32.partialorder %v16878_v37, 0.0  ;;  %v2955_v24 = vand.u32 2147483648, %v16878_v37  ;;  %vm2994_vm15 = vcmp.eq.f32.partialorder %v16918_v47, inf  ;;  %1187 = vadd.xlane.f32.xlu0 %v1186_v13  ;;  %12705 = vrcp.f32 %v3330_v9  ;;  %v17044_v9 = vpop.xlane.xlu0 %578 }
 0x221   :  { %v3354_v53 = vmax.f32 %v2942_v11, 1e-12  ;;  %v2953_v20 = vsel %vm2952_vm13, %v16878_v37, %v2951_v48  ;;  %v5529_v44 = vcombine.low %v5521_v60, %v5528_v61  ;;  %v2970_v43 = vsel %vm2968_vm12, %v2969_v62, %v2967_v22  ;;  %v299_v61 = vld [vmem:[%s21259_s0 + $0x1ee] sm:$0x3] }
 0x222   :  { %v12700_v25 = vpop.eup %12699  ;;  %v2993_v13 = vmul.f32 %v12696_v54, %v16918_v47  ;;  %vm2996_vm3 = vcmp.eq.f32.partialorder %v16918_v47, 0.0  ;;  %12707 = vrsqrt.f32 %v16967_v35  ;;  %v3352_v48 = vmax.f32 %v2928_v27, 1e-12  ;;  %v17060_v27 = vpop.xlane.xlu1 %596 }
 0x223   :  { %v17046_v11 = vpop.eup %12701  ;;  %v2997_v31 = vand.u32 2147483648, %v16918_v47  ;;  %11457 = vmatprep.mubr.msk.f32.mxu0 %vm4207_vm2, %v5529_v44  ;;  %12709 = vrsqrt.f32 %v17001_v16  ;;  %v551_v14 = vmul.f32 %v295_v21, %v295_v21  ;;  %v2956_v38 = vsel %vm2954_vm14, %v2955_v24, %v2953_v20  ;;  %v297_v21 = vld [vmem:[%s21259_s0 + $0x1ea] sm:$0x3]  ;;  %v13433_v44 = vld [vmem:[%s21259_s0 + $0x14e] sm:$0x3] }
 0x224   :  { %vm2980_vm4 = vcmp.eq.f32.partialorder %v16942_v39, inf  ;;  %v549_v62 = vmul.f32 %v293_v8, %v293_v8  ;;  %12711 = vrsqrt.f32 %v17021_v7  ;;  %v3358_v54 = vmax.f32 %v2970_v43, 1e-12  ;;  %v13434_v43 = vld [vmem:[%s21259_s0 + $0x152] sm:$0x3] }
 0x225   :  { %12713 = vrcp.f32 %v3354_v53  ;;  %v2979_v22 = vmul.f32 %v12700_v25, %v16942_v39  ;;  %v1294_v60 = vsel %vm564_vm0, %v551_v14, 0.0  ;;  %v2995_v37 = vsel %vm2994_vm15, %v16918_v47, %v2993_v13  ;;  %v303_v47 = vld [vmem:[%s21259_s0 + $0x1f6] sm:$0x3] }
 0x226   :  { %vm2982_vm5 = vcmp.eq.f32.partialorder %v16942_v39, 0.0  ;;  %1295 = vadd.xlane.f32.xlu1 %v1294_v60  ;;  %v1288_v24 = vsel %vm564_vm0, %v549_v62, 0.0  ;;  %12715 = vrsqrt.f32 %v17044_v9  ;;  %v3356_v53 = vmax.f32 %v2956_v38, 1e-12  ;;  %v17098_v60 = vpop.xlane.xlu0 %590 }
 0x227   :  { %12717 = vrcp.f32 %v3352_v48  ;;  %v2983_v20 = vand.u32 2147483648, %v16942_v39  ;;  %1289 = vadd.xlane.f32.xlu0 %v1288_v24  ;;  %v17076_v8 = vmul.f32 %v13433_v44, %v16838_v50  ;;  %v17078_v25 = vpop.eup %12703  ;;  %v17084_v13 = vmul.f32 %v13434_v43, %v16813_v26  ;;  %v13435_v48 = vld [vmem:[%s21259_s0 + $0x156] sm:$0x3]  ;;  %v13436_v50 = vld [vmem:[%s21259_s0 + $0x15a] sm:$0x3] }
 0x228   :  { %v17090_v14 = vmul.f32 %v13435_v48, %v16896_v56  ;;  %v17096_v38 = vmul.f32 %v13436_v50, %v16872_v17  ;;  %v555_v62 = vmul.f32 %v299_v61, %v299_v61  ;;  %12719 = vrcp.f32 %v3358_v54  ;;  %v17123_v61 = vpop.xlane.xlu1 %608 }
 0x229   :  { %21463 = vst [vmem:[#allocation58_spill] sm:$0xff] %v17076_v8  ;;  %21464 = vst [vmem:[#allocation59_spill] sm:$0xff] %v17084_v13  ;;  %v2998_v26 = vsel %vm2996_vm3, %v2997_v31, %v2995_v37  ;;  %v2981_v24 = vsel %vm2980_vm4, %v16942_v39, %v2979_v22  ;;  %v553_v56 = vmul.f32 %v297_v21, %v297_v21  ;;  %12721 = vrsqrt.f32 %v17060_v27  ;;  %v301_v31 = vld [vmem:[%s21259_s0 + $0x1f2] sm:$0x3] }
 0x22a   :  { %21465 = vst [vmem:[#allocation60_spill] sm:$0xff] %v17090_v14  ;;  %21466 = vst [vmem:[#allocation61_spill] sm:$0xff] %v17096_v38  ;;  %v5530_v44 = vcombine.low %v17076_v8, %v17084_v13  ;;  %v5531_v43 = vcombine.low %v17090_v14, %v17096_v38  ;;  %v1306_v17 = vsel %vm564_vm0, %v555_v62, 0.0  ;;  %v17117_v54 = vpop.eup %12705  ;;  %vm1349_vm6 = vcmp.eq.f32.partialorder %v16967_v35, inf }
 0x22b   :  { %vm1351_vm7 = vcmp.eq.f32.partialorder %v16967_v35, 0.0  ;;  %1307 = vadd.xlane.f32.xlu1 %v1306_v17  ;;  %v1300_v22 = vsel %vm564_vm0, %v553_v56, 0.0  ;;  %12723 = vrsqrt.f32 %v17098_v60  ;;  %v2984_v21 = vsel %vm2982_vm5, %v2983_v20, %v2981_v24 }
 0x22c   :  { %v12708_v37 = vpop.eup %12707  ;;  %12725 = vrcp.f32 %v3356_v53  ;;  %v5538_v48 = vrot.slane %v5530_v44, %v13863_v33  ;;  %v5545_v50 = vrot.slane %v5531_v43, %v13863_v33  ;;  %1301 = vadd.xlane.f32.xlu0 %v1300_v22  ;;  %v3362_v38 = vmax.f32 %v2998_v26, 1e-12 }
 0x22d   :  { %v12710_v62 = vpop.eup %12709  ;;  %v1348_v17 = vmul.f32 %v12708_v37, %v16967_v35  ;;  %v559_v13 = vmul.f32 %v303_v47, %v303_v47  ;;  %v557_v56 = vmul.f32 %v301_v31, %v301_v31  ;;  %v1352_v8 = vand.u32 2147483648, %v16967_v35  ;;  %v17151_v37 = vpop.xlane.xlu0 %602 }
 0x22e   :  { %v12712_v14 = vpop.eup %12711  ;;  %v1334_v29 = vmul.f32 %v12710_v62, %v17001_v16  ;;  %v5546_v53 = vcombine.low %v5538_v48, %v5545_v50  ;;  %12727 = vrsqrt.f32 %v17123_v61  ;;  %v3360_v20 = vmax.f32 %v2984_v21, 1e-12 }
 0x22f   :  { %v17133_v39 = vpop.eup %12713  ;;  %v1350_v24 = vsel %vm1349_vm6, %v16967_v35, %v1348_v17  ;;  %v1318_v26 = vsel %vm564_vm0, %v559_v13, 0.0  ;;  %v1312_v44 = vsel %vm564_vm0, %v557_v56, 0.0  ;;  %vm1335_vm8 = vcmp.eq.f32.partialorder %v17001_v16, inf  ;;  %v68_v35 = vld [vmem:[%s21259_s0 + $0x20] sm:$0x3] }
 0x230   :  { %v12716_v43 = vpop.eup %12715  ;;  %vm1337_vm9 = vcmp.eq.f32.partialorder %v17001_v16, 0.0  ;;  %v1338_v47 = vand.u32 2147483648, %v17001_v16  ;;  %v1376_v31 = vmul.f32 %v12712_v14, %v17021_v7  ;;  %11458 = vmatmul.mubr.msk.f32.gmra.mrb[10].mxu0 %vm4207_vm2, %v5546_v53  ;;  %1319 = vadd.xlane.f32.xlu1 %v1318_v26  ;;  %12729 = vrcp.f32 %v3362_v38  ;;  %v13437_v56 = vld [vmem:[%s21259_s0 + $0x182] sm:$0x3] }
 0x231   :  { %v17145_v22 = vpop.eup %12717  ;;  %v1353_v13 = vsel %vm1351_vm7, %v1352_v8, %v1350_v24  ;;  %vm1377_vm10 = vcmp.eq.f32.partialorder %v17021_v7, inf  ;;  %vm1379_vm11 = vcmp.eq.f32.partialorder %v17021_v7, 0.0  ;;  %1313 = vadd.xlane.f32.xlu0 %v1312_v44  ;;  %v1336_v21 = vsel %vm1335_vm8, %v17001_v16, %v1334_v29  ;;  %v305_v29 = vld [vmem:[%s21259_s0 + $0x1fa] sm:$0x3]  ;;  %v13438_v44 = vld [vmem:[%s21259_s0 + $0x186] sm:$0x3] }
 0x232   :  { %v1380_v14 = vand.u32 2147483648, %v17021_v7  ;;  %v1362_v48 = vmul.f32 %v12716_v43, %v17044_v9  ;;  %vm1363_vm12 = vcmp.eq.f32.partialorder %v17044_v9, inf  ;;  %v17160_v8 = vpop.eup %12719  ;;  %12731 = vrcp.f32 %v3360_v20 }
 0x233   :  { %vm1365_vm13 = vcmp.eq.f32.partialorder %v17044_v9, 0.0  ;;  %v1366_v38 = vand.u32 2147483648, %v17044_v9  ;;  %vm1405_vm14 = vcmp.eq.f32.partialorder %v17060_v27, inf  ;;  %v12722_v50 = vpop.eup %12721  ;;  %v3127_v62 = vmax.f32 %v1353_v13, 1e-12  ;;  %v17193_v13 = vpop.xlane.xlu1 %668 }
 0x234   :  { %v1378_v17 = vsel %vm1377_vm10, %v17021_v7, %v1376_v31  ;;  %12733 = vrsqrt.f32 %v17151_v37  ;;  %v17176_v53 = vmul.f32 %v13437_v56, %v16948_v6  ;;  %v1339_v24 = vsel %vm1337_vm9, %v1338_v47, %v1336_v21  ;;  %v13439_v31 = vld [vmem:[%s21259_s0 + $0x18a] sm:$0x3] }
 0x235   :  { %v12724_v20 = vpop.eup %12723  ;;  %v1404_v26 = vmul.f32 %v12722_v50, %v17060_v27  ;;  %v17185_v43 = vmul.f32 %v13438_v44, %v16935_v5  ;;  %v17191_v6 = vmul.f32 %v13439_v31, %v17009_v45  ;;  %v1364_v47 = vsel %vm1363_vm12, %v17044_v9, %v1362_v48 }
 0x236   :  { %21467 = vst [vmem:[#allocation62_spill] sm:$0xff] %v17176_v53  ;;  %v17195_v16 = vpop.eup %12725  ;;  %v5547_v21 = vcombine.low %v21365_v55, %v17176_v53  ;;  %v324_v5 = vmul.f32 %v68_v35, %v68_v35  ;;  %v561_v50 = vmul.f32 %v305_v29, %v305_v29  ;;  %v1381_v56 = vsel %vm1379_vm11, %v1380_v14, %v1378_v17  ;;  %v17213_v35 = vpop.xlane.xlu0 %662 }
 0x237   :  { %21468 = vst [vmem:[#allocation63_spill] sm:$0xff] %v17185_v43  ;;  %21469 = vst [vmem:[#allocation64_spill] sm:$0xff] %v17191_v6  ;;  %v1406_v45 = vsel %vm1405_vm14, %v17060_v27, %v1404_v26  ;;  %v1390_v44 = vmul.f32 %v12724_v20, %v17098_v60  ;;  %v5548_v31 = vcombine.low %v17185_v43, %v17191_v6  ;;  %v3125_v46 = vmax.f32 %v1339_v24, 1e-12 }
 0x238   :  { %v12728_v28 = vpop.eup %12727  ;;  %vm1407_vm15 = vcmp.eq.f32.partialorder %v17060_v27, 0.0  ;;  %v1408_v48 = vand.u32 2147483648, %v17060_v27  ;;  %vm1391_vm3 = vcmp.eq.f32.partialorder %v17098_v60, inf  ;;  %v1367_v7 = vsel %vm1365_vm13, %v1366_v38, %v1364_v47  ;;  %v72_v47 = vld [vmem:[%s21259_s0 + $0x28] sm:$0x3] }
 0x239   :  { %v5555_v14 = vrot.slane %v5547_v21, %v13863_v33  ;;  %v5562_v29 = vrot.slane %v5548_v31, %v13863_v33  ;;  %v613_v17 = vsel %vm564_vm0, %v324_v5, 0.0  ;;  %v3131_v20 = vmax.f32 %v1381_v56, 1e-12  ;;  %v17229_v21 = vpop.xlane.xlu1 %680 }
 0x23a   :  { %v1409_v26 = vsel %vm1407_vm15, %v1408_v48, %v1406_v45  ;;  %614 = vadd.xlane.f32.xlu1 %v613_v17  ;;  %v1324_v24 = vsel %vm564_vm0, %v561_v50, 0.0  ;;  %12735 = vrsqrt.f32 %v17193_v13  ;;  %v17222_v27 = vpop.eup %12729  ;;  %v1392_v6 = vsel %vm1391_vm3, %v17098_v60, %v1390_v44  ;;  %v17241_v31 = vpop.xlane.xlu0 %674 }
 0x23b   :  { %12737 = vrcp.f32 %v3127_v62  ;;  %v1432_v9 = vmul.f32 %v12728_v28, %v17123_v61  ;;  %v5563_v38 = vcombine.low %v5555_v14, %v5562_v29  ;;  %1325 = vadd.xlane.f32.xlu0 %v1324_v24  ;;  %v3129_v5 = vmax.f32 %v1367_v7, 1e-12  ;;  %v70_v62 = vld [vmem:[%s21259_s0 + $0x24] sm:$0x3]  ;;  %v74_v29 = vld [vmem:[%s21259_s0 + $0x2c] sm:$0x3] }
 0x23c   :  { %12739 = vrcp.f32 %v3125_v46  ;;  %v1394_v50 = vand.u32 2147483648, %v17098_v60  ;;  %v17235_v56 = vpop.eup %12731  ;;  %v3135_v45 = vmax.f32 %v1409_v26, 1e-12  ;;  %vm1393_vm4 = vcmp.eq.f32.partialorder %v17098_v60, 0.0  ;;  %v76_v60 = vld [vmem:[%s21259_s0 + $0x30] sm:$0x3] }
 0x23d   :  { %11460 = vmatprep.mubr.msk.f32.mxu0 %vm4207_vm2, %v5563_v38  ;;  %12741 = vrsqrt.f32 %v17213_v35  ;;  %vm1433_vm5 = vcmp.eq.f32.partialorder %v17123_v61, inf  ;;  %v328_v46 = vmul.f32 %v72_v47, %v72_v47  ;;  %vm1435_vm6 = vcmp.eq.f32.partialorder %v17123_v61, 0.0  ;;  %v17257_v24 = vpop.xlane.xlu1 %692  ;;  %v13441_v47 = vld [vmem:[%s21259_s0 + $0x192] sm:$0x3] }
 0x23e   :  { %v12734_v28 = vpop.eup %12733  ;;  %12743 = vrcp.f32 %v3131_v20  ;;  %v1395_v44 = vsel %vm1393_vm4, %v1394_v50, %v1392_v6  ;;  %v1434_v48 = vsel %vm1433_vm5, %v17123_v61, %v1432_v9  ;;  %v326_v7 = vmul.f32 %v70_v62, %v70_v62  ;;  %v13442_v50 = vld [vmem:[%s21259_s0 + $0x196] sm:$0x3] }
 0x23f   :  { %12745 = vrsqrt.f32 %v17229_v21  ;;  %v1436_v14 = vand.u32 2147483648, %v17123_v61  ;;  %vm1419_vm7 = vcmp.eq.f32.partialorder %v17151_v37, inf  ;;  %v625_v6 = vsel %vm564_vm0, %v328_v46, 0.0  ;;  %v13440_v61 = vld [vmem:[%s21259_s0 + $0x18e] sm:$0x3] }
 0x240   :  { %12747 = vrcp.f32 %v3129_v5  ;;  %v3133_v17 = vmax.f32 %v1395_v44, 1e-12  ;;  %v1418_v20 = vmul.f32 %v12734_v28, %v17151_v37  ;;  %626 = vadd.xlane.f32.xlu1 %v625_v6  ;;  %v619_v26 = vsel %vm564_vm0, %v326_v7, 0.0 }
 0x241   :  { %12749 = vrcp.f32 %v3135_v45  ;;  %v17259_v9 = vsel %vm1435_vm6, %v1436_v14, %v1434_v48  ;;  %620 = vadd.xlane.f32.xlu0 %v619_v26  ;;  %v17266_v38 = vmul.f32 %v13440_v61, %v16979_v57  ;;  %v17272_v5 = vmul.f32 %v13441_v47, %v17046_v11  ;;  %v13443_v45 = vld [vmem:[%s21259_s0 + $0x19a] sm:$0x3] }
 0x242   :  { %12751 = vrsqrt.f32 %v17241_v31  ;;  %v17278_v62 = vmul.f32 %v13442_v50, %v17023_v40  ;;  %v17284_v57 = vmul.f32 %v13443_v45, %v17117_v54  ;;  %v332_v28 = vmul.f32 %v76_v60, %v76_v60  ;;  %v17291_v40 = vpop.xlane.xlu0 %686 }
 0x243   :  { %21470 = vst [vmem:[#allocation65_spill] sm:$0xff] %v17266_v38  ;;  %21471 = vst [vmem:[#allocation66_spill] sm:$0xff] %v17272_v5  ;;  %v330_v44 = vmul.f32 %v74_v29, %v74_v29  ;;  %vm1421_vm8 = vcmp.eq.f32.partialorder %v17151_v37, 0.0  ;;  %v1422_v11 = vand.u32 2147483648, %v17151_v37  ;;  %v5564_v48 = vcombine.low %v17266_v38, %v17272_v5 }
 0x244   :  { %21472 = vst [vmem:[#allocation67_spill] sm:$0xff] %v17278_v62  ;;  %21473 = vst [vmem:[#allocation68_spill] sm:$0xff] %v17284_v57  ;;  %v12736_v46 = vpop.eup %12735  ;;  %12753 = vrsqrt.f32 %v17257_v24  ;;  %v1420_v54 = vsel %vm1419_vm7, %v17151_v37, %v1418_v20  ;;  %v5565_v60 = vcombine.low %v17278_v62, %v17284_v57  ;;  %v637_v14 = vsel %vm564_vm0, %v332_v28, 0.0  ;;  %v80_v20 = vld [vmem:[%s21259_s0 + $0x38] sm:$0x3]  ;;  %v17350_v57 = vpop.xlane.xlu1 %704 }
 0x245   :  { %v17293_v7 = vpop.eup %12737  ;;  %v631_v6 = vsel %vm564_vm0, %v330_v44, 0.0  ;;  %12755 = vrcp.f32 %v3133_v17  ;;  %v3139_v26 = vmax.f32 %v17259_v9, 1e-12  ;;  %v1572_v61 = vmul.f32 %v12736_v46, %v17193_v13  ;;  %638 = vadd.xlane.f32.xlu1 %v637_v14  ;;  %v13444_v17 = vld [vmem:[%s21259_s0 + $0x1c2] sm:$0x3] }
 0x246   :  { %v17302_v29 = vpop.eup %12739  ;;  %vm1573_vm9 = vcmp.eq.f32.partialorder %v17193_v13, inf  ;;  %632 = vadd.xlane.f32.xlu0 %v631_v6  ;;  %v5572_v50 = vrot.slane %v5564_v48, %v13863_v33  ;;  %v5579_v45 = vrot.slane %v5565_v60, %v13863_v33  ;;  %12757 = vrsqrt.f32 %v17291_v40  ;;  %v78_v28 = vld [vmem:[%s21259_s0 + $0x34] sm:$0x3]  ;;  %v13445_v60 = vld [vmem:[%s21259_s0 + $0x1c6] sm:$0x3] }
 0x247   :  { %v12742_v47 = vpop.eup %12741  ;;  %v17317_v9 = vmul.f32 %v13444_v17, %v17078_v25  ;;  %v1423_v46 = vsel %vm1421_vm8, %v1422_v11, %v1420_v54  ;;  %v17331_v14 = vmul.f32 %v13445_v60, %v17145_v22  ;;  %v13446_v25 = vld [vmem:[%s21259_s0 + $0x1ca] sm:$0x3]  ;;  %vm1575_vm10 = vcmp.eq.f32.partialorder %v17193_v13, 0.0 }
 0x248   :  { %v17322_v44 = vpop.eup %12743  ;;  %v1558_v48 = vmul.f32 %v12742_v47, %v17213_v35  ;;  %v17337_v6 = vmul.f32 %v13446_v25, %v17133_v39  ;;  %v5580_v37 = vcombine.low %v5572_v50, %v5579_v45  ;;  %v336_v54 = vmul.f32 %v80_v20, %v80_v20 }
 0x249   :  { %21474 = vst [vmem:[#allocation69_spill] sm:$0xff] %v17317_v9  ;;  %21475 = vst [vmem:[#allocation70_spill] sm:$0xff] %v17331_v14  ;;  %v12746_v17 = vpop.eup %12745  ;;  %v5581_v11 = vcombine.low %v21365_v55, %v17317_v9  ;;  %v1574_v22 = vsel %vm1573_vm9, %v17193_v13, %v1572_v61  ;;  %v1576_v60 = vand.u32 2147483648, %v17193_v13  ;;  %v334_v25 = vmul.f32 %v78_v28, %v78_v28  ;;  %v17362_v9 = vpop.xlane.xlu0 %698 }
 0x24a   :  { %21476 = vst [vmem:[#allocation71_spill] sm:$0xff] %v17337_v6  ;;  %v17342_v47 = vpop.eup %12747  ;;  %v5582_v39 = vcombine.low %v17331_v14, %v17337_v6  ;;  %v3137_v50 = vmax.f32 %v1423_v46, 1e-12  ;;  %vm1559_vm11 = vcmp.eq.f32.partialorder %v17213_v35, inf  ;;  %vm1561_vm12 = vcmp.eq.f32.partialorder %v17213_v35, 0.0  ;;  %11461 = vmatmul.mubr.msk.f32.gmra.mrb[12].mxu0 %vm4207_vm2, %v5580_v37 }
 0x24b   :  { %v17352_v5 = vpop.eup %12749  ;;  %v1562_v20 = vand.u32 2147483648, %v17213_v35  ;;  %v1560_v45 = vsel %vm1559_vm11, %v17213_v35, %v1558_v48  ;;  %v1600_v55 = vmul.f32 %v12746_v17, %v17229_v21  ;;  %v649_v6 = vsel %vm564_vm0, %v336_v54, 0.0  ;;  %v100_v17 = vld [vmem:[%s21259_s0 + $0x60] sm:$0x3]  ;;  %v82_v35 = vld [vmem:[%s21259_s0 + $0x3c] sm:$0x3] }
 0x24c   :  { %v12752_v61 = vpop.eup %12751  ;;  %v5596_v28 = vrot.slane %v5582_v39, %v13863_v33  ;;  %v1577_v46 = vsel %vm1575_vm10, %v1576_v60, %v1574_v22  ;;  %v5589_v14 = vrot.slane %v5581_v11, %v13863_v33  ;;  %650 = vadd.xlane.f32.xlu1 %v649_v6  ;;  %v643_v62 = vsel %vm564_vm0, %v334_v25, 0.0 }
 0x24d   :  { %12759 = vrsqrt.f32 %v17350_v57  ;;  %vm1601_vm13 = vcmp.eq.f32.partialorder %v17229_v21, inf  ;;  %vm1603_vm14 = vcmp.eq.f32.partialorder %v17229_v21, 0.0  ;;  %v1604_v48 = vand.u32 2147483648, %v17229_v21  ;;  %644 = vadd.xlane.f32.xlu0 %v643_v62  ;;  %v17386_v62 = vpop.xlane.xlu1 %764 }
 0x24e   :  { %v12754_v37 = vpop.eup %12753  ;;  %12761 = vrcp.f32 %v3139_v26  ;;  %v1563_v13 = vsel %vm1561_vm12, %v1562_v20, %v1560_v45  ;;  %vm1587_vm15 = vcmp.eq.f32.partialorder %v17241_v31, inf  ;;  %v5597_v6 = vcombine.low %v5589_v14, %v5596_v28  ;;  %v17395_v20 = vpop.xlane.xlu0 %758 }
 0x24f   :  { %12763 = vrcp.f32 %v3137_v50  ;;  %v17378_v11 = vpop.eup %12755  ;;  %v3159_v26 = vmax.f32 %v1577_v46, 1e-12  ;;  %v1602_v54 = vsel %vm1601_vm13, %v17229_v21, %v1600_v55  ;;  %v1586_v22 = vmul.f32 %v12752_v61, %v17241_v31 }
 0x250   :  { %vm1589_vm3 = vcmp.eq.f32.partialorder %v17241_v31, 0.0  ;;  %v12758_v14 = vpop.eup %12757  ;;  %v1590_v60 = vand.u32 2147483648, %v17241_v31  ;;  %v1628_v39 = vmul.f32 %v12754_v37, %v17257_v24  ;;  %vm1629_vm4 = vcmp.eq.f32.partialorder %v17257_v24, inf  ;;  %11463 = vmatprep.mubr.msk.f32.mxu0 %vm4207_vm2, %v5597_v6  ;;  %v102_v6 = vld [vmem:[%s21259_s0 + $0x64] sm:$0x3] }
 0x251   :  { %vm1631_vm5 = vcmp.eq.f32.partialorder %v17257_v24, 0.0  ;;  %v3157_v55 = vmax.f32 %v1563_v13, 1e-12  ;;  %v1632_v25 = vand.u32 2147483648, %v17257_v24  ;;  %12765 = vrsqrt.f32 %v17362_v9 }
 0x252   :  { %v356_v50 = vmul.f32 %v100_v17, %v100_v17  ;;  %v1605_v61 = vsel %vm1603_vm14, %v1604_v48, %v1602_v54  ;;  %vm1615_vm6 = vcmp.eq.f32.partialorder %v17291_v40, inf  ;;  %v338_v45 = vmul.f32 %v82_v35, %v82_v35  ;;  %v104_v48 = vld [vmem:[%s21259_s0 + $0x68] sm:$0x3]  ;;  %v13447_v54 = vld [vmem:[%s21259_s0 + $0x1ce] sm:$0x3]  ;;  %v17425_v35 = vpop.xlane.xlu1 %776 }
 0x253   :  { %12767 = vrsqrt.f32 %v17386_v62  ;;  %v1588_v28 = vsel %vm1587_vm15, %v17241_v31, %v1586_v22  ;;  %v1614_v46 = vmul.f32 %v12758_v14, %v17291_v40  ;;  %v1630_v13 = vsel %vm1629_vm4, %v17257_v24, %v1628_v39  ;;  %v108_v24 = vld [vmem:[%s21259_s0 + $0x70] sm:$0x3] }
 0x254   :  { %12769 = vrcp.f32 %v3159_v26  ;;  %v709_v37 = vsel %vm564_vm0, %v356_v50, 0.0  ;;  %vm1617_vm7 = vcmp.eq.f32.partialorder %v17291_v40, 0.0  ;;  %v655_v21 = vsel %vm564_vm0, %v338_v45, 0.0  ;;  %v13450_v45 = vld [vmem:[%s21259_s0 + $0x1da] sm:$0x3] }
 0x255   :  { %710 = vadd.xlane.f32.xlu1 %v709_v37  ;;  %12771 = vrsqrt.f32 %v17395_v20  ;;  %v3163_v17 = vmax.f32 %v1605_v61, 1e-12  ;;  %v1618_v26 = vand.u32 2147483648, %v17291_v40  ;;  %656 = vadd.xlane.f32.xlu0 %v655_v21  ;;  %v17423_v22 = vmul.f32 %v13447_v54, %v17195_v16  ;;  %v13449_v61 = vld [vmem:[%s21259_s0 + $0x1d6] sm:$0x3] }
 0x256   :  { %12773 = vrcp.f32 %v3157_v55  ;;  %v1591_v39 = vsel %vm1589_vm3, %v1590_v60, %v1588_v28  ;;  %v13448_v55 = vld [vmem:[%s21259_s0 + $0x1d2] sm:$0x3]  ;;  %v17439_v16 = vmul.f32 %v13449_v61, %v17235_v56  ;;  %v17445_v31 = vmul.f32 %v13450_v45, %v17222_v27  ;;  %v17454_v56 = vpop.xlane.xlu0 %770 }
 0x257   :  { %21477 = vst [vmem:[#allocation72_spill] sm:$0xff] %v17423_v22  ;;  %v12760_v14 = vpop.eup %12759  ;;  %v17433_v50 = vmul.f32 %v13448_v55, %v17160_v8  ;;  %v1633_v8 = vsel %vm1631_vm5, %v1632_v25, %v1630_v13  ;;  %v1616_v28 = vsel %vm1615_vm6, %v17291_v40, %v1614_v46  ;;  %v360_v37 = vmul.f32 %v104_v48, %v104_v48  ;;  %v106_v25 = vld [vmem:[%s21259_s0 + $0x6c] sm:$0x3] }
 0x258   :  { %21479 = vst [vmem:[#allocation74_spill] sm:$0xff] %v17439_v16  ;;  %21480 = vst [vmem:[#allocation75_spill] sm:$0xff] %v17445_v31  ;;  %v17447_v60 = vpop.eup %12761  ;;  %v358_v21 = vmul.f32 %v102_v6, %v102_v6  ;;  %v1656_v55 = vmul.f32 %v12760_v14, %v17350_v57  ;;  %v5599_v61 = vcombine.low %v17439_v16, %v17445_v31  ;;  %12775 = vrsqrt.f32 %v17425_v35 }
 0x259   :  { %21478 = vst [vmem:[#allocation73_spill] sm:$0xff] %v17433_v50  ;;  %v17456_v54 = vpop.eup %12763  ;;  %v5598_v27 = vcombine.low %v17423_v22, %v17433_v50  ;;  %v3161_v46 = vmax.f32 %v1591_v39, 1e-12  ;;  %vm1657_vm8 = vcmp.eq.f32.partialorder %v17350_v57, inf  ;;  %v721_v13 = vsel %vm564_vm0, %v360_v37, 0.0  ;;  %v17480_v37 = vpop.xlane.xlu1 %788 }
 0x25a   :  { %v715_v48 = vsel %vm564_vm0, %v358_v21, 0.0  ;;  %12777 = vrcp.f32 %v3163_v17  ;;  %vm1659_vm9 = vcmp.eq.f32.partialorder %v17350_v57, 0.0  ;;  %v5613_v14 = vrot.slane %v5599_v61, %v13863_v33  ;;  %722 = vadd.xlane.f32.xlu1 %v721_v13 }
 0x25b   :  { %v5606_v6 = vrot.slane %v5598_v27, %v13863_v33  ;;  %716 = vadd.xlane.f32.xlu0 %v715_v48  ;;  %v12766_v45 = vpop.eup %12765  ;;  %v3167_v31 = vmax.f32 %v1633_v8, 1e-12  ;;  %v1619_v39 = vsel %vm1617_vm7, %v1618_v26, %v1616_v28  ;;  %v1660_v50 = vand.u32 2147483648, %v17350_v57  ;;  %v17490_v26 = vpop.xlane.xlu0 %782 }
 0x25c   :  { %12779 = vrsqrt.f32 %v17454_v56  ;;  %v1658_v21 = vsel %vm1657_vm8, %v17350_v57, %v1656_v55  ;;  %v364_v61 = vmul.f32 %v108_v24, %v108_v24  ;;  %v362_v13 = vmul.f32 %v106_v25, %v106_v25 }
 0x25d   :  { %v12768_v17 = vpop.eup %12767  ;;  %v5614_v27 = vcombine.low %v5606_v6, %v5613_v14  ;;  %12781 = vrcp.f32 %v3161_v46  ;;  %vm1643_vm10 = vcmp.eq.f32.partialorder %v17362_v9, inf  ;;  %vm1645_vm11 = vcmp.eq.f32.partialorder %v17362_v9, 0.0 }
 0x25e   :  { %v17485_v48 = vpop.eup %12769  ;;  %v1646_v40 = vand.u32 2147483648, %v17362_v9  ;;  %v3165_v28 = vmax.f32 %v1619_v39, 1e-12  ;;  %v733_v55 = vsel %vm564_vm0, %v364_v61, 0.0  ;;  %v727_v24 = vsel %vm564_vm0, %v362_v13, 0.0 }
 0x25f   :  { %v12772_v8 = vpop.eup %12771  ;;  %11464 = vmatmul.mubr.msk.f32.gmra.mrb[14].mxu0 %vm4207_vm2, %v5614_v27  ;;  %12783 = vrsqrt.f32 %v17480_v37  ;;  %v1661_v46 = vsel %vm1659_vm9, %v1660_v50, %v1658_v21  ;;  %v1642_v6 = vmul.f32 %v12766_v45, %v17362_v9  ;;  %v1796_v14 = vmul.f32 %v12768_v17, %v17386_v62  ;;  %734 = vadd.xlane.f32.xlu1 %v733_v55  ;;  %v110_v45 = vld [vmem:[%s21259_s0 + $0x74] sm:$0x3]  ;;  %v13451_v27 = vld [vmem:[%s21259_s0] sm:$0x3]  ;;  %v17554_v59 = vpop.xlane.xlu0 %794 }
 0x260   :  { %v17496_v25 = vpop.eup %12773  ;;  %12785 = vrcp.f32 %v3167_v31  ;;  %728 = vadd.xlane.f32.xlu0 %v727_v24  ;;  %vm1797_vm12 = vcmp.eq.f32.partialorder %v17386_v62, inf  ;;  %vm1799_vm13 = vcmp.eq.f32.partialorder %v17386_v62, 0.0  ;;  %v1782_v39 = vmul.f32 %v12772_v8, %v17395_v20  ;;  %v112_v31 = vld [vmem:[%s21259_s0 + $0x78] sm:$0x3] }
 0x261   :  { %12787 = vrsqrt.f32 %v17490_v26  ;;  %v1800_v57 = vand.u32 2147483648, %v17386_v62  ;;  %vm1783_vm14 = vcmp.eq.f32.partialorder %v17395_v20, inf  ;;  %vm1785_vm15 = vcmp.eq.f32.partialorder %v17395_v20, 0.0 }
 0x262   :  { %v1786_v50 = vand.u32 2147483648, %v17395_v20  ;;  %v12776_v17 = vpop.eup %12775  ;;  %12789 = vrcp.f32 %v3165_v28  ;;  %v3171_v21 = vmax.f32 %v1661_v46, 1e-12  ;;  %vm1825_vm3 = vcmp.eq.f32.partialorder %v17425_v35, inf  ;;  %v13452_v28 = vld [vmem:[%s21259_s0 + $0x4] sm:$0x3]  ;;  %v17536_v46 = vpop.xlane.xlu1 %800 }
 0x263   :  { %v3382_v61 = vmul.f32 %v13451_v27, %v17302_v29  ;;  %v1644_v13 = vsel %vm1643_vm10, %v17362_v9, %v1642_v6  ;;  %v1798_v8 = vsel %vm1797_vm12, %v17386_v62, %v1796_v14  ;;  %vm1827_vm4 = vcmp.eq.f32.partialorder %v17425_v35, 0.0  ;;  %v13453_v29 = vld [vmem:[%s21259_s0 + $0x8] sm:$0x3]  ;;  %v13454_v27 = vld [vmem:[%s21259_s0 + $0xc] sm:$0x3] }
 0x264   :  { %v3386_v55 = vmul.f32 %v13452_v28, %v17293_v7  ;;  %v3390_v24 = vmul.f32 %v13453_v29, %v17342_v47  ;;  %v17538_v6 = vpop.eup %12777  ;;  %v1784_v14 = vsel %vm1783_vm14, %v17395_v20, %v1782_v39  ;;  %v3394_v7 = vmul.f32 %v13454_v27, %v17322_v44  ;;  %v132_v62 = vld [vmem:[%s21259_s0 + $0xa0] sm:$0x3] }
 0x265   :  { %v368_v28 = vmul.f32 %v112_v31, %v112_v31  ;;  %v366_v16 = vmul.f32 %v110_v45, %v110_v45  ;;  %v1824_v38 = vmul.f32 %v12776_v17, %v17425_v35  ;;  %v1828_v47 = vand.u32 2147483648, %v17425_v35 }
 0x266   :  { %v12780_v22 = vpop.eup %12779  ;;  %vm1811_vm5 = vcmp.eq.f32.partialorder %v17454_v56, inf  ;;  %v5875_v29 = vcombine.low %v3382_v61, %v3386_v55  ;;  %v1647_v53 = vsel %vm1645_vm11, %v1646_v40, %v1644_v13  ;;  %v5876_v39 = vcombine.low %v3390_v24, %v3394_v7 }
 0x267   :  { %v745_v43 = vsel %vm564_vm0, %v368_v28, 0.0  ;;  %v739_v23 = vsel %vm564_vm0, %v366_v16, 0.0  ;;  %v17556_v44 = vpop.eup %12781  ;;  %12791 = vrcp.f32 %v3171_v21  ;;  %v1801_v31 = vsel %vm1799_vm13, %v1800_v57, %v1798_v8  ;;  %v17595_v28 = vpop.xlane.xlu0 %854 }
 0x268   :  { %v1787_v45 = vsel %vm1785_vm15, %v1786_v50, %v1784_v14  ;;  %vm1813_vm6 = vcmp.eq.f32.partialorder %v17454_v56, 0.0  ;;  %746 = vadd.xlane.f32.xlu1 %v745_v43  ;;  %740 = vadd.xlane.f32.xlu0 %v739_v23  ;;  %v1810_v40 = vmul.f32 %v12780_v22, %v17454_v56  ;;  %v5883_v16 = vrot.slane %v5875_v29, %v13863_v33  ;;  %v114_v22 = vld [vmem:[%s21259_s0 + $0x7c] sm:$0x3]  ;;  %v17580_v50 = vpop.xlane.xlu1 %860 }
 0x269   :  { %v12784_v9 = vpop.eup %12783  ;;  %v5890_v17 = vrot.slane %v5876_v39, %v13863_v33  ;;  %12793 = vrsqrt.f32 %v17536_v46  ;;  %v3169_v20 = vmax.f32 %v1647_v53, 1e-12  ;;  %v1826_v23 = vsel %vm1825_vm3, %v17425_v35, %v1824_v38 }
 0x26a   :  { %v17570_v57 = vpop.eup %12785  ;;  %v1814_v43 = vand.u32 2147483648, %v17454_v56  ;;  %12795 = vrsqrt.f32 %v17554_v59  ;;  %v3191_v61 = vmax.f32 %v1801_v31, 1e-12  ;;  %v1852_v13 = vmul.f32 %v12784_v9, %v17480_v37  ;;  %v134_v9 = vld [vmem:[%s21259_s0 + $0xa4] sm:$0x3] }
 0x26b   :  { %v12788_v21 = vpop.eup %12787  ;;  %vm1853_vm7 = vcmp.eq.f32.partialorder %v17480_v37, inf  ;;  %v5891_v53 = vcombine.low %v5883_v16, %v5890_v17  ;;  %v3189_v8 = vmax.f32 %v1787_v45, 1e-12  ;;  %vm1855_vm8 = vcmp.eq.f32.partialorder %v17480_v37, 0.0  ;;  %v136_v45 = vld [vmem:[%s21259_s0 + $0xa8] sm:$0x3] }
 0x26c   :  { %v1838_v38 = vmul.f32 %v12788_v21, %v17490_v26  ;;  %v388_v55 = vmul.f32 %v132_v62, %v132_v62  ;;  %v17586_v24 = vpop.eup %12789  ;;  %v1829_v14 = vsel %vm1827_vm4, %v1828_v47, %v1826_v23  ;;  %v1812_v27 = vsel %vm1811_vm5, %v17454_v56, %v1810_v40  ;;  %v17614_v62 = vpop.xlane.xlu1 %872 }
 0x26d   :  { %11468 = vmatprep.mubr.msk.f32.mxu0 %vm4207_vm2, %v5891_v53  ;;  %v370_v7 = vmul.f32 %v114_v22, %v114_v22  ;;  %12797 = vrsqrt.f32 %v17580_v50  ;;  %v1856_v29 = vand.u32 2147483648, %v17480_v37  ;;  %vm1839_vm9 = vcmp.eq.f32.partialorder %v17490_v26, inf  ;;  %v13456_v22 = vld [vmem:[%s21259_s0 + $0x14] sm:$0x3] }
 0x26e   :  { %12799 = vrcp.f32 %v3169_v20  ;;  %v805_v39 = vsel %vm564_vm0, %v388_v55, 0.0  ;;  %v1854_v35 = vsel %vm1853_vm7, %v17480_v37, %v1852_v13  ;;  %v1842_v47 = vand.u32 2147483648, %v17490_v26  ;;  %v13455_v20 = vld [vmem:[%s21259_s0 + $0x10] sm:$0x3] }
 0x26f   :  { %12801 = vrcp.f32 %v3191_v61  ;;  %806 = vadd.xlane.f32.xlu1 %v805_v39  ;;  %v751_v31 = vsel %vm564_vm0, %v370_v7, 0.0  ;;  %v3195_v40 = vmax.f32 %v1829_v14, 1e-12  ;;  %v1815_v16 = vsel %vm1813_vm6, %v1814_v43, %v1812_v27  ;;  %v13457_v43 = vld [vmem:[%s21259_s0 + $0x18] sm:$0x3] }
 0x270   :  { %12803 = vrcp.f32 %v3189_v8  ;;  %v1840_v17 = vsel %vm1839_vm9, %v17490_v26, %v1838_v38  ;;  %752 = vadd.xlane.f32.xlu0 %v751_v31  ;;  %v3398_v23 = vmul.f32 %v13455_v20, %v17378_v11  ;;  %v3402_v56 = vmul.f32 %v13456_v22, %v17352_v5  ;;  %v13458_v11 = vld [vmem:[%s21259_s0 + $0x1c] sm:$0x3]  ;;  %v17658_v20 = vpop.xlane.xlu1 %884 }
 0x271   :  { %12805 = vrsqrt.f32 %v17595_v28  ;;  %v3406_v21 = vmul.f32 %v13457_v43, %v17456_v54  ;;  %v17629_v61 = vpop.eup %12791  ;;  %v1857_v13 = vsel %vm1855_vm8, %v1856_v29, %v1854_v35  ;;  %v3410_v53 = vmul.f32 %v13458_v11, %v17447_v60  ;;  %v17639_v54 = vpop.xlane.xlu0 %866 }
 0x272   :  { %v392_v8 = vmul.f32 %v136_v45, %v136_v45  ;;  %v390_v38 = vmul.f32 %v134_v9, %v134_v9  ;;  %v3193_v55 = vmax.f32 %v1815_v16, 1e-12  ;;  %vm1841_vm10 = vcmp.eq.f32.partialorder %v17490_v26, 0.0  ;;  %v140_v26 = vld [vmem:[%s21259_s0 + $0xb0] sm:$0x3] }
 0x273   :  { %v12794_v5 = vpop.eup %12793  ;;  %v5892_v14 = vcombine.low %v3398_v23, %v3402_v56  ;;  %12807 = vrsqrt.f32 %v17614_v62  ;;  %v1843_v37 = vsel %vm1841_vm10, %v1842_v47, %v1840_v17  ;;  %v5893_v7 = vcombine.low %v3406_v21, %v3410_v53  ;;  %v138_v45 = vld [vmem:[%s21259_s0 + $0xac] sm:$0x3] }
 0x274   :  { %v12796_v27 = vpop.eup %12795  ;;  %v817_v29 = vsel %vm564_vm0, %v392_v8, 0.0  ;;  %v811_v39 = vsel %vm564_vm0, %v390_v38, 0.0  ;;  %12809 = vrcp.f32 %v3195_v40  ;;  %v3199_v60 = vmax.f32 %v1857_v13, 1e-12 }
 0x275   :  { %vm1881_vm11 = vcmp.eq.f32.partialorder %v17536_v46, inf  ;;  %vm1883_vm12 = vcmp.eq.f32.partialorder %v17536_v46, 0.0  ;;  %818 = vadd.xlane.f32.xlu1 %v817_v29  ;;  %812 = vadd.xlane.f32.xlu0 %v811_v39  ;;  %v1880_v35 = vmul.f32 %v12794_v5, %v17536_v46  ;;  %v5900_v47 = vrot.slane %v5892_v14, %v13863_v33  ;;  %v17667_v11 = vpop.xlane.xlu0 %878  ;;  %v144_v29 = vld [vmem:[%s21259_s0 + $0xb8] sm:$0x3] }
 0x276   :  { %v5907_v31 = vrot.slane %v5893_v7, %v13863_v33  ;;  %12811 = vrsqrt.f32 %v17639_v54  ;;  %v3197_v40 = vmax.f32 %v1843_v37, 1e-12  ;;  %v1884_v16 = vand.u32 2147483648, %v17536_v46 }
 0x277   :  { %v12798_v9 = vpop.eup %12797  ;;  %v1866_v17 = vmul.f32 %v12796_v27, %v17554_v59  ;;  %vm1867_vm13 = vcmp.eq.f32.partialorder %v17554_v59, inf  ;;  %12813 = vrcp.f32 %v3193_v55  ;;  %vm1869_vm14 = vcmp.eq.f32.partialorder %v17554_v59, 0.0 }
 0x278   :  { %v17660_v23 = vpop.eup %12799  ;;  %v5908_v22 = vcombine.low %v5900_v47, %v5907_v31  ;;  %v396_v56 = vmul.f32 %v140_v26, %v140_v26  ;;  %12815 = vrcp.f32 %v3199_v60  ;;  %v1870_v21 = vand.u32 2147483648, %v17554_v59 }
 0x279   :  { %v17663_v43 = vpop.eup %12801  ;;  %vm2021_vm15 = vcmp.eq.f32.partialorder %v17580_v50, inf  ;;  %v394_v13 = vmul.f32 %v138_v45, %v138_v45  ;;  %v1882_v8 = vsel %vm1881_vm11, %v17536_v46, %v1880_v35  ;;  %v2020_v38 = vmul.f32 %v12798_v9, %v17580_v50  ;;  %v142_v35 = vld [vmem:[%s21259_s0 + $0xb4] sm:$0x3]  ;;  %v13459_v45 = vld [vmem:[%s21259_s0 + $0x40] sm:$0x3] }
 0x27a   :  { %v17669_v53 = vpop.eup %12803  ;;  %11469 = vmatmul.mubr.msk.f32.vlgmr.msra.gmra.mrb[0].mxu0 %vm4207_vm2, %v5908_v22  ;;  %v829_v5 = vsel %vm564_vm0, %v396_v56, 0.0  ;;  %12817 = vrsqrt.f32 %v17658_v20  ;;  %v1868_v14 = vsel %vm1867_vm13, %v17554_v59, %v1866_v17  ;;  %vm2023_vm3 = vcmp.eq.f32.partialorder %v17580_v50, 0.0  ;;  %v13460_v59 = vld [vmem:[%s21259_s0 + $0x44] sm:$0x3]  ;;  %v13461_v17 = vld [vmem:[%s21259_s0 + $0x48] sm:$0x3] }
 0x27b   :  { %v12806_v55 = vpop.eup %12805  ;;  %12819 = vrcp.f32 %v3197_v40  ;;  %830 = vadd.xlane.f32.xlu1 %v829_v5  ;;  %v823_v27 = vsel %vm564_vm0, %v394_v13, 0.0  ;;  %v2024_v37 = vand.u32 2147483648, %v17580_v50  ;;  %vm2007_vm4 = vcmp.eq.f32.partialorder %v17595_v28, inf  ;;  %v13462_v56 = vld [vmem:[%s21259_s0 + $0x4c] sm:$0x3]  ;;  %v17724_v13 = vpop.xlane.xlu1 %896 }
 0x27c   :  { %v2010_v7 = vand.u32 2147483648, %v17595_v28  ;;  %824 = vadd.xlane.f32.xlu0 %v823_v27  ;;  %12821 = vrsqrt.f32 %v17667_v11  ;;  %v1885_v60 = vsel %vm1883_vm12, %v1884_v16, %v1882_v8  ;;  %vm2009_vm5 = vcmp.eq.f32.partialorder %v17595_v28, 0.0 }
 0x27d   :  { %v12808_v39 = vpop.eup %12807  ;;  %vm2049_vm6 = vcmp.eq.f32.partialorder %v17614_v62, inf  ;;  %v2052_v26 = vand.u32 2147483648, %v17614_v62  ;;  %vm2035_vm7 = vcmp.eq.f32.partialorder %v17639_v54, inf  ;;  %v1871_v47 = vsel %vm1869_vm14, %v1870_v21, %v1868_v14 }
 0x27e   :  { %v2022_v46 = vsel %vm2021_vm15, %v17580_v50, %v2020_v38  ;;  %v2006_v31 = vmul.f32 %v12806_v55, %v17595_v28  ;;  %vm2051_vm8 = vcmp.eq.f32.partialorder %v17614_v62, 0.0  ;;  %v3446_v9 = vmul.f32 %v13459_v45, %v17496_v25  ;;  %v17710_v40 = vpop.eup %12809  ;;  %v17729_v45 = vpop.xlane.xlu0 %890  ;;  %v164_v50 = vld [vmem:[%s21259_s0 + $0xe0] sm:$0x3] }
 0x27f   :  { %v3450_v16 = vmul.f32 %v13460_v59, %v17485_v48  ;;  %v3454_v22 = vmul.f32 %v13461_v17, %v17556_v44  ;;  %v3458_v25 = vmul.f32 %v13462_v56, %v17538_v6  ;;  %v400_v21 = vmul.f32 %v144_v29, %v144_v29 }
 0x280   :  { %v12812_v8 = vpop.eup %12811  ;;  %v3203_v38 = vmax.f32 %v1885_v60, 1e-12  ;;  %v2048_v5 = vmul.f32 %v12808_v39, %v17614_v62  ;;  %vm2037_vm9 = vcmp.eq.f32.partialorder %v17639_v54, 0.0  ;;  %v398_v48 = vmul.f32 %v142_v35, %v142_v35 }
 0x281   :  { %v3201_v55 = vmax.f32 %v1871_v47, 1e-12  ;;  %v2034_v14 = vmul.f32 %v12812_v8, %v17639_v54  ;;  %v5909_v44 = vcombine.low %v3446_v9, %v3450_v16  ;;  %v5910_v27 = vcombine.low %v3454_v22, %v3458_v25  ;;  %v17731_v59 = vpop.eup %12813  ;;  %v17763_v8 = vpop.xlane.xlu1 %956 }
 0x282   :  { %v2025_v6 = vsel %vm2023_vm3, %v2024_v37, %v2022_v46  ;;  %v841_v29 = vsel %vm564_vm0, %v400_v21, 0.0  ;;  %v835_v60 = vsel %vm564_vm0, %v398_v48, 0.0  ;;  %12823 = vrsqrt.f32 %v17724_v13  ;;  %v17738_v39 = vpop.eup %12815  ;;  %v146_v37 = vld [vmem:[%s21259_s0 + $0xbc] sm:$0x3] }
 0x283   :  { %v2008_v35 = vsel %vm2007_vm4, %v17595_v28, %v2006_v31  ;;  %v2038_v47 = vand.u32 2147483648, %v17639_v54  ;;  %v5917_v9 = vrot.slane %v5909_v44, %v13863_v33  ;;  %v5924_v16 = vrot.slane %v5910_v27, %v13863_v33  ;;  %842 = vadd.xlane.f32.xlu1 %v841_v29  ;;  %836 = vadd.xlane.f32.xlu0 %v835_v60  ;;  %v168_v29 = vld [vmem:[%s21259_s0 + $0xe8] sm:$0x3] }
 0x284   :  { %v12818_v46 = vpop.eup %12817  ;;  %12825 = vrcp.f32 %v3203_v38  ;;  %v2050_v31 = vsel %vm2049_vm6, %v17614_v62, %v2048_v5  ;;  %v2036_v17 = vsel %vm2035_vm7, %v17639_v54, %v2034_v14  ;;  %vm2077_vm10 = vcmp.eq.f32.partialorder %v17658_v20, inf }
 0x285   :  { %v17759_v22 = vpop.eup %12819  ;;  %v3223_v56 = vmax.f32 %v2025_v6, 1e-12  ;;  %v2076_v25 = vmul.f32 %v12818_v46, %v17658_v20  ;;  %v5925_v21 = vcombine.low %v5917_v9, %v5924_v16  ;;  %12827 = vrsqrt.f32 %v17729_v45 }
 0x286   :  { %v12822_v38 = vpop.eup %12821  ;;  %12829 = vrcp.f32 %v3201_v55  ;;  %v2011_v5 = vsel %vm2009_vm5, %v2010_v7, %v2008_v35  ;;  %v420_v48 = vmul.f32 %v164_v50, %v164_v50  ;;  %v402_v14 = vmul.f32 %v146_v37, %v146_v37  ;;  %v17776_v55 = vpop.xlane.xlu0 %950  ;;  %v13463_v37 = vld [vmem:[%s21259_s0 + $0x50] sm:$0x3] }
 0x287   :  { %v2053_v44 = vsel %vm2051_vm8, %v2052_v26, %v2050_v31  ;;  %v2039_v27 = vsel %vm2037_vm9, %v2038_v47, %v2036_v17  ;;  %vm2079_vm11 = vcmp.eq.f32.partialorder %v17658_v20, 0.0  ;;  %v2062_v6 = vmul.f32 %v12822_v38, %v17667_v11  ;;  %11471 = vmatprep.mubr.msk.f32.mxu0 %vm4207_vm2, %v5925_v21  ;;  %v166_v47 = vld [vmem:[%s21259_s0 + $0xe4] sm:$0x3]  ;;  %v17802_v31 = vpop.xlane.xlu1 %968  ;;  %v13466_v38 = vld [vmem:[%s21259_s0 + $0x5c] sm:$0x3] }
 0x288   :  { %v2078_v28 = vsel %vm2077_vm10, %v17658_v20, %v2076_v25  ;;  %v901_v7 = vsel %vm564_vm0, %v420_v48, 0.0  ;;  %v847_v62 = vsel %vm564_vm0, %v402_v14, 0.0  ;;  %12831 = vrsqrt.f32 %v17763_v8 }
 0x289   :  { %12833 = vrcp.f32 %v3223_v56  ;;  %v3221_v54 = vmax.f32 %v2011_v5, 1e-12  ;;  %v2080_v26 = vand.u32 2147483648, %v17658_v20  ;;  %vm2063_vm12 = vcmp.eq.f32.partialorder %v17667_v11, inf  ;;  %902 = vadd.xlane.f32.xlu1 %v901_v7  ;;  %848 = vadd.xlane.f32.xlu0 %v847_v62  ;;  %v13464_v56 = vld [vmem:[%s21259_s0 + $0x54] sm:$0x3] }
 0x28a   :  { %v2064_v60 = vsel %vm2063_vm12, %v17667_v11, %v2062_v6  ;;  %vm2065_vm13 = vcmp.eq.f32.partialorder %v17667_v11, 0.0  ;;  %v2066_v35 = vand.u32 2147483648, %v17667_v11  ;;  %12835 = vrsqrt.f32 %v17776_v55  ;;  %v13465_v20 = vld [vmem:[%s21259_s0 + $0x58] sm:$0x3]  ;;  %v172_v62 = vld [vmem:[%s21259_s0 + $0xf0] sm:$0x3] }
 0x28b   :  { %v3227_v9 = vmax.f32 %v2053_v44, 1e-12  ;;  %v3225_v16 = vmax.f32 %v2039_v27, 1e-12  ;;  %v2081_v50 = vsel %vm2079_vm11, %v2080_v26, %v2078_v28  ;;  %v3462_v46 = vmul.f32 %v13463_v37, %v17586_v24  ;;  %v17823_v28 = vpop.xlane.xlu0 %962 }
 0x28c   :  { %v12824_v17 = vpop.eup %12823  ;;  %v3466_v25 = vmul.f32 %v13464_v56, %v17570_v57  ;;  %v3470_v21 = vmul.f32 %v13465_v20, %v17660_v23  ;;  %v3474_v24 = vmul.f32 %v13466_v38, %v17629_v61  ;;  %v424_v5 = vmul.f32 %v168_v29, %v168_v29 }
 0x28d   :  { %12837 = vrcp.f32 %v3221_v54  ;;  %v2067_v48 = vsel %vm2065_vm13, %v2066_v35, %v2064_v60  ;;  %v2104_v14 = vmul.f32 %v12824_v17, %v17724_v13  ;;  %v422_v57 = vmul.f32 %v166_v47, %v166_v47  ;;  %v170_v60 = vld [vmem:[%s21259_s0 + $0xec] sm:$0x3] }
 0x28e   :  { %v17819_v44 = vpop.eup %12825  ;;  %v5926_v27 = vcombine.low %v3462_v46, %v3466_v25  ;;  %v5927_v6 = vcombine.low %v3470_v21, %v3474_v24  ;;  %v913_v23 = vsel %vm564_vm0, %v424_v5, 0.0  ;;  %12839 = vrsqrt.f32 %v17802_v31 }
 0x28f   :  { %v12828_v7 = vpop.eup %12827  ;;  %12841 = vrcp.f32 %v3227_v9  ;;  %v3231_v61 = vmax.f32 %v2081_v50, 1e-12  ;;  %914 = vadd.xlane.f32.xlu1 %v913_v23  ;;  %v907_v11 = vsel %vm564_vm0, %v422_v57, 0.0  ;;  %vm2105_vm14 = vcmp.eq.f32.partialorder %v17724_v13, inf  ;;  %v17840_v9 = vpop.xlane.xlu1 %980 }
 0x290   :  { %v17829_v54 = vpop.eup %12829  ;;  %12843 = vrcp.f32 %v3225_v16  ;;  %v5934_v26 = vrot.slane %v5926_v27, %v13863_v33  ;;  %v5941_v29 = vrot.slane %v5927_v6, %v13863_v33  ;;  %908 = vadd.xlane.f32.xlu0 %v907_v11  ;;  %v3229_v35 = vmax.f32 %v2067_v48, 1e-12  ;;  %v17853_v24 = vpop.xlane.xlu0 %974 }
 0x291   :  { %vm2107_vm15 = vcmp.eq.f32.partialorder %v17724_v13, 0.0  ;;  %v2108_v47 = vand.u32 2147483648, %v17724_v13  ;;  %12845 = vrsqrt.f32 %v17823_v28  ;;  %v2106_v50 = vsel %vm2105_vm14, %v17724_v13, %v2104_v14  ;;  %v176_v13 = vld [vmem:[%s21259_s0 + $0xf8] sm:$0x3] }
 0x292   :  { %v12832_v16 = vpop.eup %12831  ;;  %v2090_v37 = vmul.f32 %v12828_v7, %v17729_v45  ;;  %v5942_v46 = vcombine.low %v5934_v26, %v5941_v29  ;;  %v428_v17 = vmul.f32 %v172_v62, %v172_v62  ;;  %12847 = vrcp.f32 %v3231_v61  ;;  %v174_v61 = vld [vmem:[%s21259_s0 + $0xf4] sm:$0x3]  ;;  %v13467_v26 = vld [vmem:[%s21259_s0 + $0x80] sm:$0x3] }
 0x293   :  { %v17844_v56 = vpop.eup %12833  ;;  %vm2091_vm3 = vcmp.eq.f32.partialorder %v17729_v45, inf  ;;  %vm2093_vm4 = vcmp.eq.f32.partialorder %v17729_v45, 0.0  ;;  %v426_v25 = vmul.f32 %v170_v60, %v170_v60  ;;  %v2094_v21 = vand.u32 2147483648, %v17729_v45  ;;  %v13468_v60 = vld [vmem:[%s21259_s0 + $0x84] sm:$0x3] }
 0x294   :  { %v12836_v20 = vpop.eup %12835  ;;  %vm2245_vm5 = vcmp.eq.f32.partialorder %v17763_v8, inf  ;;  %11472 = vmatmul.mubr.msk.f32.gmra.mrb[2].mxu0 %vm4207_vm2, %v5942_v46  ;;  %v925_v38 = vsel %vm564_vm0, %v428_v17, 0.0  ;;  %12849 = vrsqrt.f32 %v17840_v9  ;;  %v2109_v5 = vsel %vm2107_vm15, %v2108_v47, %v2106_v50  ;;  %v17886_v47 = vpop.xlane.xlu1 %992 }
 0x295   :  { %v2244_v48 = vmul.f32 %v12832_v16, %v17763_v8  ;;  %v2230_v14 = vmul.f32 %v12836_v20, %v17776_v55  ;;  %926 = vadd.xlane.f32.xlu1 %v925_v38  ;;  %v919_v57 = vsel %vm564_vm0, %v426_v25, 0.0  ;;  %12851 = vrcp.f32 %v3229_v35 }
 0x296   :  { %v2092_v27 = vsel %vm2091_vm3, %v17729_v45, %v2090_v37  ;;  %vm2247_vm6 = vcmp.eq.f32.partialorder %v17763_v8, 0.0  ;;  %v2248_v6 = vand.u32 2147483648, %v17763_v8  ;;  %920 = vadd.xlane.f32.xlu0 %v919_v57  ;;  %vm2231_vm7 = vcmp.eq.f32.partialorder %v17776_v55, inf  ;;  %v13470_v45 = vld [vmem:[%s21259_s0 + $0x8c] sm:$0x3]  ;;  %v17913_v57 = vpop.xlane.xlu0 %986 }
 0x297   :  { %v17868_v23 = vpop.eup %12837  ;;  %vm2233_vm8 = vcmp.eq.f32.partialorder %v17776_v55, 0.0  ;;  %v2234_v7 = vand.u32 2147483648, %v17776_v55  ;;  %12853 = vrsqrt.f32 %v17853_v24  ;;  %v3235_v62 = vmax.f32 %v2109_v5, 1e-12 }
 0x298   :  { %v12840_v11 = vpop.eup %12839  ;;  %vm2273_vm9 = vcmp.eq.f32.partialorder %v17802_v31, inf  ;;  %v3510_v29 = vmul.f32 %v13467_v26, %v17669_v53  ;;  %v3514_v35 = vmul.f32 %v13468_v60, %v17663_v43  ;;  %v2095_v50 = vsel %vm2093_vm4, %v2094_v21, %v2092_v27  ;;  %v13469_v43 = vld [vmem:[%s21259_s0 + $0x88] sm:$0x3] }
 0x299   :  { %v17888_v16 = vpop.eup %12841  ;;  %v2246_v37 = vsel %vm2245_vm5, %v17763_v8, %v2244_v48  ;;  %v2232_v53 = vsel %vm2231_vm7, %v17776_v55, %v2230_v14  ;;  %vm2275_vm10 = vcmp.eq.f32.partialorder %v17802_v31, 0.0  ;;  %v3518_v46 = vmul.f32 %v13469_v43, %v17731_v59  ;;  %v196_v55 = vld [vmem:[%s21259_s0 + $0x120] sm:$0x3] }
 0x29a   :  { %v17903_v17 = vpop.eup %12843  ;;  %v3522_v25 = vmul.f32 %v13470_v45, %v17710_v40  ;;  %v5943_v20 = vcombine.low %v3510_v29, %v3514_v35  ;;  %v432_v21 = vmul.f32 %v176_v13, %v176_v13  ;;  %v430_v38 = vmul.f32 %v174_v61, %v174_v61  ;;  %v17935_v35 = vpop.xlane.xlu1 %1052 }
 0x29b   :  { %v12846_v5 = vpop.eup %12845  ;;  %v2272_v48 = vmul.f32 %v12840_v11, %v17802_v31  ;;  %v2276_v14 = vand.u32 2147483648, %v17802_v31  ;;  %vm2259_vm11 = vcmp.eq.f32.partialorder %v17823_v28, inf  ;;  %v2262_v59 = vand.u32 2147483648, %v17823_v28 }
 0x29c   :  { %12855 = vrcp.f32 %v3235_v62  ;;  %v3233_v27 = vmax.f32 %v2095_v50, 1e-12  ;;  %v2249_v26 = vsel %vm2247_vm6, %v2248_v6, %v2246_v37  ;;  %vm2261_vm12 = vcmp.eq.f32.partialorder %v17823_v28, 0.0  ;;  %v17918_v13 = vpop.eup %12847 }
 0x29d   :  { %v5944_v40 = vcombine.low %v3518_v46, %v3522_v25  ;;  %v2235_v61 = vsel %vm2233_vm8, %v2234_v7, %v2232_v53  ;;  %v937_v11 = vsel %vm564_vm0, %v432_v21, 0.0  ;;  %v931_v29 = vsel %vm564_vm0, %v430_v38, 0.0  ;;  %v178_v7 = vld [vmem:[%s21259_s0 + $0xfc] sm:$0x3] }
 0x29e   :  { %12857 = vrsqrt.f32 %v17886_v47  ;;  %v12850_v60 = vpop.eup %12849  ;;  %v2258_v62 = vmul.f32 %v12846_v5, %v17823_v28  ;;  %v5951_v8 = vrot.slane %v5943_v20, %v13863_v33  ;;  %938 = vadd.xlane.f32.xlu1 %v937_v11  ;;  %932 = vadd.xlane.f32.xlu0 %v931_v29  ;;  %v3255_v50 = vmax.f32 %v2249_v26, 1e-12  ;;  %v17947_v5 = vpop.xlane.xlu0 %1046  ;;  %v200_v29 = vld [vmem:[%s21259_s0 + $0x128] sm:$0x3] }
 0x29f   :  { %v5958_v6 = vrot.slane %v5944_v40, %v13863_v33  ;;  %12859 = vrsqrt.f32 %v17913_v57  ;;  %v2274_v37 = vsel %vm2273_vm9, %v17802_v31, %v2272_v48  ;;  %v2300_v53 = vmul.f32 %v12850_v60, %v17840_v9  ;;  %v17942_v43 = vpop.eup %12851  ;;  %v198_v60 = vld [vmem:[%s21259_s0 + $0x124] sm:$0x3] }
 0x2a0   :  { %vm2301_vm13 = vcmp.eq.f32.partialorder %v17840_v9, inf  ;;  %12861 = vrcp.f32 %v3233_v27  ;;  %vm2303_vm14 = vcmp.eq.f32.partialorder %v17840_v9, 0.0  ;;  %v2304_v46 = vand.u32 2147483648, %v17840_v9 }
 0x2a1   :  { %v5959_v45 = vcombine.low %v5951_v8, %v5958_v6  ;;  %v12854_v25 = vpop.eup %12853  ;;  %v3253_v20 = vmax.f32 %v2235_v61, 1e-12  ;;  %v452_v21 = vmul.f32 %v196_v55, %v196_v55  ;;  %v434_v38 = vmul.f32 %v178_v7, %v178_v7 }
 0x2a2   :  { %12863 = vrsqrt.f32 %v17935_v35  ;;  %v2277_v48 = vsel %vm2275_vm10, %v2276_v14, %v2274_v37  ;;  %v2260_v27 = vsel %vm2259_vm11, %v17823_v28, %v2258_v62  ;;  %v2302_v26 = vsel %vm2301_vm13, %v17840_v9, %v2300_v53  ;;  %v17970_v62 = vpop.xlane.xlu1 %1064  ;;  %v13472_v53 = vld [vmem:[%s21259_s0 + $0x94] sm:$0x3]  ;;  %v13473_v28 = vld [vmem:[%s21259_s0 + $0x98] sm:$0x3] }
 0x2a3   :  { %v2286_v40 = vmul.f32 %v12854_v25, %v17853_v24  ;;  %11474 = vmatprep.mubr.msk.f32.mxu0 %vm4207_vm2, %v5959_v45  ;;  %12865 = vrcp.f32 %v3255_v50  ;;  %vm2287_vm15 = vcmp.eq.f32.partialorder %v17853_v24, inf  ;;  %v997_v61 = vsel %vm564_vm0, %v452_v21, 0.0  ;;  %v13471_v50 = vld [vmem:[%s21259_s0 + $0x90] sm:$0x3] }
 0x2a4   :  { %v943_v11 = vsel %vm564_vm0, %v434_v38, 0.0  ;;  %vm2289_vm3 = vcmp.eq.f32.partialorder %v17853_v24, 0.0  ;;  %v2290_v14 = vand.u32 2147483648, %v17853_v24  ;;  %998 = vadd.xlane.f32.xlu1 %v997_v61  ;;  %12867 = vrsqrt.f32 %v17947_v5 }
 0x2a5   :  { %v2288_v31 = vsel %vm2287_vm15, %v17853_v24, %v2286_v40  ;;  %944 = vadd.xlane.f32.xlu0 %v943_v11  ;;  %12869 = vrcp.f32 %v3253_v20  ;;  %v3259_v8 = vmax.f32 %v2277_v48, 1e-12  ;;  %v2263_v6 = vsel %vm2261_vm12, %v2262_v59, %v2260_v27 }
 0x2a6   :  { %v2305_v24 = vsel %vm2303_vm14, %v2304_v46, %v2302_v26  ;;  %v17976_v55 = vpop.eup %12855  ;;  %v2291_v7 = vsel %vm2289_vm3, %v2290_v14, %v2288_v31  ;;  %v3526_v37 = vmul.f32 %v13471_v50, %v17759_v22  ;;  %v3530_v45 = vmul.f32 %v13472_v53, %v17738_v39  ;;  %v13474_v46 = vld [vmem:[%s21259_s0 + $0x9c] sm:$0x3]  ;;  %v204_v50 = vld [vmem:[%s21259_s0 + $0x130] sm:$0x3] }
 0x2a7   :  { %v3534_v9 = vmul.f32 %v13473_v28, %v17829_v54  ;;  %v3538_v25 = vmul.f32 %v13474_v46, %v17819_v44  ;;  %v456_v22 = vmul.f32 %v200_v29, %v200_v29  ;;  %v454_v20 = vmul.f32 %v198_v60, %v198_v60  ;;  %v17998_v54 = vpop.xlane.xlu0 %1058 }
 0x2a8   :  { %v12858_v59 = vpop.eup %12857  ;;  %12871 = vrsqrt.f32 %v17970_v62  ;;  %vm2329_vm4 = vcmp.eq.f32.partialorder %v17886_v47, inf  ;;  %vm2331_vm5 = vcmp.eq.f32.partialorder %v17886_v47, 0.0  ;;  %v5960_v38 = vcombine.low %v3526_v37, %v3530_v45  ;;  %v18025_v45 = vpop.xlane.xlu1 %1076 }
 0x2a9   :  { %v12860_v21 = vpop.eup %12859  ;;  %v2328_v39 = vmul.f32 %v12858_v59, %v17886_v47  ;;  %v3257_v48 = vmax.f32 %v2263_v6, 1e-12  ;;  %v5961_v27 = vcombine.low %v3534_v9, %v3538_v25  ;;  %v1009_v26 = vsel %vm564_vm0, %v456_v22, 0.0 }
 0x2aa   :  { %v1003_v44 = vsel %vm564_vm0, %v454_v20, 0.0  ;;  %v18002_v40 = vpop.eup %12861  ;;  %12873 = vrcp.f32 %v3259_v8  ;;  %v3263_v61 = vmax.f32 %v2305_v24, 1e-12  ;;  %v3261_v11 = vmax.f32 %v2291_v7, 1e-12  ;;  %1010 = vadd.xlane.f32.xlu1 %v1009_v26 }
 0x2ab   :  { %v2332_v31 = vand.u32 2147483648, %v17886_v47  ;;  %1004 = vadd.xlane.f32.xlu0 %v1003_v44  ;;  %v2314_v29 = vmul.f32 %v12860_v21, %v17913_v57  ;;  %v5968_v60 = vrot.slane %v5960_v38, %v13863_v33  ;;  %v5975_v6 = vrot.slane %v5961_v27, %v13863_v33  ;;  %v202_v8 = vld [vmem:[%s21259_s0 + $0x12c] sm:$0x3]  ;;  %v18028_v25 = vpop.xlane.xlu0 %1070  ;;  %v208_v44 = vld [vmem:[%s21259_s0 + $0x138] sm:$0x3] }
 0x2ac   :  { %v12864_v14 = vpop.eup %12863  ;;  %12875 = vrsqrt.f32 %v17998_v54  ;;  %v2330_v24 = vsel %vm2329_vm4, %v17886_v47, %v2328_v39  ;;  %vm2315_vm6 = vcmp.eq.f32.partialorder %v17913_v57, inf  ;;  %vm2317_vm7 = vcmp.eq.f32.partialorder %v17913_v57, 0.0 }
 0x2ad   :  { %v2318_v7 = vand.u32 2147483648, %v17913_v57  ;;  %v18021_v37 = vpop.eup %12865  ;;  %12877 = vrcp.f32 %v3257_v48  ;;  %vm2469_vm8 = vcmp.eq.f32.partialorder %v17935_v35, inf  ;;  %vm2471_vm9 = vcmp.eq.f32.partialorder %v17935_v35, 0.0 }
 0x2ae   :  { %v5976_v53 = vcombine.low %v5968_v60, %v5975_v6  ;;  %v12868_v28 = vpop.eup %12867  ;;  %12879 = vrcp.f32 %v3263_v61  ;;  %v2468_v9 = vmul.f32 %v12864_v14, %v17935_v35  ;;  %v460_v59 = vmul.f32 %v204_v50, %v204_v50  ;;  %v206_v14 = vld [vmem:[%s21259_s0 + $0x134] sm:$0x3] }
 0x2af   :  { %v458_v46 = vmul.f32 %v202_v8, %v202_v8  ;;  %v18030_v22 = vpop.eup %12869  ;;  %12881 = vrcp.f32 %v3261_v11  ;;  %v2333_v20 = vsel %vm2331_vm5, %v2332_v31, %v2330_v24  ;;  %v2316_v21 = vsel %vm2315_vm6, %v17913_v57, %v2314_v29  ;;  %v13475_v57 = vld [vmem:[%s21259_s0 + $0xc0] sm:$0x3]  ;;  %v13476_v24 = vld [vmem:[%s21259_s0 + $0xc4] sm:$0x3] }
 0x2b0   :  { %v2454_v39 = vmul.f32 %v12868_v28, %v17947_v5  ;;  %11475 = vmatmul.mubr.msk.f32.gmra.mrb[4].mxu0 %vm4207_vm2, %v5976_v53  ;;  %v2472_v38 = vand.u32 2147483648, %v17935_v35  ;;  %v1021_v48 = vsel %vm564_vm0, %v460_v59, 0.0  ;;  %12883 = vrsqrt.f32 %v18025_v45  ;;  %v13477_v53 = vld [vmem:[%s21259_s0 + $0xc8] sm:$0x3]  ;;  %v18081_v59 = vpop.xlane.xlu1 %1088 }
 0x2b1   :  { %v1015_v27 = vsel %vm564_vm0, %v458_v46, 0.0  ;;  %vm2455_vm10 = vcmp.eq.f32.partialorder %v17947_v5, inf  ;;  %vm2457_vm11 = vcmp.eq.f32.partialorder %v17947_v5, 0.0  ;;  %v2458_v47 = vand.u32 2147483648, %v17947_v5  ;;  %1022 = vadd.xlane.f32.xlu1 %v1021_v48  ;;  %v18085_v48 = vpop.xlane.xlu0 %1082 }
 0x2b2   :  { %v12872_v26 = vpop.eup %12871  ;;  %1016 = vadd.xlane.f32.xlu0 %v1015_v27  ;;  %12885 = vrsqrt.f32 %v18028_v25  ;;  %v3267_v61 = vmax.f32 %v2333_v20, 1e-12  ;;  %v2319_v11 = vsel %vm2317_vm7, %v2318_v7, %v2316_v21  ;;  %v2470_v31 = vsel %vm2469_vm8, %v17935_v35, %v2468_v9 }
 0x2b3   :  { %vm2497_vm12 = vcmp.eq.f32.partialorder %v17970_v62, inf  ;;  %v2456_v29 = vsel %vm2455_vm10, %v17947_v5, %v2454_v39  ;;  %v2496_v60 = vmul.f32 %v12872_v26, %v17970_v62  ;;  %vm2499_vm13 = vcmp.eq.f32.partialorder %v17970_v62, 0.0 }
 0x2b4   :  { %v3574_v6 = vmul.f32 %v13475_v57, %v17868_v23  ;;  %v18066_v50 = vpop.eup %12873  ;;  %v2500_v8 = vand.u32 2147483648, %v17970_v62  ;;  %v3578_v7 = vmul.f32 %v13476_v24, %v17844_v56  ;;  %v3582_v28 = vmul.f32 %v13477_v53, %v17903_v17  ;;  %v13478_v23 = vld [vmem:[%s21259_s0 + $0xcc] sm:$0x3]  ;;  %v3898_v57 = vld [vmem:[#allocation2 + $0x14] sm:$0x7] }
 0x2b5   :  { %v3586_v9 = vmul.f32 %v13478_v23, %v17888_v16  ;;  %v3265_v20 = vmax.f32 %v2319_v11, 1e-12  ;;  %v2473_v21 = vsel %vm2471_vm9, %v2472_v38, %v2470_v31  ;;  %v464_v56 = vmul.f32 %v208_v44, %v208_v44  ;;  %11492 = vmatprep.subr.msk.mxu0 %vm4238_vm1, %v3898_v57  ;;  %v228_v31 = vld [vmem:[%s21259_s0 + $0x160] sm:$0x3] }
 0x2b6   :  { %v12876_v46 = vpop.eup %12875  ;;  %v462_v39 = vmul.f32 %v206_v14, %v206_v14  ;;  %12887 = vrcp.f32 %v3267_v61  ;;  %v2459_v17 = vsel %vm2457_vm11, %v2458_v47, %v2456_v29  ;;  %v5977_v27 = vcombine.low %v3574_v6, %v3578_v7  ;;  %v210_v14 = vld [vmem:[%s21259_s0 + $0x13c] sm:$0x3]  ;;  %11493 = vmatpush3.msk.msra.mxu0 %vm4238_vm1, %v3898_v57 }
 0x2b7   :  { %v5978_v26 = vcombine.low %v3582_v28, %v3586_v9  ;;  %v18089_v24 = vpop.eup %12877  ;;  %v2498_v16 = vsel %vm2497_vm12, %v17970_v62, %v2496_v60  ;;  %v1033_v35 = vsel %vm564_vm0, %v464_v56, 0.0  ;;  %12889 = vrsqrt.f32 %v18081_v59  ;;  %v18117_v28 = vpop.xlane.xlu1 %1148 }
 0x2b8   :  { %v1027_v38 = vsel %vm564_vm0, %v462_v39, 0.0  ;;  %v18098_v44 = vpop.eup %12879  ;;  %v3287_v5 = vmax.f32 %v2473_v21, 1e-12  ;;  %v2482_v47 = vmul.f32 %v12876_v46, %v17998_v54  ;;  %v5985_v61 = vrot.slane %v5977_v27, %v13863_v33  ;;  %1034 = vadd.xlane.f32.xlu1 %v1033_v35  ;;  %v18122_v39 = vpop.xlane.xlu0 %1142 }
 0x2b9   :  { %v5992_v11 = vrot.slane %v5978_v26, %v13863_v33  ;;  %1028 = vadd.xlane.f32.xlu0 %v1027_v38  ;;  %v18109_v29 = vpop.eup %12881  ;;  %vm2483_vm14 = vcmp.eq.f32.partialorder %v17998_v54, inf  ;;  %vm2485_vm15 = vcmp.eq.f32.partialorder %v17998_v54, 0.0  ;;  %v2486_v60 = vand.u32 2147483648, %v17998_v54 }
 0x2ba   :  { %12891 = vrsqrt.f32 %v18085_v48  ;;  %v12884_v6 = vpop.eup %12883  ;;  %v3285_v7 = vmax.f32 %v2459_v17, 1e-12  ;;  %vm2525_vm3 = vcmp.eq.f32.partialorder %v18025_v45, inf  ;;  %v2501_v9 = vsel %vm2499_vm13, %v2500_v8, %v2498_v16  ;;  %v232_v16 = vld [vmem:[%s21259_s0 + $0x168] sm:$0x3] }
 0x2bb   :  { %12893 = vrcp.f32 %v3265_v20  ;;  %v5993_v53 = vcombine.low %v5985_v61, %v5992_v11  ;;  %v2524_v46 = vmul.f32 %v12884_v6, %v18025_v45  ;;  %v484_v21 = vmul.f32 %v228_v31, %v228_v31  ;;  %v13480_v31 = vld [vmem:[%s21259_s0 + $0xd4] sm:$0x3] }
 0x2bc   :  { %v12886_v23 = vpop.eup %12885  ;;  %v466_v56 = vmul.f32 %v210_v14, %v210_v14  ;;  %12895 = vrcp.f32 %v3287_v5  ;;  %v2484_v20 = vsel %vm2483_vm14, %v17998_v54, %v2482_v47  ;;  %vm2527_vm4 = vcmp.eq.f32.partialorder %v18025_v45, 0.0  ;;  %v230_v5 = vld [vmem:[%s21259_s0 + $0x164] sm:$0x3]  ;;  %v13479_v54 = vld [vmem:[%s21259_s0 + $0xd0] sm:$0x3] }
 0x2bd   :  { %v2510_v17 = vmul.f32 %v12886_v23, %v18028_v25  ;;  %11477 = vmatprep.mubr.msk.f32.mxu0 %vm4207_vm2, %v5993_v53  ;;  %v2526_v62 = vsel %vm2525_vm3, %v18025_v45, %v2524_v46  ;;  %v1093_v8 = vsel %vm564_vm0, %v484_v21, 0.0  ;;  %12897 = vrsqrt.f32 %v18117_v28 }
 0x2be   :  { %v1039_v27 = vsel %vm564_vm0, %v466_v56, 0.0  ;;  %v3291_v26 = vmax.f32 %v2501_v9, 1e-12  ;;  %v2528_v57 = vand.u32 2147483648, %v18025_v45  ;;  %vm2511_vm5 = vcmp.eq.f32.partialorder %v18028_v25, inf  ;;  %1094 = vadd.xlane.f32.xlu1 %v1093_v8 }
 0x2bf   :  { %1040 = vadd.xlane.f32.xlu0 %v1039_v27  ;;  %12899 = vrsqrt.f32 %v18122_v39  ;;  %v2487_v35 = vsel %vm2485_vm15, %v2486_v60, %v2484_v20  ;;  %vm2513_vm6 = vcmp.eq.f32.partialorder %v18028_v25, 0.0  ;;  %v2514_v38 = vand.u32 2147483648, %v18028_v25  ;;  %v18160_v60 = vpop.xlane.xlu1 %1160 }
 0x2c0   :  { %12901 = vrcp.f32 %v3285_v7  ;;  %v18147_v47 = vpop.eup %12887  ;;  %v2529_v61 = vsel %vm2527_vm4, %v2528_v57, %v2526_v62  ;;  %vm2553_vm7 = vcmp.eq.f32.partialorder %v18081_v59, inf  ;;  %v3590_v11 = vmul.f32 %v13479_v54, %v17942_v43  ;;  %v13481_v7 = vld [vmem:[%s21259_s0 + $0xd8] sm:$0x3]  ;;  %v13482_v43 = vld [vmem:[%s21259_s0 + $0xdc] sm:$0x3] }
 0x2c1   :  { %v3594_v14 = vmul.f32 %v13480_v31, %v17918_v13  ;;  %v12890_v6 = vpop.eup %12889  ;;  %v2512_v45 = vsel %vm2511_vm5, %v18028_v25, %v2510_v17  ;;  %v3598_v53 = vmul.f32 %v13481_v7, %v18002_v40  ;;  %v3602_v23 = vmul.f32 %v13482_v43, %v17976_v55  ;;  %v18176_v40 = vpop.xlane.xlu0 %1154  ;;  %v234_v54 = vld [vmem:[%s21259_s0 + $0x16c] sm:$0x3] }
 0x2c2   :  { %v488_v13 = vmul.f32 %v232_v16, %v232_v16  ;;  %12903 = vrcp.f32 %v3291_v26  ;;  %v3289_v9 = vmax.f32 %v2487_v35, 1e-12  ;;  %v486_v21 = vmul.f32 %v230_v5, %v230_v5  ;;  %v236_v5 = vld [vmem:[%s21259_s0 + $0x170] sm:$0x3] }
 0x2c3   :  { %v5994_v46 = vcombine.low %v3590_v11, %v3594_v14  ;;  %v2552_v20 = vmul.f32 %v12890_v6, %v18081_v59  ;;  %v5995_v17 = vcombine.low %v3598_v53, %v3602_v23  ;;  %12905 = vrsqrt.f32 %v18160_v60  ;;  %v18200_v11 = vpop.xlane.xlu1 %1172 }
 0x2c4   :  { %v12892_v56 = vpop.eup %12891  ;;  %v1105_v62 = vsel %vm564_vm0, %v488_v13, 0.0  ;;  %v3295_v27 = vmax.f32 %v2529_v61, 1e-12  ;;  %v2515_v55 = vsel %vm2513_vm6, %v2514_v38, %v2512_v45  ;;  %vm2555_vm8 = vcmp.eq.f32.partialorder %v18081_v59, 0.0 }
 0x2c5   :  { %v18178_v8 = vpop.eup %12893  ;;  %1106 = vadd.xlane.f32.xlu1 %v1105_v62  ;;  %v1099_v26 = vsel %vm564_vm0, %v486_v21, 0.0  ;;  %v2556_v57 = vand.u32 2147483648, %v18081_v59  ;;  %vm2539_vm9 = vcmp.eq.f32.partialorder %v18085_v48, inf  ;;  %v6002_v16 = vrot.slane %v5994_v46, %v13863_v33  ;;  %v18213_v46 = vpop.xlane.xlu0 %1166 }
 0x2c6   :  { %v6009_v35 = vrot.slane %v5995_v17, %v13863_v33  ;;  %1100 = vadd.xlane.f32.xlu0 %v1099_v26  ;;  %v18191_v25 = vpop.eup %12895  ;;  %v2538_v38 = vmul.f32 %v12892_v56, %v18085_v48  ;;  %vm2541_vm10 = vcmp.eq.f32.partialorder %v18085_v48, 0.0  ;;  %v2542_v61 = vand.u32 2147483648, %v18085_v48  ;;  %v240_v26 = vld [vmem:[%s21259_s0 + $0x178] sm:$0x3] }
 0x2c7   :  { %12907 = vrsqrt.f32 %v18176_v40  ;;  %v12898_v31 = vpop.eup %12897  ;;  %v3293_v14 = vmax.f32 %v2515_v55, 1e-12  ;;  %v2554_v6 = vsel %vm2553_vm7, %v18081_v59, %v2552_v20  ;;  %vm2693_vm11 = vcmp.eq.f32.partialorder %v18117_v28, inf }
 0x2c8   :  { %12909 = vrcp.f32 %v3289_v9  ;;  %v6010_v45 = vcombine.low %v6002_v16, %v6009_v35  ;;  %v2692_v53 = vmul.f32 %v12898_v31, %v18117_v28  ;;  %v492_v43 = vmul.f32 %v236_v5, %v236_v5 }
 0x2c9   :  { %v12900_v7 = vpop.eup %12899  ;;  %12911 = vrcp.f32 %v3295_v27  ;;  %vm2695_vm12 = vcmp.eq.f32.partialorder %v18117_v28, 0.0  ;;  %v2696_v13 = vand.u32 2147483648, %v18117_v28  ;;  %v490_v9 = vmul.f32 %v234_v54, %v234_v54  ;;  %v13483_v54 = vld [vmem:[%s21259_s0 + $0x100] sm:$0x3] }
 0x2ca   :  { %v18207_v23 = vpop.eup %12901  ;;  %11478 = vmatmul.mubr.msk.f32.gmra.mrb[6].mxu0 %vm4207_vm2, %v6010_v45  ;;  %12913 = vrsqrt.f32 %v18200_v11  ;;  %v2557_v21 = vsel %vm2555_vm8, %v2556_v57, %v2554_v6  ;;  %v2540_v56 = vsel %vm2539_vm9, %v18085_v48, %v2538_v38  ;;  %v2678_v20 = vmul.f32 %v12900_v7, %v18122_v39  ;;  %v238_v57 = vld [vmem:[%s21259_s0 + $0x174] sm:$0x3]  ;;  %v13484_v48 = vld [vmem:[%s21259_s0 + $0x104] sm:$0x3]  ;;  %v13485_v7 = vld [vmem:[%s21259_s0 + $0x108] sm:$0x3] }
 0x2cb   :  { %v1117_v17 = vsel %vm564_vm0, %v492_v43, 0.0  ;;  %12915 = vrcp.f32 %v3293_v14  ;;  %vm2679_vm13 = vcmp.eq.f32.partialorder %v18122_v39, inf  ;;  %vm2681_vm14 = vcmp.eq.f32.partialorder %v18122_v39, 0.0  ;;  %v18247_v14 = vpop.xlane.xlu1 %1184  ;;  %v13486_v43 = vld [vmem:[%s21259_s0 + $0x10c] sm:$0x3] }
 0x2cc   :  { %1118 = vadd.xlane.f32.xlu1 %v1117_v17  ;;  %v1111_v62 = vsel %vm564_vm0, %v490_v9, 0.0  ;;  %v18225_v27 = vpop.eup %12903  ;;  %v2694_v59 = vsel %vm2693_vm11, %v18117_v28, %v2692_v53  ;;  %v2682_v55 = vand.u32 2147483648, %v18122_v39  ;;  %vm2721_vm15 = vcmp.eq.f32.partialorder %v18160_v60, inf }
 0x2cd   :  { %1112 = vadd.xlane.f32.xlu0 %v1111_v62  ;;  %12917 = vrsqrt.f32 %v18213_v46  ;;  %v12906_v16 = vpop.eup %12905  ;;  %v3299_v35 = vmax.f32 %v2557_v21, 1e-12  ;;  %v2543_v5 = vsel %vm2541_vm10, %v2542_v61, %v2540_v56  ;;  %vm2723_vm3 = vcmp.eq.f32.partialorder %v18160_v60, 0.0  ;;  %v18269_v62 = vpop.xlane.xlu0 %1178 }
 0x2ce   :  { %v2724_v38 = vand.u32 2147483648, %v18160_v60  ;;  %v3638_v31 = vmul.f32 %v13483_v54, %v18030_v22  ;;  %v2680_v6 = vsel %vm2679_vm13, %v18122_v39, %v2678_v20  ;;  %v2720_v45 = vmul.f32 %v12906_v16, %v18160_v60 }
 0x2cf   :  { %v3642_v61 = vmul.f32 %v13484_v48, %v18021_v37  ;;  %v3646_v22 = vmul.f32 %v13485_v7, %v18089_v24  ;;  %v2697_v53 = vsel %vm2695_vm12, %v2696_v13, %v2694_v59  ;;  %v3650_v9 = vmul.f32 %v13486_v43, %v18066_v50 }
 0x2d0   :  { %v496_v21 = vmul.f32 %v240_v26, %v240_v26  ;;  %v494_v56 = vmul.f32 %v238_v57, %v238_v57  ;;  %v3297_v17 = vmax.f32 %v2543_v5, 1e-12  ;;  %vm2707_vm4 = vcmp.eq.f32.partialorder %v18176_v40, inf }
 0x2d1   :  { %v12908_v20 = vpop.eup %12907  ;;  %v6011_v37 = vcombine.low %v3638_v31, %v3642_v61  ;;  %12919 = vrsqrt.f32 %v18247_v14  ;;  %v2683_v28 = vsel %vm2681_vm14, %v2682_v55, %v2680_v6  ;;  %vm2709_vm5 = vcmp.eq.f32.partialorder %v18176_v40, 0.0  ;;  %v242_v6 = vld [vmem:[%s21259_s0 + $0x17c] sm:$0x3] }
 0x2d2   :  { %v18271_v24 = vpop.eup %12909  ;;  %v2710_v50 = vand.u32 2147483648, %v18176_v40  ;;  %v6012_v13 = vcombine.low %v3646_v22, %v3650_v9  ;;  %v1129_v59 = vsel %vm564_vm0, %v496_v21, 0.0  ;;  %12921 = vrcp.f32 %v3299_v35  ;;  %v260_v35 = vld [vmem:[%s21259_s0 + $0x1a0] sm:$0x3] }
 0x2d3   :  { %v18278_v26 = vpop.eup %12911  ;;  %v3319_v57 = vmax.f32 %v2697_v53, 1e-12  ;;  %v2722_v16 = vsel %vm2721_vm15, %v18160_v60, %v2720_v45  ;;  %1130 = vadd.xlane.f32.xlu1 %v1129_v59  ;;  %v1123_v5 = vsel %vm564_vm0, %v494_v56, 0.0  ;;  %v2706_v55 = vmul.f32 %v12908_v20, %v18176_v40  ;;  %v18294_v45 = vpop.xlane.xlu1 %1244 }
 0x2d4   :  { %v12914_v39 = vpop.eup %12913  ;;  %v6019_v54 = vrot.slane %v6011_v37, %v13863_v33  ;;  %v6026_v31 = vrot.slane %v6012_v13, %v13863_v33  ;;  %1124 = vadd.xlane.f32.xlu0 %v1123_v5  ;;  %12923 = vrsqrt.f32 %v18269_v62  ;;  %v3317_v48 = vmax.f32 %v2683_v28, 1e-12  ;;  %v18306_v20 = vpop.xlane.xlu0 %1238  ;;  %v264_v13 = vld [vmem:[%s21259_s0 + $0x1a8] sm:$0x3] }
 0x2d5   :  { %12925 = vrcp.f32 %v3297_v17  ;;  %v2748_v61 = vmul.f32 %v12914_v39, %v18200_v11  ;;  %vm2749_vm6 = vcmp.eq.f32.partialorder %v18200_v11, inf  ;;  %v18298_v7 = vpop.eup %12915  ;;  %vm2751_vm7 = vcmp.eq.f32.partialorder %v18200_v11, 0.0 }
 0x2d6   :  { %v2752_v22 = vand.u32 2147483648, %v18200_v11  ;;  %vm2735_vm8 = vcmp.eq.f32.partialorder %v18213_v46, inf  ;;  %v6027_v53 = vcombine.low %v6019_v54, %v6026_v31  ;;  %v2725_v9 = vsel %vm2723_vm3, %v2724_v38, %v2722_v16  ;;  %v262_v16 = vld [vmem:[%s21259_s0 + $0x1a4] sm:$0x3] }
 0x2d7   :  { %v12918_v43 = vpop.eup %12917  ;;  %v516_v21 = vmul.f32 %v260_v35, %v260_v35  ;;  %v498_v56 = vmul.f32 %v242_v6, %v242_v6  ;;  %12927 = vrsqrt.f32 %v18294_v45  ;;  %v2708_v17 = vsel %vm2707_vm4, %v18176_v40, %v2706_v55  ;;  %v13487_v6 = vld [vmem:[%s21259_s0 + $0x110] sm:$0x3] }
 0x2d8   :  { %12929 = vrcp.f32 %v3319_v57  ;;  %v2734_v37 = vmul.f32 %v12918_v43, %v18213_v46  ;;  %vm2737_vm9 = vcmp.eq.f32.partialorder %v18213_v46, 0.0  ;;  %11480 = vmatprep.mubr.msk.f32.mxu0 %vm4207_vm2, %v6027_v53  ;;  %v2750_v60 = vsel %vm2749_vm6, %v18200_v11, %v2748_v61  ;;  %v13489_v11 = vld [vmem:[%s21259_s0 + $0x118] sm:$0x3]  ;;  %v13490_v53 = vld [vmem:[%s21259_s0 + $0x11c] sm:$0x3] }
 0x2d9   :  { %12931 = vrcp.f32 %v3317_v48  ;;  %v1189_v38 = vsel %vm564_vm0, %v516_v21, 0.0  ;;  %v1135_v28 = vsel %vm564_vm0, %v498_v56, 0.0  ;;  %v3323_v59 = vmax.f32 %v2725_v9, 1e-12  ;;  %v18356_v21 = vpop.xlane.xlu1 %1256 }
 0x2da   :  { %v2738_v57 = vand.u32 2147483648, %v18213_v46  ;;  %vm2777_vm10 = vcmp.eq.f32.partialorder %v18247_v14, inf  ;;  %1190 = vadd.xlane.f32.xlu1 %v1189_v38  ;;  %1136 = vadd.xlane.f32.xlu0 %v1135_v28  ;;  %12933 = vrsqrt.f32 %v18306_v20  ;;  %v2711_v39 = vsel %vm2709_vm5, %v2710_v50, %v2708_v17  ;;  %v13488_v50 = vld [vmem:[%s21259_s0 + $0x114] sm:$0x3] }
 0x2db   :  { %v12920_v5 = vpop.eup %12919  ;;  %v2736_v55 = vsel %vm2735_vm8, %v18213_v46, %v2734_v37  ;;  %vm2779_vm11 = vcmp.eq.f32.partialorder %v18247_v14, 0.0  ;;  %v2780_v54 = vand.u32 2147483648, %v18247_v14  ;;  %v2753_v31 = vsel %vm2751_vm7, %v2752_v22, %v2750_v60  ;;  %v18360_v60 = vpop.xlane.xlu0 %1250 }
 0x2dc   :  { %v2776_v35 = vmul.f32 %v12920_v5, %v18247_v14  ;;  %v3654_v40 = vmul.f32 %v13487_v6, %v18109_v29  ;;  %v3658_v48 = vmul.f32 %v13488_v50, %v18098_v44  ;;  %v18346_v61 = vpop.eup %12921  ;;  %v3662_v22 = vmul.f32 %v13489_v11, %v18178_v8 }
 0x2dd   :  { %v3666_v29 = vmul.f32 %v13490_v53, %v18147_v47  ;;  %v520_v43 = vmul.f32 %v264_v13, %v264_v13  ;;  %v518_v9 = vmul.f32 %v262_v16, %v262_v16  ;;  %12935 = vrcp.f32 %v3323_v59 }
 0x2de   :  { %v12924_v56 = vpop.eup %12923  ;;  %v3321_v44 = vmax.f32 %v2711_v39, 1e-12  ;;  %v2739_v17 = vsel %vm2737_vm9, %v2738_v57, %v2736_v55  ;;  %v6028_v37 = vcombine.low %v3654_v40, %v3658_v48  ;;  %v2778_v38 = vsel %vm2777_vm10, %v18247_v14, %v2776_v35  ;;  %v268_v55 = vld [vmem:[%s21259_s0 + $0x1b0] sm:$0x3] }
 0x2df   :  { %v18362_v8 = vpop.eup %12925  ;;  %vm2763_vm12 = vcmp.eq.f32.partialorder %v18269_v62, inf  ;;  %v6029_v47 = vcombine.low %v3662_v22, %v3666_v29  ;;  %v1201_v28 = vsel %vm564_vm0, %v520_v43, 0.0  ;;  %v3327_v13 = vmax.f32 %v2753_v31, 1e-12  ;;  %v266_v31 = vld [vmem:[%s21259_s0 + $0x1ac] sm:$0x3]  ;;  %v18392_v22 = vpop.xlane.xlu1 %1268 }
 0x2e0   :  { %vm2765_vm13 = vcmp.eq.f32.partialorder %v18269_v62, 0.0  ;;  %1202 = vadd.xlane.f32.xlu1 %v1201_v28  ;;  %v1195_v46 = vsel %vm564_vm0, %v518_v9, 0.0  ;;  %12937 = vrsqrt.f32 %v18356_v21  ;;  %v3325_v57 = vmax.f32 %v2739_v17, 1e-12  ;;  %v18395_v43 = vpop.xlane.xlu0 %1262  ;;  %v270_v28 = vld [vmem:[%s21259_s0 + $0x1b4] sm:$0x3] }
 0x2e1   :  { %v12928_v59 = vpop.eup %12927  ;;  %v2762_v16 = vmul.f32 %v12924_v56, %v18269_v62  ;;  %v6036_v5 = vrot.slane %v6028_v37, %v13863_v33  ;;  %v6043_v39 = vrot.slane %v6029_v47, %v13863_v33  ;;  %1196 = vadd.xlane.f32.xlu0 %v1195_v46  ;;  %12939 = vrcp.f32 %v3321_v44 }
 0x2e2   :  { %v18381_v35 = vpop.eup %12929  ;;  %v2781_v6 = vsel %vm2779_vm11, %v2780_v54, %v2778_v38  ;;  %v2766_v40 = vand.u32 2147483648, %v18269_v62  ;;  %vm2917_vm14 = vcmp.eq.f32.partialorder %v18294_v45, inf  ;;  %vm2919_vm15 = vcmp.eq.f32.partialorder %v18294_v45, 0.0  ;;  %v272_v38 = vld [vmem:[%s21259_s0 + $0x1b8] sm:$0x3] }
 0x2e3   :  { %v18387_v50 = vpop.eup %12931  ;;  %v2920_v48 = vand.u32 2147483648, %v18294_v45  ;;  %v6044_v11 = vcombine.low %v6036_v5, %v6043_v39  ;;  %12941 = vrsqrt.f32 %v18360_v60  ;;  %v2916_v14 = vmul.f32 %v12928_v59, %v18294_v45  ;;  %v13491_v5 = vld [vmem:[%s21259_s0 + $0x140] sm:$0x3]  ;;  %v13492_v39 = vld [vmem:[%s21259_s0 + $0x144] sm:$0x3] }
 0x2e4   :  { %v12934_v53 = vpop.eup %12933  ;;  %12943 = vrcp.f32 %v3327_v13  ;;  %v524_v54 = vmul.f32 %v268_v55, %v268_v55  ;;  %v522_v29 = vmul.f32 %v266_v31, %v266_v31  ;;  %v3331_v9 = vmax.f32 %v2781_v6, 1e-12  ;;  %v18436_v31 = vpop.xlane.xlu1 %1280 }
 0x2e5   :  { %12945 = vrcp.f32 %v3325_v57  ;;  %v2764_v56 = vsel %vm2763_vm12, %v18269_v62, %v2762_v16  ;;  %v2902_v44 = vmul.f32 %v12934_v53, %v18306_v20  ;;  %11481 = vmatmul.mubr.msk.f32.gmra.mrb[8].mxu0 %vm4207_vm2, %v6044_v11  ;;  %vm2903_vm3 = vcmp.eq.f32.partialorder %v18306_v20, inf  ;;  %v13494_v53 = vld [vmem:[%s21259_s0 + $0x14c] sm:$0x3] }
 0x2e6   :  { %v1213_v17 = vsel %vm564_vm0, %v524_v54, 0.0  ;;  %v1207_v37 = vsel %vm564_vm0, %v522_v29, 0.0  ;;  %12947 = vrsqrt.f32 %v18392_v22  ;;  %vm2905_vm4 = vcmp.eq.f32.partialorder %v18306_v20, 0.0 }
 0x2e7   :  { %v2906_v47 = vand.u32 2147483648, %v18306_v20  ;;  %vm2945_vm5 = vcmp.eq.f32.partialorder %v18356_v21, inf  ;;  %1214 = vadd.xlane.f32.xlu1 %v1213_v17  ;;  %1208 = vadd.xlane.f32.xlu0 %v1207_v37  ;;  %12949 = vrsqrt.f32 %v18395_v43  ;;  %v18416_v13 = vpop.eup %12935  ;;  %v2767_v46 = vsel %vm2765_vm13, %v2766_v40, %v2764_v56  ;;  %v13493_v40 = vld [vmem:[%s21259_s0 + $0x148] sm:$0x3] }
 0x2e8   :  { %v2918_v59 = vsel %vm2917_vm14, %v18294_v45, %v2916_v14  ;;  %vm2947_vm6 = vcmp.eq.f32.partialorder %v18356_v21, 0.0  ;;  %v2948_v57 = vand.u32 2147483648, %v18356_v21  ;;  %12951 = vrcp.f32 %v3331_v9 }
 0x2e9   :  { %v2904_v16 = vsel %vm2903_vm3, %v18306_v20, %v2902_v44  ;;  %v3702_v62 = vmul.f32 %v13491_v5, %v18207_v23  ;;  %v3706_v55 = vmul.f32 %v13492_v39, %v18191_v25  ;;  %v3710_v11 = vmul.f32 %v13493_v40, %v18271_v24  ;;  %v18449_v44 = vpop.xlane.xlu0 %1274 }
 0x2ea   :  { %v12938_v6 = vpop.eup %12937  ;;  %v3714_v23 = vmul.f32 %v13494_v53, %v18225_v27  ;;  %v528_v14 = vmul.f32 %v272_v38, %v272_v38  ;;  %v526_v54 = vmul.f32 %v270_v28, %v270_v28  ;;  %v3329_v29 = vmax.f32 %v2767_v46, 1e-12  ;;  %v274_v28 = vld [vmem:[%s21259_s0 + $0x1bc] sm:$0x3] }
 0x2eb   :  { %v2921_v25 = vsel %vm2919_vm15, %v2920_v48, %v2918_v59  ;;  %v2944_v9 = vmul.f32 %v12938_v6, %v18356_v21  ;;  %v6045_v56 = vcombine.low %v3702_v62, %v3706_v55  ;;  %v18451_v17 = vpop.eup %12939  ;;  %12953 = vrsqrt.f32 %v18436_v31  ;;  %v292_v48 = vld [vmem:[%s21259_s0 + $0x1e0] sm:$0x3]  ;;  %v18480_v6 = vpop.xlane.xlu1 %707 }
 0x2ec   :  { %v6046_v24 = vcombine.low %v3710_v11, %v3714_v23  ;;  %v1225_v37 = vsel %vm564_vm0, %v528_v14, 0.0  ;;  %v1219_v5 = vsel %vm564_vm0, %v526_v54, 0.0  ;;  %v2907_v38 = vsel %vm2905_vm4, %v2906_v47, %v2904_v16 }
 0x2ed   :  { %v12942_v27 = vpop.eup %12941  ;;  %v2946_v45 = vsel %vm2945_vm5, %v18356_v21, %v2944_v9  ;;  %vm2931_vm7 = vcmp.eq.f32.partialorder %v18360_v60, inf  ;;  %vm2933_vm8 = vcmp.eq.f32.partialorder %v18360_v60, 0.0  ;;  %1226 = vadd.xlane.f32.xlu1 %v1225_v37  ;;  %1220 = vadd.xlane.f32.xlu0 %v1219_v5  ;;  %v3351_v47 = vmax.f32 %v2921_v25, 1e-12 }
 0x2ee   :  { %v18469_v20 = vpop.eup %12943  ;;  %v6053_v46 = vrot.slane %v6045_v56, %v13863_v33  ;;  %v6060_v59 = vrot.slane %v6046_v24, %v13863_v33  ;;  %12955 = vrsqrt.f32 %v18449_v44  ;;  %v2949_v62 = vsel %vm2947_vm6, %v2948_v57, %v2946_v45  ;;  %v18489_v56 = vpop.xlane.xlu0 %611  ;;  %v18491_v24 = vld [vmem:[#allocation2 + $0x18] sm:$0x7] }
 0x2ef   :  { %v18474_v16 = vpop.eup %12945  ;;  %12957 = vrcp.f32 %v3329_v29  ;;  %v2930_v39 = vmul.f32 %v12942_v27, %v18360_v60  ;;  %v2934_v55 = vand.u32 2147483648, %v18360_v60  ;;  %v3349_v11 = vmax.f32 %v2907_v38, 1e-12  ;;  %11518 = vmatprep.subr.msk.mxu0 %vm4238_vm1, %v18491_v24 }
 0x2f0   :  { %v12948_v40 = vpop.eup %12947  ;;  %v6061_v53 = vcombine.low %v6053_v46, %v6060_v59  ;;  %v548_v23 = vmul.f32 %v292_v48, %v292_v48  ;;  %v530_v14 = vmul.f32 %v274_v28, %v274_v28  ;;  %vm2973_vm9 = vcmp.eq.f32.partialorder %v18392_v22, inf  ;;  %v296_v28 = vld [vmem:[%s21259_s0 + $0x1e8] sm:$0x3]  ;;  %v18518_v46 = vpop.xlane.xlu1 %899 }
 0x2f1   :  { %v12950_v54 = vpop.eup %12949  ;;  %v2972_v25 = vmul.f32 %v12948_v40, %v18392_v22  ;;  %vm2975_vm10 = vcmp.eq.f32.partialorder %v18392_v22, 0.0  ;;  %v2976_v21 = vand.u32 2147483648, %v18392_v22  ;;  %12959 = vrcp.f32 %v3351_v47  ;;  %v294_v47 = vld [vmem:[%s21259_s0 + $0x1e4] sm:$0x3] }
 0x2f2   :  { %v3355_v57 = vmax.f32 %v2949_v62, 1e-12  ;;  %11483 = vmatprep.mubr.msk.f32.mxu0 %vm4207_vm2, %v6061_v53  ;;  %v1285_v29 = vsel %vm564_vm0, %v548_v23, 0.0  ;;  %v1231_v9 = vsel %vm564_vm0, %v530_v14, 0.0  ;;  %v18493_v37 = vpop.eup %12951  ;;  %v2932_v5 = vsel %vm2931_vm7, %v18360_v60, %v2930_v39  ;;  %v13495_v39 = vld [vmem:[%s21259_s0 + $0x150] sm:$0x3] }
 0x2f3   :  { %v2958_v27 = vmul.f32 %v12950_v54, %v18395_v43  ;;  %vm2959_vm11 = vcmp.eq.f32.partialorder %v18395_v43, inf  ;;  %1286 = vadd.xlane.f32.xlu1 %v1285_v29  ;;  %1232 = vadd.xlane.f32.xlu0 %v1231_v9  ;;  %12961 = vrsqrt.f32 %v18480_v6  ;;  %vm2961_vm12 = vcmp.eq.f32.partialorder %v18395_v43, 0.0  ;;  %v13497_v60 = vld [vmem:[%s21259_s0 + $0x158] sm:$0x3] }
 0x2f4   :  { %12963 = vrcp.f32 %v3349_v11  ;;  %v2962_v38 = vand.u32 2147483648, %v18395_v43  ;;  %vm3001_vm13 = vcmp.eq.f32.partialorder %v18436_v31, inf  ;;  %v2974_v45 = vsel %vm2973_vm9, %v18392_v22, %v2972_v25  ;;  %v13496_v11 = vld [vmem:[%s21259_s0 + $0x154] sm:$0x3]  ;;  %v3894_v25 = vld [vmem:[#allocation2 + $0x4] sm:$0x7] }
 0x2f5   :  { %vm3003_vm14 = vcmp.eq.f32.partialorder %v18436_v31, 0.0  ;;  %v3004_v48 = vand.u32 2147483648, %v18436_v31  ;;  %12965 = vrsqrt.f32 %v18489_v56  ;;  %v12954_v59 = vpop.eup %12953  ;;  %v2935_v62 = vsel %vm2933_vm8, %v2934_v55, %v2932_v5  ;;  %11362 = vmatprep.subr.msk.mxu1 %vm4238_vm1, %v3894_v25 }
 0x2f6   :  { %12967 = vrcp.f32 %v3355_v57  ;;  %v3718_v40 = vmul.f32 %v13495_v39, %v18298_v7  ;;  %v3722_v53 = vmul.f32 %v13496_v11, %v18278_v26  ;;  %v2960_v23 = vsel %vm2959_vm11, %v18395_v43, %v2958_v27  ;;  %v13498_v7 = vld [vmem:[%s21259_s0 + $0x15c] sm:$0x3]  ;;  %v18544_v27 = vpop.xlane.xlu0 %803  ;;  %11363 = vmatpush3.msk.msra.mxu1 %vm4238_vm1, %v3894_v25  ;;  %v300_v43 = vld [vmem:[%s21259_s0 + $0x1f0] sm:$0x3] }
 0x2f7   :  { %v3000_v14 = vmul.f32 %v12954_v59, %v18436_v31  ;;  %v3726_v55 = vmul.f32 %v13497_v60, %v18362_v8  ;;  %v3730_v54 = vmul.f32 %v13498_v7, %v18346_v61  ;;  %v2977_v57 = vsel %vm2975_vm10, %v2976_v21, %v2974_v45  ;;  %11365 = vmatmul.mubr.msk.f32.vlgmr.msra.gmra.mrb[0].mxu1 %vm4207_vm2, %v21407_v15 }
 0x2f8   :  { %v12956_v26 = vpop.eup %12955  ;;  %v6062_v29 = vcombine.low %v3718_v40, %v3722_v53  ;;  %v552_v9 = vmul.f32 %v296_v28, %v296_v28  ;;  %v550_v5 = vmul.f32 %v294_v47, %v294_v47  ;;  %v3353_v8 = vmax.f32 %v2935_v62, 1e-12 }
 0x2f9   :  { %v18547_v59 = vpop.eup %12957  ;;  %vm2987_vm15 = vcmp.eq.f32.partialorder %v18449_v44, inf  ;;  %v6063_v39 = vcombine.low %v3726_v55, %v3730_v54  ;;  %12969 = vrsqrt.f32 %v18518_v46  ;;  %v2963_v61 = vsel %vm2961_vm12, %v2962_v38, %v2960_v23  ;;  %v18567_v38 = vpop.xlane.xlu1 %1091  ;;  %v298_v23 = vld [vmem:[%s21259_s0 + $0x1ec] sm:$0x3] }
 0x2fa   :  { %v3002_v22 = vsel %vm3001_vm13, %v18436_v31, %v3000_v14  ;;  %v1297_v21 = vsel %vm564_vm0, %v552_v9, 0.0  ;;  %v1291_v45 = vsel %vm564_vm0, %v550_v5, 0.0  ;;  %v3359_v28 = vmax.f32 %v2977_v57, 1e-12  ;;  %v18585_v57 = vpop.xlane.xlu0 %995 }
 0x2fb   :  { %v2986_v47 = vmul.f32 %v12956_v26, %v18449_v44  ;;  %v6070_v62 = vrot.slane %v6062_v29, %v13863_v33  ;;  %v6077_v40 = vrot.slane %v6063_v39, %v13863_v33  ;;  %1298 = vadd.xlane.f32.xlu1 %v1297_v21  ;;  %1292 = vadd.xlane.f32.xlu0 %v1291_v45  ;;  %v18569_v11 = vpop.eup %12959  ;;  %vm2989_vm3 = vcmp.eq.f32.partialorder %v18449_v44, 0.0 }
 0x2fc   :  { %v2990_v53 = vand.u32 2147483648, %v18449_v44  ;;  %vm1664_vm4 = vcmp.eq.f32.partialorder %v18480_v6, inf  ;;  %12971 = vrsqrt.f32 %v18544_v27  ;;  %v3005_v60 = vsel %vm3003_vm14, %v3004_v48, %v3002_v22 }
 0x2fd   :  { %v12962_v14 = vpop.eup %12961  ;;  %vm1666_vm5 = vcmp.eq.f32.partialorder %v18480_v6, 0.0  ;;  %v1667_v55 = vand.u32 2147483648, %v18480_v6  ;;  %v6078_v7 = vcombine.low %v6070_v62, %v6077_v40  ;;  %12973 = vrcp.f32 %v3353_v8  ;;  %v18601_v45 = vpop.xlane.xlu1 %1283  ;;  %v302_v62 = vld [vmem:[%s21259_s0 + $0x1f4] sm:$0x3] }
 0x2fe   :  { %v18582_v54 = vpop.eup %12963  ;;  %v3357_v25 = vmax.f32 %v2963_v61, 1e-12  ;;  %vm1440_vm6 = vcmp.eq.f32.partialorder %v18489_v56, inf  ;;  %v556_v26 = vmul.f32 %v300_v43, %v300_v43  ;;  %12975 = vrcp.f32 %v3359_v28 }
 0x2ff   :  { %v12966_v29 = vpop.eup %12965  ;;  %v2988_v31 = vsel %vm2987_vm15, %v18449_v44, %v2986_v47  ;;  %v1663_v48 = vmul.f32 %v12962_v14, %v18480_v6  ;;  %11484 = vmatmul.mubr.msk.f32.gmra.mrb[10].mxu0 %vm4207_vm2, %v6078_v7  ;;  %v554_v9 = vmul.f32 %v298_v23, %v298_v23  ;;  %v3363_v8 = vmax.f32 %v3005_v60, 1e-12  ;;  %v304_v47 = vld [vmem:[%s21259_s0 + $0x1f8] sm:$0x3]  ;;  %v13500_v14 = vld [vmem:[%s21259_s0 + $0x184] sm:$0x3] }
 0x300   :  { %v18592_v5 = vpop.eup %12967  ;;  %v1439_v39 = vmul.f32 %v12966_v29, %v18489_v56  ;;  %v1309_v61 = vsel %vm564_vm0, %v556_v26, 0.0  ;;  %12977 = vrsqrt.f32 %v18567_v38  ;;  %vm1442_vm7 = vcmp.eq.f32.partialorder %v18489_v56, 0.0  ;;  %v13501_v26 = vld [vmem:[%s21259_s0 + $0x188] sm:$0x3] }
 0x301   :  { %v1443_v22 = vand.u32 2147483648, %v18489_v56  ;;  %1310 = vadd.xlane.f32.xlu1 %v1309_v61  ;;  %v1303_v21 = vsel %vm564_vm0, %v554_v9, 0.0  ;;  %12979 = vrsqrt.f32 %v18585_v57  ;;  %v2991_v28 = vsel %vm2989_vm3, %v2990_v53, %v2988_v31  ;;  %v13499_v53 = vld [vmem:[%s21259_s0 + $0x180] sm:$0x3]  ;;  %v13502_v31 = vld [vmem:[%s21259_s0 + $0x18c] sm:$0x3] }
 0x302   :  { %12981 = vrcp.f32 %v3357_v25  ;;  %vm2112_vm8 = vcmp.eq.f32.partialorder %v18518_v46, inf  ;;  %vm2114_vm9 = vcmp.eq.f32.partialorder %v18518_v46, 0.0  ;;  %1304 = vadd.xlane.f32.xlu0 %v1303_v21  ;;  %v1665_v43 = vsel %vm1664_vm4, %v18480_v6, %v1663_v48 }
 0x303   :  { %v12970_v40 = vpop.eup %12969  ;;  %v2115_v44 = vand.u32 2147483648, %v18518_v46  ;;  %v3766_v23 = vmul.f32 %v13499_v53, %v18387_v50  ;;  %v3770_v60 = vmul.f32 %v13500_v14, %v18381_v35  ;;  %12983 = vrcp.f32 %v3363_v8  ;;  %v18633_v50 = vpop.xlane.xlu0 %1187  ;;  %v307_v14 = vld [vmem:[%s21259_s0 + $0x1fe] sm:$0x3] }
 0x304   :  { %v1441_v7 = vsel %vm1440_vm6, %v18489_v56, %v1439_v39  ;;  %v2111_v25 = vmul.f32 %v12970_v40, %v18518_v46  ;;  %v3774_v29 = vmul.f32 %v13501_v26, %v18451_v17  ;;  %v3778_v35 = vmul.f32 %v13502_v31, %v18416_v13 }
 0x305   :  { %v6079_v48 = vcombine.low %v3766_v23, %v3770_v60  ;;  %v560_v9 = vmul.f32 %v304_v47, %v304_v47  ;;  %v558_v8 = vmul.f32 %v302_v62, %v302_v62  ;;  %v3361_v61 = vmax.f32 %v2991_v28, 1e-12  ;;  %v18647_v23 = vpop.xlane.xlu1 %1295  ;;  %v306_v60 = vld [vmem:[%s21259_s0 + $0x1fc] sm:$0x3] }
 0x306   :  { %v12972_v39 = vpop.eup %12971  ;;  %v1668_v21 = vsel %vm1666_vm5, %v1667_v55, %v1665_v43  ;;  %vm1888_vm10 = vcmp.eq.f32.partialorder %v18544_v27, inf  ;;  %vm1890_vm11 = vcmp.eq.f32.partialorder %v18544_v27, 0.0  ;;  %v1444_v17 = vsel %vm1442_vm7, %v1443_v22, %v1441_v7 }
 0x307   :  { %v1887_v40 = vmul.f32 %v12972_v39, %v18544_v27  ;;  %v1891_v53 = vand.u32 2147483648, %v18544_v27  ;;  %v6080_v13 = vcombine.low %v3774_v29, %v3778_v35  ;;  %v18649_v47 = vpop.eup %12973  ;;  %v2113_v6 = vsel %vm2112_vm8, %v18518_v46, %v2111_v25  ;;  %v18673_v26 = vpop.xlane.xlu0 %1289 }
 0x308   :  { %v1321_v55 = vsel %vm564_vm0, %v560_v9, 0.0  ;;  %v1315_v28 = vsel %vm564_vm0, %v558_v8, 0.0  ;;  %12985 = vrsqrt.f32 %v18601_v45  ;;  %v18657_v56 = vpop.eup %12975  ;;  %v3172_v22 = vmax.f32 %v1668_v21, 1e-12 }
 0x309   :  { %v6087_v62 = vrot.slane %v6079_v48, %v13863_v33  ;;  %v6094_v43 = vrot.slane %v6080_v13, %v13863_v33  ;;  %1322 = vadd.xlane.f32.xlu1 %v1321_v55  ;;  %1316 = vadd.xlane.f32.xlu0 %v1315_v28  ;;  %12987 = vrsqrt.f32 %v18633_v50  ;;  %v1889_v25 = vsel %vm1888_vm10, %v18544_v27, %v1887_v40  ;;  %v18687_v46 = vpop.xlane.xlu1 %1307 }
 0x30a   :  { %v12978_v7 = vpop.eup %12977  ;;  %12989 = vrcp.f32 %v3361_v61  ;;  %vm2560_vm12 = vcmp.eq.f32.partialorder %v18567_v38, inf  ;;  %vm2562_vm13 = vcmp.eq.f32.partialorder %v18567_v38, 0.0  ;;  %v3140_v31 = vmax.f32 %v1444_v17, 1e-12 }
 0x30b   :  { %v12980_v29 = vpop.eup %12979  ;;  %v2116_v35 = vsel %vm2114_vm9, %v2115_v44, %v2113_v6  ;;  %v2559_v48 = vmul.f32 %v12978_v7, %v18567_v38  ;;  %v6095_v9 = vcombine.low %v6087_v62, %v6094_v43  ;;  %v563_v61 = vmul.f32 %v307_v14, %v307_v14  ;;  %v18702_v43 = vpop.xlane.xlu0 %1301 }
 0x30c   :  { %v18678_v8 = vpop.eup %12981  ;;  %v2335_v39 = vmul.f32 %v12980_v29, %v18585_v57  ;;  %v562_v21 = vmul.f32 %v306_v60, %v306_v60  ;;  %12991 = vrsqrt.f32 %v18647_v23  ;;  %v1892_v40 = vsel %vm1890_vm11, %v1891_v53, %v1889_v25  ;;  %v13503_v60 = vld [vmem:[%s21259_s0 + $0x190] sm:$0x3]  ;;  %v13504_v25 = vld [vmem:[%s21259_s0 + $0x194] sm:$0x3] }
 0x30d   :  { %12993 = vrcp.f32 %v3172_v22  ;;  %v2563_v17 = vand.u32 2147483648, %v18567_v38  ;;  %vm2336_vm14 = vcmp.eq.f32.partialorder %v18585_v57, inf  ;;  %11486 = vmatprep.mubr.msk.f32.mxu0 %vm4207_vm2, %v6095_v9  ;;  %v18689_v44 = vpop.eup %12983  ;;  %v3236_v13 = vmax.f32 %v2116_v35, 1e-12 }
 0x30e   :  { %v2561_v6 = vsel %vm2560_vm12, %v18567_v38, %v2559_v48  ;;  %v1330_v55 = vsel %vm564_vm0, %v563_v61, 0.0  ;;  %v1327_v27 = vsel %vm564_vm0, %v562_v21, 0.0  ;;  %v2337_v53 = vsel %vm2336_vm14, %v18585_v57, %v2335_v39 }
 0x30f   :  { %vm2338_vm15 = vcmp.eq.f32.partialorder %v18585_v57, 0.0  ;;  %v2339_v28 = vand.u32 2147483648, %v18585_v57  ;;  %1331 = vadd.xlane.f32.xlu1 %v1330_v55  ;;  %1328 = vadd.xlane.f32.xlu0 %v1327_v27  ;;  %12995 = vrsqrt.f32 %v18673_v26  ;;  %v3204_v22 = vmax.f32 %v1892_v40, 1e-12 }
 0x310   :  { %12997 = vrcp.f32 %v3140_v31  ;;  %vm3008_vm3 = vcmp.eq.f32.partialorder %v18601_v45, inf  ;;  %v3011_v62 = vand.u32 2147483648, %v18601_v45  ;;  %v2564_v14 = vsel %vm2562_vm13, %v2563_v17, %v2561_v6  ;;  %v13505_v31 = vld [vmem:[%s21259_s0 + $0x198] sm:$0x3] }
 0x311   :  { %vm3010_vm0 = vcmp.eq.f32.partialorder %v18601_v45, 0.0  ;;  %v3782_v7 = vmul.f32 %v13503_v60, %v18474_v16  ;;  %v3786_v29 = vmul.f32 %v13504_v25, %v18469_v20  ;;  %v3790_v38 = vmul.f32 %v13505_v31, %v18547_v59  ;;  %v13506_v16 = vld [vmem:[%s21259_s0 + $0x19c] sm:$0x3]  ;;  %v18729_v59 = vpop.xlane.xlu1 %1319 }
 0x312   :  { %v12986_v35 = vpop.eup %12985  ;;  %12999 = vrcp.f32 %v3236_v13  ;;  %v2340_v48 = vsel %vm2338_vm15, %v2339_v28, %v2337_v53  ;;  %vm2784_vm4 = vcmp.eq.f32.partialorder %v18633_v50, inf  ;;  %v3794_v9 = vmul.f32 %v13506_v16, %v18493_v37  ;;  %v18741_v53 = vpop.xlane.xlu0 %1313 }
 0x313   :  { %v12988_v20 = vpop.eup %12987  ;;  %v3007_v39 = vmul.f32 %v12986_v35, %v18601_v45  ;;  %vm2786_vm5 = vcmp.eq.f32.partialorder %v18633_v50, 0.0  ;;  %v6096_v61 = vcombine.low %v3782_v7, %v3786_v29  ;;  %13001 = vrsqrt.f32 %v18687_v46 }
 0x314   :  { %v18731_v57 = vpop.eup %12989  ;;  %v3300_v21 = vmax.f32 %v2564_v14, 1e-12  ;;  %v2783_v40 = vmul.f32 %v12988_v20, %v18633_v50  ;;  %v6097_v17 = vcombine.low %v3790_v38, %v3794_v9  ;;  %13003 = vrsqrt.f32 %v18702_v43 }
 0x315   :  { %13005 = vrcp.f32 %v3204_v22  ;;  %v3268_v37 = vmax.f32 %v2340_v48, 1e-12  ;;  %v2787_v13 = vand.u32 2147483648, %v18633_v50  ;;  %vm3036_vm6 = vcmp.eq.f32.partialorder %v18647_v23, inf  ;;  %v18758_v35 = vpop.xlane.xlu1 %614 }
 0x316   :  { %v12992_v6 = vpop.eup %12991  ;;  %vm3038_vm7 = vcmp.eq.f32.partialorder %v18647_v23, 0.0  ;;  %v6104_v55 = vrot.slane %v6096_v61, %v13863_v33  ;;  %v6111_v27 = vrot.slane %v6097_v17, %v13863_v33  ;;  %13007 = vrsqrt.f32 %v18729_v59  ;;  %v13508_v61 = vld [vmem:[%s21259_s0 + $0x1c4] sm:$0x3]  ;;  %v13509_v17 = vld [vmem:[%s21259_s0 + $0x1c8] sm:$0x3] }
 0x317   :  { %v18743_v28 = vpop.eup %12993  ;;  %v3009_v22 = vsel %vm3008_vm3, %v18601_v45, %v3007_v39  ;;  %v3035_v14 = vmul.f32 %v12992_v6, %v18647_v23  ;;  %v3039_v60 = vand.u32 2147483648, %v18647_v23  ;;  %vm3022_vm8 = vcmp.eq.f32.partialorder %v18673_v26, inf  ;;  %v13507_v45 = vld [vmem:[%s21259_s0 + $0x1c0] sm:$0x3] }
 0x318   :  { %13009 = vrcp.f32 %v3300_v21  ;;  %v2785_v7 = vsel %vm2784_vm4, %v18633_v50, %v2783_v40  ;;  %vm3024_vm9 = vcmp.eq.f32.partialorder %v18673_v26, 0.0  ;;  %v6112_v25 = vcombine.low %v6104_v55, %v6111_v27 }
 0x319   :  { %v12996_v29 = vpop.eup %12995  ;;  %13011 = vrcp.f32 %v3268_v37  ;;  %v3025_v31 = vand.u32 2147483648, %v18673_v26  ;;  %vm3064_vm10 = vcmp.eq.f32.partialorder %v18687_v46, inf  ;;  %v3067_v38 = vand.u32 2147483648, %v18687_v46  ;;  %v13510_v37 = vld [vmem:[%s21259_s0 + $0x1cc] sm:$0x3] }
 0x31a   :  { %v18760_v48 = vpop.eup %12997  ;;  %v3012_v16 = vsel %vm3010_vm0, %v3011_v62, %v3009_v22  ;;  %v3037_v9 = vsel %vm3036_vm6, %v18647_v23, %v3035_v14  ;;  %v3021_v20 = vmul.f32 %v12996_v29, %v18673_v26  ;;  %11487 = vmatmul.mubr.msk.f32.gmra.mrb[12].mxu0 %vm4207_vm2, %v6112_v25  ;;  %vm3066_vm11 = vcmp.eq.f32.partialorder %v18687_v46, 0.0 }
 0x31b   :  { %vm3050_vm12 = vcmp.eq.f32.partialorder %v18702_v43, inf  ;;  %v2788_v39 = vsel %vm2786_vm5, %v2787_v13, %v2785_v7  ;;  %13013 = vrsqrt.f32 %v18741_v53  ;;  %v3830_v62 = vmul.f32 %v13507_v45, %v18582_v54  ;;  %v18797_v13 = vpop.xlane.xlu0 %1325 }
 0x31c   :  { %v3834_v21 = vmul.f32 %v13508_v61, %v18569_v11  ;;  %v18782_v40 = vpop.eup %12999  ;;  %v3023_v50 = vsel %vm3022_vm8, %v18673_v26, %v3021_v20  ;;  %vm3052_vm13 = vcmp.eq.f32.partialorder %v18702_v43, 0.0  ;;  %v3838_v54 = vmul.f32 %v13509_v17, %v18649_v47 }
 0x31d   :  { %v3842_v11 = vmul.f32 %v13510_v37, %v18592_v5  ;;  %13015 = vrsqrt.f32 %v18758_v35  ;;  %v13002_v6 = vpop.eup %13001  ;;  %v3364_v55 = vmax.f32 %v3012_v16, 1e-12  ;;  %v3040_v27 = vsel %vm3038_vm7, %v3039_v60, %v3037_v9  ;;  %v18816_v9 = vpop.xlane.xlu1 %626 }
 0x31e   :  { %v3053_v22 = vand.u32 2147483648, %v18702_v43  ;;  %v6113_v14 = vcombine.low %v3830_v62, %v3834_v21  ;;  %v13004_v7 = vpop.eup %13003  ;;  %v3332_v47 = vmax.f32 %v2788_v39, 1e-12  ;;  %v3026_v25 = vsel %vm3024_vm9, %v3025_v31, %v3023_v50 }
 0x31f   :  { %v3063_v29 = vmul.f32 %v13002_v6, %v18687_v46  ;;  %v6114_v5 = vcombine.low %v3838_v54, %v3842_v11  ;;  %v18805_v20 = vpop.eup %13005  ;;  %v3049_v45 = vmul.f32 %v13004_v7, %v18702_v43  ;;  %vm3092_vm14 = vcmp.eq.f32.partialorder %v18729_v59, inf  ;;  %v18833_v6 = vpop.xlane.xlu0 %620 }
 0x320   :  { %vm3094_vm15 = vcmp.eq.f32.partialorder %v18729_v59, 0.0  ;;  %13017 = vrsqrt.f32 %v18797_v13  ;;  %v13008_v23 = vpop.eup %13007  ;;  %v3368_v60 = vmax.f32 %v3040_v27, 1e-12  ;;  %v6121_v31 = vrot.slane %v6113_v14, %v13863_v33 }
 0x321   :  { %v3065_v26 = vsel %vm3064_vm10, %v18687_v46, %v3063_v29  ;;  %v6128_v16 = vrot.slane %v6114_v5, %v13863_v33  ;;  %13019 = vrcp.f32 %v3364_v55  ;;  %v3366_v39 = vmax.f32 %v3026_v25, 1e-12  ;;  %v13511_v25 = vld [vmem:[%s21259_s0 + $0x1d0] sm:$0x3]  ;;  %v18851_v5 = vpop.xlane.xlu1 %638 }
 0x322   :  { %v3091_v62 = vmul.f32 %v13008_v23, %v18729_v59  ;;  %v3095_v61 = vand.u32 2147483648, %v18729_v59  ;;  %v18820_v21 = vpop.eup %13009  ;;  %13021 = vrcp.f32 %v3332_v47  ;;  %v3051_v50 = vsel %vm3050_vm12, %v18702_v43, %v3049_v45  ;;  %v13512_v45 = vld [vmem:[%s21259_s0 + $0x1d4] sm:$0x3] }
 0x323   :  { %vm3078_vm3 = vcmp.eq.f32.partialorder %v18741_v53, inf  ;;  %v6129_v17 = vcombine.low %v6121_v31, %v6128_v16  ;;  %v18826_v54 = vpop.eup %13011  ;;  %v3068_v37 = vsel %vm3066_vm11, %v3067_v38, %v3065_v26  ;;  %vm3080_vm0 = vcmp.eq.f32.partialorder %v18741_v53, 0.0 }
 0x324   :  { %v3081_v11 = vand.u32 2147483648, %v18741_v53  ;;  %13023 = vrsqrt.f32 %v18816_v9  ;;  %v3093_v55 = vsel %vm3092_vm14, %v18729_v59, %v3091_v62  ;;  %vm1447_vm4 = vcmp.eq.f32.partialorder %v18758_v35, inf  ;;  %v13514_v59 = vld [vmem:[%s21259_s0 + $0x1dc] sm:$0x3] }
 0x325   :  { %13025 = vrcp.f32 %v3368_v60  ;;  %11489 = vmatprep.mubr.msk.f32.mxu0 %vm4207_vm2, %v6129_v17  ;;  %vm1449_vm5 = vcmp.eq.f32.partialorder %v18758_v35, 0.0  ;;  %v13014_v46 = vpop.eup %13013  ;;  %v3054_v38 = vsel %vm3052_vm13, %v3053_v22, %v3051_v50  ;;  %v1450_v27 = vand.u32 2147483648, %v18758_v35  ;;  %v13513_v60 = vld [vmem:[%s21259_s0 + $0x1d8] sm:$0x3] }
 0x326   :  { %13027 = vrcp.f32 %v3366_v39  ;;  %vm3106_vm6 = vcmp.eq.f32.partialorder %v18797_v13, inf  ;;  %v3372_v7 = vmax.f32 %v3068_v37, 1e-12  ;;  %v3077_v47 = vmul.f32 %v13014_v46, %v18741_v53 }
 0x327   :  { %v13016_v14 = vpop.eup %13015  ;;  %13029 = vrsqrt.f32 %v18833_v6  ;;  %v3846_v29 = vmul.f32 %v13511_v25, %v18678_v8  ;;  %v3096_v43 = vsel %vm3094_vm15, %v3095_v61, %v3093_v55  ;;  %v3850_v23 = vmul.f32 %v13512_v45, %v18657_v56 }
 0x328   :  { %v1446_v22 = vmul.f32 %v13016_v14, %v18758_v35  ;;  %v3854_v26 = vmul.f32 %v13513_v60, %v18731_v57  ;;  %v3370_v8 = vmax.f32 %v3054_v38, 1e-12  ;;  %vm3108_vm7 = vcmp.eq.f32.partialorder %v18797_v13, 0.0  ;;  %v18893_v38 = vpop.xlane.xlu0 %632 }
 0x329   :  { %v3858_v31 = vmul.f32 %v13514_v59, %v18689_v44  ;;  %v6352_v16 = vcombine.low %v16209_v36, %v16268_v34  ;;  %v3079_v56 = vsel %vm3078_vm3, %v18741_v53, %v3077_v47  ;;  %v6130_v62 = vcombine.low %v3846_v29, %v3850_v23 }
 0x32a   :  { %v13018_v39 = vpop.eup %13017  ;;  %v6351_v57 = vcombine.low %v16197_v18, %v16203_v10  ;;  %13031 = vrsqrt.f32 %v18851_v5  ;;  %v3376_v61 = vmax.f32 %v3096_v43, 1e-12  ;;  %v1448_v50 = vsel %vm1447_vm4, %v18758_v35, %v1446_v22 }
 0x32b   :  { %v3105_v44 = vmul.f32 %v13018_v39, %v18797_v13  ;;  %v6131_v17 = vcombine.low %v3854_v26, %v3858_v31  ;;  %v18881_v36 = vpop.eup %13019  ;;  %13033 = vrcp.f32 %v3372_v7  ;;  %v3109_v34 = vand.u32 2147483648, %v18797_v13 }
 0x32c   :  { %vm1475_vm8 = vcmp.eq.f32.partialorder %v18816_v9, inf  ;;  %v6366_v37 = vrot.slane %v6352_v16, %v13863_v33  ;;  %v18886_v18 = vpop.eup %13021  ;;  %v3082_v10 = vsel %vm3080_vm0, %v3081_v11, %v3079_v56  ;;  %vm1477_vm9 = vcmp.eq.f32.partialorder %v18816_v9, 0.0 }
 0x32d   :  { %v6138_v55 = vrot.slane %v6130_v62, %v13863_v33  ;;  %v6145_v46 = vrot.slane %v6131_v17, %v13863_v33  ;;  %13035 = vrcp.f32 %v3370_v8  ;;  %v1451_v7 = vsel %vm1449_vm5, %v1450_v27, %v1448_v50  ;;  %v18909_v27 = vpop.xlane.xlu1 %650  ;;  %v13515_v8 = vld [vmem:[%s21259_s0 + $0x1e] sm:$0x3] }
 0x32e   :  { %v13024_v14 = vpop.eup %13023  ;;  %v1478_v47 = vand.u32 2147483648, %v18816_v9  ;;  %v6359_v25 = vrot.slane %v6351_v57, %v13863_v33  ;;  %13037 = vrcp.f32 %v3376_v61  ;;  %v3107_v53 = vsel %vm3106_vm6, %v18797_v13, %v3105_v44 }
 0x32f   :  { %v18899_v29 = vpop.eup %13025  ;;  %v1474_v11 = vmul.f32 %v13024_v14, %v18816_v9  ;;  %v6146_v43 = vcombine.low %v6138_v55, %v6145_v46  ;;  %v3374_v45 = vmax.f32 %v3082_v10, 1e-12  ;;  %vm1461_vm10 = vcmp.eq.f32.partialorder %v18833_v6, inf }
 0x330   :  { %v18905_v22 = vpop.eup %13027  ;;  %v6367_v35 = vcombine.low %v6359_v25, %v6366_v37  ;;  %13039 = vrsqrt.f32 %v18893_v38  ;;  %v3141_v60 = vmax.f32 %v1451_v7, 1e-12  ;;  %v3412_v59 = vmul.f32 %v13515_v8, %v18760_v48  ;;  %v18959_v7 = vld [vmem:[#allocation2 + $0x1c] sm:$0x7] }
 0x331   :  { %v13030_v23 = vpop.eup %13029  ;;  %v1476_v26 = vsel %vm1475_vm8, %v18816_v9, %v1474_v11  ;;  %11490 = vmatmul.mubr.msk.f32.gmra.mrb[14].mxu0 %vm4207_vm2, %v6146_v43  ;;  %v6368_v31 = vcombine.low %v16274_v58, %v16280_v49  ;;  %v3110_v16 = vsel %vm3108_vm7, %v3109_v34, %v3107_v53  ;;  %v6385_v56 = vcombine.low %v16297_v19, %v16303_v32  ;;  %v18933_v58 = vpop.xlane.xlu0 %644  ;;  %v13516_v25 = vld [vmem:[%s21259_s0 + $0x5e] sm:$0x3] }
 0x332   :  { %v1460_v39 = vmul.f32 %v13030_v23, %v18833_v6  ;;  %11494 = vmatprep.mubr.msk.f32.mxu0 %vm4207_vm2, %v6367_v35  ;;  %v6386_v62 = vcombine.low %v16313_v41, %v16365_v0  ;;  %vm1463_vm11 = vcmp.eq.f32.partialorder %v18833_v6, 0.0  ;;  %v1464_v48 = vand.u32 2147483648, %v18833_v6  ;;  %v18952_v37 = vpop.xlane.xlu1 %710 }
 0x333   :  { %v6369_v57 = vcombine.low %v16286_v51, %v3412_v59  ;;  %13041 = vrsqrt.f32 %v18909_v27  ;;  %v1479_v13 = vsel %vm1477_vm9, %v1478_v47, %v1476_v26  ;;  %v3378_v41 = vmax.f32 %v3110_v16, 1e-12 }
 0x334   :  { %v13032_v49 = vpop.eup %13031  ;;  %13043 = vrcp.f32 %v3374_v45  ;;  %v1462_v19 = vsel %vm1461_vm10, %v18833_v6, %v1460_v39  ;;  %v6400_v32 = vrot.slane %v6386_v62, %v13863_v33  ;;  %v6376_v51 = vrot.slane %v6368_v31, %v13863_v33  ;;  %v13517_v39 = vld [vmem:[%s21259_s0 + $0x9e] sm:$0x3] }
 0x335   :  { %v1502_v0 = vmul.f32 %v13032_v49, %v18851_v5  ;;  %v6383_v61 = vrot.slane %v6369_v57, %v13863_v33  ;;  %v18944_v50 = vpop.eup %13033  ;;  %13045 = vrcp.f32 %v3141_v60  ;;  %vm1503_vm12 = vcmp.eq.f32.partialorder %v18851_v5, inf  ;;  %v18971_v43 = vpop.xlane.xlu0 %656 }
 0x336   :  { %vm1505_vm13 = vcmp.eq.f32.partialorder %v18851_v5, 0.0  ;;  %v6393_v9 = vrot.slane %v6385_v56, %v13863_v33  ;;  %v3145_v44 = vmax.f32 %v1479_v13, 1e-12  ;;  %v1465_v17 = vsel %vm1463_vm11, %v1464_v48, %v1462_v19  ;;  %v21481_v13 = vld [vmem:[#allocation27_spill] sm:$0xff] }
 0x337   :  { %v6384_v34 = vcombine.low %v6376_v51, %v6383_v61  ;;  %13047 = vrsqrt.f32 %v18933_v58  ;;  %v18954_v10 = vpop.eup %13035  ;;  %v1504_v55 = vsel %vm1503_vm12, %v18851_v5, %v1502_v0  ;;  %v1506_v46 = vand.u32 2147483648, %v18851_v5  ;;  %v21482_v19 = vld [vmem:[#allocation31_spill] sm:$0xff] }
 0x338   :  { %vm1489_vm14 = vcmp.eq.f32.partialorder %v18893_v38, inf  ;;  %v6401_v14 = vcombine.low %v6393_v9, %v6400_v32  ;;  %v18961_v47 = vpop.eup %13037  ;;  %13049 = vrcp.f32 %v3378_v41  ;;  %v1492_v6 = vand.u32 2147483648, %v18893_v38  ;;  %v21483_v41 = vld [vmem:[#allocation34_spill] sm:$0xff]  ;;  %v21484_v0 = vld [vmem:[#allocation35_spill] sm:$0xff] }
 0x339   :  { %11495 = vmatmul.mubr.msk.f32.vlgmr.msra.gmra.mrb[0].mxu0 %vm4207_vm2, %v6384_v34  ;;  %v3476_v53 = vmul.f32 %v13516_v25, %v18743_v28  ;;  %v6402_v11 = vcombine.low %v16371_v12, %v16377_v63  ;;  %v3143_v35 = vmax.f32 %v1465_v17, 1e-12  ;;  %vm1491_vm15 = vcmp.eq.f32.partialorder %v18893_v38, 0.0  ;;  %v19011_v48 = vpop.xlane.xlu0 %716 }
 0x33a   :  { %v13040_v45 = vpop.eup %13039  ;;  %11497 = vmatprep.mubr.msk.f32.mxu0 %vm4207_vm2, %v6401_v14  ;;  %v6419_v23 = vcombine.low %v16440_v52, %v16454_v2  ;;  %v6420_v60 = vcombine.low %v16460_v42, %v16546_v1  ;;  %13051 = vrsqrt.f32 %v18952_v37  ;;  %11519 = vmatpush3.msk.msra.mxu0 %vm4238_vm1, %v18491_v24  ;;  %v1507_v12 = vsel %vm1505_vm13, %v1506_v46, %v1504_v55  ;;  %v18996_v24 = vpop.xlane.xlu1 %722 }
 0x33b   :  { %13053 = vrcp.f32 %v3145_v44  ;;  %v1488_v63 = vmul.f32 %v13040_v45, %v18893_v38  ;;  %v6403_v28 = vcombine.low %v16384_v3, %v3476_v53  ;;  %11544 = vmatprep.subr.msk.mxu0 %vm4238_vm1, %v18959_v7  ;;  %vm1531_vm3 = vcmp.eq.f32.partialorder %v18909_v27, inf }
 0x33c   :  { %vm1533_vm0 = vcmp.eq.f32.partialorder %v18909_v27, 0.0  ;;  %v6434_v52 = vrot.slane %v6420_v60, %v13863_v33  ;;  %13055 = vrsqrt.f32 %v18971_v43  ;;  %v1534_v42 = vand.u32 2147483648, %v18909_v27 }
 0x33d   :  { %v13042_v2 = vpop.eup %13041  ;;  %vm1517_vm4 = vcmp.eq.f32.partialorder %v18933_v58, inf  ;;  %v6410_v1 = vrot.slane %v6402_v11, %v13863_v33  ;;  %v6417_v3 = vrot.slane %v6403_v28, %v13863_v33  ;;  %13057 = vrcp.f32 %v3143_v35 }
 0x33e   :  { %v18998_v5 = vpop.eup %13043  ;;  %v3149_v26 = vmax.f32 %v1507_v12, 1e-12  ;;  %v1530_v8 = vmul.f32 %v13042_v2, %v18909_v27  ;;  %v6427_v59 = vrot.slane %v6419_v23, %v13863_v33  ;;  %v1490_v31 = vsel %vm1489_vm14, %v18893_v38, %v1488_v63  ;;  %v19038_v25 = vpop.xlane.xlu1 %734 }
 0x33f   :  { %v6418_v16 = vcombine.low %v6410_v1, %v6417_v3  ;;  %v3540_v56 = vmul.f32 %v13517_v39, %v18805_v20  ;;  %v6436_v62 = vcombine.low %v16552_v4, %v16558_v30  ;;  %v19013_v57 = vpop.eup %13045  ;;  %v6453_v32 = vcombine.low %v21482_v19, %v21481_v13  ;;  %v21485_v4 = vld [vmem:[#allocation33_spill] sm:$0xff]  ;;  %v19052_v12 = vpop.xlane.xlu0 %728  ;;  %v13518_v1 = vld [vmem:[%s21259_s0 + $0xde] sm:$0x3]  ;;  %v21492_v13 = vld [vmem:[#allocation44_spill] sm:$0xff] }
 0x340   :  { %v6435_v49 = vcombine.low %v6427_v59, %v6434_v52  ;;  %v6454_v51 = vcombine.low %v21484_v0, %v21483_v41  ;;  %13059 = vrsqrt.f32 %v18996_v24  ;;  %vm1519_vm5 = vcmp.eq.f32.partialorder %v18933_v58, 0.0 }
 0x341   :  { %v13048_v61 = vpop.eup %13047  ;;  %v1520_v20 = vand.u32 2147483648, %v18933_v58  ;;  %11498 = vmatmul.mubr.msk.f32.gmra.mrb[2].mxu0 %vm4207_vm2, %v6418_v16  ;;  %vm1671_vm6 = vcmp.eq.f32.partialorder %v18952_v37, inf  ;;  %v6437_v30 = vcombine.low %v21485_v4, %v3540_v56  ;;  %v1532_v9 = vsel %vm1531_vm3, %v18909_v27, %v1530_v8  ;;  %v21487_v8 = vld [vmem:[#allocation38_spill] sm:$0xff] }
 0x342   :  { %v1516_v44 = vmul.f32 %v13048_v61, %v18933_v58  ;;  %11500 = vmatprep.mubr.msk.f32.mxu0 %vm4207_vm2, %v6435_v49  ;;  %vm1673_vm7 = vcmp.eq.f32.partialorder %v18952_v37, 0.0  ;;  %v6468_v17 = vrot.slane %v6454_v51, %v13863_v33  ;;  %v19032_v34 = vpop.eup %13049  ;;  %13061 = vrcp.f32 %v3149_v26  ;;  %v21486_v26 = vld [vmem:[#allocation37_spill] sm:$0xff]  ;;  %v21491_v49 = vld [vmem:[#allocation43_spill] sm:$0xff]  ;;  %v19082_v61 = vpop.xlane.xlu1 %746 }
 0x343   :  { %v1493_v55 = vsel %vm1491_vm15, %v1492_v6, %v1490_v31  ;;  %v6444_v46 = vrot.slane %v6436_v62, %v13863_v33  ;;  %v6451_v14 = vrot.slane %v6437_v30, %v13863_v33  ;;  %v1674_v45 = vand.u32 2147483648, %v18952_v37  ;;  %v21489_v31 = vld [vmem:[#allocation40_spill] sm:$0xff] }
 0x344   :  { %v13052_v53 = vpop.eup %13051  ;;  %v1518_v11 = vsel %vm1517_vm4, %v18933_v58, %v1516_v44  ;;  %vm1545_vm8 = vcmp.eq.f32.partialorder %v18971_v43, inf  ;;  %v6461_v35 = vrot.slane %v6453_v32, %v13863_v33  ;;  %v1535_v38 = vsel %vm1533_vm0, %v1534_v42, %v1532_v9  ;;  %v21488_v58 = vld [vmem:[#allocation36_spill] sm:$0xff] }
 0x345   :  { %v19046_v23 = vpop.eup %13053  ;;  %v1670_v6 = vmul.f32 %v13052_v53, %v18952_v37  ;;  %v6452_v60 = vcombine.low %v6444_v46, %v6451_v14  ;;  %13063 = vrsqrt.f32 %v19011_v48  ;;  %v3147_v28 = vmax.f32 %v1493_v55, 1e-12 }
 0x346   :  { %v13056_v63 = vpop.eup %13055  ;;  %v1521_v52 = vsel %vm1519_vm5, %v1520_v20, %v1518_v11  ;;  %v6469_v2 = vcombine.low %v6461_v35, %v6468_v17  ;;  %v3604_v27 = vmul.f32 %v13518_v1, %v18782_v40  ;;  %v6470_v59 = vcombine.low %v21487_v8, %v21486_v26  ;;  %v21490_v40 = vld [vmem:[#allocation42_spill] sm:$0xff]  ;;  %v19091_v17 = vpop.xlane.xlu0 %740  ;;  %v21496_v1 = vld [vmem:[#allocation55_spill] sm:$0xff] }
 0x347   :  { %v1672_v42 = vsel %vm1671_vm6, %v18952_v37, %v1670_v6  ;;  %v1544_v3 = vmul.f32 %v13056_v63, %v18971_v43  ;;  %11501 = vmatmul.mubr.msk.f32.gmra.mrb[4].mxu0 %vm4207_vm2, %v6452_v60  ;;  %v6487_v16 = vcombine.low %v21489_v31, %v21488_v58  ;;  %v19069_v39 = vpop.eup %13057  ;;  %v3153_v56 = vmax.f32 %v1535_v38, 1e-12  ;;  %v21493_v63 = vld [vmem:[#allocation53_spill] sm:$0xff]  ;;  %v19114_v8 = vpop.xlane.xlu1 %806  ;;  %v21499_v58 = vld [vmem:[#allocation54_spill] sm:$0xff] }
 0x348   :  { %vm1547_vm9 = vcmp.eq.f32.partialorder %v18971_v43, 0.0  ;;  %11503 = vmatprep.mubr.msk.f32.mxu0 %vm4207_vm2, %v6469_v2  ;;  %v6471_v62 = vcombine.low %v21490_v40, %v3604_v27  ;;  %v6488_v19 = vcombine.low %v21492_v13, %v21491_v49  ;;  %v3151_v32 = vmax.f32 %v1521_v52, 1e-12  ;;  %v21495_v2 = vld [vmem:[#allocation56_spill] sm:$0xff] }
 0x349   :  { %v1675_v41 = vsel %vm1673_vm7, %v1674_v45, %v1672_v42  ;;  %v1546_v0 = vsel %vm1545_vm8, %v18971_v43, %v1544_v3  ;;  %v1548_v51 = vand.u32 2147483648, %v18971_v43  ;;  %v6478_v4 = vrot.slane %v6470_v59, %v13863_v33  ;;  %v13519_v43 = vld [vmem:[%s21259_s0 + $0x11e] sm:$0x3]  ;;  %v21498_v3 = vld [vmem:[#allocation57_spill] sm:$0xff] }
 0x34a   :  { %v13060_v20 = vpop.eup %13059  ;;  %v6485_v30 = vrot.slane %v6471_v62, %v13863_v33  ;;  %v6502_v9 = vrot.slane %v6488_v19, %v13863_v33  ;;  %13065 = vrsqrt.f32 %v19038_v25  ;;  %vm1699_vm10 = vcmp.eq.f32.partialorder %v18996_v24, inf  ;;  %v21497_v42 = vld [vmem:[#allocation58_spill] sm:$0xff]  ;;  %v19124_v40 = vpop.xlane.xlu0 %752 }
 0x34b   :  { %13067 = vrcp.f32 %v3147_v28  ;;  %v1698_v37 = vmul.f32 %v13060_v20, %v18996_v24  ;;  %v6495_v44 = vrot.slane %v6487_v16, %v13863_v33  ;;  %v1549_v55 = vsel %vm1547_vm9, %v1548_v51, %v1546_v0  ;;  %v21494_v28 = vld [vmem:[#allocation45_spill] sm:$0xff] }
 0x34c   :  { %13069 = vrcp.f32 %v3153_v56  ;;  %vm1701_vm11 = vcmp.eq.f32.partialorder %v18996_v24, 0.0  ;;  %v6486_v46 = vcombine.low %v6478_v4, %v6485_v30  ;;  %v19096_v14 = vpop.eup %13061  ;;  %v3173_v53 = vmax.f32 %v1675_v41, 1e-12  ;;  %v13520_v30 = vld [vmem:[%s21259_s0 + $0x15e] sm:$0x3] }
 0x34d   :  { %13071 = vrcp.f32 %v3151_v32  ;;  %v1700_v11 = vsel %vm1699_vm10, %v18996_v24, %v1698_v37  ;;  %v6503_v45 = vcombine.low %v6495_v44, %v6502_v9  ;;  %v1702_v35 = vand.u32 2147483648, %v18996_v24  ;;  %v21500_v37 = vld [vmem:[#allocation60_spill] sm:$0xff]  ;;  %v21501_v44 = vld [vmem:[#allocation59_spill] sm:$0xff] }
 0x34e   :  { %vm1685_vm12 = vcmp.eq.f32.partialorder %v19011_v48, inf  ;;  %11504 = vmatmul.mubr.msk.f32.gmra.mrb[6].mxu0 %vm4207_vm2, %v6486_v46  ;;  %13073 = vrsqrt.f32 %v19052_v12  ;;  %v3668_v38 = vmul.f32 %v13519_v43, %v18826_v54  ;;  %v3155_v60 = vmax.f32 %v1549_v55, 1e-12  ;;  %v19146_v46 = vpop.xlane.xlu1 %818 }
 0x34f   :  { %v13064_v6 = vpop.eup %13063  ;;  %11506 = vmatprep.mubr.msk.f32.mxu0 %vm4207_vm2, %v6503_v45  ;;  %v6504_v52 = vcombine.low %v21494_v28, %v21493_v63  ;;  %v6521_v27 = vcombine.low %v21496_v1, %v21495_v2  ;;  %v6522_v26 = vcombine.low %v21498_v3, %v21497_v42  ;;  %v1703_v59 = vsel %vm1701_vm11, %v1702_v35, %v1700_v11  ;;  %v21502_v45 = vld [vmem:[#allocation63_spill] sm:$0xff]  ;;  %v21503_v35 = vld [vmem:[#allocation62_spill] sm:$0xff]  ;;  %v21506_v28 = vld [vmem:[#allocation61_spill] sm:$0xff]  ;;  %v19162_v2 = vpop.xlane.xlu0 %812 }
 0x350   :  { %v1684_v54 = vmul.f32 %v13064_v6, %v19011_v48  ;;  %v6505_v31 = vcombine.low %v21499_v58, %v3668_v38  ;;  %13075 = vrsqrt.f32 %v19082_v61  ;;  %vm1687_vm13 = vcmp.eq.f32.partialorder %v19011_v48, 0.0  ;;  %v21504_v38 = vld [vmem:[#allocation65_spill] sm:$0xff]  ;;  %v21505_v6 = vld [vmem:[#allocation64_spill] sm:$0xff] }
 0x351   :  { %13077 = vrcp.f32 %v3173_v53  ;;  %v1688_v16 = vand.u32 2147483648, %v19011_v48  ;;  %v6536_v56 = vrot.slane %v6522_v26, %v13863_v33  ;;  %vm1727_vm14 = vcmp.eq.f32.partialorder %v19038_v25, inf }
 0x352   :  { %v1686_v24 = vsel %vm1685_vm12, %v19011_v48, %v1684_v54  ;;  %v6512_v62 = vrot.slane %v6504_v52, %v13863_v33  ;;  %v6519_v49 = vrot.slane %v6505_v31, %v13863_v33  ;;  %v3177_v13 = vmax.f32 %v1703_v59, 1e-12 }
 0x353   :  { %vm1729_vm15 = vcmp.eq.f32.partialorder %v19038_v25, 0.0  ;;  %v1730_v19 = vand.u32 2147483648, %v19038_v25  ;;  %v6529_v32 = vrot.slane %v6521_v27, %v13863_v33  ;;  %13079 = vrsqrt.f32 %v19091_v17 }
 0x354   :  { %v13066_v41 = vpop.eup %13065  ;;  %13081 = vrcp.f32 %v3155_v60  ;;  %v1689_v0 = vsel %vm1687_vm13, %v1688_v16, %v1686_v24  ;;  %vm1713_vm3 = vcmp.eq.f32.partialorder %v19052_v12, inf  ;;  %v6520_v48 = vcombine.low %v6512_v62, %v6519_v49 }
 0x355   :  { %v19137_v51 = vpop.eup %13067  ;;  %v1726_v20 = vmul.f32 %v13066_v41, %v19038_v25  ;;  %v6537_v4 = vcombine.low %v6529_v32, %v6536_v56  ;;  %v3732_v9 = vmul.f32 %v13520_v30, %v18820_v21  ;;  %v6538_v55 = vcombine.low %v21501_v44, %v21500_v37  ;;  %v21509_v44 = vld [vmem:[#allocation70_spill] sm:$0xff] }
 0x356   :  { %v19148_v53 = vpop.eup %13069  ;;  %vm1715_vm0 = vcmp.eq.f32.partialorder %v19052_v12, 0.0  ;;  %v1716_v11 = vand.u32 2147483648, %v19052_v12  ;;  %11507 = vmatmul.mubr.msk.f32.gmra.mrb[8].mxu0 %vm4207_vm2, %v6520_v48  ;;  %v6555_v43 = vcombine.low %v21503_v35, %v21502_v45  ;;  %v6556_v60 = vcombine.low %v21505_v6, %v21504_v38  ;;  %v21512_v45 = vld [vmem:[#allocation71_spill] sm:$0xff] }
 0x357   :  { %v19157_v21 = vpop.eup %13071  ;;  %13083 = vrcp.f32 %v3177_v13  ;;  %v3175_v63 = vmax.f32 %v1689_v0, 1e-12  ;;  %11509 = vmatprep.mubr.msk.f32.mxu0 %vm4207_vm2, %v6537_v4  ;;  %vm1755_vm4 = vcmp.eq.f32.partialorder %v19082_v61, inf  ;;  %v6539_v52 = vcombine.low %v21506_v28, %v3732_v9  ;;  %v19185_v13 = vpop.xlane.xlu1 %830  ;;  %v13521_v0 = vld [vmem:[%s21259_s0 + $0x19e] sm:$0x3] }
 0x358   :  { %v13074_v1 = vpop.eup %13073  ;;  %v1728_v27 = vsel %vm1727_vm14, %v19038_v25, %v1726_v20  ;;  %vm1757_vm5 = vcmp.eq.f32.partialorder %v19082_v61, 0.0  ;;  %v1758_v42 = vand.u32 2147483648, %v19082_v61  ;;  %v6570_v3 = vrot.slane %v6556_v60, %v13863_v33  ;;  %v21507_v20 = vld [vmem:[#allocation67_spill] sm:$0xff]  ;;  %v21508_v4 = vld [vmem:[#allocation66_spill] sm:$0xff] }
 0x359   :  { %13085 = vrsqrt.f32 %v19114_v8  ;;  %v1712_v26 = vmul.f32 %v13074_v1, %v19052_v12  ;;  %v6546_v59 = vrot.slane %v6538_v55, %v13863_v33  ;;  %v6553_v54 = vrot.slane %v6539_v52, %v13863_v33  ;;  %v21510_v55 = vld [vmem:[#allocation69_spill] sm:$0xff] }
 0x35a   :  { %13087 = vrsqrt.f32 %v19124_v40  ;;  %v13076_v58 = vpop.eup %13075  ;;  %vm1741_vm6 = vcmp.eq.f32.partialorder %v19091_v17, inf  ;;  %vm1743_vm7 = vcmp.eq.f32.partialorder %v19091_v17, 0.0  ;;  %v1744_v31 = vand.u32 2147483648, %v19091_v17 }
 0x35b   :  { %v6563_v16 = vrot.slane %v6555_v43, %v13863_v33  ;;  %v19179_v56 = vpop.eup %13077  ;;  %13089 = vrcp.f32 %v3175_v63  ;;  %v1714_v24 = vsel %vm1713_vm3, %v19052_v12, %v1712_v26  ;;  %v1754_v62 = vmul.f32 %v13076_v58, %v19082_v61  ;;  %v19203_v43 = vpop.xlane.xlu0 %824 }
 0x35c   :  { %v6554_v49 = vcombine.low %v6546_v59, %v6553_v54  ;;  %v1731_v32 = vsel %vm1729_vm15, %v1730_v19, %v1728_v27  ;;  %v3796_v48 = vmul.f32 %v13521_v0, %v18886_v18  ;;  %v6572_v30 = vcombine.low %v21508_v4, %v21507_v20  ;;  %v21511_v19 = vld [vmem:[#allocation72_spill] sm:$0xff]  ;;  %v19229_v58 = vpop.xlane.xlu1 %842  ;;  %v21514_v20 = vld [vmem:[#allocation74_spill] sm:$0xff]  ;;  %v21515_v4 = vld [vmem:[#allocation73_spill] sm:$0xff] }
 0x35d   :  { %v6571_v41 = vcombine.low %v6563_v16, %v6570_v3  ;;  %v13080_v9 = vpop.eup %13079  ;;  %v1717_v37 = vsel %vm1715_vm0, %v1716_v11, %v1714_v24  ;;  %v6589_v25 = vcombine.low %v21510_v55, %v21509_v44  ;;  %v6590_v35 = vcombine.low %v21512_v45, %v21511_v19  ;;  %v21513_v11 = vld [vmem:[#allocation68_spill] sm:$0xff] }
 0x35e   :  { %11510 = vmatmul.mubr.msk.f32.gmra.mrb[10].mxu0 %vm4207_vm2, %v6554_v49  ;;  %13091 = vrsqrt.f32 %v19146_v46  ;;  %v19205_v18 = vpop.eup %13081  ;;  %v1756_v38 = vsel %vm1755_vm4, %v19082_v61, %v1754_v62  ;;  %v1740_v12 = vmul.f32 %v13080_v9, %v19091_v17  ;;  %vm1895_vm8 = vcmp.eq.f32.partialorder %v19114_v8, inf }
 0x35f   :  { %11512 = vmatprep.mubr.msk.f32.mxu0 %vm4207_vm2, %v6571_v41  ;;  %v6573_v6 = vcombine.low %v21513_v11, %v3796_v48  ;;  %v3181_v60 = vmax.f32 %v1731_v32, 1e-12  ;;  %vm1897_vm9 = vcmp.eq.f32.partialorder %v19114_v8, 0.0  ;;  %v1898_v63 = vand.u32 2147483648, %v19114_v8  ;;  %v13522_v41 = vld [vmem:[%s21259_s0 + $0x1de] sm:$0x3]  ;;  %v19240_v48 = vpop.xlane.xlu0 %836 }
 0x360   :  { %v6604_v28 = vrot.slane %v6590_v35, %v13863_v33  ;;  %v3179_v52 = vmax.f32 %v1717_v37, 1e-12  ;;  %v1742_v1 = vsel %vm1741_vm6, %v19091_v17, %v1740_v12  ;;  %v6580_v27 = vrot.slane %v6572_v30, %v13863_v33 }
 0x361   :  { %v6587_v3 = vrot.slane %v6573_v6, %v13863_v33  ;;  %v19222_v26 = vpop.eup %13083  ;;  %v1759_v59 = vsel %vm1757_vm5, %v1758_v42, %v1756_v38  ;;  %vm1769_vm10 = vcmp.eq.f32.partialorder %v19124_v40, inf  ;;  %vm1771_vm11 = vcmp.eq.f32.partialorder %v19124_v40, 0.0  ;;  %v19265_v6 = vpop.xlane.xlu1 %902 }
 0x362   :  { %v6597_v54 = vrot.slane %v6589_v25, %v13863_v33  ;;  %v1745_v24 = vsel %vm1743_vm7, %v1744_v31, %v1742_v1  ;;  %v1772_v62 = vand.u32 2147483648, %v19124_v40  ;;  %13093 = vrsqrt.f32 %v19162_v2 }
 0x363   :  { %v13086_v16 = vpop.eup %13085  ;;  %v6588_v49 = vcombine.low %v6580_v27, %v6587_v3  ;;  %13095 = vrcp.f32 %v3181_v60  ;;  %v3860_v0 = vmul.f32 %v13522_v41, %v18881_v36  ;;  %v3185_v17 = vmax.f32 %v1759_v59, 1e-12  ;;  %v21516_v36 = vld [vmem:[#allocation75_spill] sm:$0xff]  ;;  %v21517_v59 = vld [vmem:[#allocation17_spill] sm:$0xff] }
 0x364   :  { %v13088_v32 = vpop.eup %13087  ;;  %v1894_v61 = vmul.f32 %v13086_v16, %v19114_v8  ;;  %v6605_v42 = vcombine.low %v6597_v54, %v6604_v28  ;;  %13097 = vrcp.f32 %v3179_v52  ;;  %v6606_v30 = vcombine.low %v21515_v4, %v21514_v20  ;;  %v21518_v4 = vld [vmem:[#allocation18_spill] sm:$0xff] }
 0x365   :  { %v1768_v31 = vmul.f32 %v13088_v32, %v19124_v40  ;;  %11513 = vmatmul.mubr.msk.f32.gmra.mrb[12].mxu0 %vm4207_vm2, %v6588_v49  ;;  %v19246_v9 = vpop.eup %13089  ;;  %v3183_v37 = vmax.f32 %v1745_v24, 1e-12  ;;  %v6607_v55 = vcombine.low %v21516_v36, %v3860_v0  ;;  %13099 = vrsqrt.f32 %v19185_v13  ;;  %v13524_v49 = vld [vmem:[%s21259_s0 + $0x24] sm:$0x3]  ;;  %v19306_v0 = vpop.xlane.xlu1 %914 }
 0x366   :  { %v1896_v44 = vsel %vm1895_vm8, %v19114_v8, %v1894_v61  ;;  %11515 = vmatprep.mubr.msk.f32.mxu0 %vm4207_vm2, %v6605_v42  ;;  %vm1923_vm12 = vcmp.eq.f32.partialorder %v19146_v46, inf  ;;  %v6614_v45 = vrot.slane %v6606_v30, %v13863_v33  ;;  %13101 = vrsqrt.f32 %v19203_v43  ;;  %v13525_v61 = vld [vmem:[%s21259_s0 + $0x28] sm:$0x3] }
 0x367   :  { %v1899_v25 = vsel %vm1897_vm9, %v1898_v63, %v1896_v44  ;;  %v1770_v19 = vsel %vm1769_vm10, %v19124_v40, %v1768_v31  ;;  %v6621_v11 = vrot.slane %v6607_v55, %v13863_v33  ;;  %13103 = vrcp.f32 %v3185_v17  ;;  %v19272_v63 = vpop.xlane.xlu0 %848  ;;  %v21519_v55 = vld [vmem:[#allocation19_spill] sm:$0xff] }
 0x368   :  { %v13092_v35 = vpop.eup %13091  ;;  %v3205_v38 = vmax.f32 %v1899_v25, 1e-12  ;;  %v1773_v12 = vsel %vm1771_vm11, %v1772_v62, %v1770_v19  ;;  %vm1925_vm13 = vcmp.eq.f32.partialorder %v19146_v46, 0.0  ;;  %v1926_v60 = vand.u32 2147483648, %v19146_v46 }
 0x369   :  { %v1922_v8 = vmul.f32 %v13092_v35, %v19146_v46  ;;  %13105 = vrcp.f32 %v3183_v37  ;;  %vm1909_vm14 = vcmp.eq.f32.partialorder %v19162_v2, inf  ;;  %vm1911_vm15 = vcmp.eq.f32.partialorder %v19162_v2, 0.0 }
 0x36a   :  { %v6622_v40 = vcombine.low %v6614_v45, %v6621_v11  ;;  %13107 = vrcp.f32 %v3205_v38  ;;  %v3187_v28 = vmax.f32 %v1773_v12, 1e-12  ;;  %v1912_v1 = vand.u32 2147483648, %v19162_v2 }
 0x36b   :  { %v1924_v52 = vsel %vm1923_vm12, %v19146_v46, %v1922_v8  ;;  %vm1951_vm3 = vcmp.eq.f32.partialorder %v19185_v13, inf  ;;  %vm1953_vm0 = vcmp.eq.f32.partialorder %v19185_v13, 0.0  ;;  %13109 = vrsqrt.f32 %v19229_v58  ;;  %v13523_v46 = vld [vmem:[%s21259_s0 + $0x20] sm:$0x3]  ;;  %v19319_v37 = vpop.xlane.xlu0 %908 }
 0x36c   :  { %v1927_v27 = vsel %vm1925_vm13, %v1926_v60, %v1924_v52  ;;  %11516 = vmatmul.mubr.msk.f32.gmra.mrb[14].mxu0 %vm4207_vm2, %v6622_v40  ;;  %v13094_v3 = vpop.eup %13093  ;;  %v1954_v54 = vand.u32 2147483648, %v19185_v13  ;;  %vm1937_vm4 = vcmp.eq.f32.partialorder %v19203_v43, inf  ;;  %13111 = vrsqrt.f32 %v19240_v48  ;;  %v21520_v40 = vld [vmem:[#allocation13_spill] sm:$0xff] }
 0x36d   :  { %11520 = vmatprep.mubr.msk.f32.mxu0 %vm4207_vm2, %v21517_v59  ;;  %v3414_v16 = vmul.f32 %v13523_v46, %v19013_v57  ;;  %v19291_v24 = vpop.eup %13095  ;;  %v1908_v62 = vmul.f32 %v13094_v3, %v19162_v2  ;;  %v3418_v32 = vmul.f32 %v13524_v49, %v19069_v39  ;;  %v3422_v42 = vmul.f32 %v13525_v61, %v19046_v23  ;;  %v13526_v57 = vld [vmem:[%s21259_s0 + $0x2c] sm:$0x3]  ;;  %v21521_v3 = vld [vmem:[#allocation14_spill] sm:$0xff]  ;;  %v21522_v61 = vld [vmem:[#allocation16_spill] sm:$0xff] }
 0x36e   :  { %v3426_v41 = vmul.f32 %v13526_v57, %v19137_v51  ;;  %v19308_v17 = vpop.eup %13097  ;;  %13113 = vrcp.f32 %v3187_v28  ;;  %v3209_v31 = vmax.f32 %v1927_v27, 1e-12  ;;  %vm1939_vm5 = vcmp.eq.f32.partialorder %v19203_v43, 0.0  ;;  %v19350_v28 = vpop.xlane.xlu1 %926 }
 0x36f   :  { %v1940_v39 = vand.u32 2147483648, %v19203_v43  ;;  %v13100_v20 = vpop.eup %13099  ;;  %v1910_v23 = vsel %vm1909_vm14, %v19162_v2, %v1908_v62  ;;  %vm1979_vm6 = vcmp.eq.f32.partialorder %v19229_v58, inf  ;;  %v3969_v51 = vcombine.low %v3414_v16, %v3418_v32 }
 0x370   :  { %11521 = vmatmul.mubr.msk.f32.vlgmr.msra.gmra.mrb[0].mxu0 %vm4207_vm2, %v21518_v4  ;;  %v3970_v30 = vcombine.low %v3422_v42, %v3426_v41  ;;  %13115 = vrsqrt.f32 %v19265_v6  ;;  %v1913_v44 = vsel %vm1911_vm15, %v1912_v1, %v1910_v23  ;;  %v1950_v36 = vmul.f32 %v13100_v20, %v19185_v13  ;;  %v13102_v19 = vpop.eup %13101  ;;  %v13527_v42 = vld [vmem:[%s21259_s0 + $0x30] sm:$0x3]  ;;  %v13528_v41 = vld [vmem:[%s21259_s0 + $0x34] sm:$0x3]  ;;  %v21523_v4 = vld [vmem:[#allocation23_spill] sm:$0xff] }
 0x371   :  { %11523 = vmatprep.mubr.msk.f32.mxu0 %vm4207_vm2, %v21519_v55  ;;  %vm1981_vm7 = vcmp.eq.f32.partialorder %v19229_v58, 0.0  ;;  %v1982_v25 = vand.u32 2147483648, %v19229_v58  ;;  %13117 = vrsqrt.f32 %v19272_v63  ;;  %11545 = vmatpush3.msk.msra.mxu0 %vm4238_vm1, %v18959_v7  ;;  %vm1965_vm8 = vcmp.eq.f32.partialorder %v19240_v48, inf  ;;  %v19335_v35 = vpop.eup %13103 }
 0x372   :  { %vm1967_vm9 = vcmp.eq.f32.partialorder %v19240_v48, 0.0  ;;  %v3977_v2 = vrot.slane %v3969_v51, %v13863_v33  ;;  %v3984_v45 = vrot.slane %v3970_v30, %v13863_v33  ;;  %v3207_v38 = vmax.f32 %v1913_v44, 1e-12  ;;  %v19401_v44 = vld [vmem:[#allocation2 + $0x20] sm:$0x7] }
 0x373   :  { %v1952_v12 = vsel %vm1951_vm3, %v19185_v13, %v1950_v36  ;;  %v1936_v11 = vmul.f32 %v13102_v19, %v19203_v43  ;;  %13119 = vrsqrt.f32 %v19306_v0  ;;  %v19342_v7 = vpop.eup %13105  ;;  %v1968_v8 = vand.u32 2147483648, %v19240_v48  ;;  %v19370_v13 = vpop.xlane.xlu0 %920  ;;  %11570 = vmatprep.subr.msk.mxu0 %vm4238_vm1, %v19401_v44 }
 0x374   :  { %13121 = vrcp.f32 %v3209_v31  ;;  %v19345_v60 = vcombine.low %v3977_v2, %v3984_v45  ;;  %11524 = vmatmul.mubr.msk.f32.gmra.mrb[2].mxu0 %vm4207_vm2, %v21520_v40  ;;  %vm2119_vm10 = vcmp.eq.f32.partialorder %v19265_v6, inf  ;;  %v19352_v52 = vpop.eup %13107  ;;  %v1955_v1 = vsel %vm1953_vm0, %v1954_v54, %v1952_v12  ;;  %v21524_v40 = vld [vmem:[#allocation28_spill] sm:$0xff] }
 0x375   :  { %v1938_v27 = vsel %vm1937_vm4, %v19203_v43, %v1936_v11  ;;  %11526 = vmatprep.mubr.msk.f32.mxu0 %vm4207_vm2, %v21521_v3  ;;  %vm2121_vm11 = vcmp.eq.f32.partialorder %v19265_v6, 0.0  ;;  %v2122_v59 = vand.u32 2147483648, %v19265_v6  ;;  %v13110_v46 = vpop.eup %13109  ;;  %vm1993_vm12 = vcmp.eq.f32.partialorder %v19272_v63, inf }
 0x376   :  { %v1941_v16 = vsel %vm1939_vm5, %v1940_v39, %v1938_v27  ;;  %11367 = vmatprep.mubr.msk.f32.mxu1 %vm4207_vm2, %v19345_v60  ;;  %vm1995_vm13 = vcmp.eq.f32.partialorder %v19272_v63, 0.0  ;;  %13123 = vrsqrt.f32 %v19319_v37  ;;  %v13112_v54 = vpop.eup %13111  ;;  %v1978_v62 = vmul.f32 %v13110_v46, %v19229_v58 }
 0x377   :  { %13125 = vrcp.f32 %v3207_v38  ;;  %v1996_v49 = vand.u32 2147483648, %v19272_v63  ;;  %vm2147_vm14 = vcmp.eq.f32.partialorder %v19306_v0, inf  ;;  %v3213_v43 = vmax.f32 %v1955_v1, 1e-12  ;;  %v19421_v1 = vpop.xlane.xlu0 %932 }
 0x378   :  { %v1964_v32 = vmul.f32 %v13112_v54, %v19240_v48  ;;  %11527 = vmatmul.mubr.msk.f32.gmra.mrb[4].mxu0 %vm4207_vm2, %v21522_v61  ;;  %v3430_v57 = vmul.f32 %v13527_v42, %v19096_v14  ;;  %v3434_v31 = vmul.f32 %v13528_v41, %v19157_v21  ;;  %v19386_v39 = vpop.eup %13113  ;;  %v3211_v20 = vmax.f32 %v1941_v16, 1e-12  ;;  %v13529_v14 = vld [vmem:[%s21259_s0 + $0x38] sm:$0x3]  ;;  %v13530_v21 = vld [vmem:[%s21259_s0 + $0x3c] sm:$0x3] }
 0x379   :  { %v1980_v23 = vsel %vm1979_vm6, %v19229_v58, %v1978_v62  ;;  %11529 = vmatprep.mubr.msk.f32.mxu0 %vm4207_vm2, %v21523_v4  ;;  %v3438_v51 = vmul.f32 %v13529_v14, %v19148_v53  ;;  %v3442_v30 = vmul.f32 %v13530_v21, %v19205_v18  ;;  %13127 = vrsqrt.f32 %v19350_v28  ;;  %v19409_v53 = vpop.xlane.xlu1 %938  ;;  %v21525_v16 = vld [vmem:[#allocation32_spill] sm:$0xff]  ;;  %v21527_v4 = vld [vmem:[#allocation41_spill] sm:$0xff] }
 0x37a   :  { %v13116_v36 = vpop.eup %13115  ;;  %v1983_v55 = vsel %vm1981_vm7, %v1982_v25, %v1980_v23  ;;  %v1966_v19 = vsel %vm1965_vm8, %v19240_v48, %v1964_v32  ;;  %v3986_v2 = vcombine.low %v3430_v57, %v3434_v31  ;;  %vm2149_vm15 = vcmp.eq.f32.partialorder %v19306_v0, 0.0 }
 0x37b   :  { %v13118_v45 = vpop.eup %13117  ;;  %v1969_v18 = vsel %vm1967_vm9, %v1968_v8, %v1966_v19  ;;  %v2118_v38 = vmul.f32 %v13116_v36, %v19265_v6  ;;  %v3987_v58 = vcombine.low %v3438_v51, %v3442_v30  ;;  %13129 = vrcp.f32 %v3213_v43  ;;  %v19464_v51 = vpop.xlane.xlu0 %944  ;;  %v21528_v19 = vld [vmem:[#allocation46_spill] sm:$0xff] }
 0x37c   :  { %v3217_v25 = vmax.f32 %v1983_v55, 1e-12  ;;  %v1992_v12 = vmul.f32 %v13118_v45, %v19272_v63  ;;  %v2150_v11 = vand.u32 2147483648, %v19306_v0  ;;  %11530 = vmatmul.mubr.msk.f32.gmra.mrb[6].mxu0 %vm4207_vm2, %v21524_v40  ;;  %v3215_v3 = vmax.f32 %v1969_v18, 1e-12 }
 0x37d   :  { %v13120_v27 = vpop.eup %13119  ;;  %v2120_v48 = vsel %vm2119_vm10, %v19265_v6, %v2118_v38  ;;  %v3994_v8 = vrot.slane %v3986_v2, %v13863_v33  ;;  %v4001_v46 = vrot.slane %v3987_v58, %v13863_v33  ;;  %11532 = vmatprep.mubr.msk.f32.mxu0 %vm4207_vm2, %v21525_v16  ;;  %13131 = vrcp.f32 %v3211_v20  ;;  %v19449_v20 = vpop.xlane.xlu1 %998  ;;  %v21529_v38 = vld [vmem:[#allocation47_spill] sm:$0xff]  ;;  %v21530_v16 = vld [vmem:[#allocation48_spill] sm:$0xff] }
 0x37e   :  { %v19430_v54 = vpop.eup %13121  ;;  %v2123_v62 = vsel %vm2121_vm11, %v2122_v59, %v2120_v48  ;;  %v1994_v43 = vsel %vm1993_vm12, %v19272_v63, %v1992_v12  ;;  %v2146_v32 = vmul.f32 %v13120_v27, %v19306_v0  ;;  %13133 = vrsqrt.f32 %v19370_v13  ;;  %v21526_v59 = vld [vmem:[#allocation39_spill] sm:$0xff] }
 0x37f   :  { %v3237_v61 = vmax.f32 %v2123_v62, 1e-12  ;;  %v1997_v42 = vsel %vm1995_vm13, %v1996_v49, %v1994_v43  ;;  %v19440_v57 = vcombine.low %v3994_v8, %v4001_v46  ;;  %13135 = vrcp.f32 %v3217_v25  ;;  %v13532_v25 = vld [vmem:[%s21259_s0 + $0x64] sm:$0x3]  ;;  %v19512_v62 = vpop.xlane.xlu0 %1004 }
 0x380   :  { %v13124_v41 = vpop.eup %13123  ;;  %v3219_v31 = vmax.f32 %v1997_v42, 1e-12  ;;  %v2148_v6 = vsel %vm2147_vm14, %v19306_v0, %v2146_v32  ;;  %vm2133_vm3 = vcmp.eq.f32.partialorder %v19319_v37, inf  ;;  %11533 = vmatmul.mubr.msk.f32.gmra.mrb[8].mxu0 %vm4207_vm2, %v21526_v59  ;;  %13137 = vrcp.f32 %v3215_v3 }
 0x381   :  { %v19451_v63 = vpop.eup %13125  ;;  %v2151_v49 = vsel %vm2149_vm15, %v2150_v11, %v2148_v6  ;;  %v2132_v23 = vmul.f32 %v13124_v41, %v19319_v37  ;;  %vm2135_vm0 = vcmp.eq.f32.partialorder %v19319_v37, 0.0  ;;  %11368 = vmatmul.mubr.msk.f32.gmra.mrb[2].mxu1 %vm4207_vm2, %v19440_v57  ;;  %11535 = vmatprep.mubr.msk.f32.mxu0 %vm4207_vm2, %v21527_v4  ;;  %13139 = vrcp.f32 %v3237_v61  ;;  %v13533_v11 = vld [vmem:[%s21259_s0 + $0x68] sm:$0x3]  ;;  %v19498_v3 = vpop.xlane.xlu1 %1010  ;;  %v13536_v4 = vld [vmem:[%s21259_s0 + $0x1e6] sm:$0x3] }
 0x382   :  { %v2136_v14 = vand.u32 2147483648, %v19319_v37  ;;  %vm2175_vm4 = vcmp.eq.f32.partialorder %v19350_v28, inf  ;;  %vm2177_vm5 = vcmp.eq.f32.partialorder %v19350_v28, 0.0  ;;  %v3241_v0 = vmax.f32 %v2151_v49, 1e-12 }
 0x383   :  { %v2134_v21 = vsel %vm2133_vm3, %v19319_v37, %v2132_v23  ;;  %v2178_v30 = vand.u32 2147483648, %v19350_v28  ;;  %13141 = vrsqrt.f32 %v19409_v53  ;;  %v13128_v36 = vpop.eup %13127  ;;  %vm2161_vm6 = vcmp.eq.f32.partialorder %v19370_v13, inf  ;;  %v13531_v37 = vld [vmem:[%s21259_s0 + $0x60] sm:$0x3]  ;;  %v13535_v49 = vld [vmem:[%s21259_s0 + $0x1e2] sm:$0x3] }
 0x384   :  { %13143 = vrcp.f32 %v3219_v31  ;;  %v2137_v55 = vsel %vm2135_vm0, %v2136_v14, %v2134_v21  ;;  %vm2163_vm7 = vcmp.eq.f32.partialorder %v19370_v13, 0.0  ;;  %11536 = vmatmul.mubr.msk.f32.gmra.mrb[10].mxu0 %vm4207_vm2, %v21528_v19  ;;  %v2174_v45 = vmul.f32 %v13128_v36, %v19350_v28 }
 0x385   :  { %v3239_v2 = vmax.f32 %v2137_v55, 1e-12  ;;  %13145 = vrsqrt.f32 %v19421_v1  ;;  %v3478_v18 = vmul.f32 %v13531_v37, %v19179_v56  ;;  %11538 = vmatprep.mubr.msk.f32.mxu0 %vm4207_vm2, %v21529_v38  ;;  %v19483_v58 = vpop.eup %13129  ;;  %v3482_v12 = vmul.f32 %v13532_v25, %v19246_v9  ;;  %v13534_v56 = vld [vmem:[%s21259_s0 + $0x6c] sm:$0x3] }
 0x386   :  { %v3486_v40 = vmul.f32 %v13533_v11, %v19222_v26  ;;  %v3490_v27 = vmul.f32 %v13534_v56, %v19308_v17  ;;  %13147 = vrsqrt.f32 %v19449_v20  ;;  %v2176_v9 = vsel %vm2175_vm4, %v19350_v28, %v2174_v45 }
 0x387   :  { %13149 = vrcp.f32 %v3241_v0  ;;  %v2164_v48 = vand.u32 2147483648, %v19370_v13  ;;  %vm2203_vm8 = vcmp.eq.f32.partialorder %v19409_v53, inf  ;;  %v19505_v26 = vpop.eup %13131  ;;  %v2179_v8 = vsel %vm2177_vm5, %v2178_v30, %v2176_v9  ;;  %v13537_v0 = vld [vmem:[%s21259_s0 + $0x1ea] sm:$0x3] }
 0x388   :  { %13151 = vrcp.f32 %v3239_v2  ;;  %vm2205_vm9 = vcmp.eq.f32.partialorder %v19409_v53, 0.0  ;;  %v4003_v17 = vcombine.low %v3478_v18, %v3482_v12  ;;  %v4004_v46 = vcombine.low %v3486_v40, %v3490_v27  ;;  %11539 = vmatmul.mubr.msk.f32.gmra.mrb[12].mxu0 %vm4207_vm2, %v21530_v16  ;;  %v13134_v43 = vpop.eup %13133 }
 0x389   :  { %v2206_v32 = vand.u32 2147483648, %v19409_v53  ;;  %vm2189_vm10 = vcmp.eq.f32.partialorder %v19421_v1, inf  ;;  %v2192_v61 = vand.u32 2147483648, %v19421_v1  ;;  %13153 = vrsqrt.f32 %v19464_v51  ;;  %v19518_v28 = vpop.eup %13135 }
 0x38a   :  { %v2160_v42 = vmul.f32 %v13134_v43, %v19370_v13  ;;  %vm2191_vm11 = vcmp.eq.f32.partialorder %v19421_v1, 0.0  ;;  %v4011_v41 = vrot.slane %v4003_v17, %v13863_v33  ;;  %v4018_v31 = vrot.slane %v4004_v46, %v13863_v33  ;;  %v19525_v6 = vpop.eup %13137 }
 0x38b   :  { %vm2343_vm12 = vcmp.eq.f32.partialorder %v19449_v20, inf  ;;  %v3245_v59 = vmax.f32 %v2179_v8, 1e-12  ;;  %vm2345_vm13 = vcmp.eq.f32.partialorder %v19449_v20, 0.0  ;;  %v19532_v23 = vmul.f32 %v13535_v49, %v18905_v22  ;;  %v19546_v30 = vpop.eup %13139 }
 0x38c   :  { %v19538_v14 = vmul.f32 %v13536_v4, %v18899_v29  ;;  %v19544_v21 = vmul.f32 %v13537_v0, %v18954_v10  ;;  %v2162_v22 = vsel %vm2161_vm6, %v19370_v13, %v2160_v42  ;;  %v19551_v36 = vcombine.low %v4011_v41, %v4018_v31  ;;  %v19555_v29 = vpop.xlane.xlu1 %1022  ;;  %v19571_v13 = vpop.xlane.xlu0 %1016 }
 0x38d   :  { %v2346_v55 = vand.u32 2147483648, %v19449_v20  ;;  %13155 = vrsqrt.f32 %v19498_v3  ;;  %v13142_v19 = vpop.eup %13141  ;;  %v2165_v2 = vsel %vm2163_vm7, %v2164_v48, %v2162_v22  ;;  %vm2217_vm14 = vcmp.eq.f32.partialorder %v19464_v51, inf }
 0x38e   :  { %v21531_v10 = vmov 0.0   ;;  %v6827_v37 = vcombine.low %v19538_v14, %v19544_v21  ;;  %v19564_v18 = vpop.eup %13143  ;;  %v3243_v38 = vmax.f32 %v2165_v2, 1e-12  ;;  %v2202_v25 = vmul.f32 %v13142_v19, %v19409_v53  ;;  %11370 = vmatprep.mubr.msk.f32.mxu1 %vm4207_vm2, %v19551_v36 }
 0x38f   :  { %v6826_v45 = vcombine.low %v21531_v10, %v19532_v23  ;;  %vm2219_vm15 = vcmp.eq.f32.partialorder %v19464_v51, 0.0  ;;  %13157 = vrsqrt.f32 %v19512_v62  ;;  %v13146_v12 = vpop.eup %13145  ;;  %v2220_v11 = vand.u32 2147483648, %v19464_v51 }
 0x390   :  { %13159 = vrcp.f32 %v3245_v59  ;;  %v6841_v56 = vrot.slane %v6827_v37, %v13863_v33  ;;  %v13148_v27 = vpop.eup %13147  ;;  %v2204_v9 = vsel %vm2203_vm8, %v19409_v53, %v2202_v25  ;;  %v2188_v48 = vmul.f32 %v13146_v12, %v19421_v1  ;;  %v13538_v59 = vld [vmem:[%s21259_s0 + $0x70] sm:$0x3]  ;;  %v19602_v4 = vpop.xlane.xlu1 %1034 }
 0x391   :  { %v6834_v40 = vrot.slane %v6826_v45, %v13863_v33  ;;  %vm2371_vm3 = vcmp.eq.f32.partialorder %v19498_v3, inf  ;;  %v2374_v8 = vand.u32 2147483648, %v19498_v3  ;;  %v19582_v17 = vpop.eup %13149  ;;  %13161 = vrcp.f32 %v3243_v38  ;;  %v13542_v38 = vld [vmem:[%s21259_s0 + $0x1ee] sm:$0x3] }
 0x392   :  { %v2207_v46 = vsel %vm2205_vm9, %v2206_v32, %v2204_v9  ;;  %v2342_v16 = vmul.f32 %v13148_v27, %v19449_v20  ;;  %vm2373_vm0 = vcmp.eq.f32.partialorder %v19498_v3, 0.0  ;;  %v19588_v42 = vpop.eup %13151  ;;  %v2190_v31 = vsel %vm2189_vm10, %v19421_v1, %v2188_v48  ;;  %v13539_v32 = vld [vmem:[%s21259_s0 + $0x74] sm:$0x3]  ;;  %v13545_v48 = vld [vmem:[%s21259_s0 + $0x1fa] sm:$0x3] }
 0x393   :  { %v6842_v43 = vcombine.low %v6834_v40, %v6841_v56  ;;  %v3249_v41 = vmax.f32 %v2207_v46, 1e-12  ;;  %vm2357_vm4 = vcmp.eq.f32.partialorder %v19512_v62, inf  ;;  %v3494_v53 = vmul.f32 %v13538_v59, %v19291_v24  ;;  %v13154_v0 = vpop.eup %13153  ;;  %v13540_v24 = vld [vmem:[%s21259_s0 + $0x78] sm:$0x3] }
 0x394   :  { %v3498_v49 = vmul.f32 %v13539_v32, %v19342_v7  ;;  %v2193_v22 = vsel %vm2191_vm11, %v2192_v61, %v2190_v31  ;;  %v2344_v19 = vsel %vm2343_vm12, %v19449_v20, %v2342_v16  ;;  %v3502_v2 = vmul.f32 %v13540_v24, %v19335_v35  ;;  %v13541_v7 = vld [vmem:[%s21259_s0 + $0x7c] sm:$0x3]  ;;  %v19627_v35 = vpop.xlane.xlu0 %1028  ;;  %v19660_v59 = vpop.xlane.xlu1 %1094 }
 0x395   :  { %11541 = vmatprep.mubr.msk.f32.mxu0 %vm4207_vm2, %v6842_v43  ;;  %v3506_v45 = vmul.f32 %v13541_v7, %v19386_v39  ;;  %v3247_v1 = vmax.f32 %v2193_v22, 1e-12  ;;  %v2347_v61 = vsel %vm2345_vm13, %v2346_v55, %v2344_v19  ;;  %v2216_v37 = vmul.f32 %v13154_v0, %v19464_v51  ;;  %v13543_v39 = vld [vmem:[%s21259_s0 + $0x1f2] sm:$0x3] }
 0x396   :  { %v19625_v25 = vmul.f32 %v13542_v38, %v18944_v50  ;;  %13163 = vrcp.f32 %v3249_v41  ;;  %v4020_v12 = vcombine.low %v3494_v53, %v3498_v49  ;;  %v19633_v20 = vmul.f32 %v13543_v39, %v18998_v5  ;;  %v13544_v50 = vld [vmem:[%s21259_s0 + $0x1f6] sm:$0x3]  ;;  %v13547_v39 = vld [vmem:[%s21259_s0 + $0xa4] sm:$0x3] }
 0x397   :  { %v4021_v40 = vcombine.low %v3502_v2, %v3506_v45  ;;  %v13156_v55 = vpop.eup %13155  ;;  %v3269_v56 = vmax.f32 %v2347_v61, 1e-12  ;;  %v2218_v27 = vsel %vm2217_vm14, %v19464_v51, %v2216_v37  ;;  %v19642_v9 = vmul.f32 %v13544_v50, %v18961_v47 }
 0x398   :  { %v19648_v5 = vmul.f32 %v13545_v48, %v19032_v34  ;;  %13165 = vrcp.f32 %v3247_v1  ;;  %v2221_v46 = vsel %vm2219_vm15, %v2220_v11, %v2218_v27  ;;  %v2370_v16 = vmul.f32 %v13156_v55, %v19498_v3  ;;  %v19674_v19 = vpop.xlane.xlu0 %1040  ;;  %v19690_v61 = vpop.xlane.xlu1 %1106 }
 0x399   :  { %vm2359_vm5 = vcmp.eq.f32.partialorder %v19512_v62, 0.0  ;;  %v13158_v43 = vpop.eup %13157  ;;  %v4028_v41 = vrot.slane %v4020_v12, %v13863_v33  ;;  %v4035_v47 = vrot.slane %v4021_v40, %v13863_v33  ;;  %v6843_v31 = vcombine.low %v19625_v25, %v19633_v20  ;;  %v13546_v12 = vld [vmem:[%s21259_s0 + $0xa0] sm:$0x3] }
 0x39a   :  { %v6844_v34 = vcombine.low %v19642_v9, %v19648_v5  ;;  %v19662_v53 = vpop.eup %13159  ;;  %v3251_v51 = vmax.f32 %v2221_v46, 1e-12  ;;  %v2372_v11 = vsel %vm2371_vm3, %v19498_v3, %v2370_v16  ;;  %v2356_v32 = vmul.f32 %v13158_v43, %v19512_v62 }
 0x39b   :  { %13167 = vrsqrt.f32 %v19555_v29  ;;  %v2375_v49 = vsel %vm2373_vm0, %v2374_v8, %v2372_v11  ;;  %v2360_v0 = vand.u32 2147483648, %v19512_v62  ;;  %v19672_v22 = vcombine.low %v4028_v41, %v4035_v47  ;;  %v19676_v24 = vpop.eup %13161 }
 0x39c   :  { %13169 = vrcp.f32 %v3269_v56  ;;  %v3273_v2 = vmax.f32 %v2375_v49, 1e-12  ;;  %v2358_v7 = vsel %vm2357_vm4, %v19512_v62, %v2356_v32  ;;  %v6851_v45 = vrot.slane %v6843_v31, %v13863_v33  ;;  %v19709_v56 = vpop.xlane.xlu0 %1100  ;;  %v19738_v31 = vpop.xlane.xlu1 %1118 }
 0x39d   :  { %v6858_v1 = vrot.slane %v6844_v34, %v13863_v33  ;;  %v2361_v3 = vsel %vm2359_vm5, %v2360_v0, %v2358_v7  ;;  %11371 = vmatmul.mubr.msk.f32.gmra.mrb[4].mxu1 %vm4207_vm2, %v19672_v22  ;;  %13171 = vrsqrt.f32 %v19571_v13  ;;  %vm2399_vm6 = vcmp.eq.f32.partialorder %v19555_v29, inf }
 0x39e   :  { %13173 = vrcp.f32 %v3251_v51  ;;  %v3271_v38 = vmax.f32 %v2361_v3, 1e-12  ;;  %vm2401_vm7 = vcmp.eq.f32.partialorder %v19555_v29, 0.0  ;;  %v2402_v62 = vand.u32 2147483648, %v19555_v29 }
 0x39f   :  { %v6859_v8 = vcombine.low %v6851_v45, %v6858_v1  ;;  %13175 = vrsqrt.f32 %v19602_v4  ;;  %vm2385_vm8 = vcmp.eq.f32.partialorder %v19571_v13, inf  ;;  %v3542_v40 = vmul.f32 %v13546_v12, %v19352_v52  ;;  %v13549_v52 = vld [vmem:[%s21259_s0 + $0xac] sm:$0x3]  ;;  %v13550_v1 = vld [vmem:[%s21259_s0 + $0xb0] sm:$0x3] }
 0x3a0   :  { %v19692_v37 = vpop.eup %13163  ;;  %13177 = vrcp.f32 %v3273_v2  ;;  %v3546_v55 = vmul.f32 %v13547_v39, %v19451_v63  ;;  %vm2387_vm9 = vcmp.eq.f32.partialorder %v19571_v13, 0.0  ;;  %v3554_v48 = vmul.f32 %v13549_v52, %v19505_v26 }
 0x3a1   :  { %11542 = vmatmul.mubr.msk.f32.gmra.mrb[14].mxu0 %vm4207_vm2, %v6859_v8  ;;  %13179 = vrsqrt.f32 %v19627_v35  ;;  %v2388_v63 = vand.u32 2147483648, %v19571_v13  ;;  %vm2427_vm10 = vcmp.eq.f32.partialorder %v19602_v4, inf  ;;  %vm2429_vm11 = vcmp.eq.f32.partialorder %v19602_v4, 0.0 }
 0x3a2   :  { %11546 = vmatprep.mubr.msk.f32.mxu0 %vm4207_vm2, %v19345_v60  ;;  %v19711_v27 = vpop.eup %13165  ;;  %v13548_v60 = vld [vmem:[%s21259_s0 + $0xa8] sm:$0x3]  ;;  %13181 = vrsqrt.f32 %v19660_v59  ;;  %v4037_v46 = vcombine.low %v3542_v40, %v3546_v55  ;;  %vm2413_vm12 = vcmp.eq.f32.partialorder %v19627_v35, inf  ;;  %v2416_v47 = vand.u32 2147483648, %v19627_v35 }
 0x3a3   :  { %v3550_v50 = vmul.f32 %v13548_v60, %v19430_v54  ;;  %13183 = vrsqrt.f32 %v19674_v19  ;;  %v2430_v54 = vand.u32 2147483648, %v19602_v4  ;;  %vm2415_vm13 = vcmp.eq.f32.partialorder %v19627_v35, 0.0 }
 0x3a4   :  { %13185 = vrcp.f32 %v3271_v38  ;;  %vm2567_vm14 = vcmp.eq.f32.partialorder %v19660_v59, inf  ;;  %vm2569_vm15 = vcmp.eq.f32.partialorder %v19660_v59, 0.0  ;;  %v2570_v11 = vand.u32 2147483648, %v19660_v59 }
 0x3a5   :  { %v13168_v16 = vpop.eup %13167  ;;  %11547 = vmatmul.mubr.msk.f32.vlgmr.msra.gmra.mrb[0].mxu0 %vm4207_vm2, %v19440_v57  ;;  %v4038_v43 = vcombine.low %v3550_v50, %v3554_v48  ;;  %13187 = vrsqrt.f32 %v19690_v61  ;;  %v4045_v57 = vrot.slane %v4037_v46, %v13863_v33  ;;  %vm2443_vm3 = vcmp.eq.f32.partialorder %v19674_v19, 0.0  ;;  %v19792_v50 = vpop.xlane.xlu1 %1130 }
 0x3a6   :  { %v19730_v26 = vpop.eup %13169  ;;  %v2398_v41 = vmul.f32 %v13168_v16, %v19555_v29  ;;  %11549 = vmatprep.mubr.msk.f32.mxu0 %vm4207_vm2, %v19551_v36  ;;  %11571 = vmatpush3.msk.msra.mxu0 %vm4238_vm1, %v19401_v44  ;;  %13189 = vrsqrt.f32 %v19709_v56  ;;  %vm2441_vm1 = vcmp.eq.f32.partialorder %v19674_v19, inf  ;;  %v19753_v44 = vpop.xlane.xlu0 %1112  ;;  %v2444_v7 = vand.u32 2147483648, %v19674_v19 }
 0x3a7   :  { %v4052_v34 = vrot.slane %v4038_v43, %v13863_v33  ;;  %v13172_v36 = vpop.eup %13171  ;;  %v3558_v3 = vmul.f32 %v13550_v1, %v19483_v58  ;;  %vm2595_vm0 = vcmp.eq.f32.partialorder %v19690_v61, inf  ;;  %13191 = vrsqrt.f32 %v19738_v31 }
 0x3a8   :  { %v2400_v51 = vsel %vm2399_vm6, %v19555_v29, %v2398_v41  ;;  %v19755_v32 = vpop.eup %13173  ;;  %v2384_v0 = vmul.f32 %v13172_v36, %v19571_v13  ;;  %v13551_v29 = vld [vmem:[%s21259_s0 + $0xb4] sm:$0x3]  ;;  %vm2597_vm4 = vcmp.eq.f32.partialorder %v19690_v61, 0.0  ;;  %vm2581_vm5 = vcmp.eq.f32.partialorder %v19709_v56, inf }
 0x3a9   :  { %v2403_v49 = vsel %vm2401_vm7, %v2402_v62, %v2400_v51  ;;  %v4053_v2 = vcombine.low %v4045_v57, %v4052_v34  ;;  %11550 = vmatmul.mubr.msk.f32.gmra.mrb[2].mxu0 %vm4207_vm2, %v19672_v22  ;;  %v13176_v45 = vpop.eup %13175  ;;  %v3562_v8 = vmul.f32 %v13551_v29, %v19525_v6  ;;  %v13552_v22 = vld [vmem:[%s21259_s0 + $0xb8] sm:$0x3]  ;;  %v13553_v62 = vld [vmem:[%s21259_s0 + $0xbc] sm:$0x3]  ;;  %vm2583_vm6 = vcmp.eq.f32.partialorder %v19709_v56, 0.0 }
 0x3aa   :  { %v3566_v38 = vmul.f32 %v13552_v22, %v19518_v28  ;;  %v3570_v12 = vmul.f32 %v13553_v62, %v19564_v18  ;;  %v19780_v40 = vpop.eup %13177  ;;  %v2386_v58 = vsel %vm2385_vm8, %v19571_v13, %v2384_v0  ;;  %v2426_v6 = vmul.f32 %v13176_v45, %v19602_v4  ;;  %v19804_v34 = vpop.xlane.xlu0 %1124 }
 0x3ab   :  { %11373 = vmatprep.mubr.msk.f32.mxu1 %vm4207_vm2, %v4053_v2  ;;  %11552 = vmatprep.mubr.msk.f32.mxu0 %vm4207_vm2, %v4053_v2  ;;  %v13180_v28 = vpop.eup %13179  ;;  %v3277_v39 = vmax.f32 %v2403_v49, 1e-12  ;;  %v2389_v18 = vsel %vm2387_vm9, %v2388_v63, %v2386_v58  ;;  %v4054_v55 = vcombine.low %v3558_v3, %v3562_v8  ;;  %vm2623_vm7 = vcmp.eq.f32.partialorder %v19738_v31, inf }
 0x3ac   :  { %v4055_v60 = vcombine.low %v3566_v38, %v3570_v12  ;;  %v13182_v52 = vpop.eup %13181  ;;  %v3275_v48 = vmax.f32 %v2389_v18, 1e-12  ;;  %v2428_v46 = vsel %vm2427_vm10, %v19602_v4, %v2426_v6  ;;  %v2412_v16 = vmul.f32 %v13180_v28, %v19627_v35  ;;  %v19831_v12 = vpop.xlane.xlu1 %1190 }
 0x3ad   :  { %v13184_v43 = vpop.eup %13183  ;;  %v2431_v41 = vsel %vm2429_vm11, %v2430_v54, %v2428_v46  ;;  %v2566_v13 = vmul.f32 %v13182_v52, %v19660_v59  ;;  %v4062_v63 = vrot.slane %v4054_v55, %v13863_v33  ;;  %v2598_v4 = vand.u32 2147483648, %v19690_v61 }
 0x3ae   :  { %v4069_v57 = vrot.slane %v4055_v60, %v13863_v33  ;;  %v19806_v36 = vpop.eup %13185  ;;  %v3281_v51 = vmax.f32 %v2431_v41, 1e-12  ;;  %v2414_v49 = vsel %vm2413_vm12, %v19627_v35, %v2412_v16  ;;  %v2440_v0 = vmul.f32 %v13184_v43, %v19674_v19  ;;  %v19840_v58 = vpop.xlane.xlu0 %1136  ;;  %v13555_v16 = vld [vmem:[%s21259_s0 + $0xe4] sm:$0x3] }
 0x3af   :  { %v13188_v54 = vpop.eup %13187  ;;  %13193 = vrcp.f32 %v3277_v39  ;;  %v2417_v2 = vsel %vm2415_vm13, %v2416_v47, %v2414_v49  ;;  %v2568_v45 = vsel %vm2567_vm14, %v19660_v59, %v2566_v13  ;;  %v2584_v59 = vand.u32 2147483648, %v19709_v56  ;;  %v13556_v13 = vld [vmem:[%s21259_s0 + $0xe8] sm:$0x3] }
 0x3b0   :  { %v4070_v1 = vcombine.low %v4062_v63, %v4069_v57  ;;  %v13190_v3 = vpop.eup %13189  ;;  %13195 = vrcp.f32 %v3275_v48  ;;  %v3279_v29 = vmax.f32 %v2417_v2, 1e-12  ;;  %v2571_v8 = vsel %vm2569_vm15, %v2570_v11, %v2568_v45  ;;  %v19849_v52 = vpop.xlane.xlu1 %1202  ;;  %v13554_v48 = vld [vmem:[%s21259_s0 + $0xe0] sm:$0x3] }
 0x3b1   :  { %v2442_v22 = vsel %vm2441_vm1, %v19674_v19, %v2440_v0  ;;  %v3301_v38 = vmax.f32 %v2571_v8, 1e-12  ;;  %v2594_v47 = vmul.f32 %v13188_v54, %v19690_v61  ;;  %v2580_v62 = vmul.f32 %v13190_v3, %v19709_v56  ;;  %v13192_v6 = vpop.eup %13191 }
 0x3b2   :  { %v2445_v35 = vsel %vm2443_vm3, %v2444_v7, %v2442_v22  ;;  %11374 = vmatmul.mubr.msk.f32.gmra.mrb[6].mxu1 %vm4207_vm2, %v4070_v1  ;;  %11553 = vmatmul.mubr.msk.f32.gmra.mrb[4].mxu0 %vm4207_vm2, %v4070_v1  ;;  %13197 = vrcp.f32 %v3281_v51  ;;  %v2622_v55 = vmul.f32 %v13192_v6, %v19738_v31  ;;  %v3606_v46 = vmul.f32 %v13554_v48, %v19546_v30  ;;  %v13557_v30 = vld [vmem:[%s21259_s0 + $0xec] sm:$0x3]  ;;  %v19872_v51 = vpop.xlane.xlu0 %1196  ;;  %v13560_v6 = vld [vmem:[%s21259_s0 + $0xf8] sm:$0x3] }
 0x3b3   :  { %13199 = vrcp.f32 %v3279_v29  ;;  %v3283_v19 = vmax.f32 %v2445_v35, 1e-12  ;;  %v2596_v11 = vsel %vm2595_vm0, %v19690_v61, %v2594_v47  ;;  %v2582_v7 = vsel %vm2581_vm5, %v19709_v56, %v2580_v62  ;;  %v13558_v35 = vld [vmem:[%s21259_s0 + $0xf0] sm:$0x3]  ;;  %v13559_v62 = vld [vmem:[%s21259_s0 + $0xf4] sm:$0x3] }
 0x3b4   :  { %13201 = vrcp.f32 %v3301_v38  ;;  %v2599_v28 = vsel %vm2597_vm4, %v2598_v4, %v2596_v11  ;;  %v2585_v39 = vsel %vm2583_vm6, %v2584_v59, %v2582_v7  ;;  %v2624_v56 = vsel %vm2623_vm7, %v19738_v31, %v2622_v55  ;;  %v19892_v3 = vpop.xlane.xlu1 %1214 }
 0x3b5   :  { %v3305_v18 = vmax.f32 %v2599_v28, 1e-12  ;;  %13203 = vrsqrt.f32 %v19753_v44  ;;  %v3303_v60 = vmax.f32 %v2585_v39, 1e-12  ;;  %v2626_v61 = vand.u32 2147483648, %v19738_v31 }
 0x3b6   :  { %13205 = vrsqrt.f32 %v19792_v50  ;;  %v3610_v43 = vmul.f32 %v13555_v16, %v19588_v42  ;;  %vm2625_vm8 = vcmp.eq.f32.partialorder %v19738_v31, 0.0  ;;  %v3614_v63 = vmul.f32 %v13556_v13, %v19582_v17 }
 0x3b7   :  { %13207 = vrcp.f32 %v3283_v19  ;;  %v3618_v57 = vmul.f32 %v13557_v30, %v19676_v24  ;;  %v2627_v49 = vsel %vm2625_vm8, %v2626_v61, %v2624_v56  ;;  %vm2609_vm9 = vcmp.eq.f32.partialorder %v19753_v44, inf  ;;  %v19909_v19 = vpop.xlane.xlu0 %1208 }
 0x3b8   :  { %13209 = vrcp.f32 %v3305_v18  ;;  %v4071_v31 = vcombine.low %v3606_v46, %v3610_v43  ;;  %vm2611_vm10 = vcmp.eq.f32.partialorder %v19753_v44, 0.0  ;;  %v2612_v4 = vand.u32 2147483648, %v19753_v44  ;;  %v19940_v16 = vpop.xlane.xlu1 %1226 }
 0x3b9   :  { %v19860_v41 = vpop.eup %13193  ;;  %13211 = vrsqrt.f32 %v19804_v34  ;;  %v4072_v17 = vcombine.low %v3614_v63, %v3618_v57  ;;  %vm2651_vm11 = vcmp.eq.f32.partialorder %v19792_v50, inf  ;;  %v2654_v24 = vand.u32 2147483648, %v19792_v50 }
 0x3ba   :  { %v19874_v42 = vpop.eup %13195  ;;  %13213 = vrsqrt.f32 %v19831_v12  ;;  %v3309_v2 = vmax.f32 %v2627_v49, 1e-12  ;;  %vm2653_vm12 = vcmp.eq.f32.partialorder %v19792_v50, 0.0  ;;  %vm2637_vm13 = vcmp.eq.f32.partialorder %v19804_v34, inf }
 0x3bb   :  { %13215 = vrcp.f32 %v3303_v60  ;;  %v4079_v45 = vrot.slane %v4071_v31, %v13863_v33  ;;  %v4086_v1 = vrot.slane %v4072_v17, %v13863_v33  ;;  %vm2639_vm14 = vcmp.eq.f32.partialorder %v19804_v34, 0.0 }
 0x3bc   :  { %v19879_v0 = vpop.eup %13197  ;;  %13217 = vrsqrt.f32 %v19840_v58  ;;  %v2640_v8 = vand.u32 2147483648, %v19804_v34  ;;  %vm2791_vm15 = vcmp.eq.f32.partialorder %v19831_v12, inf  ;;  %vm2793_vm1 = vcmp.eq.f32.partialorder %v19831_v12, 0.0 }
 0x3bd   :  { %v19885_v54 = vpop.eup %13199  ;;  %13219 = vrsqrt.f32 %v19849_v52  ;;  %v4087_v38 = vcombine.low %v4079_v45, %v4086_v1  ;;  %v3622_v47 = vmul.f32 %v13558_v35, %v19662_v53  ;;  %v3626_v59 = vmul.f32 %v13559_v62, %v19711_v27  ;;  %v13561_v53 = vld [vmem:[%s21259_s0 + $0xfc] sm:$0x3] }
 0x3be   :  { %v19894_v29 = vpop.eup %13201  ;;  %13221 = vrsqrt.f32 %v19872_v51  ;;  %v3630_v28 = vmul.f32 %v13560_v6, %v19692_v37  ;;  %v3634_v39 = vmul.f32 %v13561_v53, %v19755_v32  ;;  %v2794_v55 = vand.u32 2147483648, %v19831_v12 }
 0x3bf   :  { %v13204_v22 = vpop.eup %13203  ;;  %13223 = vrsqrt.f32 %v19892_v3  ;;  %11376 = vmatprep.mubr.msk.f32.mxu1 %vm4207_vm2, %v4087_v38  ;;  %11555 = vmatprep.mubr.msk.f32.mxu0 %vm4207_vm2, %v4087_v38  ;;  %v4088_v37 = vcombine.low %v3622_v47, %v3626_v59  ;;  %vm2665_vm3 = vcmp.eq.f32.partialorder %v19840_v58, inf  ;;  %vm2667_vm0 = vcmp.eq.f32.partialorder %v19840_v58, 0.0 }
 0x3c0   :  { %v13206_v11 = vpop.eup %13205  ;;  %v2608_v7 = vmul.f32 %v13204_v22, %v19753_v44  ;;  %13225 = vrcp.f32 %v3309_v2  ;;  %v4089_v56 = vcombine.low %v3630_v28, %v3634_v39  ;;  %v2668_v46 = vand.u32 2147483648, %v19840_v58  ;;  %v19953_v2 = vpop.xlane.xlu0 %1220 }
 0x3c1   :  { %v19921_v27 = vpop.eup %13207  ;;  %v2650_v18 = vmul.f32 %v13206_v11, %v19792_v50  ;;  %13227 = vrsqrt.f32 %v19909_v19  ;;  %vm2819_vm4 = vcmp.eq.f32.partialorder %v19849_v52, inf  ;;  %v4096_v30 = vrot.slane %v4088_v37, %v13863_v33 }
 0x3c2   :  { %v19927_v60 = vpop.eup %13209  ;;  %v2610_v32 = vsel %vm2609_vm9, %v19753_v44, %v2608_v7  ;;  %v4103_v57 = vrot.slane %v4089_v56, %v13863_v33  ;;  %vm2821_vm5 = vcmp.eq.f32.partialorder %v19849_v52, 0.0  ;;  %v2822_v17 = vand.u32 2147483648, %v19849_v52 }
 0x3c3   :  { %v13212_v61 = vpop.eup %13211  ;;  %v2652_v48 = vsel %vm2651_vm11, %v19792_v50, %v2650_v18  ;;  %v2613_v13 = vsel %vm2611_vm10, %v2612_v4, %v2610_v32  ;;  %vm2805_vm6 = vcmp.eq.f32.partialorder %v19872_v51, inf  ;;  %vm2807_vm7 = vcmp.eq.f32.partialorder %v19872_v51, 0.0 }
 0x3c4   :  { %v13214_v43 = vpop.eup %13213  ;;  %v2636_v63 = vmul.f32 %v13212_v61, %v19804_v34  ;;  %v2655_v4 = vsel %vm2653_vm12, %v2654_v24, %v2652_v48  ;;  %v4104_v1 = vcombine.low %v4096_v30, %v4103_v57  ;;  %v3307_v38 = vmax.f32 %v2613_v13, 1e-12  ;;  %v19994_v56 = vpop.xlane.xlu0 %1232 }
 0x3c5   :  { %v19947_v49 = vpop.eup %13215  ;;  %v2790_v31 = vmul.f32 %v13214_v43, %v19831_v12  ;;  %v2808_v11 = vand.u32 2147483648, %v19872_v51  ;;  %13229 = vrsqrt.f32 %v19940_v16  ;;  %vm2847_vm8 = vcmp.eq.f32.partialorder %v19892_v3, inf }
 0x3c6   :  { %v13218_v44 = vpop.eup %13217  ;;  %v2638_v45 = vsel %vm2637_vm13, %v19804_v34, %v2636_v63  ;;  %11377 = vmatmul.mubr.msk.f32.gmra.mrb[8].mxu1 %vm4207_vm2, %v4104_v1  ;;  %11556 = vmatmul.mubr.msk.f32.gmra.mrb[6].mxu0 %vm4207_vm2, %v4104_v1  ;;  %v3313_v34 = vmax.f32 %v2655_v4, 1e-12  ;;  %vm2849_vm9 = vcmp.eq.f32.partialorder %v19892_v3, 0.0  ;;  %13231 = vrcp.f32 %v3307_v38 }
 0x3c7   :  { %v13220_v22 = vpop.eup %13219  ;;  %v2641_v35 = vsel %vm2639_vm14, %v2640_v8, %v2638_v45  ;;  %v2792_v47 = vsel %vm2791_vm15, %v19831_v12, %v2790_v31  ;;  %v2664_v62 = vmul.f32 %v13218_v44, %v19840_v58  ;;  %v19979_v12 = vpop.xlane.xlu1 %1286  ;;  %13233 = vrsqrt.f32 %v19953_v2  ;;  %v13562_v44 = vld [vmem:[%s21259_s0 + $0x120] sm:$0x3]  ;;  %v13563_v45 = vld [vmem:[%s21259_s0 + $0x124] sm:$0x3] }
 0x3c8   :  { %v13222_v50 = vpop.eup %13221  ;;  %v2795_v24 = vsel %vm2793_vm1, %v2794_v55, %v2792_v47  ;;  %v2818_v59 = vmul.f32 %v13220_v22, %v19849_v52  ;;  %v3311_v28 = vmax.f32 %v2641_v35, 1e-12  ;;  %13235 = vrcp.f32 %v3313_v34  ;;  %v13565_v35 = vld [vmem:[%s21259_s0 + $0x12c] sm:$0x3]  ;;  %v20032_v47 = vpop.xlane.xlu0 %1292 }
 0x3c9   :  { %v2666_v8 = vsel %vm2665_vm3, %v19840_v58, %v2664_v62  ;;  %v2804_v7 = vmul.f32 %v13222_v50, %v19872_v51  ;;  %v13224_v6 = vpop.eup %13223  ;;  %v3333_v55 = vmax.f32 %v2795_v24, 1e-12  ;;  %v2850_v43 = vand.u32 2147483648, %v19892_v3 }
 0x3ca   :  { %v2669_v53 = vsel %vm2667_vm0, %v2668_v46, %v2666_v8  ;;  %v2820_v39 = vsel %vm2819_vm4, %v19849_v52, %v2818_v59  ;;  %v19987_v18 = vpop.eup %13225  ;;  %v2846_v46 = vmul.f32 %v13224_v6, %v19892_v3  ;;  %vm2833_vm10 = vcmp.eq.f32.partialorder %v19909_v19, inf  ;;  %v20021_v22 = vpop.f32.mrb[0].mxu1 }
 0x3cb   :  { %v2823_v37 = vsel %vm2821_vm5, %v2822_v17, %v2820_v39  ;;  %v2806_v32 = vsel %vm2805_vm6, %v19872_v51, %v2804_v7  ;;  %v13228_v58 = vpop.eup %13227  ;;  %v3315_v61 = vmax.f32 %v2669_v53, 1e-12  ;;  %13237 = vrcp.f32 %v3311_v28  ;;  %v20009_v31 = vpop.xlane.xlu1 %1298 }
 0x3cc   :  { %v2809_v48 = vsel %vm2807_vm7, %v2808_v11, %v2806_v32  ;;  %v2832_v52 = vmul.f32 %v13228_v58, %v19909_v19  ;;  %v3337_v13 = vmax.f32 %v2823_v37, 1e-12  ;;  %v2848_v63 = vsel %vm2847_vm8, %v19892_v3, %v2846_v46  ;;  %v13564_v3 = vld [vmem:[%s21259_s0 + $0x128] sm:$0x3]  ;;  %v20057_v58 = vpop.xlane.xlu0 %1304  ;;  %v13566_v46 = vld [vmem:[%s21259_s0 + $0x130] sm:$0x3] }
 0x3cd   :  { %vm2835_vm11 = vcmp.eq.f32.partialorder %v19909_v19, 0.0  ;;  %13239 = vrcp.f32 %v3333_v55  ;;  %v3335_v51 = vmax.f32 %v2809_v48, 1e-12  ;;  %v2836_v57 = vand.u32 2147483648, %v19909_v19 }
 0x3ce   :  { %v2834_v30 = vsel %vm2833_vm10, %v19909_v19, %v2832_v52  ;;  %13241 = vrcp.f32 %v3315_v61  ;;  %v2851_v17 = vsel %vm2849_vm9, %v2850_v43, %v2848_v63  ;;  %v3670_v4 = vmul.f32 %v13562_v44, %v19730_v26  ;;  %v13567_v52 = vld [vmem:[%s21259_s0 + $0x134] sm:$0x3] }
 0x3cf   :  { %v3674_v1 = vmul.f32 %v13563_v45, %v19806_v36  ;;  %v2837_v19 = vsel %vm2835_vm11, %v2836_v57, %v2834_v30  ;;  %v3678_v38 = vmul.f32 %v13564_v3, %v19780_v40  ;;  %v3682_v26 = vmul.f32 %v13565_v35, %v19874_v42  ;;  %v20034_v36 = vpop.f32.mrb[1].mxu1  ;;  %v13230_v62 = vpop.eup %13229 }
 0x3d0   :  { %13243 = vrsqrt.f32 %v19979_v12  ;;  %vm2875_vm12 = vcmp.eq.f32.partialorder %v19940_v16, inf  ;;  %v3341_v24 = vmax.f32 %v2851_v17, 1e-12  ;;  %v2874_v40 = vmul.f32 %v13230_v62, %v19940_v16  ;;  %v20041_v34 = vpop.eup %13231  ;;  %v20047_v28 = vpop.xlane.xlu1 %1310 }
 0x3d1   :  { %13245 = vrcp.f32 %v3337_v13  ;;  %v4105_v50 = vcombine.low %v3670_v4, %v3674_v1  ;;  %v4106_v59 = vcombine.low %v3678_v38, %v3682_v26  ;;  %v3339_v11 = vmax.f32 %v2837_v19, 1e-12  ;;  %v13234_v53 = vpop.eup %13233 }
 0x3d2   :  { %13247 = vrcp.f32 %v3335_v51  ;;  %vm2877_vm13 = vcmp.eq.f32.partialorder %v19940_v16, 0.0  ;;  %v2878_v42 = vand.u32 2147483648, %v19940_v16  ;;  %v2876_v8 = vsel %vm2875_vm12, %v19940_v16, %v2874_v40  ;;  %v20053_v55 = vpop.eup %13235 }
 0x3d3   :  { %13249 = vrsqrt.f32 %v19994_v56  ;;  %v4113_v7 = vrot.slane %v4105_v50, %v13863_v33  ;;  %v4120_v6 = vrot.slane %v4106_v59, %v13863_v33  ;;  %vm2861_vm14 = vcmp.eq.f32.partialorder %v19953_v2, inf  ;;  %v20109_v50 = vpop.xlane.xlu0 %1316 }
 0x3d4   :  { %13251 = vrsqrt.f32 %v20009_v31  ;;  %vm2863_vm15 = vcmp.eq.f32.partialorder %v19953_v2, 0.0  ;;  %v2864_v39 = vand.u32 2147483648, %v19953_v2  ;;  %v2860_v37 = vmul.f32 %v13234_v53, %v19953_v2  ;;  %v20095_v19 = vpop.xlane.xlu1 %1322 }
 0x3d5   :  { %13253 = vrsqrt.f32 %v20032_v47  ;;  %v4121_v32 = vcombine.low %v4113_v7, %v4120_v6  ;;  %vm3015_vm1 = vcmp.eq.f32.partialorder %v19979_v12, inf  ;;  %v20059_v61 = vpop.eup %13237  ;;  %v2879_v48 = vsel %vm2877_vm13, %v2878_v42, %v2876_v8 }
 0x3d6   :  { %13255 = vrcp.f32 %v3341_v24  ;;  %vm3017_vm3 = vcmp.eq.f32.partialorder %v19979_v12, 0.0  ;;  %v3686_v43 = vmul.f32 %v13566_v46, %v19860_v41  ;;  %v3690_v13 = vmul.f32 %v13567_v52, %v19885_v54  ;;  %v13568_v41 = vld [vmem:[%s21259_s0 + $0x138] sm:$0x3]  ;;  %v13569_v54 = vld [vmem:[%s21259_s0 + $0x13c] sm:$0x3] }
 0x3d7   :  { %v20072_v63 = vpop.eup %13239  ;;  %13257 = vrcp.f32 %v3339_v11  ;;  %v2862_v16 = vsel %vm2861_vm14, %v19953_v2, %v2860_v37  ;;  %11379 = vmatprep.mubr.msk.f32.mxu1 %vm4207_vm2, %v4121_v32  ;;  %11558 = vmatprep.mubr.msk.f32.mxu0 %vm4207_vm2, %v4121_v32  ;;  %v3694_v51 = vmul.f32 %v13568_v41, %v19879_v0  ;;  %v3698_v30 = vmul.f32 %v13569_v54, %v19921_v27  ;;  %v13571_v54 = vld [vmem:[%s21259_s0 + $0x164] sm:$0x3] }
 0x3d8   :  { %v20087_v57 = vpop.eup %13241  ;;  %v3018_v17 = vand.u32 2147483648, %v19979_v12  ;;  %vm2889_vm0 = vcmp.eq.f32.partialorder %v19994_v56, inf  ;;  %v4122_v44 = vcombine.low %v3686_v43, %v3690_v13  ;;  %13259 = vrsqrt.f32 %v20047_v28 }
 0x3d9   :  { %v3345_v45 = vmax.f32 %v2879_v48, 1e-12  ;;  %v2865_v0 = vsel %vm2863_vm15, %v2864_v39, %v2862_v16  ;;  %vm2891_vm4 = vcmp.eq.f32.partialorder %v19994_v56, 0.0  ;;  %v4123_v1 = vcombine.low %v3694_v51, %v3698_v30  ;;  %v13570_v51 = vld [vmem:[%s21259_s0 + $0x160] sm:$0x3] }
 0x3da   :  { %v13244_v4 = vpop.eup %13243  ;;  %v2892_v38 = vand.u32 2147483648, %v19994_v56  ;;  %vm3043_vm5 = vcmp.eq.f32.partialorder %v20009_v31, inf  ;;  %13261 = vrsqrt.f32 %v20057_v58  ;;  %vm3045_vm6 = vcmp.eq.f32.partialorder %v20009_v31, 0.0 }
 0x3db   :  { %v20097_v27 = vpop.eup %13245  ;;  %v3014_v3 = vmul.f32 %v13244_v4, %v19979_v12  ;;  %v3046_v2 = vand.u32 2147483648, %v20009_v31  ;;  %v4130_v26 = vrot.slane %v4122_v44, %v13863_v33  ;;  %v4137_v62 = vrot.slane %v4123_v1, %v13863_v33 }
 0x3dc   :  { %v20103_v35 = vpop.eup %13247  ;;  %v3343_v40 = vmax.f32 %v2865_v0, 1e-12  ;;  %vm3029_vm7 = vcmp.eq.f32.partialorder %v20032_v47, inf  ;;  %13263 = vrsqrt.f32 %v20095_v19  ;;  %vm3031_vm8 = vcmp.eq.f32.partialorder %v20032_v47, 0.0 }
 0x3dd   :  { %v13250_v24 = vpop.eup %13249  ;;  %v3016_v59 = vsel %vm3015_vm1, %v19979_v12, %v3014_v3  ;;  %13265 = vrcp.f32 %v3345_v45  ;;  %v4138_v7 = vcombine.low %v4130_v26, %v4137_v62  ;;  %v3032_v39 = vand.u32 2147483648, %v20032_v47  ;;  %v13572_v45 = vld [vmem:[%s21259_s0 + $0x168] sm:$0x3] }
 0x3de   :  { %v13252_v11 = vpop.eup %13251  ;;  %v3019_v42 = vsel %vm3017_vm3, %v3018_v17, %v3016_v59  ;;  %v2888_v8 = vmul.f32 %v13250_v24, %v19994_v56  ;;  %13267 = vrsqrt.f32 %v20109_v50  ;;  %vm3071_vm9 = vcmp.eq.f32.partialorder %v20047_v28, inf }
 0x3df   :  { %v13254_v6 = vpop.eup %13253  ;;  %v3042_v53 = vmul.f32 %v13252_v11, %v20009_v31  ;;  %11380 = vmatmul.mubr.msk.f32.gmra.mrb[10].mxu1 %vm4207_vm2, %v4138_v7  ;;  %11559 = vmatmul.mubr.msk.f32.gmra.mrb[8].mxu0 %vm4207_vm2, %v4138_v7  ;;  %v3074_v48 = vand.u32 2147483648, %v20047_v28  ;;  %13269 = vrcp.f32 %v3343_v40  ;;  %v3365_v46 = vmax.f32 %v3019_v42, 1e-12 }
 0x3e0   :  { %v20123_v37 = vpop.eup %13255  ;;  %v2890_v32 = vsel %vm2889_vm0, %v19994_v56, %v2888_v8  ;;  %v3028_v12 = vmul.f32 %v13254_v6, %v20032_v47  ;;  %vm3073_vm10 = vcmp.eq.f32.partialorder %v20047_v28, 0.0  ;;  %v3734_v56 = vmul.f32 %v13570_v51, %v19894_v29  ;;  %v13573_v29 = vld [vmem:[%s21259_s0 + $0x16c] sm:$0x3]  ;;  %v13575_v51 = vld [vmem:[%s21259_s0 + $0x174] sm:$0x3] }
 0x3e1   :  { %v2893_v43 = vsel %vm2891_vm4, %v2892_v38, %v2890_v32  ;;  %v3044_v52 = vsel %vm3043_vm5, %v20009_v31, %v3042_v53  ;;  %v20138_v13 = vpop.eup %13257  ;;  %v3738_v30 = vmul.f32 %v13571_v54, %v19947_v49  ;;  %v3742_v0 = vmul.f32 %v13572_v45, %v19927_v60  ;;  %v20168_v60 = vpop.xlane.xlu0 %1328 }
 0x3e2   :  { %v3347_v16 = vmax.f32 %v2893_v43, 1e-12  ;;  %v3030_v41 = vsel %vm3029_vm7, %v20032_v47, %v3028_v12  ;;  %v13260_v17 = vpop.eup %13259  ;;  %v3047_v44 = vsel %vm3045_vm6, %v3046_v2, %v3044_v52  ;;  %v3746_v1 = vmul.f32 %v13573_v29, %v20041_v34 }
 0x3e3   :  { %v3033_v4 = vsel %vm3031_vm8, %v3032_v39, %v3030_v41  ;;  %v3070_v31 = vmul.f32 %v13260_v17, %v20047_v28  ;;  %v4139_v3 = vcombine.low %v3734_v56, %v3738_v30  ;;  %vm3057_vm11 = vcmp.eq.f32.partialorder %v20057_v58, inf }
 0x3e4   :  { %13271 = vrcp.f32 %v3347_v16  ;;  %v3367_v49 = vmax.f32 %v3033_v4, 1e-12  ;;  %v13262_v38 = vpop.eup %13261  ;;  %vm3059_vm12 = vcmp.eq.f32.partialorder %v20057_v58, 0.0  ;;  %v3060_v47 = vand.u32 2147483648, %v20057_v58  ;;  %v13574_v16 = vld [vmem:[%s21259_s0 + $0x170] sm:$0x3] }
 0x3e5   :  { %v4140_v2 = vcombine.low %v3742_v0, %v3746_v1  ;;  %v3369_v26 = vmax.f32 %v3047_v44, 1e-12  ;;  %v3056_v62 = vmul.f32 %v13262_v38, %v20057_v58  ;;  %vm3099_vm13 = vcmp.eq.f32.partialorder %v20095_v19, inf }
 0x3e6   :  { %13273 = vrcp.f32 %v3367_v49  ;;  %v13264_v34 = vpop.eup %13263  ;;  %vm3101_vm14 = vcmp.eq.f32.partialorder %v20095_v19, 0.0  ;;  %v4147_v24 = vrot.slane %v4139_v3, %v13863_v33  ;;  %v3072_v11 = vsel %vm3071_vm9, %v20047_v28, %v3070_v31  ;;  %v13581_v3 = vld [vmem:[%s21259_s0 + $0x1ac] sm:$0x3] }
 0x3e7   :  { %13275 = vrcp.f32 %v3365_v46  ;;  %v4154_v40 = vrot.slane %v4140_v2, %v13863_v33  ;;  %v13266_v59 = vpop.eup %13265  ;;  %v3058_v42 = vsel %vm3057_vm11, %v20057_v58, %v3056_v62  ;;  %v3098_v8 = vmul.f32 %v13264_v34, %v20095_v19 }
 0x3e8   :  { %13277 = vrsqrt.f32 %v20168_v60  ;;  %v13268_v7 = vpop.eup %13267  ;;  %v3061_v6 = vsel %vm3059_vm12, %v3060_v47, %v3058_v42  ;;  %v3102_v53 = vand.u32 2147483648, %v20095_v19  ;;  %vm3085_vm15 = vcmp.eq.f32.partialorder %v20109_v50, inf }
 0x3e9   :  { %v4155_v39 = vcombine.low %v4147_v24, %v4154_v40  ;;  %13279 = vrcp.f32 %v3369_v26  ;;  %v3371_v32 = vmax.f32 %v3061_v6, 1e-12  ;;  %v3100_v12 = vsel %vm3099_vm13, %v20095_v19, %v3098_v8  ;;  %v13270_v43 = vpop.eup %13269  ;;  %v20242_v24 = vpop.xlane.xlu1 %1331 }
 0x3ea   :  { %v3084_v46 = vmul.f32 %v13268_v7, %v20109_v50  ;;  %v3075_v52 = vsel %vm3073_vm10, %v3074_v48, %v3072_v11  ;;  %v3088_v58 = vand.u32 2147483648, %v20109_v50  ;;  %v3750_v41 = vmul.f32 %v13574_v16, %v19987_v18  ;;  %v13576_v18 = vld [vmem:[%s21259_s0 + $0x178] sm:$0x3] }
 0x3eb   :  { %11382 = vmatprep.mubr.msk.f32.mxu1 %vm4207_vm2, %v4155_v39  ;;  %11561 = vmatprep.mubr.msk.f32.mxu0 %vm4207_vm2, %v4155_v39  ;;  %v3754_v56 = vmul.f32 %v13575_v51, %v20059_v61  ;;  %13281 = vrcp.f32 %v3371_v32  ;;  %v3103_v28 = vsel %vm3101_vm14, %v3102_v53, %v3100_v12  ;;  %vm3087_vm1 = vcmp.eq.f32.partialorder %v20109_v50, 0.0  ;;  %v13577_v61 = vld [vmem:[%s21259_s0 + $0x17c] sm:$0x3]  ;;  %v13584_v11 = vld [vmem:[%s21259_s0 + $0x1b8] sm:$0x3] }
 0x3ec   :  { %v3086_v48 = vsel %vm3085_vm15, %v20109_v50, %v3084_v46  ;;  %v3758_v30 = vmul.f32 %v13576_v18, %v20053_v55  ;;  %v3762_v19 = vmul.f32 %v13577_v61, %v20087_v57  ;;  %v3373_v4 = vmax.f32 %v3075_v52, 1e-12  ;;  %v13578_v50 = vld [vmem:[%s21259_s0 + $0x1a0] sm:$0x3]  ;;  %v13579_v55 = vld [vmem:[%s21259_s0 + $0x1a4] sm:$0x3] }
 0x3ed   :  { %v3089_v54 = vsel %vm3087_vm1, %v3088_v58, %v3086_v48  ;;  %v4156_v17 = vcombine.low %v3750_v41, %v3754_v56  ;;  %v3798_v0 = vmul.f32 %v13578_v50, %v20072_v63  ;;  %v3802_v29 = vmul.f32 %v13579_v55, %v20103_v35  ;;  %v13580_v57 = vld [vmem:[%s21259_s0 + $0x1a8] sm:$0x3]  ;;  %v13582_v35 = vld [vmem:[%s21259_s0 + $0x1b0] sm:$0x3]  ;;  %v13586_v39 = vld [vmem:[%s21259_s0 + $0x1e4] sm:$0x3] }
 0x3ee   :  { %v13272_v44 = vpop.eup %13271  ;;  %v3375_v45 = vmax.f32 %v3089_v54, 1e-12  ;;  %v3377_v1 = vmax.f32 %v3103_v28, 1e-12  ;;  %v4157_v49 = vcombine.low %v3758_v30, %v3762_v19  ;;  %v3806_v31 = vmul.f32 %v13580_v57, %v20097_v27  ;;  %v13583_v27 = vld [vmem:[%s21259_s0 + $0x1b4] sm:$0x3] }
 0x3ef   :  { %v3810_v63 = vmul.f32 %v13581_v3, %v20138_v13  ;;  %v4164_v47 = vrot.slane %v4156_v17, %v13863_v33  ;;  %v4173_v2 = vcombine.low %v3798_v0, %v3802_v29  ;;  %v3814_v26 = vmul.f32 %v13582_v35, %v20123_v37  ;;  %v13585_v37 = vld [vmem:[%s21259_s0 + $0x1bc] sm:$0x3]  ;;  %v13587_v51 = vld [vmem:[%s21259_s0 + $0x1e0] sm:$0x3]  ;;  %v13589_v19 = vld [vmem:[%s21259_s0 + $0x1ec] sm:$0x3] }
 0x3f0   :  { %v13274_v38 = vpop.eup %13273  ;;  %v3818_v62 = vmul.f32 %v13583_v27, %v13270_v43  ;;  %v4171_v13 = vrot.slane %v4157_v49, %v13863_v33  ;;  %v3822_v42 = vmul.f32 %v13584_v11, %v13266_v59  ;;  %v3826_v8 = vmul.f32 %v13585_v37, %v13272_v44  ;;  %v13592_v35 = vld [vmem:[%s21259_s0 + $0x1f8] sm:$0x3]  ;;  %v13593_v27 = vld [vmem:[%s21259_s0 + $0x1fc] sm:$0x3] }
 0x3f1   :  { %v13276_v34 = vpop.eup %13275  ;;  %v4174_v40 = vcombine.low %v3806_v31, %v3810_v63  ;;  %13283 = vrcp.f32 %v3375_v45  ;;  %v4181_v6 = vrot.slane %v4173_v2, %v13863_v33  ;;  %v3866_v32 = vmul.f32 %v13586_v39, %v13274_v38  ;;  %v13590_v31 = vld [vmem:[%s21259_s0 + $0x1f4] sm:$0x3]  ;;  %v13591_v63 = vld [vmem:[%s21259_s0 + $0x1f0] sm:$0x3]  ;;  %v21533_v39 = vld [vmem:[#allocation49_spill] sm:$0xff] }
 0x3f2   :  { %v13278_v7 = vpop.eup %13277  ;;  %v4190_v53 = vcombine.low %v3814_v26, %v3818_v62  ;;  %v4172_v46 = vcombine.low %v4164_v47, %v4171_v13  ;;  %v4191_v43 = vcombine.low %v3822_v42, %v3826_v8  ;;  %13285 = vrsqrt.f32 %v20242_v24 }
 0x3f3   :  { %v3112_v12 = vmul.f32 %v13278_v7, %v20168_v60  ;;  %v4188_v59 = vrot.slane %v4174_v40, %v13863_v33  ;;  %v13280_v52 = vpop.eup %13279  ;;  %vm3113_vm3 = vcmp.eq.f32.partialorder %v20168_v60, inf  ;;  %vm3115_vm0 = vcmp.eq.f32.partialorder %v20168_v60, 0.0 }
 0x3f4   :  { %v3116_v58 = vand.u32 2147483648, %v20168_v60  ;;  %13287 = vrcp.f32 %v3373_v4  ;;  %11383 = vmatmul.mubr.msk.f32.gmra.mrb[12].mxu1 %vm4207_vm2, %v4172_v46  ;;  %11562 = vmatmul.mubr.msk.f32.gmra.mrb[10].mxu0 %vm4207_vm2, %v4172_v46  ;;  %v3862_v56 = vmul.f32 %v13587_v51, %v13276_v34  ;;  %v4198_v54 = vrot.slane %v4190_v53, %v13863_v33  ;;  %v21532_v53 = vld [vmem:[#allocation12_spill] sm:$0xff]  ;;  %v21537_v46 = vld [vmem:[#allocation21_spill] sm:$0xff] }
 0x3f5   :  { %v3114_v16 = vsel %vm3113_vm3, %v20168_v60, %v3112_v12  ;;  %v4189_v41 = vcombine.low %v4181_v6, %v4188_v59  ;;  %v13282_v28 = vpop.eup %13281  ;;  %13289 = vrcp.f32 %v3377_v1  ;;  %v4205_v18 = vrot.slane %v4191_v43, %v13863_v33  ;;  %v13588_v60 = vld [vmem:[%s21259_s0 + $0x1e8] sm:$0x3]  ;;  %v21536_v12 = vld [vmem:[#allocation52_spill] sm:$0xff] }
 0x3f6   :  { %v3117_v48 = vsel %vm3115_vm0, %v3116_v58, %v3114_v16  ;;  %v3870_v61 = vmul.f32 %v13588_v60, %v13280_v52  ;;  %v3874_v17 = vmul.f32 %v13589_v19, %v13282_v28  ;;  %v7036_v44 = vcombine.low %v3862_v56, %v3866_v32  ;;  %v21534_v32 = vld [vmem:[#allocation50_spill] sm:$0xff]  ;;  %v21538_v59 = vld [vmem:[#allocation20_spill] sm:$0xff]  ;;  %v21541_v56 = vld [vmem:[#allocation15_spill] sm:$0xff] }
 0x3f7   :  { %v3379_v30 = vmax.f32 %v3117_v48, 1e-12  ;;  %11385 = vmatprep.mubr.msk.f32.mxu1 %vm4207_vm2, %v4189_v41  ;;  %11564 = vmatprep.mubr.msk.f32.mxu0 %vm4207_vm2, %v4189_v41  ;;  %v4206_v4 = vcombine.low %v4198_v54, %v4205_v18  ;;  %vm3120_vm4 = vcmp.eq.f32.partialorder %v20242_v24, inf  ;;  %v3123_v13 = vand.u32 2147483648, %v20242_v24  ;;  %v21539_v52 = vld [vmem:[#allocation24_spill] sm:$0xff]  ;;  %v21540_v58 = vld [vmem:[#allocation22_spill] sm:$0xff] }
 0x3f8   :  { %v7037_v45 = vcombine.low %v3870_v61, %v3874_v17  ;;  %v7044_v50 = vrot.slane %v7036_v44, %v13863_v33  ;;  %vm3122_vm5 = vcmp.eq.f32.partialorder %v20242_v24, 0.0  ;;  %v13594_v16 = vld [vmem:[%s21259_s0 + $0x1fe] sm:$0x3]  ;;  %v7240_v51 = vcombine.low %v19544_v21, %v19625_v25  ;;  %v21545_v17 = vld [vmem:[#allocation29_spill] sm:$0xff] }
 0x3f9   :  { %13291 = vrcp.f32 %v3379_v30  ;;  %11386 = vmatmul.mubr.msk.f32.gmra.mrb[14].mxu1 %vm4207_vm2, %v4206_v4  ;;  %11565 = vmatmul.mubr.msk.f32.gmra.mrb[12].mxu0 %vm4207_vm2, %v4206_v4  ;;  %v21542_v28 = vld [vmem:[#allocation26_spill] sm:$0xff]  ;;  %v7239_v48 = vcombine.low %v19532_v23, %v19538_v14  ;;  %v21543_v30 = vld [vmem:[#allocation25_spill] sm:$0xff]  ;;  %v7256_v60 = vcombine.low %v19633_v20, %v19642_v9 }
 0x3fa   :  { %v7051_v0 = vrot.slane %v7037_v45, %v13863_v33  ;;  %v7254_v18 = vrot.slane %v7240_v51, %v13863_v33  ;;  %v21544_v21 = vld [vmem:[#allocation30_spill] sm:$0xff] }
 0x3fb   :  { %v13284_v55 = vpop.eup %13283  ;;  %v7247_v25 = vrot.slane %v7239_v48, %v13863_v33  ;;  %v7264_v23 = vrot.slane %v7256_v60, %v13863_v33 }
 0x3fc   :  { %v7052_v29 = vcombine.low %v7044_v50, %v7051_v0  ;;  %v13286_v1 = vpop.eup %13285  ;;  %v3882_v3 = vmul.f32 %v13590_v31, %v13284_v55  ;;  %v7851_v50 = vld [vmem:[%s21261_s2 + $0x20] sm:$0xff]  ;;  %v7852_v0 = vld [vmem:[%s21261_s2 + $0x28] sm:$0xff] }
 0x3fd   :  { %v3119_v2 = vmul.f32 %v13286_v1, %v20242_v24  ;;  %v7255_v19 = vcombine.low %v7247_v25, %v7254_v18  ;;  %v11920_v55 = vpack.c.bf16 %v7852_v0, %v7851_v50  ;;  %v7847_v31 = vld [vmem:[%s21261_s2] sm:$0xff]  ;;  %v7856_v50 = vld [vmem:[%s21261_s2 + $0x48] sm:$0xff]  ;;  %v7857_v0 = vld [vmem:[%s21261_s2 + $0x50] sm:$0xff] }
 0x3fe   :  { %v13288_v49 = vpop.eup %13287  ;;  %11567 = vmatprep.mubr.msk.f32.mxu0 %vm4207_vm2, %v7052_v29 }
 0x3ff   :  { %v13290_v57 = vpop.eup %13289  ;;  %v3878_v38 = vmul.f32 %v13591_v63, %v13288_v49  ;;  %v3121_v11 = vsel %vm3120_vm4, %v20242_v24, %v3119_v2  ;;  %v21535_v24 = vld [vmem:[#allocation51_spill] sm:$0xff]  ;;  %11921 = vmatprep.subr.bf16.mxu1 %v11920_v55  ;;  %v7853_v49 = vld [vmem:[%s21261_s2 + $0x30] sm:$0xff] }
 0x400   :  { %v3886_v26 = vmul.f32 %v13592_v35, %v13290_v57  ;;  %v3124_v8 = vsel %vm3122_vm5, %v3123_v13, %v3121_v11  ;;  %11923 = vmatpush3.bf16.msra.mxu1 %v11920_v55  ;;  %v7854_v57 = vld [vmem:[%s21261_s2 + $0x38] sm:$0xff]  ;;  %v7848_v63 = vld [vmem:[%s21261_s2 + $0x8] sm:$0xff] }
 0x401   :  { %v7053_v34 = vcombine.low %v3878_v38, %v3882_v3  ;;  %v3380_v6 = vmax.f32 %v3124_v8, 1e-12  ;;  %v11924_v3 = vpack.c.bf16 %v7854_v57, %v7853_v49  ;;  %v20370_v38 = vpack.c.bf16 %v7848_v63, %v7847_v31  ;;  %v7859_v57 = vld [vmem:[%s21261_s2 + $0x60] sm:$0xff]  ;;  %v7860_v31 = vld [vmem:[%s21261_s2 + $0x68] sm:$0xff] }
 0x403   :  { %v13292_v47 = vpop.eup %13291  ;;  %v7061_v42 = vrot.slane %v7053_v34, %v13863_v33  ;;  %13293 = vrcp.f32 %v3380_v6  ;;  %11925 = vmatprep.subr.bf16.mxu1 %v11924_v3  ;;  %v20388_v34 = vld [vmem:[%s21264_s5] ss:$0 sm:$0xff] }
 0x404   :  { %v3890_v62 = vmul.f32 %v13593_v27, %v13292_v47  ;;  %11927 = vmatpush3.bf16.msra.mxu1 %v11924_v3 }
 0x405   :  { %11929 = vmatprep.subr.bf16.mxu1 %v20370_v38 }
 0x406   :  { %v7054_v40 = vcombine.low %v3886_v26, %v3890_v62 }
 0x408   :  { %v7068_v37 = vrot.slane %v7054_v40, %v13863_v33 }
 0x40a   :  { %v7069_v7 = vcombine.low %v7061_v42, %v7068_v37 }
 0x40c   :  { %11568 = vmatmul.mubr.msk.f32.gmra.mrb[14].mxu0 %vm4207_vm2, %v7069_v7 }
 0x40d   :  { %11572 = vmatprep.mubr.msk.f32.mxu0 %vm4207_vm2, %v21532_v53  ;;  %v13294_v43 = vpop.eup %13293 }
 0x40e   :  { %v3892_v41 = vmul.f32 %v13594_v16, %v13294_v43 }
 0x410   :  { %11573 = vmatmul.mubr.msk.f32.vlgmr.msra.gmra.mrb[0].mxu0 %vm4207_vm2, %v21533_v39  ;;  %v7257_v54 = vcombine.low %v19648_v5, %v3892_v41 }
 0x411   :  { %11575 = vmatprep.mubr.msk.f32.mxu0 %vm4207_vm2, %v21534_v32 }
 0x412   :  { %v7271_v61 = vrot.slane %v7257_v54, %v13863_v33 }
 0x414   :  { %11576 = vmatmul.mubr.msk.f32.gmra.mrb[2].mxu0 %vm4207_vm2, %v21535_v24  ;;  %v7272_v14 = vcombine.low %v7264_v23, %v7271_v61 }
 0x415   :  { %11578 = vmatprep.mubr.msk.f32.mxu0 %vm4207_vm2, %v21536_v12 }
 0x418   :  { %11579 = vmatmul.mubr.msk.f32.gmra.mrb[4].mxu0 %vm4207_vm2, %v21537_v46 }
 0x419   :  { %11581 = vmatprep.mubr.msk.f32.mxu0 %vm4207_vm2, %v21538_v59 }
 0x41c   :  { %11582 = vmatmul.mubr.msk.f32.gmra.mrb[6].mxu0 %vm4207_vm2, %v21539_v52 }
 0x41d   :  { %11584 = vmatprep.mubr.msk.f32.mxu0 %vm4207_vm2, %v21540_v58 }
 0x420   :  { %11585 = vmatmul.mubr.msk.f32.gmra.mrb[8].mxu0 %vm4207_vm2, %v21541_v56 }
 0x421   :  { %11587 = vmatprep.mubr.msk.f32.mxu0 %vm4207_vm2, %v21542_v28 }
 0x424   :  { %11588 = vmatmul.mubr.msk.f32.gmra.mrb[10].mxu0 %vm4207_vm2, %v21543_v30 }
 0x425   :  { %11590 = vmatprep.mubr.msk.f32.mxu0 %vm4207_vm2, %v21544_v21 }
 0x428   :  { %11591 = vmatmul.mubr.msk.f32.gmra.mrb[12].mxu0 %vm4207_vm2, %v21545_v17 }
 0x429   :  { %11593 = vmatprep.mubr.msk.f32.mxu0 %vm4207_vm2, %v7255_v19 }
 0x42c   :  { %11594 = vmatmul.mubr.msk.f32.gmra.mrb[14].mxu0 %vm4207_vm2, %v7272_v14  ;;  %vm7936_vm2 = vcmask 261120  }
 0x42d   :  { %11604 = vmatprep.mubr.msk.f32.mxu1 %vm7936_vm2, %v21407_v15 }
 0x454   :  { %v11369_v5 = vpop.f32.mrb[2].mxu1 }
 0x455   :  { %v4318_v20 = vpop.f32.mrb[3].mxu1 }
 0x470   :  { %v11372_v9 = vpop.f32.mrb[4].mxu1 }
 0x471   :  { %v4328_v44 = vpop.f32.mrb[5].mxu1 }
 0x485   :  { %v11375_v4 = vpop.f32.mrb[6].mxu1 }
 0x486   :  { %v4338_v45 = vpop.f32.mrb[7].mxu1 }
 0x499   :  { %v20352_v29 = vpop.f32.mrb[8].mxu1 }
 0x49a   :  { %v20354_v1 = vpop.f32.mrb[9].mxu1 }
 0x4b2   :  { %v20373_v47 = vpop.f32.mrb[10].mxu1 }
 0x4b3   :  { %v20375_v2 = vpop.f32.mrb[11].mxu1 }
 0x4c7   :  { %v20377_v35 = vpop.f32.mrb[12].mxu1 }
 0x4c8   :  { %v20379_v26 = vpop.f32.mrb[13].mxu1 }
 0x4cc   :  { %v20381_v27 = vpop.f32.mrb[14].mxu1 }
 0x4cd   :  { %v20383_v62 = vpop.f32.mrb[15].mxu1 }
 0x4e3   :  { %v11574_v13 = vpop.f32.mrb[0].mxu0 }
 0x4e4   :  { %v12100_v40 = vadd.f32 %v11574_v13, %v20021_v22  ;;  %v7346_v11 = vpop.f32.mrb[1].mxu0 }
 0x4e5   :  { %v12101_v42 = vadd.f32 %v7346_v11, %v20034_v36 }
 0x4e6   :  { %v20393_v37 = vadd.f32 %v12100_v40, %v20388_v34 }
 0x4e7   :  { %v20396_v8 = vadd.f32 %v12101_v42, %v20388_v34  ;;  %v11577_v7 = vpop.f32.mrb[2].mxu0 }
 0x4e8   :  { %v7480_v6 = vmin.f32 %v20393_v37, 0.0  ;;  %v12102_v53 = vadd.f32 %v11577_v7, %v11369_v5  ;;  %v7356_v39 = vpop.f32.mrb[3].mxu0  ;;  %v7849_v5 = vld [vmem:[%s21261_s2 + $0x10] sm:$0xff]  ;;  %vm7464_vm6 = vcmp.gt.f32.partialorder %v20393_v37, 0.0 }
 0x4e9   :  { %v7479_v32 = vmin.f32 %v20396_v8, 0.0  ;;  %v12103_v24 = vadd.f32 %v7356_v39, %v4318_v20  ;;  %v7850_v20 = vld [vmem:[%s21261_s2 + $0x18] sm:$0xff]  ;;  %vm7463_vm7 = vcmp.gt.f32.partialorder %v20396_v8, 0.0 }
 0x4ea   :  { %v7497_v12 = vmul.f32 1.442695, %v7480_v6  ;;  %v20401_v22 = vadd.f32 %v12102_v53, %v20388_v34  ;;  %v20453_v40 = vpack.c.bf16 %v7850_v20, %v7849_v5 }
 0x4eb   :  { %v7495_v46 = vmul.f32 1.442695, %v7479_v32  ;;  %v20404_v36 = vadd.f32 %v12103_v24, %v20388_v34  ;;  %v11580_v59 = vpop.f32.mrb[4].mxu0 }
 0x4ec   :  { %13295 = vpow2.f32 %v7497_v12  ;;  %v7482_v43 = vmin.f32 %v20401_v22, 0.0  ;;  %v12104_v52 = vadd.f32 %v11580_v59, %v11372_v9  ;;  %v7366_v58 = vpop.f32.mrb[5].mxu0  ;;  %vm7466_vm8 = vcmp.gt.f32.partialorder %v20401_v22, 0.0 }
 0x4ed   :  { %13297 = vpow2.f32 %v7495_v46  ;;  %v7481_v16 = vmin.f32 %v20404_v36, 0.0  ;;  %v12105_v41 = vadd.f32 %v7366_v58, %v4328_v44  ;;  %v20463_v46 = vpack.c.bf16 %v7860_v31, %v7859_v57 }
 0x4ee   :  { %v7501_v51 = vmul.f32 1.442695, %v7482_v43  ;;  %v20409_v56 = vadd.f32 %v12104_v52, %v20388_v34  ;;  %vm7465_vm9 = vcmp.gt.f32.partialorder %v20404_v36, 0.0 }
 0x4ef   :  { %v7499_v28 = vmul.f32 1.442695, %v7481_v16  ;;  %v20412_v48 = vadd.f32 %v12105_v41, %v20388_v34  ;;  %v11583_v54 = vpop.f32.mrb[6].mxu0 }
 0x4f0   :  { %13299 = vpow2.f32 %v7501_v51  ;;  %v7484_v18 = vmin.f32 %v20409_v56, 0.0  ;;  %v12106_v30 = vadd.f32 %v11583_v54, %v11375_v4  ;;  %v7376_v60 = vpop.f32.mrb[7].mxu0  ;;  %vm7468_vm10 = vcmp.gt.f32.partialorder %v20409_v56, 0.0 }
 0x4f1   :  { %13301 = vpow2.f32 %v7499_v28  ;;  %v7483_v21 = vmin.f32 %v20412_v48, 0.0  ;;  %v12107_v25 = vadd.f32 %v7376_v60, %v4338_v45  ;;  %v7855_v45 = vld [vmem:[%s21261_s2 + $0x40] sm:$0xff]  ;;  %vm7467_vm11 = vcmp.gt.f32.partialorder %v20412_v48, 0.0 }
 0x4f2   :  { %v7505_v61 = vmul.f32 1.442695, %v7484_v18  ;;  %v20417_v19 = vadd.f32 %v12106_v30, %v20388_v34  ;;  %v20458_v53 = vpack.c.bf16 %v7856_v50, %v7855_v45 }
 0x4f3   :  { %v7503_v17 = vmul.f32 1.442695, %v7483_v21  ;;  %v20420_v23 = vadd.f32 %v12107_v25, %v20388_v34  ;;  %v11586_v14 = vpop.f32.mrb[8].mxu0 }
 0x4f4   :  { %13303 = vpow2.f32 %v7505_v61  ;;  %v7486_v9 = vmin.f32 %v20417_v19, 0.0  ;;  %v12108_v44 = vadd.f32 %v11586_v14, %v20352_v29  ;;  %v7386_v4 = vpop.f32.mrb[9].mxu0  ;;  %v7858_v29 = vld [vmem:[%s21261_s2 + $0x58] sm:$0xff]  ;;  %vm7470_vm12 = vcmp.gt.f32.partialorder %v20417_v19, 0.0 }
 0x4f5   :  { %13305 = vpow2.f32 %v7503_v17  ;;  %v7485_v55 = vmin.f32 %v20420_v23, 0.0  ;;  %v12109_v49 = vadd.f32 %v7386_v4, %v20354_v1  ;;  %v20461_v12 = vpack.c.bf16 %v7858_v29, %v7857_v0 }
 0x4f6   :  { %v13296_v3 = vpop.eup %13295  ;;  %v7509_v63 = vmul.f32 1.442695, %v7486_v9  ;;  %v20451_v13 = vadd.f32 %v12108_v44, %v20388_v34  ;;  %vm7469_vm13 = vcmp.gt.f32.partialorder %v20420_v23, 0.0 }
 0x4f7   :  { %v13298_v1 = vpop.eup %13297  ;;  %v10943_v11 = vadd.f32 -1.0, %v13296_v3  ;;  %v7507_v42 = vmul.f32 1.442695, %v7485_v55  ;;  %v20456_v7 = vadd.f32 %v12109_v49, %v20388_v34  ;;  %v11589_v6 = vpop.f32.mrb[10].mxu0 }
 0x4f8   :  { %v10942_v39 = vadd.f32 -1.0, %v13298_v1  ;;  %v7488_v32 = vmin.f32 %v20451_v13, 0.0  ;;  %v7396_v24 = vpop.f32.mrb[11].mxu0  ;;  %13307 = vpow2.f32 %v7509_v63  ;;  %v12110_v30 = vadd.f32 %v11589_v6, %v20373_v47 }
 0x4f9   :  { %v7487_v59 = vmin.f32 %v20456_v7, 0.0  ;;  %v7544_v52 = vsel %vm7464_vm6, %v20393_v37, %v10943_v11  ;;  %13309 = vpow2.f32 %v7507_v42  ;;  %v12111_v44 = vadd.f32 %v7396_v24, %v20375_v2 }
 0x4fa   :  { %v13300_v43 = vpop.eup %13299  ;;  %v7543_v58 = vsel %vm7463_vm7, %v20396_v8, %v10942_v39  ;;  %v7513_v16 = vmul.f32 1.442695, %v7488_v32  ;;  %v7592_v8 = vcombine.high %v7544_v52, %v7544_v52  ;;  %v20481_v61 = vrot.slane %v7544_v52, %v13863_v33 }
 0x4fb   :  { %v13302_v41 = vpop.eup %13301  ;;  %v10945_v51 = vadd.f32 -1.0, %v13300_v43  ;;  %v7511_v28 = vmul.f32 1.442695, %v7487_v59  ;;  %v20472_v54 = vpop.f32.mrb[12].mxu0  ;;  %v7575_v60 = vcombine.high %v7543_v58, %v7543_v58  ;;  %vm7472_vm14 = vcmp.gt.f32.partialorder %v20451_v13, 0.0 }
 0x4fc   :  { %v10944_v18 = vadd.f32 -1.0, %v13302_v41  ;;  %13311 = vpow2.f32 %v7513_v16  ;;  %v20476_v37 = vpop.f32.mrb[13].mxu0  ;;  %v20500_v55 = vrot.slane %v7592_v8, %v13863_v33  ;;  %v20525_v41 = vadd.f32 %v12110_v30, %v20388_v34 }
 0x4fd   :  { %v7546_v21 = vsel %vm7466_vm8, %v20401_v22, %v10945_v51  ;;  %13313 = vpow2.f32 %v7511_v28  ;;  %v20489_v22 = vrot.slane %v7543_v58, %v13863_v33  ;;  %v20503_v2 = vrot.slane %v7575_v60, %v13863_v33 }
 0x4fe   :  { %v13304_v25 = vpop.eup %13303  ;;  %v7626_v17 = vcombine.high %v7546_v21, %v7546_v21  ;;  %v7545_v14 = vsel %vm7465_vm9, %v20404_v36, %v10944_v18  ;;  %v20492_v45 = vrot.slane %v7546_v21, %v13863_v33  ;;  %vm7471_vm15 = vcmp.gt.f32.partialorder %v20456_v7, 0.0 }
 0x4ff   :  { %v13306_v5 = vpop.eup %13305  ;;  %v7609_v20 = vcombine.high %v7545_v14, %v7545_v14  ;;  %v7616_v47 = vrot.slane %v7545_v14, %v13863_v33  ;;  %v10947_v9 = vadd.f32 -1.0, %v13304_v25  ;;  %v20486_v4 = vpop.f32.mrb[14].mxu0  ;;  %v7590_v52 = vcombine.high %v20489_v22, %v20489_v22 }
 0x500   :  { %v7640_v50 = vrot.slane %v7626_v17, %v13863_v33  ;;  %v10946_v0 = vadd.f32 -1.0, %v13306_v5  ;;  %v20497_v36 = vpop.f32.mrb[15].mxu0  ;;  %vm7474_vm1 = vcmp.gt.f32.partialorder %v20525_v41, 0.0  ;;  %vm13676_vm7 = vmmov 0  }
 0x501   :  { %v7623_v49 = vrot.slane %v7609_v20, %v13863_v33  ;;  %v7548_v29 = vsel %vm7468_vm10, %v20409_v56, %v10947_v9  ;;  %v7624_v3 = vcombine.high %v7616_v47, %v7616_v47 }
 0x502   :  { %v7886_v57 = vcombine.low %v20492_v45, %v7640_v50  ;;  %v10971_v31 = vcombine.high %v20492_v45, %v7640_v50  ;;  %v7660_v63 = vcombine.high %v7548_v29, %v7548_v29  ;;  %v13308_v1 = vpop.eup %13307  ;;  %v7667_v39 = vrot.slane %v7548_v29, %v13863_v33 }
 0x503   :  { %v7885_v11 = vcombine.low %v7616_v47, %v7623_v49  ;;  %v10963_v42 = vcombine.high %v7623_v49, %v20492_v45  ;;  %v10970_v6 = vcombine.high %v7616_v47, %v7623_v49  ;;  %v13310_v32 = vpop.eup %13309  ;;  %v7547_v43 = vsel %vm7467_vm11, %v20412_v48, %v10946_v0 }
 0x504   :  { %v7900_v24 = vrot.slane %v7886_v57, %v13863_v33  ;;  %v8187_v59 = vrot.slane %v10971_v31, %v13863_v33  ;;  %v7674_v56 = vrot.slane %v7660_v63, %v13863_v33  ;;  %v7643_v8 = vcombine.high %v7547_v43, %v7547_v43 }
 0x505   :  { %v7893_v58 = vrot.slane %v7885_v11, %v13863_v33  ;;  %v8180_v16 = vrot.slane %v10970_v6, %v13863_v33  ;;  %v7650_v60 = vrot.slane %v7547_v43, %v13863_v33  ;;  %v10949_v25 = vadd.f32 -1.0, %v13308_v1 }
 0x506   :  { %v13312_v51 = vpop.eup %13311  ;;  %v8501_v28 = vcombine.low %v7667_v39, %v7674_v56  ;;  %v10995_v18 = vcombine.high %v7667_v39, %v7674_v56  ;;  %v10948_v17 = vadd.f32 -1.0, %v13310_v32  ;;  %v20534_v5 = vcombine.low %v21531_v10, %v7624_v3 }
 0x507   :  { %v20529_v48 = vcombine.low %v7893_v58, %v7900_v24  ;;  %v20531_v21 = vcombine.low %v8180_v16, %v8187_v59  ;;  %v13314_v14 = vpop.eup %13313  ;;  %v7657_v20 = vrot.slane %v7643_v8, %v13863_v33  ;;  %v7658_v47 = vcombine.high %v7650_v60, %v7650_v60 }
 0x508   :  { %v20537_v30 = vrot.slane %v8501_v28, %v13863_v33  ;;  %v20541_v9 = vrot.slane %v10995_v18, %v13863_v33  ;;  %v7550_v45 = vsel %vm7470_vm12, %v20417_v19, %v10949_v25  ;;  %v7549_v50 = vsel %vm7469_vm13, %v20420_v23, %v10948_v17 }
 0x509   :  { %v10951_v0 = vadd.f32 -1.0, %v13312_v51  ;;  %11605 = vmatmul.mubr.msk.f32.vlgmr.msra.gmra.mrb[16].mxu1 %vm7936_vm2, %v20529_v48  ;;  %v20552_v49 = vcombine.low %v21531_v10, %v7658_v47  ;;  %v10981_v29 = vcombine.high %v7657_v20, %v7667_v39  ;;  %v8500_v57 = vcombine.low %v7650_v60, %v7657_v20 }
 0x50a   :  { %v10994_v31 = vcombine.high %v7650_v60, %v7657_v20  ;;  %11931 = vmatpush3.bf16.msra.mxu1 %v20370_v38  ;;  %v7677_v3 = vcombine.high %v7549_v50, %v7549_v50  ;;  %v10950_v63 = vadd.f32 -1.0, %v13314_v14  ;;  %v7490_v19 = vmin.f32 %v20525_v41, 0.0 }
 0x50b   :  { %v20557_v1 = vadd.f32 %v12111_v44, %v20388_v34  ;;  %11933 = vmatprep.subr.bf16.mxu1 %v20453_v40  ;;  %v8038_v23 = vrot.slane %v20534_v5, %v13863_v33  ;;  %v20563_v11 = vrot.slane %v8500_v57, %v13863_v33  ;;  %v7694_v39 = vcombine.high %v7550_v45, %v7550_v45 }
 0x50c   :  { %v20566_v6 = vrot.slane %v10994_v31, %v13863_v33  ;;  %v8045_v38 = vrot.slane %v10963_v42, %v13863_v33  ;;  %v20570_v32 = vrot.slane %v7550_v45, %v13863_v33  ;;  %v7684_v44 = vrot.slane %v7549_v50, %v13863_v33 }
 0x50d   :  { %v7552_v24 = vsel %vm7472_vm14, %v20451_v13, %v10951_v0  ;;  %v8343_v59 = vrot.slane %v20552_v49, %v13863_v33  ;;  %v20579_v56 = vrot.slane %v10981_v29, %v13863_v33  ;;  %v8516_v43 = vcombine.low %v20563_v11, %v20537_v30  ;;  %v7875_v11 = vld [vmem:[%s21261_s2 + $0xe0] sm:$0xff] }
 0x50e   :  { %v8681_v42 = vcombine.low %v20566_v6, %v20541_v9  ;;  %11935 = vmatpush3.bf16.msra.mxu1 %v20453_v40  ;;  %v7691_v58 = vrot.slane %v7677_v3, %v13863_v33  ;;  %v7551_v13 = vsel %vm7471_vm15, %v20456_v7, %v10950_v63  ;;  %v7517_v16 = vmul.f32 1.442695, %v7490_v19  ;;  %v7879_v6 = vld [vmem:[%s21261_s2 + $0x100] sm:$0xff] }
 0x50f   :  { %v7489_v51 = vmin.f32 %v20557_v1, 0.0  ;;  %11937 = vmatprep.subr.bf16.mxu1 %v20458_v53  ;;  %v7708_v28 = vrot.slane %v7694_v39, %v13863_v33  ;;  %v7728_v18 = vcombine.high %v7552_v24, %v7552_v24  ;;  %v7711_v8 = vcombine.high %v7551_v13, %v7551_v13 }
 0x510   :  { %v12112_v60 = vadd.f32 %v20472_v54, %v20377_v35  ;;  %13315 = vpow2.f32 %v7517_v16  ;;  %v12113_v25 = vadd.f32 %v20476_v37, %v20379_v26  ;;  %v12114_v7 = vadd.f32 %v20486_v4, %v20381_v27 }
 0x511   :  { %v7515_v40 = vmul.f32 1.442695, %v7489_v51  ;;  %v7692_v17 = vcombine.high %v7684_v44, %v7684_v44  ;;  %v20600_v14 = vrot.slane %v7551_v13, %v13863_v33  ;;  %v12115_v20 = vadd.f32 %v20497_v36, %v20383_v62 }
 0x512   :  { %v20603_v5 = vadd.f32 %v12112_v60, %v20388_v34  ;;  %v20608_v35 = vadd.f32 %v12113_v25, %v20388_v34  ;;  %v20611_v54 = vadd.f32 %v12114_v7, %v20388_v34  ;;  %v7902_v26 = vcombine.low %v7684_v44, %v7691_v58 }
 0x513   :  { %13317 = vpow2.f32 %v7515_v40  ;;  %v20614_v27 = vrot.slane %v7552_v24, %v13863_v33  ;;  %v20618_v4 = vadd.f32 %v12115_v20, %v20388_v34  ;;  %v7903_v47 = vcombine.low %v20570_v32, %v7708_v28 }
 0x514   :  { %v7492_v37 = vmin.f32 %v20603_v5, 0.0  ;;  %v20622_v62 = vrot.slane %v7728_v18, %v13863_v33  ;;  %v20625_v36 = vrot.slane %v7711_v8, %v13863_v33  ;;  %v7491_v45 = vmin.f32 %v20608_v35, 0.0 }
 0x515   :  { %v7494_v50 = vmin.f32 %v20611_v54, 0.0  ;;  %v7726_v0 = vcombine.high %v20600_v14, %v20600_v14  ;;  %v7493_v34 = vmin.f32 %v20618_v4, 0.0  ;;  %v7910_v57 = vrot.slane %v7902_v26, %v13863_v33 }
 0x516   :  { %v7521_v29 = vmul.f32 1.442695, %v7492_v37  ;;  %vm7473_vm3 = vcmp.gt.f32.partialorder %v20557_v1, 0.0  ;;  %v7519_v31 = vmul.f32 1.442695, %v7491_v45  ;;  %v7917_v63 = vrot.slane %v7903_v47, %v13863_v33 }
 0x517   :  { %v7525_v3 = vmul.f32 1.442695, %v7494_v50  ;;  %v20636_v19 = vcombine.low %v8038_v23, %v8045_v38  ;;  %v7523_v39 = vmul.f32 1.442695, %v7493_v34  ;;  %v8047_v24 = vcombine.low %v21531_v10, %v7692_v17 }
 0x518   :  { %13319 = vpow2.f32 %v7521_v29  ;;  %v10964_v13 = vcombine.high %v7691_v58, %v20570_v32  ;;  %v20640_v16 = vcombine.low %v7910_v57, %v7917_v63  ;;  %v10972_v51 = vcombine.high %v7684_v44, %v7691_v58 }
 0x519   :  { %13321 = vpow2.f32 %v7519_v31  ;;  %v10973_v18 = vcombine.high %v20570_v32, %v7708_v28  ;;  %v8055_v8 = vrot.slane %v8047_v24, %v13863_v33  ;;  %v8318_v23 = vcombine.low %v21531_v10, %v7590_v52 }
 0x51a   :  { %13323 = vpow2.f32 %v7525_v3  ;;  %v8062_v60 = vrot.slane %v10964_v13, %v13863_v33  ;;  %v13316_v38 = vpop.eup %13315  ;;  %11607 = vmatprep.mubr.msk.f32.mxu1 %vm7936_vm2, %v20640_v16  ;;  %v8197_v40 = vrot.slane %v10972_v51, %v13863_v33  ;;  %v10980_v32 = vcombine.high %v20503_v2, %v20481_v61 }
 0x51b   :  { %13325 = vpow2.f32 %v7523_v39  ;;  %v8204_v44 = vrot.slane %v10973_v18, %v13863_v33  ;;  %v10953_v58 = vadd.f32 -1.0, %v13316_v38  ;;  %vm7476_vm0 = vcmp.gt.f32.partialorder %v20603_v5, 0.0 }
 0x51c   :  { %v20656_v28 = vcombine.low %v8055_v8, %v8062_v60  ;;  %v8326_v25 = vrot.slane %v8318_v23, %v13863_v33  ;;  %v20663_v52 = vcombine.low %v8343_v59, %v20579_v56  ;;  %vm7475_vm4 = vcmp.gt.f32.partialorder %v20608_v35, 0.0 }
 0x51d   :  { %v13318_v7 = vpop.eup %13317  ;;  %v20666_v17 = vcombine.low %v8197_v40, %v8204_v44  ;;  %v8333_v20 = vrot.slane %v10980_v32, %v13863_v33  ;;  %v8352_v26 = vcombine.low %v21531_v10, %v7726_v0  ;;  %v10982_v37 = vcombine.high %v20625_v36, %v20614_v27 }
 0x51e   :  { %v7554_v47 = vsel %vm7474_vm1, %v20525_v41, %v10953_v58  ;;  %v10952_v45 = vadd.f32 -1.0, %v13318_v7  ;;  %vm7478_vm5 = vcmp.gt.f32.partialorder %v20611_v54, 0.0  ;;  %v8483_v49 = vcombine.low %v20489_v22, %v20503_v2 }
 0x51f   :  { %v8484_v59 = vcombine.low %v20481_v61, %v20500_v55  ;;  %v7762_v56 = vcombine.high %v7554_v47, %v7554_v47  ;;  %v7769_v50 = vrot.slane %v7554_v47, %v13863_v33  ;;  %vm7477_vm6 = vcmp.gt.f32.partialorder %v20618_v4, 0.0 }
 0x520   :  { %v20682_v0 = vcombine.low %v8326_v25, %v8333_v20  ;;  %v8360_v29 = vrot.slane %v8352_v26, %v13863_v33  ;;  %v7553_v41 = vsel %vm7473_vm3, %v20557_v1, %v10952_v45  ;;  %v8367_v34 = vrot.slane %v10982_v37, %v13863_v33 }
 0x521   :  { %v20690_v57 = vrot.slane %v8483_v49, %v13863_v33  ;;  %v20693_v31 = vrot.slane %v8484_v59, %v13863_v33  ;;  %v7776_v3 = vrot.slane %v7762_v56, %v13863_v33  ;;  %v7745_v63 = vcombine.high %v7553_v41, %v7553_v41 }
 0x522   :  { %v7752_v39 = vrot.slane %v7553_v41, %v13863_v33  ;;  %v8517_v24 = vcombine.low %v20600_v14, %v20625_v36  ;;  %v13320_v13 = vpop.eup %13319  ;;  %v20699_v51 = vcombine.low %v8360_v29, %v8367_v34  ;;  %v8518_v18 = vcombine.low %v20614_v27, %v20622_v62 }
 0x523   :  { %v8499_v1 = vcombine.low %v20690_v57, %v20693_v31  ;;  %v10992_v8 = vcombine.high %v20489_v22, %v20503_v2  ;;  %v13322_v60 = vpop.eup %13321  ;;  %v7759_v23 = vrot.slane %v7745_v63, %v13863_v33  ;;  %v10955_v40 = vadd.f32 -1.0, %v13320_v13  ;;  %v7873_v31 = vld [vmem:[%s21261_s2 + $0xd0] sm:$0xff] }
 0x524   :  { %v7760_v38 = vcombine.high %v7752_v39, %v7752_v39  ;;  %v7920_v44 = vcombine.low %v7769_v50, %v7776_v3  ;;  %v13324_v32 = vpop.eup %13323  ;;  %v10954_v58 = vadd.f32 -1.0, %v13322_v60  ;;  %v10975_v25 = vcombine.high %v7769_v50, %v7776_v3 }
 0x525   :  { %v20709_v7 = vrot.slane %v8517_v24, %v13863_v33  ;;  %v20712_v20 = vrot.slane %v8518_v18, %v13863_v33  ;;  %v13326_v26 = vpop.eup %13325  ;;  %v7556_v22 = vsel %vm7476_vm0, %v20603_v5, %v10955_v40  ;;  %v10957_v2 = vadd.f32 -1.0, %v13324_v32 }
 0x526   :  { %v7919_v37 = vcombine.low %v7752_v39, %v7759_v23  ;;  %v7934_v47 = vrot.slane %v7920_v44, %v13863_v33  ;;  %v7796_v45 = vcombine.high %v7556_v22, %v7556_v22  ;;  %v7803_v49 = vrot.slane %v7556_v22, %v13863_v33 }
 0x527   :  { %v7555_v59 = vsel %vm7475_vm4, %v20608_v35, %v10954_v58  ;;  %v10956_v56 = vadd.f32 -1.0, %v13326_v26  ;;  %v7558_v34 = vsel %vm7478_vm5, %v20611_v54, %v10957_v2  ;;  %v8064_v32 = vcombine.low %v21531_v10, %v7760_v38 }
 0x528   :  { %v7779_v29 = vcombine.high %v7555_v59, %v7555_v59  ;;  %v7786_v41 = vrot.slane %v7555_v59, %v13863_v33  ;;  %v7927_v5 = vrot.slane %v7919_v37, %v13863_v33  ;;  %v7810_v3 = vrot.slane %v7796_v45, %v13863_v33 }
 0x529   :  { %v7830_v63 = vcombine.high %v7558_v34, %v7558_v34  ;;  %v20729_v24 = vrot.slane %v7558_v34, %v13863_v33  ;;  %v7557_v35 = vsel %vm7477_vm6, %v20618_v4, %v10956_v56  ;;  %v10965_v58 = vcombine.high %v7759_v23, %v7769_v50 }
 0x52a   :  { %v7793_v13 = vrot.slane %v7779_v29, %v13863_v33  ;;  %v7794_v18 = vcombine.high %v7786_v41, %v7786_v41  ;;  %v7813_v60 = vcombine.high %v7557_v35, %v7557_v35  ;;  %v20736_v40 = vrot.slane %v7557_v35, %v13863_v33 }
 0x52b   :  { %v20739_v54 = vrot.slane %v7830_v63, %v13863_v33  ;;  %v20741_v44 = vcombine.low %v7927_v5, %v7934_v47  ;;  %v10974_v22 = vcombine.high %v7752_v39, %v7759_v23  ;;  %v8221_v2 = vrot.slane %v10975_v25, %v13863_v33 }
 0x52c   :  { %v7827_v26 = vrot.slane %v7813_v60, %v13863_v33  ;;  %v7828_v4 = vcombine.high %v20736_v40, %v20736_v40  ;;  %v8072_v37 = vrot.slane %v8064_v32, %v13863_v33  ;;  %v8079_v45 = vrot.slane %v10965_v58, %v13863_v33 }
 0x52d   :  { %11608 = vmatmul.mubr.msk.f32.gmra.mrb[18].mxu1 %vm7936_vm2, %v20741_v44  ;;  %v8369_v47 = vcombine.low %v21531_v10, %v7794_v18  ;;  %v10983_v59 = vcombine.high %v7793_v13, %v7803_v49  ;;  %v8214_v50 = vrot.slane %v10974_v22, %v13863_v33  ;;  %v8533_v39 = vcombine.low %v20709_v7, %v20712_v20  ;;  %v7877_v20 = vld [vmem:[%s21261_s2 + $0xf0] sm:$0xff] }
 0x52e   :  { %11618 = vmatprep.mubr.msk.f32.mxu1 %vm7936_vm2, %v21407_v15  ;;  %v8534_v23 = vcombine.low %v7786_v41, %v7793_v13  ;;  %v8535_v38 = vcombine.low %v7803_v49, %v7810_v3  ;;  %v20758_v25 = vcombine.low %v8072_v37, %v8079_v45  ;;  %v10993_v34 = vcombine.high %v20481_v61, %v20500_v55 }
 0x52f   :  { %v8377_v56 = vrot.slane %v8369_v47, %v13863_v33  ;;  %v8384_v29 = vrot.slane %v10983_v59, %v13863_v33  ;;  %v20764_v5 = vcombine.low %v8214_v50, %v8221_v2  ;;  %v20773_v18 = vrot.slane %v10992_v8, %v13863_v33 }
 0x530   :  { %v20767_v63 = vrot.slane %v8534_v23, %v13863_v33  ;;  %v20770_v35 = vrot.slane %v8535_v38, %v13863_v33  ;;  %v20778_v32 = vrot.slane %v10993_v34, %v13863_v33  ;;  %v10996_v61 = vcombine.high %v20600_v14, %v20625_v36  ;;  %v7862_v36 = vld [vmem:[%s21261_s2 + $0x78] sm:$0xff] }
 0x531   :  { %11619 = vmatmul.mubr.msk.f32.vlgmr.msra.gmra.mrb[16].mxu1 %vm7936_vm2, %v20636_v19  ;;  %v8385_v60 = vcombine.low %v8377_v56, %v8384_v29  ;;  %v10997_v55 = vcombine.high %v20614_v27, %v20622_v62  ;;  %v10998_v58 = vcombine.high %v7786_v41, %v7793_v13  ;;  %v10999_v22 = vcombine.high %v7803_v49, %v7810_v3  ;;  %v7861_v62 = vld [vmem:[%s21261_s2 + $0x70] sm:$0xff] }
 0x532   :  { %11939 = vmatpush3.bf16.msra.mxu1 %v20458_v53  ;;  %11621 = vmatprep.mubr.msk.f32.mxu1 %vm7936_vm2, %v20656_v28  ;;  %v8550_v8 = vcombine.low %v20767_v63, %v20770_v35  ;;  %v8664_v2 = vcombine.low %v20773_v18, %v20778_v32  ;;  %v20793_v14 = vrot.slane %v10996_v61, %v13863_v33  ;;  %v7882_v35 = vld [vmem:[%s21261_s2 + $0x118] sm:$0xff]  ;;  %v11019_v18 = vld [vmem:[%s21264_s5 + $0x1] ss:$0 sm:$0xff] }
 0x533   :  { %11941 = vmatprep.subr.bf16.mxu1 %v20461_v12  ;;  %v20796_v27 = vrot.slane %v10997_v55, %v13863_v33  ;;  %v8813_v53 = vcombine.low %v21531_v10, %v7828_v4  ;;  %v20806_v49 = vrot.slane %v10998_v58, %v13863_v33  ;;  %v20809_v41 = vrot.slane %v10999_v22, %v13863_v33  ;;  %v7865_v55 = vld [vmem:[%s21261_s2 + $0x90] sm:$0xff]  ;;  %v7866_v58 = vld [vmem:[%s21261_s2 + $0x98] sm:$0xff]  ;;  %v7867_v22 = vld [vmem:[%s21261_s2 + $0xa0] sm:$0xff] }
 0x534   :  { %v11004_v3 = vcombine.high %v7827_v26, %v20729_v24  ;;  %v8921_v13 = vcombine.low %v20736_v40, %v7827_v26  ;;  %v8922_v45 = vcombine.low %v20729_v24, %v20739_v54  ;;  %v11013_v47 = vcombine.high %v20736_v40, %v7827_v26  ;;  %v7864_v26 = vld [vmem:[%s21261_s2 + $0x88] sm:$0xff] }
 0x535   :  { %11622 = vmatmul.mubr.msk.f32.gmra.mrb[18].mxu1 %vm7936_vm2, %v20758_v25  ;;  %v8698_v4 = vcombine.low %v20793_v14, %v20796_v27  ;;  %v8821_v37 = vrot.slane %v8813_v53, %v13863_v33  ;;  %v8715_v59 = vcombine.low %v20806_v49, %v20809_v41  ;;  %v11948_v38 = vpack.c.bf16 %v7862_v36, %v7861_v62  ;;  %v7868_v53 = vld [vmem:[%s21261_s2 + $0xa8] sm:$0xff]  ;;  %v7870_v36 = vld [vmem:[%s21261_s2 + $0xb8] sm:$0xff] }
 0x536   :  { %11943 = vmatpush3.bf16.msra.mxu1 %v20461_v12  ;;  %11632 = vmatprep.mubr.msk.f32.mxu1 %vm7936_vm2, %v21407_v15  ;;  %v8828_v50 = vrot.slane %v11004_v3, %v13863_v33  ;;  %v20828_v23 = vrot.slane %v8921_v13, %v13863_v33  ;;  %v20832_v56 = vrot.slane %v8922_v45, %v13863_v33  ;;  %v7863_v15 = vld [vmem:[%s21261_s2 + $0x80] sm:$0xff]  ;;  %v7872_v3 = vld [vmem:[%s21261_s2 + $0xc8] sm:$0xff] }
 0x537   :  { %11945 = vmatprep.subr.bf16.mxu1 %v20463_v46  ;;  %v11014_v12 = vcombine.high %v20729_v24, %v20739_v54  ;;  %v20837_v40 = vrot.slane %v11013_v47, %v13863_v33  ;;  %v11952_v54 = vpack.c.bf16 %v7864_v26, %v7863_v15  ;;  %v11960_v62 = vpack.c.bf16 %v7868_v53, %v7867_v22  ;;  %v9244_v22 = vld [vmem:[%s21262_s3 + $0x8] sm:$0xff] }
 0x538   :  { %v20845_v29 = vcombine.low %v8821_v37, %v8828_v50  ;;  %v8937_v34 = vcombine.low %v20828_v23, %v20832_v56 }
 0x539   :  { %11633 = vmatmul.mubr.msk.f32.vlgmr.msra.gmra.mrb[16].mxu1 %vm7936_vm2, %v20531_v21  ;;  %v20852_v24 = vrot.slane %v11014_v12, %v13863_v33 }
 0x53a   :  { %11947 = vmatpush3.bf16.msra.mxu1 %v20463_v46  ;;  %11635 = vmatprep.mubr.msk.f32.mxu1 %vm7936_vm2, %v20666_v17  ;;  %v11956_v46 = vpack.c.bf16 %v7866_v58, %v7865_v55 }
 0x53b   :  { %11949 = vmatprep.subr.bf16.mxu1 %v11948_v38  ;;  %v9045_v61 = vcombine.low %v20837_v40, %v20852_v24 }
 0x53d   :  { %11636 = vmatmul.mubr.msk.f32.gmra.mrb[18].mxu1 %vm7936_vm2, %v20764_v5 }
 0x53e   :  { %11951 = vmatpush3.bf16.msra.mxu1 %v11948_v38  ;;  %11646 = vmatprep.mubr.msk.f32.mxu1 %vm7936_vm2, %v20682_v0  ;;  %v7869_v0 = vld [vmem:[%s21261_s2 + $0xb0] sm:$0xff] }
 0x53f   :  { %11953 = vmatprep.subr.bf16.mxu1 %v11952_v54 }
 0x541   :  { %11647 = vmatmul.mubr.msk.f32.vlgmr.msra.gmra.mrb[16].mxu1 %vm7936_vm2, %v20663_v52  ;;  %v11964_v52 = vpack.c.bf16 %v7870_v36, %v7869_v0  ;;  %v9245_v0 = vld [vmem:[%s21262_s3 + $0x10] sm:$0xff]  ;;  %v9246_v36 = vld [vmem:[%s21262_s3 + $0x18] sm:$0xff] }
 0x542   :  { %11955 = vmatpush3.bf16.msra.mxu1 %v11952_v54  ;;  %11649 = vmatprep.mubr.msk.f32.mxu1 %vm7936_vm2, %v20699_v51  ;;  %v7871_v51 = vld [vmem:[%s21261_s2 + $0xc0] sm:$0xff] }
 0x543   :  { %11957 = vmatprep.subr.bf16.mxu1 %v11956_v46  ;;  %v11968_v57 = vpack.c.bf16 %v7872_v3, %v7871_v51 }
 0x545   :  { %11650 = vmatmul.mubr.msk.f32.gmra.mrb[18].mxu1 %vm7936_vm2, %v8385_v60 }
 0x546   :  { %11959 = vmatpush3.bf16.msra.mxu1 %v11956_v46  ;;  %11660 = vmatprep.mubr.msk.f32.mxu1 %vm7936_vm2, %v8499_v1  ;;  %v7874_v1 = vld [vmem:[%s21261_s2 + $0xd8] sm:$0xff]  ;;  %v9243_v46 = vld [vmem:[%s21262_s3] sm:$0xff] }
 0x547   :  { %11961 = vmatprep.subr.bf16.mxu1 %v11960_v62  ;;  %v11972_v30 = vpack.c.bf16 %v7874_v1, %v7873_v31  ;;  %v11999_v1 = vpack.c.bf16 %v9244_v22, %v9243_v46  ;;  %v9256_v46 = vld [vmem:[%s21262_s3 + $0x68] sm:$0xff] }
 0x549   :  { %11661 = vmatmul.mubr.msk.f32.vlgmr.msra.gmra.mrb[16].mxu1 %vm7936_vm2, %v8516_v43  ;;  %v7876_v43 = vld [vmem:[%s21261_s2 + $0xe8] sm:$0xff] }
 0x54a   :  { %11963 = vmatpush3.bf16.msra.mxu1 %v11960_v62  ;;  %11663 = vmatprep.mubr.msk.f32.mxu1 %vm7936_vm2, %v8533_v39  ;;  %v11976_v7 = vpack.c.bf16 %v7876_v43, %v7875_v11  ;;  %v7878_v39 = vld [vmem:[%s21261_s2 + $0xf8] sm:$0xff]  ;;  %v12002_v43 = vpack.c.bf16 %v9246_v36, %v9245_v0 }
 0x54b   :  { %11965 = vmatprep.subr.bf16.mxu1 %v11964_v52  ;;  %v11980_v9 = vpack.c.bf16 %v7878_v39, %v7877_v20  ;;  %v9258_v0 = vld [vmem:[%s21262_s3 + $0x78] sm:$0xff] }
 0x54d   :  { %11664 = vmatmul.mubr.msk.f32.gmra.mrb[18].mxu1 %vm7936_vm2, %v8550_v8 }
 0x54e   :  { %11967 = vmatpush3.bf16.msra.mxu1 %v11964_v52  ;;  %11674 = vmatprep.mubr.msk.f32.mxu1 %vm7936_vm2, %v8664_v2 }
 0x54f   :  { %11969 = vmatprep.subr.bf16.mxu1 %v11968_v57 }
 0x551   :  { %11675 = vmatmul.mubr.msk.f32.vlgmr.msra.gmra.mrb[16].mxu1 %vm7936_vm2, %v8681_v42  ;;  %v7880_v42 = vld [vmem:[%s21261_s2 + $0x108] sm:$0xff] }
 0x552   :  { %11971 = vmatpush3.bf16.msra.mxu1 %v11968_v57  ;;  %11677 = vmatprep.mubr.msk.f32.mxu1 %vm7936_vm2, %v8698_v4  ;;  %v11984_v63 = vpack.c.bf16 %v7880_v42, %v7879_v6 }
 0x553   :  { %11973 = vmatprep.subr.bf16.mxu1 %v11972_v30 }
 0x555   :  { %11678 = vmatmul.mubr.msk.f32.gmra.mrb[18].mxu1 %vm7936_vm2, %v8715_v59 }
 0x556   :  { %11975 = vmatpush3.bf16.msra.mxu1 %v11972_v30  ;;  %11688 = vmatprep.mubr.msk.f32.mxu1 %vm7936_vm2, %v20636_v19  ;;  %v7881_v19 = vld [vmem:[%s21261_s2 + $0x110] sm:$0xff] }
 0x557   :  { %11977 = vmatprep.subr.bf16.mxu1 %v11976_v7 }
 0x559   :  { %11689 = vmatmul.mubr.msk.f32.vlgmr.msra.gmra.mrb[16].mxu1 %vm7936_vm2, %v20656_v28  ;;  %v11988_v28 = vpack.c.bf16 %v7882_v35, %v7881_v19  ;;  %v21546_v35 = vld [vmem:[#allocation11_spill] sm:$0xff] }
 0x55a   :  { %11979 = vmatpush3.bf16.msra.mxu1 %v11976_v7  ;;  %11691 = vmatprep.mubr.msk.f32.mxu1 %vm7936_vm2, %v20758_v25  ;;  %v9250_v25 = vld [vmem:[%s21262_s3 + $0x38] sm:$0xff] }
 0x55b   :  { %11981 = vmatprep.subr.bf16.mxu1 %v11980_v9 }
 0x55d   :  { %11692 = vmatmul.mubr.msk.f32.gmra.mrb[18].mxu1 %vm7936_vm2, %v20845_v29 }
 0x55e   :  { %11983 = vmatpush3.bf16.msra.mxu1 %v11980_v9  ;;  %11702 = vmatprep.mubr.msk.f32.mxu1 %vm7936_vm2, %v20529_v48  ;;  %v9247_v48 = vld [vmem:[%s21262_s3 + $0x20] sm:$0xff] }
 0x55f   :  { %11985 = vmatprep.subr.bf16.mxu1 %v11984_v63 }
 0x561   :  { %11703 = vmatmul.mubr.msk.f32.vlgmr.msra.gmra.mrb[16].mxu1 %vm7936_vm2, %v20640_v16  ;;  %v9248_v16 = vld [vmem:[%s21262_s3 + $0x28] sm:$0xff] }
 0x562   :  { %11987 = vmatpush3.bf16.msra.mxu1 %v11984_v63  ;;  %11705 = vmatprep.mubr.msk.f32.mxu1 %vm7936_vm2, %v20741_v44  ;;  %v11993_v44 = vpack.c.bf16 %v9248_v16, %v9247_v48 }
 0x563   :  { %11989 = vmatprep.subr.bf16.mxu1 %v11988_v28 }
 0x565   :  { %11706 = vmatmul.mubr.msk.f32.gmra.mrb[18].mxu1 %vm7936_vm2, %v8937_v34 }
 0x566   :  { %11991 = vmatpush3.bf16.msra.mxu1 %v11988_v28  ;;  %11716 = vmatprep.mubr.msk.f32.mxu1 %vm7936_vm2, %v20531_v21  ;;  %v9249_v21 = vld [vmem:[%s21262_s3 + $0x30] sm:$0xff] }
 0x569   :  { %11717 = vmatmul.mubr.msk.f32.vlgmr.msra.gmra.mrb[16].mxu1 %vm7936_vm2, %v20666_v17  ;;  %v13675_v17 = vmov 0.0|0.0  }
 0x56a   :  { %11719 = vmatprep.mubr.msk.f32.mxu1 %vm7936_vm2, %v20764_v5  ;;  %11992 = vmatprep.subr.bf16.mxu1 %v13675_v17  ;;  %v11996_v5 = vpack.c.bf16 %v9250_v25, %v9249_v21 }
 0x56b   :  { %11994 = vmatpush3.bf16.msra.mxu1 %v11993_v44 }
 0x56c   :  { %11995 = vmatprep.subr.bf16.mxu1 %v13675_v17 }
 0x56d   :  { %11720 = vmatmul.mubr.msk.f32.gmra.mrb[18].mxu1 %vm7936_vm2, %v9045_v61 }
 0x56e   :  { %11730 = vmatprep.mubr.msk.f32.mxu1 %vm13676_vm7, %v21531_v10 }
 0x56f   :  { %11997 = vmatpush3.bf16.msra.mxu1 %v11996_v5 }
 0x570   :  { %11998 = vmatprep.subr.bf16.mxu1 %v13675_v17 }
 0x63c   :  { %v11718_v60 = vpop.f32.mrb[16].mxu1 }
 0x63d   :  { %v9144_v32 = vadd.f32 %v11718_v60, %v11019_v18  ;;  %v9114_v8 = vpop.f32.mrb[17].mxu1 }
 0x63e   :  { %v9143_v2 = vadd.f32 %v11019_v18, %v9114_v8 }
 0x63f   :  { %v9152_v14 = vmin.f32 %v9144_v32, 0.0  ;;  %vm9148_vm8 = vcmp.gt.f32.partialorder %v9144_v32, 0.0 }
 0x640   :  { %v9151_v27 = vmin.f32 %v9143_v2, 0.0  ;;  %v11721_v49 = vpop.f32.mrb[18].mxu1  ;;  %vm9147_vm9 = vcmp.gt.f32.partialorder %v9143_v2, 0.0 }
 0x641   :  { %v9157_v41 = vmul.f32 1.442695, %v9152_v14  ;;  %v9146_v13 = vadd.f32 %v11721_v49, %v11019_v18  ;;  %v9124_v4 = vpop.f32.mrb[19].mxu1 }
 0x642   :  { %v9155_v37 = vmul.f32 1.442695, %v9151_v27  ;;  %v9145_v45 = vadd.f32 %v11019_v18, %v9124_v4  ;;  %v9252_v4 = vld [vmem:[%s21262_s3 + $0x48] sm:$0xff] }
 0x643   :  { %13327 = vpow2.f32 %v9157_v41  ;;  %v9154_v47 = vmin.f32 %v9146_v13, 0.0  ;;  %vm9150_vm10 = vcmp.gt.f32.partialorder %v9146_v13, 0.0 }
 0x644   :  { %13329 = vpow2.f32 %v9155_v37  ;;  %v9153_v59 = vmin.f32 %v9145_v45, 0.0  ;;  %vm9149_vm11 = vcmp.gt.f32.partialorder %v9145_v45, 0.0 }
 0x645   :  { %v9161_v50 = vmul.f32 1.442695, %v9154_v47 }
 0x646   :  { %v9159_v23 = vmul.f32 1.442695, %v9153_v59 }
 0x647   :  { %13331 = vpow2.f32 %v9161_v50 }
 0x648   :  { %13333 = vpow2.f32 %v9159_v23 }
 0x64d   :  { %v13328_v38 = vpop.eup %13327 }
 0x64e   :  { %v13330_v56 = vpop.eup %13329  ;;  %v11021_v12 = vadd.f32 -1.0, %v13328_v38 }
 0x64f   :  { %v11020_v40 = vadd.f32 -1.0, %v13330_v56 }
 0x650   :  { %v9168_v15 = vsel %vm9148_vm8, %v9144_v32, %v11021_v12 }
 0x651   :  { %v13332_v26 = vpop.eup %13331  ;;  %v9192_v29 = vcombine.high %v9168_v15, %v9168_v15  ;;  %v9199_v34 = vrot.slane %v9168_v15, %v13863_v33  ;;  %v9167_v24 = vsel %vm9147_vm9, %v9143_v2, %v11020_v40 }
 0x652   :  { %v13334_v54 = vpop.eup %13333  ;;  %v9175_v61 = vcombine.high %v9167_v24, %v9167_v24  ;;  %v9182_v55 = vrot.slane %v9167_v24, %v13863_v33  ;;  %v11023_v58 = vadd.f32 -1.0, %v13332_v26  ;;  %v9253_v24 = vld [vmem:[%s21262_s3 + $0x50] sm:$0xff] }
 0x653   :  { %v9206_v53 = vrot.slane %v9192_v29, %v13863_v33  ;;  %v11022_v62 = vadd.f32 -1.0, %v13334_v54  ;;  %v9207_v52 = vcombine.high %v9199_v34, %v9199_v34  ;;  %v9254_v54 = vld [vmem:[%s21262_s3 + $0x58] sm:$0xff] }
 0x654   :  { %v9190_v51 = vcombine.high %v9182_v55, %v9182_v55  ;;  %v9170_v3 = vsel %vm9150_vm10, %v9146_v13, %v11023_v58  ;;  %v9189_v30 = vrot.slane %v9175_v61, %v13863_v33  ;;  %v9251_v13 = vld [vmem:[%s21262_s3 + $0x40] sm:$0xff] }
 0x655   :  { %v9281_v57 = vcombine.low %v9199_v34, %v9206_v53  ;;  %v9226_v31 = vcombine.high %v9170_v3, %v9170_v3  ;;  %v9233_v11 = vrot.slane %v9170_v3, %v13863_v33  ;;  %v11027_v20 = vcombine.high %v9199_v34, %v9206_v53  ;;  %v9255_v58 = vld [vmem:[%s21262_s3 + $0x60] sm:$0xff] }
 0x656   :  { %v9169_v9 = vsel %vm9149_vm11, %v9145_v45, %v11022_v62  ;;  %v9362_v6 = vcombine.low %v21531_v10, %v9207_v52  ;;  %v9525_v42 = vcombine.low %v21531_v10, %v9190_v51  ;;  %v9615_v44 = vcombine.low %v9182_v55, %v9189_v30  ;;  %v9257_v62 = vld [vmem:[%s21262_s3 + $0x70] sm:$0xff]  ;;  %v9259_v52 = vld [vmem:[%s21262_s3 + $0x80] sm:$0xff]  ;;  %v9260_v51 = vld [vmem:[%s21262_s3 + $0x88] sm:$0xff] }
 0x657   :  { %v21020_v7 = vrot.slane %v9281_v57, %v13863_v33  ;;  %v9240_v39 = vrot.slane %v9226_v31, %v13863_v33  ;;  %v9241_v63 = vcombine.high %v9233_v11, %v9233_v11  ;;  %v9209_v19 = vcombine.high %v9169_v9, %v9169_v9  ;;  %v9261_v57 = vld [vmem:[%s21262_s3 + $0x90] sm:$0xff]  ;;  %v9262_v31 = vld [vmem:[%s21262_s3 + $0x98] sm:$0xff] }
 0x658   :  { %v9216_v21 = vrot.slane %v9169_v9, %v13863_v33  ;;  %v11031_v25 = vcombine.high %v9182_v55, %v9189_v30  ;;  %v21031_v60 = vrot.slane %v11027_v20, %v13863_v33  ;;  %v9369_v49 = vrot.slane %v9362_v6, %v13863_v33  ;;  %v9263_v30 = vld [vmem:[%s21262_s3 + $0xa0] sm:$0xff]  ;;  %v9265_v20 = vld [vmem:[%s21262_s3 + $0xb0] sm:$0xff] }
 0x659   :  { %v9289_v28 = vcombine.low %v21546_v35, %v21020_v7  ;;  %v9877_v48 = vcombine.low %v9233_v11, %v9240_v39  ;;  %v11036_v16 = vcombine.high %v9233_v11, %v9240_v39  ;;  %v9795_v5 = vcombine.low %v21531_v10, %v9241_v63  ;;  %v9264_v11 = vld [vmem:[%s21262_s3 + $0xa8] sm:$0xff]  ;;  %v9266_v39 = vld [vmem:[%s21262_s3 + $0xb8] sm:$0xff]  ;;  %v9267_v6 = vld [vmem:[%s21262_s3 + $0xc0] sm:$0xff] }
 0x65a   :  { %v9223_v18 = vrot.slane %v9209_v19, %v13863_v33  ;;  %v9224_v2 = vcombine.high %v9216_v21, %v9216_v21  ;;  %v9623_v59 = vrot.slane %v9615_v44, %v13863_v33  ;;  %v21058_v50 = vrot.slane %v11031_v25, %v13863_v33  ;;  %v9269_v19 = vld [vmem:[%s21262_s3 + $0xd0] sm:$0xff]  ;;  %v9274_v25 = vld [vmem:[%s21262_s3 + $0xf8] sm:$0xff] }
 0x65b   :  { %v21034_v32 = vrot.slane %v9877_v48, %v13863_v33  ;;  %v21037_v8 = vrot.slane %v11036_v16, %v13863_v33  ;;  %11731 = vmatmul.mubr.msk.f32.vlgmr.msra.gmra.mrb[20].mxu1 %vm7936_vm2, %v9289_v28  ;;  %v9802_v37 = vrot.slane %v9795_v5, %v13863_v33  ;;  %v9533_v56 = vrot.slane %v9525_v42, %v13863_v33  ;;  %v9268_v42 = vld [vmem:[%s21262_s3 + $0xc8] sm:$0xff]  ;;  %v9271_v48 = vld [vmem:[%s21262_s3 + $0xe0] sm:$0xff]  ;;  %v9273_v44 = vld [vmem:[%s21262_s3 + $0xf0] sm:$0xff] }
 0x65c   :  { %v9616_v14 = vcombine.low %v9216_v21, %v9223_v18  ;;  %v11032_v27 = vcombine.high %v9216_v21, %v9223_v18  ;;  %12000 = vmatpush3.bf16.msra.mxu1 %v11999_v1  ;;  %11741 = vmatprep.mubr.msk.f32.mxu1 %vm13676_vm7, %v21531_v10  ;;  %v9526_v41 = vcombine.low %v21531_v10, %v9224_v2  ;;  %v9272_v16 = vld [vmem:[%s21262_s3 + $0xe8] sm:$0xff]  ;;  %v9275_v18 = vld [vmem:[%s21262_s3 + $0x100] sm:$0xff] }
 0x65d   :  { %12001 = vmatprep.subr.bf16.mxu1 %v13675_v17  ;;  %v9885_v45 = vcombine.low %v21020_v7, %v21034_v32  ;;  %v9967_v47 = vcombine.low %v21031_v60, %v21037_v8  ;;  %v21066_v40 = vcombine.low %v9369_v49, %v9802_v37  ;;  %v12005_v15 = vpack.c.bf16 %v9252_v4, %v9251_v13  ;;  %v9276_v2 = vld [vmem:[%s21262_s3 + $0x108] sm:$0xff]  ;;  %v10078_v4 = vld [vmem:[#allocation5 + $0x30] sm:$0xff]  ;;  %v10079_v37 = vld [vmem:[#allocation5 + $0x38] sm:$0xff] }
 0x65e   :  { %v9630_v23 = vrot.slane %v9616_v14, %v13863_v33  ;;  %v21062_v38 = vrot.slane %v11032_v27, %v13863_v33  ;;  %v9540_v12 = vrot.slane %v9526_v41, %v13863_v33  ;;  %v9370_v34 = vcombine.low %v21546_v35, %v9369_v49  ;;  %v9277_v27 = vld [vmem:[%s21262_s3 + $0x110] sm:$0xff]  ;;  %v9278_v49 = vld [vmem:[%s21262_s3 + $0x118] sm:$0xff]  ;;  %v10076_v7 = vld [vmem:[#allocation5 + $0x20] sm:$0xff] }
 0x65f   :  { %v12008_v55 = vpack.c.bf16 %v9254_v54, %v9253_v24  ;;  %v12011_v22 = vpack.c.bf16 %v9256_v46, %v9255_v58  ;;  %v9451_v53 = vcombine.low %v21546_v35, %v21031_v60  ;;  %v12014_v36 = vpack.c.bf16 %v9258_v0, %v9257_v62  ;;  %v9270_v35 = vld [vmem:[%s21262_s3 + $0xd8] sm:$0xff]  ;;  %v10077_v32 = vld [vmem:[#allocation5 + $0x28] sm:$0xff]  ;;  %v10088_v58 = vld [vmem:[#allocation5 + $0x80] sm:$0xff] }
 0x660   :  { %12003 = vmatpush3.bf16.msra.mxu1 %v12002_v43  ;;  %v9631_v26 = vcombine.low %v9623_v59, %v9630_v23  ;;  %v9721_v29 = vcombine.low %v21058_v50, %v21062_v38  ;;  %v9541_v61 = vcombine.low %v9533_v56, %v9540_v12  ;;  %v12017_v3 = vpack.c.bf16 %v9260_v51, %v9259_v52  ;;  %v10073_v50 = vld [vmem:[#allocation5 + $0x8] sm:$0xff]  ;;  %v10074_v60 = vld [vmem:[#allocation5 + $0x10] sm:$0xff]  ;;  %v10075_v8 = vld [vmem:[#allocation5 + $0x18] sm:$0xff] }
 0x661   :  { %12004 = vmatprep.subr.bf16.mxu1 %v13675_v17  ;;  %v12020_v1 = vpack.c.bf16 %v9262_v31, %v9261_v57  ;;  %v12023_v43 = vpack.c.bf16 %v9264_v11, %v9263_v30  ;;  %v12026_v9 = vpack.c.bf16 %v9266_v39, %v9265_v20  ;;  %v12029_v63 = vpack.c.bf16 %v9268_v42, %v9267_v6  ;;  %v10081_v56 = vld [vmem:[#allocation5 + $0x48] sm:$0xff]  ;;  %v10086_v54 = vld [vmem:[#allocation5 + $0x70] sm:$0xff]  ;;  %v10091_v62 = vld [vmem:[#allocation5 + $0x98] sm:$0xff] }
 0x662   :  { %v12032_v28 = vpack.c.bf16 %v9270_v35, %v9269_v19  ;;  %v12035_v21 = vpack.c.bf16 %v9272_v16, %v9271_v48  ;;  %v12038_v5 = vpack.c.bf16 %v9274_v25, %v9273_v44  ;;  %v12041_v14 = vpack.c.bf16 %v9276_v2, %v9275_v18  ;;  %v10089_v46 = vld [vmem:[#allocation5 + $0x88] sm:$0xff]  ;;  %v11038_v25 = vld [vmem:[%s21264_s5 + $0x2] ss:$0 sm:$0xff] }
 0x663   :  { %11742 = vmatmul.mubr.msk.f32.vlgmr.msra.gmra.mrb[22].mxu1 %vm7936_vm2, %v9370_v34  ;;  %v12044_v41 = vpack.c.bf16 %v9278_v49, %v9277_v27  ;;  %v12047_v13 = vpack.c.bf16 %v10077_v32, %v10076_v7  ;;  %v12050_v59 = vpack.c.bf16 %v10079_v37, %v10078_v4  ;;  %v12056_v38 = vpack.c.bf16 %v10075_v8, %v10074_v60  ;;  %v10085_v34 = vld [vmem:[#allocation5 + $0x68] sm:$0xff]  ;;  %v10092_v7 = vld [vmem:[#allocation5 + $0xa0] sm:$0xff] }
 0x664   :  { %12006 = vmatpush3.bf16.msra.mxu1 %v12005_v15  ;;  %11752 = vmatprep.mubr.msk.f32.mxu1 %vm13676_vm7, %v21531_v10  ;;  %v10083_v15 = vld [vmem:[#allocation5 + $0x58] sm:$0xff]  ;;  %v10093_v32 = vld [vmem:[#allocation5 + $0xa8] sm:$0xff]  ;;  %v10096_v60 = vld [vmem:[#allocation5 + $0xc0] sm:$0xff] }
 0x665   :  { %12007 = vmatprep.subr.bf16.mxu1 %v13675_v17  ;;  %v12077_v37 = vpack.c.bf16 %v10093_v32, %v10092_v7  ;;  %v10097_v8 = vld [vmem:[#allocation5 + $0xc8] sm:$0xff] }
 0x668   :  { %12009 = vmatpush3.bf16.msra.mxu1 %v12008_v55 }
 0x669   :  { %12010 = vmatprep.subr.bf16.mxu1 %v13675_v17 }
 0x66b   :  { %11753 = vmatmul.mubr.msk.f32.vlgmr.msra.gmra.mrb[24].mxu1 %vm7936_vm2, %v9451_v53  ;;  %v12071_v53 = vpack.c.bf16 %v10089_v46, %v10088_v58  ;;  %v10105_v58 = vld [vmem:[#allocation5 + $0x108] sm:$0xff] }
 0x66c   :  { %12012 = vmatpush3.bf16.msra.mxu1 %v12011_v22  ;;  %11763 = vmatprep.mubr.msk.f32.mxu1 %vm13676_vm7, %v21531_v10  ;;  %v10090_v22 = vld [vmem:[#allocation5 + $0x90] sm:$0xff] }
 0x66d   :  { %12013 = vmatprep.subr.bf16.mxu1 %v13675_v17  ;;  %v12074_v0 = vpack.c.bf16 %v10091_v62, %v10090_v22  ;;  %v10107_v62 = vld [vmem:[#allocation5 + $0x118] sm:$0xff] }
 0x670   :  { %12015 = vmatpush3.bf16.msra.mxu1 %v12014_v36 }
 0x671   :  { %12016 = vmatprep.subr.bf16.mxu1 %v13675_v17 }
 0x673   :  { %11764 = vmatmul.mubr.msk.f32.vlgmr.msra.gmra.mrb[26].mxu1 %vm7936_vm2, %v9541_v61  ;;  %v10087_v61 = vld [vmem:[#allocation5 + $0x78] sm:$0xff] }
 0x674   :  { %12018 = vmatpush3.bf16.msra.mxu1 %v12017_v3  ;;  %11774 = vmatprep.mubr.msk.f32.mxu1 %vm13676_vm7, %v21531_v10  ;;  %v12068_v55 = vpack.c.bf16 %v10087_v61, %v10086_v54 }
 0x675   :  { %12019 = vmatprep.subr.bf16.mxu1 %v13675_v17 }
 0x678   :  { %12021 = vmatpush3.bf16.msra.mxu1 %v12020_v1 }
 0x679   :  { %12022 = vmatprep.subr.bf16.mxu1 %v13675_v17 }
 0x67b   :  { %11775 = vmatmul.mubr.msk.f32.vlgmr.msra.gmra.mrb[28].mxu1 %vm7936_vm2, %v9631_v26  ;;  %v10084_v26 = vld [vmem:[#allocation5 + $0x60] sm:$0xff] }
 0x67c   :  { %12024 = vmatpush3.bf16.msra.mxu1 %v12023_v43  ;;  %11785 = vmatprep.mubr.msk.f32.mxu1 %vm13676_vm7, %v21531_v10  ;;  %v12065_v24 = vpack.c.bf16 %v10085_v34, %v10084_v26  ;;  %v10101_v26 = vld [vmem:[#allocation5 + $0xe8] sm:$0xff]  ;;  %v10102_v34 = vld [vmem:[#allocation5 + $0xf0] sm:$0xff] }
 0x67d   :  { %12025 = vmatprep.subr.bf16.mxu1 %v13675_v17 }
 0x680   :  { %12027 = vmatpush3.bf16.msra.mxu1 %v12026_v9 }
 0x681   :  { %12028 = vmatprep.subr.bf16.mxu1 %v13675_v17 }
 0x683   :  { %11786 = vmatmul.mubr.msk.f32.vlgmr.msra.gmra.mrb[30].mxu1 %vm7936_vm2, %v9721_v29 }
 0x684   :  { %12030 = vmatpush3.bf16.msra.mxu1 %v12029_v63  ;;  %11796 = vmatprep.mubr.msk.f32.mxu1 %vm13676_vm7, %v21531_v10 }
 0x685   :  { %12031 = vmatprep.subr.bf16.mxu1 %v13675_v17 }
 0x688   :  { %12033 = vmatpush3.bf16.msra.mxu1 %v12032_v28 }
 0x689   :  { %12034 = vmatprep.subr.bf16.mxu1 %v13675_v17 }
 0x68b   :  { %11797 = vmatmul.mubr.msk.f32.vlgmr.msra.gmra.mrb[32].mxu1 %vm7936_vm2, %v21066_v40  ;;  %v10082_v40 = vld [vmem:[#allocation5 + $0x50] sm:$0xff] }
 0x68c   :  { %12036 = vmatpush3.bf16.msra.mxu1 %v12035_v21  ;;  %11807 = vmatprep.mubr.msk.f32.mxu1 %vm13676_vm7, %v21531_v10  ;;  %v12062_v29 = vpack.c.bf16 %v10083_v15, %v10082_v40  ;;  %v10100_v15 = vld [vmem:[#allocation5 + $0xe0] sm:$0xff] }
 0x68d   :  { %12037 = vmatprep.subr.bf16.mxu1 %v13675_v17 }
 0x690   :  { %12039 = vmatpush3.bf16.msra.mxu1 %v12038_v5 }
 0x691   :  { %12040 = vmatprep.subr.bf16.mxu1 %v13675_v17 }
 0x693   :  { %11808 = vmatmul.mubr.msk.f32.vlgmr.msra.gmra.mrb[34].mxu1 %vm7936_vm2, %v9885_v45  ;;  %v10072_v45 = vld [vmem:[#allocation5] sm:$0xff] }
 0x694   :  { %12042 = vmatpush3.bf16.msra.mxu1 %v12041_v14  ;;  %11818 = vmatprep.mubr.msk.f32.mxu1 %vm13676_vm7, %v21531_v10  ;;  %v12053_v23 = vpack.c.bf16 %v10073_v50, %v10072_v45  ;;  %v10095_v50 = vld [vmem:[#allocation5 + $0xb8] sm:$0xff] }
 0x695   :  { %12043 = vmatprep.subr.bf16.mxu1 %v13675_v17 }
 0x698   :  { %12045 = vmatpush3.bf16.msra.mxu1 %v12044_v41 }
 0x699   :  { %12046 = vmatprep.subr.bf16.mxu1 %v13675_v17 }
 0x69b   :  { %11819 = vmatmul.mubr.msk.f32.vlgmr.msra.gmra.mrb[36].mxu1 %vm7936_vm2, %v9967_v47  ;;  %v10080_v47 = vld [vmem:[#allocation5 + $0x40] sm:$0xff] }
 0x69c   :  { %11829 = vmatprep.mubr.msk.f32.mxu1 %vm13676_vm7, %v21531_v10  ;;  %12048 = vmatpush3.bf16.msra.mxu1 %v12047_v13  ;;  %v12059_v12 = vpack.c.bf16 %v10081_v56, %v10080_v47  ;;  %v12083_v47 = vpack.c.bf16 %v10097_v8, %v10096_v60  ;;  %v10098_v56 = vld [vmem:[#allocation5 + $0xd0] sm:$0xff] }
 0x69d   :  { %12049 = vmatprep.subr.bf16.mxu1 %v13675_v17 }
 0x6a0   :  { %12051 = vmatpush3.bf16.msra.mxu1 %v12050_v59  ;;  %v10094_v59 = vld [vmem:[#allocation5 + $0xb0] sm:$0xff] }
 0x6a1   :  { %12052 = vmatprep.subr.bf16.mxu1 %v13675_v17 }
 0x6a3   :  { %11830 = vmatmul.mubr.f32.vlgmr.msra.gmra.mrb[38].mxu1 %v21531_v10 }
 0x6a4   :  { %12054 = vmatpush3.bf16.msra.mxu1 %v12053_v23  ;;  %11840 = vmatprep.mubr.msk.f32.mxu1 %vm13676_vm7, %v21531_v10  ;;  %v12080_v23 = vpack.c.bf16 %v10095_v50, %v10094_v59 }
 0x6a5   :  { %12055 = vmatprep.subr.bf16.mxu1 %v13675_v17 }
 0x6a8   :  { %12057 = vmatpush3.bf16.msra.mxu1 %v12056_v38 }
 0x6a9   :  { %12058 = vmatprep.subr.bf16.mxu1 %v13675_v17 }
 0x6ab   :  { %11841 = vmatmul.mubr.f32.vlgmr.msra.gmra.mrb[40].mxu1 %v21531_v10 }
 0x6ac   :  { %12060 = vmatpush3.bf16.msra.mxu1 %v12059_v12  ;;  %11851 = vmatprep.mubr.msk.f32.mxu1 %vm13676_vm7, %v21531_v10  ;;  %v10099_v12 = vld [vmem:[#allocation5 + $0xd8] sm:$0xff] }
 0x6ad   :  { %12061 = vmatprep.subr.bf16.mxu1 %v13675_v17  ;;  %v12086_v40 = vpack.c.bf16 %v10099_v12, %v10098_v56 }
 0x6b0   :  { %12063 = vmatpush3.bf16.msra.mxu1 %v12062_v29  ;;  %v12089_v29 = vpack.c.bf16 %v10101_v26, %v10100_v15 }
 0x6b1   :  { %12064 = vmatprep.subr.bf16.mxu1 %v13675_v17 }
 0x6b3   :  { %11852 = vmatmul.mubr.f32.vlgmr.msra.gmra.mrb[42].mxu1 %v21531_v10 }
 0x6b4   :  { %12066 = vmatpush3.bf16.msra.mxu1 %v12065_v24  ;;  %11862 = vmatprep.mubr.msk.f32.mxu1 %vm13676_vm7, %v21531_v10  ;;  %v10103_v24 = vld [vmem:[#allocation5 + $0xf8] sm:$0xff] }
 0x6b5   :  { %12067 = vmatprep.subr.bf16.mxu1 %v13675_v17  ;;  %v12092_v54 = vpack.c.bf16 %v10103_v24, %v10102_v34 }
 0x6b8   :  { %12069 = vmatpush3.bf16.msra.mxu1 %v12068_v55  ;;  %v10104_v55 = vld [vmem:[#allocation5 + $0x100] sm:$0xff] }
 0x6b9   :  { %12070 = vmatprep.subr.bf16.mxu1 %v13675_v17  ;;  %v12095_v46 = vpack.c.bf16 %v10105_v58, %v10104_v55 }
 0x6bb   :  { %11863 = vmatmul.mubr.f32.vlgmr.msra.gmra.mrb[44].mxu1 %v21531_v10 }
 0x6bc   :  { %11873 = vmatprep.mubr.msk.f32.mxu1 %vm13676_vm7, %v21531_v10  ;;  %12072 = vmatpush3.bf16.msra.mxu1 %v12071_v53  ;;  %v10106_v53 = vld [vmem:[#allocation5 + $0x110] sm:$0xff] }
 0x6bd   :  { %12073 = vmatprep.subr.bf16.mxu1 %v13675_v17 }
 0x6c0   :  { %12075 = vmatpush3.bf16.msra.mxu1 %v12074_v0  ;;  %v12098_v0 = vpack.c.bf16 %v10107_v62, %v10106_v53 }
 0x6c1   :  { %12076 = vmatprep.subr.bf16.mxu1 %v13675_v17 }
 0x72e   :  { %v9358_v36 = vpop.f32.mrb[20].mxu1 }
 0x72f   :  { %v11732_v52 = vpop.f32.mrb[21].mxu1 }
 0x736   :  { %v9439_v51 = vpop.f32.mrb[22].mxu1 }
 0x737   :  { %v9440_v3 = vadd.f32 %v9439_v51, %v9358_v36  ;;  %v11743_v57 = vpop.f32.mrb[23].mxu1 }
 0x73e   :  { %v9520_v31 = vpop.f32.mrb[24].mxu1 }
 0x73f   :  { %v9524_v1 = vadd.f32 %v9520_v31, %v9440_v3  ;;  %v11754_v30 = vpop.f32.mrb[25].mxu1 }
 0x746   :  { %v9610_v11 = vpop.f32.mrb[26].mxu1 }
 0x747   :  { %v9614_v43 = vadd.f32 %v9610_v11, %v9524_v1  ;;  %v11765_v20 = vpop.f32.mrb[27].mxu1 }
 0x74e   :  { %v9700_v39 = vpop.f32.mrb[28].mxu1 }
 0x74f   :  { %v9704_v9 = vadd.f32 %v9700_v39, %v9614_v43  ;;  %v11776_v6 = vpop.f32.mrb[29].mxu1 }
 0x756   :  { %v9790_v42 = vpop.f32.mrb[30].mxu1 }
 0x757   :  { %v9794_v63 = vadd.f32 %v9790_v42, %v9704_v9  ;;  %v11787_v19 = vpop.f32.mrb[31].mxu1 }
 0x75e   :  { %v9872_v35 = vpop.f32.mrb[32].mxu1 }
 0x75f   :  { %v9876_v28 = vadd.f32 %v9872_v35, %v9794_v63  ;;  %v11798_v48 = vpop.f32.mrb[33].mxu1 }
 0x766   :  { %v9954_v16 = vpop.f32.mrb[34].mxu1 }
 0x767   :  { %v9958_v21 = vadd.f32 %v9954_v16, %v9876_v28  ;;  %v11809_v44 = vpop.f32.mrb[35].mxu1 }
 0x76e   :  { %v10036_v5 = vpop.f32.mrb[36].mxu1 }
 0x76f   :  { %v10040_v18 = vadd.f32 %v10036_v5, %v9958_v21  ;;  %v11820_v2 = vpop.f32.mrb[37].mxu1  ;;  %v11045_v21 = vld [vmem:[%s21264_s5 + $0x3] ss:$0 sm:$0xff] }
 0x771   :  { %v10047_v14 = vadd.f32 %v11038_v25, %v10040_v18 }
 0x773   :  { %v10049_v27 = vmin.f32 %v10047_v14, 0.0  ;;  %vm10048_vm12 = vcmp.gt.f32.partialorder %v10047_v14, 0.0 }
 0x775   :  { %v10050_v49 = vmul.f32 1.442695, %v10049_v27 }
 0x776   :  { %v10178_v52 = vpop.f32.mrb[38].mxu1 }
 0x777   :  { %13335 = vpow2.f32 %v10050_v49  ;;  %v11831_v51 = vpop.f32.mrb[39].mxu1 }
 0x781   :  { %v13336_v41 = vpop.eup %13335 }
 0x782   :  { %v11039_v13 = vadd.f32 -1.0, %v13336_v41 }
 0x784   :  { %v10053_v4 = vsel %vm10048_vm12, %v10047_v14, %v11039_v13 }
 0x785   :  { %v10062_v45 = vrot.slane %v10053_v4, %v13863_v33  ;;  %v10055_v61 = vcombine.high %v10053_v4, %v10053_v4 }
 0x787   :  { %11874 = vmatmul.mubr.msk.f32.vlgmr.msra.gmra.mrb[46].mxu1 %vm7936_vm2, %v10062_v45  ;;  %v10070_v38 = vcombine.high %v10062_v45, %v10062_v45  ;;  %v10069_v22 = vrot.slane %v10055_v61, %v13863_v33  ;;  %v10248_v33 = vpop.f32.mrb[40].mxu1 }
 0x788   :  { %12078 = vmatpush3.bf16.msra.mxu1 %v12077_v37  ;;  %11884 = vmatprep.mubr.msk.f32.mxu1 %vm13676_vm7, %v21531_v10  ;;  %v10249_v3 = vadd.f32 %v10248_v33, %v10178_v52  ;;  %v11842_v57 = vpop.f32.mrb[41].mxu1 }
 0x789   :  { %12079 = vmatprep.subr.bf16.mxu1 %v13675_v17  ;;  %v10071_v36 = vcombine.high %v10069_v22, %v10069_v22  ;;  %v10318_v31 = vpop.f32.mrb[42].mxu1 }
 0x78a   :  { %v10322_v1 = vadd.f32 %v10318_v31, %v10249_v3  ;;  %v11853_v30 = vpop.f32.mrb[43].mxu1 }
 0x78c   :  { %12081 = vmatpush3.bf16.msra.mxu1 %v12080_v23 }
 0x78d   :  { %12082 = vmatprep.subr.bf16.mxu1 %v13675_v17 }
 0x78e   :  { %v10389_v11 = vpop.f32.mrb[44].mxu1 }
 0x78f   :  { %11885 = vmatmul.mubr.msk.f32.vlgmr.msra.gmra.mrb[48].mxu1 %vm7936_vm2, %v10070_v38  ;;  %v10393_v43 = vadd.f32 %v10389_v11, %v10322_v1  ;;  %v11864_v20 = vpop.f32.mrb[45].mxu1 }
 0x790   :  { %12084 = vmatpush3.bf16.msra.mxu1 %v12083_v47  ;;  %11895 = vmatprep.mubr.msk.f32.mxu1 %vm13676_vm7, %v21531_v10 }
 0x791   :  { %12085 = vmatprep.subr.bf16.mxu1 %v13675_v17 }
 0x794   :  { %12087 = vmatpush3.bf16.msra.mxu1 %v12086_v40 }
 0x795   :  { %12088 = vmatprep.subr.bf16.mxu1 %v13675_v17 }
 0x797   :  { %11896 = vmatmul.mubr.f32.vlgmr.msra.gmra.mrb[50].mxu1 %v21531_v10 }
 0x798   :  { %12090 = vmatpush3.bf16.msra.mxu1 %v12089_v29  ;;  %11906 = vmatprep.mubr.msk.f32.mxu1 %vm13676_vm7, %v21531_v10 }
 0x799   :  { %12091 = vmatprep.subr.bf16.mxu1 %v13675_v17 }
 0x79c   :  { %12093 = vmatpush3.bf16.msra.mxu1 %v12092_v54 }
 0x79d   :  { %12094 = vmatprep.subr.bf16.mxu1 %v13675_v17 }
 0x79f   :  { %11907 = vmatmul.mubr.msk.f32.vlgmr.msra.gmra.mrb[52].mxu1 %vm7936_vm2, %v10069_v22 }
 0x7a0   :  { %12096 = vmatpush3.bf16.msra.mxu1 %v12095_v46  ;;  %11917 = vmatprep.mubr.msk.f32.mxu1 %vm13676_vm7, %v21531_v10 }
 0x7a1   :  { %12097 = vmatprep.subr.bf16.mxu1 %v13675_v17 }
 0x7a4   :  { %12099 = vmatpush3.bf16.msra.mxu1 %v12098_v0 }
 0x7a7   :  { %11918 = vmatmul.mubr.msk.f32.vlgmr.msra.gmra.mrb[54].mxu1 %vm7936_vm2, %v10071_v36  ;;  %vm10770_vm2 = vcmask 254976  }
 0x85a   :  { %v10462_v39 = vpop.f32.mrb[46].mxu1 }
 0x85b   :  { %v10466_v9 = vadd.f32 %v10462_v39, %v10393_v43  ;;  %v11875_v10 = vpop.f32.mrb[47].mxu1 }
 0x862   :  { %v10535_v6 = vpop.f32.mrb[48].mxu1 }
 0x863   :  { %v10539_v17 = vadd.f32 %v10535_v6, %v10466_v9  ;;  %v11886_v42 = vpop.f32.mrb[49].mxu1 }
 0x86a   :  { %v10606_v63 = vpop.f32.mrb[50].mxu1 }
 0x86b   :  { %v10610_v19 = vadd.f32 %v10606_v63, %v10539_v17  ;;  %v11897_v35 = vpop.f32.mrb[51].mxu1 }
 0x872   :  { %v10679_v28 = vpop.f32.mrb[52].mxu1 }
 0x873   :  { %v10683_v48 = vadd.f32 %v10679_v28, %v10610_v19  ;;  %v11908_v16 = vpop.f32.mrb[53].mxu1 }
 0x87a   :  { %v10752_v44 = vpop.f32.mrb[54].mxu1 }
 0x87b   :  { %v10756_v25 = vadd.f32 %v10752_v44, %v10683_v48  ;;  %v11919_v5 = vpop.f32.mrb[55].mxu1 }
 0x87d   :  { %v10763_v18 = vadd.f32 %v11045_v21, %v10756_v25 }
 0x87f   :  { %v10765_v2 = vmin.f32 %v10763_v18, 0.0  ;;  %vm10764_vm13 = vcmp.gt.f32.partialorder %v10763_v18, 0.0 }
 0x881   :  { %v10766_v14 = vmul.f32 1.442695, %v10765_v2 }
 0x883   :  { %13337 = vpow2.f32 %v10766_v14 }
 0x88d   :  { %v13338_v27 = vpop.eup %13337 }
 0x88e   :  { %v11046_v49 = vadd.f32 -1.0, %v13338_v27 }
 0x890   :  { %v10769_v41 = vsel %vm10764_vm13, %v10763_v18, %v11046_v49 }
 0x891   :  { %10771 = vst.msk [vmem:[#allocation7] sm:$0x3] %vm10770_vm2, %v10769_v41 }
 0x892   :  { %13650 = shalt.err (!%p13647_p6)
}
 0x893   :  { %s13651_s24 = scalar_lea.hbm %s21265_s6, 32 }
 0x894   :  { %p13652_p7 = scmp.ne.s32.totalorder %s21265_s6, %s13651_s24  ;;  %p13655_p8 = scmp.lt.u32.totalorder %s13651_s24, %s21265_s6 }
 0x896   :  { %p13657_p9 = pnand %p13655_p8, %p13652_p7 }
 0x898   :  { %13660 = shalt.err (!%p13657_p9)
}
 0x899   :  { %10781 = dma.vmem_to_hbm [thread:$0]  %s10779_s21, 32, %s21265_s6, [#allocation4]  }
 0x89a   :  { %13665 = dma.done.wait [#allocation4], 32  }
 0x89b   :  { %13666 = vsyncadd [#allocation4], 4294967264 }
 0x89c   :  { %10785 = vsyncpa [#allocation3], 1 }
 0x89d   :  { %10786 = vsyncpa [#allocation6], 1 }
 0x89e   :  { %10787 = vsyncpa [#allocation4], 1 }

</bundles_post_ra>
